<compile_context>
chip_gen: v6e
topology: v6e:2x2x1
jax: 0.10.0
libtpu: 0.0.40
codegen_flags: <defaults>
</compile_context>

<pallas_src>
import functools

import jax
import jax.numpy as jnp
import numpy as np
from jax.experimental import pallas as pl
from jax.experimental.pallas import tpu as pltpu

EPS = 1e-5
_HIGHEST = jax.lax.Precision.HIGHEST
_ACC_DOT_MIN_C = 128   # below this, one dense im2col dot feeds the MXU better


# ---------------------------------------------------------------------------
# In-kernel helpers
# ---------------------------------------------------------------------------
def _zero_halo(pref):
    """Zero only the 1-element halo ring of a (Hp, Wp, C) padded scratch.

    The interior is fully overwritten every grid step, so only the ring must
    be zero.  Re-zeroing the ring each step (it is tiny) keeps every core's
    private scratch valid even if the batch axis is split across TensorCores.
    """
    Hp, Wp, C = pref.shape
    dt = pref.dtype
    row = jnp.zeros((1, Wp, C), dt)
    col = jnp.zeros((Hp, 1, C), dt)
    pref[pl.ds(0, 1), :, :] = row
    pref[pl.ds(Hp - 1, 1), :, :] = row
    pref[:, pl.ds(0, 1), :] = col
    pref[:, pl.ds(Wp - 1, 1), :] = col


def _phase_planes(xpad, s):
    """Space-to-depth: split (Hp, Wp, C) into s*s phase planes (Hp//s, Wp//s, C).

    plane[(ph, pw)][i, j] == xpad[s*i + ph, s*j + pw].  Done once per conv so
    every stride-s tap becomes a plain static slice (no per-tap decimation).
    """
    if s == 1:
        return {(0, 0): xpad}
    Hp, Wp, C = xpad.shape
    rows = xpad.reshape(Hp // s, s, Wp, C)            # split major dim (free)
    planes = {}
    for ph in range(s):
        r = rows[:, ph].reshape(Hp // s, Wp // s, s, C)
        for pw in range(s):
            planes[(ph, pw)] = r[:, :, pw, :]
    return planes


def _conv3x3(xp_ref, w_ref, s, Ho, Wo, C, n_main, n_extra):
    """3x3 conv (stride s, zero halo already in the scratch) on the MXU.

    xp_ref: (s*Ho+2, s*Wo+2, C) f32 padded-input scratch.
    w_ref : (9*C, n_main+n_extra) bf16 weights.  The last n_extra columns are a
            fused 1x1 conv whose only nonzero rows are the center tap [4C, 5C).
    Returns (main, extra): (Ho*Wo, n_main) f32 and (Ho*Wo, n_extra) f32 | None.
    """
    if s == 1:
        def tap(dh, dw):
            return xp_ref[pl.ds(dh, Ho), pl.ds(dw, Wo), :]
    else:
        planes = _phase_planes(xp_ref[...], s)        # one-time space-to-depth
        def tap(dh, dw):
            p = planes[(dh % s, dw % s)]
            return p[dh // s:dh // s + Ho, dw // s:dw // s + Wo, :]

    taps = []
    for k in range(9):
        dh, dw = divmod(k, 3)
        taps.append(tap(dh, dw).reshape(Ho * Wo, C).astype(jnp.bfloat16))

    if C < _ACC_DOT_MIN_C:
        # Small contraction: one dense im2col dot (K = 9*C).  The temp is tiny
        # at these channel counts and the single dot keeps the MXU fed.
        out = jnp.dot(jnp.concatenate(taps, axis=1), w_ref[...],
                      preferred_element_type=jnp.float32)
        if n_extra:
            return out[:, :n_main], out[:, n_main:]
        return out, None

    # Large contraction: 9 accumulated dots -> no (Ho*Wo, 9*C) im2col temp and
    # no lane-axis concat relayouts.  f32 accumulator, bf16 MXU operands.
    main = jnp.zeros((Ho * Wo, n_main), jnp.float32)
    extra = None
    for k in range(9):
        if k == 4 and n_extra:
            both = jnp.dot(taps[k], w_ref[pl.ds(4 * C, C), :],
                           preferred_element_type=jnp.float32)
            main = main + both[:, :n_main]
            extra = both[:, n_main:]                  # fused 1x1 downsample
        else:
            main = main + jnp.dot(
                taps[k], w_ref[pl.ds(k * C, C), pl.ds(0, n_main)],
                preferred_element_type=jnp.float32)
    return main, extra


# ---------------------------------------------------------------------------
# Fused BasicBlock kernel
# ---------------------------------------------------------------------------
def _basic_block_kernel(x_ref, w1_ref, b1_ref, w2_ref, b2_ref, *rest,
                        H, W, Cin, Cout, stride, has_downsample):
    if has_downsample:
        bd_ref, o_ref, xp_ref, hp_ref = rest
    else:
        o_ref, xp_ref, hp_ref = rest

    s = stride
    Ho, Wo = H // s, W // s
    n_extra = Cout if has_downsample else 0

    x = x_ref[...]                                    # (H, W, Cin) f32

    # ---- conv1 (+ fused 1x1 downsample): pad into VMEM scratch ----
    _zero_halo(xp_ref)
    xp_ref[pl.ds(1, H), pl.ds(1, W), :] = x

    h_flat, res_flat = _conv3x3(xp_ref, w1_ref, s, Ho, Wo, Cin, Cout, n_extra)
    h = jnp.maximum(h_flat.reshape(Ho, Wo, Cout) + b1_ref[...], 0.0)

    if has_downsample:
        residual = res_flat.reshape(Ho, Wo, Cout) + bd_ref[...]
    else:
        assert s == 1 and Cin == Cout, "identity residual needs stride=1, Cin==Cout"
        residual = x                                  # exact f32 identity path

    # ---- conv2 (3x3, stride 1) ----
    _zero_halo(hp_ref)
    hp_ref[pl.ds(1, Ho), pl.ds(1, Wo), :] = h

    out_flat, _ = _conv3x3(hp_ref, w2_ref, 1, Ho, Wo, Cout, Cout, 0)
    out = out_flat.reshape(Ho, Wo, Cout) + b2_ref[...] + residual
    o_ref[...] = jnp.maximum(out, 0.0)


# ---------------------------------------------------------------------------
# Wrapper
# ---------------------------------------------------------------------------
def _fold_bn(bn):
    scale = bn["gamma"] / jnp.sqrt(bn["var"] + EPS)
    bias = bn["beta"] - bn["mean"] * scale
    return scale, bias


def basic_block_forward(x_nhwc, params, *, stride):
    """ResNet BasicBlock forward, fused into one Pallas kernel. x: (N,H,W,Cin)."""
    N, H, W, Cin = x_nhwc.shape
    Cout = params["w1"].shape[-1]
    assert H % stride == 0 and W % stride == 0, "H, W must be divisible by stride"
    Ho, Wo = H // stride, W // stride
    has_downsample = (stride != 1) or (Cin != Cout)

    # Fold BN into weights/biases (host side, free at trace time), fuse the 1x1
    # downsample as extra output columns at the center-tap rows, cast to bf16.
    s1, b1 = _fold_bn(params["bn1"])
    s2, b2 = _fold_bn(params["bn2"])
    w1 = params["w1"].reshape(9 * Cin, Cout) * s1[None, :]      # im2col layout
    w2 = params["w2"].reshape(9 * Cout, Cout) * s2[None, :]
    extra_inputs = []
    if has_downsample:
        sd, bd = _fold_bn(params["bn_d"])
        wd = params["wd"] * sd[None, :]                          # (Cin, Cout)
        ds_cols = jnp.zeros((9 * Cin, Cout), jnp.float32)
        ds_cols = ds_cols.at[4 * Cin:5 * Cin].set(wd)            # center tap
        w1 = jnp.concatenate([w1, ds_cols], axis=1)              # (9Cin, 2Cout)
        extra_inputs = [bd.reshape(1, Cout)]
    w1 = w1.astype(jnp.bfloat16)
    w2 = w2.astype(jnp.bfloat16)

    inputs = [x_nhwc, w1, b1.reshape(1, Cout), w2, b2.reshape(1, Cout)]
    inputs += extra_inputs

    kernel = functools.partial(
        _basic_block_kernel, H=H, W=W, Cin=Cin, Cout=Cout,
        stride=stride, has_downsample=has_downsample)

    def build(single_buffer_weights):
        def const_spec(shape):
            # Grid-invariant operands: never re-DMA'd, so a single buffer is
            # enough (saves one full copy of each weight matrix in VMEM).
            if single_buffer_weights:
                return pl.BlockSpec(shape, lambda n: (0,) * len(shape),
                                    pipeline_mode=pl.Buffered(1))
            return pl.BlockSpec(shape, lambda n: (0,) * len(shape))

        in_specs = [
            pl.BlockSpec((None, H, W, Cin), lambda n: (n, 0, 0, 0)),
            const_spec(w1.shape),
            const_spec((1, Cout)),
            const_spec(w2.shape),
            const_spec((1, Cout)),
        ]
        if has_downsample:
            in_specs.append(const_spec((1, Cout)))

        return pl.pallas_call(
            kernel,
            out_shape=jax.ShapeDtypeStruct((N, Ho, Wo, Cout), jnp.float32),
            grid=(N,),
            in_specs=in_specs,
            out_specs=pl.BlockSpec((None, Ho, Wo, Cout), lambda n: (n, 0, 0, 0)),
            scratch_shapes=[
                pltpu.VMEM((H + 2, W + 2, Cin), jnp.float32),      # conv1 pad
                pltpu.VMEM((Ho + 2, Wo + 2, Cout), jnp.float32),   # conv2 pad
            ],
            compiler_params=pltpu.CompilerParams(
                dimension_semantics=("parallel",),
                # 48 MiB leaves headroom inside v7x's 64 MiB per-core VMEM.
                vmem_limit_bytes=48 * 1024 * 1024))

    try:
        return build(single_buffer_weights=True)(*inputs)
    except Exception:
        # Some jax versions reject Buffered(1); fall back to the default
        # double buffer (costs VMEM headroom only, not correctness).
        return build(single_buffer_weights=False)(*inputs)


# ---------------------------------------------------------------------------
# Pure-JAX reference (for verification)
# ---------------------------------------------------------------------------
def _ref_forward(x, params, *, stride):
    def conv(x, w, s, pad):
        return jax.lax.conv_general_dilated(
            x, w, (s, s), [(pad, pad), (pad, pad)],
            dimension_numbers=("NHWC", "HWIO", "NHWC"), precision=_HIGHEST)

    def bn(y, p):
        return (y - p["mean"]) / jnp.sqrt(p["var"] + EPS) * p["gamma"] + p["beta"]

    in_planes = x.shape[-1]
    out_planes = params["w1"].shape[-1]
    if stride != 1 or in_planes != out_planes:
        wd = params["wd"].reshape(1, 1, in_planes, out_planes)
        residual = bn(conv(x, wd, stride, 0), params["bn_d"])
    else:
        residual = x
    h = jax.nn.relu(bn(conv(x, params["w1"], stride, 1), params["bn1"]))
    out = bn(conv(h, params["w2"], 1, 1), params["bn2"]) + residual
    return jax.nn.relu(out)


# ---------------------------------------------------------------------------
# Main
# ---------------------------------------------------------------------------
def _make_bn_params(key, c):
    k1, k2, k3, k4 = jax.random.split(key, 4)
    return {
        "gamma": 1.0 + 0.1 * jax.random.normal(k1, (c,), jnp.float32),
        "beta": 0.1 * jax.random.normal(k2, (c,), jnp.float32),
        "mean": 0.1 * jax.random.normal(k3, (c,), jnp.float32),
        "var": 1.0 + 0.05 * jax.random.uniform(k4, (c,), jnp.float32),
    }


def _make_params(key, in_planes, out_planes, with_downsample):
    keys = jax.random.split(key, 6)
    fan1 = 9 * in_planes
    fan2 = 9 * out_planes
    params = {
        "w1": jax.random.normal(keys[0], (3, 3, in_planes, out_planes),
                                jnp.float32) / np.sqrt(fan1),
        "w2": jax.random.normal(keys[1], (3, 3, out_planes, out_planes),
                                jnp.float32) / np.sqrt(fan2),
        "bn1": _make_bn_params(keys[2], out_planes),
        "bn2": _make_bn_params(keys[3], out_planes),
    }
    if with_downsample:
        params["wd"] = jax.random.normal(keys[4], (in_planes, out_planes),
                                         jnp.float32) / np.sqrt(in_planes)
        params["bn_d"] = _make_bn_params(keys[5], out_planes)
    return params


if __name__ == "__main__":
    key = jax.random.PRNGKey(0)
    k_in, k_p1, k_in2, k_p2 = jax.random.split(key, 4)

    # bf16 MXU operands -> relaxed tolerance vs. the f32 HIGHEST reference.
    RTOL, ATOL = 2e-2, 2e-2

    # Case 1: stride=2, in_planes != out_planes -> fused 1x1-conv downsample.
    N, in_planes, H, W = 2, 4, 16, 16
    out_planes, stride = 8, 2
    x_nchw = jax.random.normal(k_in, (N, in_planes, H, W), jnp.float32)
    x_nhwc = jnp.transpose(x_nchw, (0, 2, 3, 1))
    params = _make_params(k_p1, in_planes, out_planes, with_downsample=True)
    out = jax.block_until_ready(basic_block_forward(x_nhwc, params, stride=stride))
    ref = _ref_forward(x_nhwc, params, stride=stride)
    np.testing.assert_allclose(np.asarray(out), np.asarray(ref),
                               rtol=RTOL, atol=ATOL)

    # Case 2: stride=1, in_planes == out_planes -> identity residual path.
    x2_nchw = jax.random.normal(k_in2, (2, 8, 8, 8), jnp.float32)
    x2_nhwc = jnp.transpose(x2_nchw, (0, 2, 3, 1))
    params2 = _make_params(k_p2, 8, 8, with_downsample=False)
    out2 = jax.block_until_ready(basic_block_forward(x2_nhwc, params2, stride=1))
    ref2 = _ref_forward(x2_nhwc, params2, stride=1)
    np.testing.assert_allclose(np.asarray(out2), np.asarray(ref2),
                               rtol=RTOL, atol=ATOL)

    print("KERNEL_OK")
</pallas_src>

<mosaic_0001>
module attributes {stable_mosaic.version = 11 : i64} {
  func.func @_basic_block_kernel(%arg0: i32, %arg1: memref<1x16x16x4xf32, #tpu.memory_space<vmem>>, %arg2: memref<36x16xbf16, #tpu.memory_space<vmem>>, %arg3: memref<1x8xf32, #tpu.memory_space<vmem>>, %arg4: memref<72x8xbf16, #tpu.memory_space<vmem>>, %arg5: memref<1x8xf32, #tpu.memory_space<vmem>>, %arg6: memref<1x8xf32, #tpu.memory_space<vmem>>, %arg7: memref<1x8x8x8xf32, #tpu.memory_space<vmem>>, %arg8: memref<18x18x4xf32, #tpu.memory_space<vmem>>, %arg9: memref<10x10x8xf32, #tpu.memory_space<vmem>>) attributes {dimension_semantics = [#tpu.dimension_semantics<parallel>], iteration_bounds = array<i64: 2>, scalar_prefetch = 0 : i64, scratch_operands = 2 : i64, tpu.core_type = #tpu.core_type<tc>, window_params = [{transform_indices = @transform_0, window_bounds = array<i64: 1, 16, 16, 4>}, {pipeline_mode = #tpu.pipeline_mode<synchronous>, transform_indices = @transform_1, window_bounds = array<i64: 36, 16>}, {pipeline_mode = #tpu.pipeline_mode<synchronous>, transform_indices = @transform_2, window_bounds = array<i64: 1, 8>}, {pipeline_mode = #tpu.pipeline_mode<synchronous>, transform_indices = @transform_3, window_bounds = array<i64: 72, 8>}, {pipeline_mode = #tpu.pipeline_mode<synchronous>, transform_indices = @transform_4, window_bounds = array<i64: 1, 8>}, {pipeline_mode = #tpu.pipeline_mode<synchronous>, transform_indices = @transform_5, window_bounds = array<i64: 1, 8>}, {transform_indices = @transform_6, window_bounds = array<i64: 1, 8, 8, 8>}]} {
    %c0 = arith.constant 0 : index
    %c0_0 = arith.constant 0 : index
    %c0_1 = arith.constant 0 : index
    %c0_2 = arith.constant 0 : index
    %0 = vector.load %arg1[%c0, %c0_0, %c0_1, %c0_2] : memref<1x16x16x4xf32, #tpu.memory_space<vmem>>, vector<1x16x16x4xf32>
    %1 = vector.shape_cast %0 : vector<1x16x16x4xf32> to vector<16x16x4xf32>
    %cst = arith.constant 0.000000e+00 : f32
    %2 = vector.broadcast %cst : f32 to vector<1x18x4xf32>
    %cst_3 = arith.constant 0.000000e+00 : f32
    %3 = vector.broadcast %cst_3 : f32 to vector<18x1x4xf32>
    %c0_4 = arith.constant 0 : index
    %c0_5 = arith.constant 0 : index
    %c0_6 = arith.constant 0 : index
    %4 = vector.load %arg8[%c0_4, %c0_5, %c0_6] : memref<18x18x4xf32, #tpu.memory_space<vmem>>, vector<1x18x4xf32>
    tpu.vector_store %arg8[%c0_4, %c0_5, %c0_6], %2 {strides = array<i32>} : memref<18x18x4xf32, #tpu.memory_space<vmem>>, vector<1x18x4xf32>,
    %c17 = arith.constant 17 : index
    %c0_7 = arith.constant 0 : index
    %c0_8 = arith.constant 0 : index
    %5 = vector.load %arg8[%c17, %c0_7, %c0_8] : memref<18x18x4xf32, #tpu.memory_space<vmem>>, vector<1x18x4xf32>
    tpu.vector_store %arg8[%c17, %c0_7, %c0_8], %2 {strides = array<i32>} : memref<18x18x4xf32, #tpu.memory_space<vmem>>, vector<1x18x4xf32>,
    %c0_9 = arith.constant 0 : index
    %c0_10 = arith.constant 0 : index
    %c0_11 = arith.constant 0 : index
    %6 = vector.load %arg8[%c0_9, %c0_10, %c0_11] : memref<18x18x4xf32, #tpu.memory_space<vmem>>, vector<18x1x4xf32>
    tpu.vector_store %arg8[%c0_9, %c0_10, %c0_11], %3 {strides = array<i32>} : memref<18x18x4xf32, #tpu.memory_space<vmem>>, vector<18x1x4xf32>,
    %c0_12 = arith.constant 0 : index
    %c17_13 = arith.constant 17 : index
    %c0_14 = arith.constant 0 : index
    %7 = vector.load %arg8[%c0_12, %c17_13, %c0_14] : memref<18x18x4xf32, #tpu.memory_space<vmem>>, vector<18x1x4xf32>
    tpu.vector_store %arg8[%c0_12, %c17_13, %c0_14], %3 {strides = array<i32>} : memref<18x18x4xf32, #tpu.memory_space<vmem>>, vector<18x1x4xf32>,
    %c1 = arith.constant 1 : index
    %c1_15 = arith.constant 1 : index
    %c0_16 = arith.constant 0 : index
    %8 = vector.load %arg8[%c1, %c1_15, %c0_16] : memref<18x18x4xf32, #tpu.memory_space<vmem>>, vector<16x16x4xf32>
    tpu.vector_store %arg8[%c1, %c1_15, %c0_16], %1 {strides = array<i32>} : memref<18x18x4xf32, #tpu.memory_space<vmem>>, vector<16x16x4xf32>,
    %c0_17 = arith.constant 0 : index
    %c0_18 = arith.constant 0 : index
    %c0_19 = arith.constant 0 : index
    %9 = vector.load %arg8[%c0_17, %c0_18, %c0_19] : memref<18x18x4xf32, #tpu.memory_space<vmem>>, vector<18x18x4xf32>
    %10 = vector.shape_cast %9 : vector<18x18x4xf32> to vector<9x2x18x4xf32>
    %11 = vector.extract_strided_slice %10 {offsets = [0, 0, 0, 0], sizes = [9, 1, 18, 4], strides = [1, 1, 1, 1]} : vector<9x2x18x4xf32> to vector<9x1x18x4xf32>
    %12 = vector.shape_cast %11 : vector<9x1x18x4xf32> to vector<9x18x4xf32>
    %13 = vector.shape_cast %12 : vector<9x18x4xf32> to vector<9x9x2x4xf32>
    %14 = vector.extract_strided_slice %13 {offsets = [0, 0, 0, 0], sizes = [9, 9, 1, 4], strides = [1, 1, 1, 1]} : vector<9x9x2x4xf32> to vector<9x9x1x4xf32>
    %15 = vector.shape_cast %14 : vector<9x9x1x4xf32> to vector<9x9x4xf32>
    %16 = vector.extract_strided_slice %13 {offsets = [0, 0, 1, 0], sizes = [9, 9, 1, 4], strides = [1, 1, 1, 1]} : vector<9x9x2x4xf32> to vector<9x9x1x4xf32>
    %17 = vector.shape_cast %16 : vector<9x9x1x4xf32> to vector<9x9x4xf32>
    %18 = vector.extract_strided_slice %10 {offsets = [0, 1, 0, 0], sizes = [9, 1, 18, 4], strides = [1, 1, 1, 1]} : vector<9x2x18x4xf32> to vector<9x1x18x4xf32>
    %19 = vector.shape_cast %18 : vector<9x1x18x4xf32> to vector<9x18x4xf32>
    %20 = vector.shape_cast %19 : vector<9x18x4xf32> to vector<9x9x2x4xf32>
    %21 = vector.extract_strided_slice %20 {offsets = [0, 0, 0, 0], sizes = [9, 9, 1, 4], strides = [1, 1, 1, 1]} : vector<9x9x2x4xf32> to vector<9x9x1x4xf32>
    %22 = vector.shape_cast %21 : vector<9x9x1x4xf32> to vector<9x9x4xf32>
    %23 = vector.extract_strided_slice %20 {offsets = [0, 0, 1, 0], sizes = [9, 9, 1, 4], strides = [1, 1, 1, 1]} : vector<9x9x2x4xf32> to vector<9x9x1x4xf32>
    %24 = vector.shape_cast %23 : vector<9x9x1x4xf32> to vector<9x9x4xf32>
    %25 = vector.extract_strided_slice %15 {offsets = [0, 0, 0], sizes = [8, 8, 4], strides = [1, 1, 1]} : vector<9x9x4xf32> to vector<8x8x4xf32>
    %26 = vector.shape_cast %25 : vector<8x8x4xf32> to vector<64x4xf32>
    %27 = arith.truncf %26 : vector<64x4xf32> to vector<64x4xbf16>
    %28 = vector.extract_strided_slice %17 {offsets = [0, 0, 0], sizes = [8, 8, 4], strides = [1, 1, 1]} : vector<9x9x4xf32> to vector<8x8x4xf32>
    %29 = vector.shape_cast %28 : vector<8x8x4xf32> to vector<64x4xf32>
    %30 = arith.truncf %29 : vector<64x4xf32> to vector<64x4xbf16>
    %31 = vector.extract_strided_slice %15 {offsets = [0, 1, 0], sizes = [8, 8, 4], strides = [1, 1, 1]} : vector<9x9x4xf32> to vector<8x8x4xf32>
    %32 = vector.shape_cast %31 : vector<8x8x4xf32> to vector<64x4xf32>
    %33 = arith.truncf %32 : vector<64x4xf32> to vector<64x4xbf16>
    %34 = vector.extract_strided_slice %22 {offsets = [0, 0, 0], sizes = [8, 8, 4], strides = [1, 1, 1]} : vector<9x9x4xf32> to vector<8x8x4xf32>
    %35 = vector.shape_cast %34 : vector<8x8x4xf32> to vector<64x4xf32>
    %36 = arith.truncf %35 : vector<64x4xf32> to vector<64x4xbf16>
    %37 = vector.extract_strided_slice %24 {offsets = [0, 0, 0], sizes = [8, 8, 4], strides = [1, 1, 1]} : vector<9x9x4xf32> to vector<8x8x4xf32>
    %38 = vector.shape_cast %37 : vector<8x8x4xf32> to vector<64x4xf32>
    %39 = arith.truncf %38 : vector<64x4xf32> to vector<64x4xbf16>
    %40 = vector.extract_strided_slice %22 {offsets = [0, 1, 0], sizes = [8, 8, 4], strides = [1, 1, 1]} : vector<9x9x4xf32> to vector<8x8x4xf32>
    %41 = vector.shape_cast %40 : vector<8x8x4xf32> to vector<64x4xf32>
    %42 = arith.truncf %41 : vector<64x4xf32> to vector<64x4xbf16>
    %43 = vector.extract_strided_slice %15 {offsets = [1, 0, 0], sizes = [8, 8, 4], strides = [1, 1, 1]} : vector<9x9x4xf32> to vector<8x8x4xf32>
    %44 = vector.shape_cast %43 : vector<8x8x4xf32> to vector<64x4xf32>
    %45 = arith.truncf %44 : vector<64x4xf32> to vector<64x4xbf16>
    %46 = vector.extract_strided_slice %17 {offsets = [1, 0, 0], sizes = [8, 8, 4], strides = [1, 1, 1]} : vector<9x9x4xf32> to vector<8x8x4xf32>
    %47 = vector.shape_cast %46 : vector<8x8x4xf32> to vector<64x4xf32>
    %48 = arith.truncf %47 : vector<64x4xf32> to vector<64x4xbf16>
    %49 = vector.extract_strided_slice %15 {offsets = [1, 1, 0], sizes = [8, 8, 4], strides = [1, 1, 1]} : vector<9x9x4xf32> to vector<8x8x4xf32>
    %50 = vector.shape_cast %49 : vector<8x8x4xf32> to vector<64x4xf32>
    %51 = arith.truncf %50 : vector<64x4xf32> to vector<64x4xbf16>
    %52 = tpu.concatenate %27, %30, %33, %36, %39, %42, %45, %48, %51 in 1 : vector<64x4xbf16>, vector<64x4xbf16>, vector<64x4xbf16>, vector<64x4xbf16>, vector<64x4xbf16>, vector<64x4xbf16>, vector<64x4xbf16>, vector<64x4xbf16>, vector<64x4xbf16> -> vector<64x36xbf16>
    %c0_20 = arith.constant 0 : index
    %c0_21 = arith.constant 0 : index
    %53 = vector.load %arg2[%c0_20, %c0_21] : memref<36x16xbf16, #tpu.memory_space<vmem>>, vector<36x16xbf16>
    %cst_22 = arith.constant dense<0.000000e+00> : vector<64x16xf32>
    %54 = tpu.matmul %52, %53, %cst_22 {dimension_numbers = #tpu.dot_dimension_numbers<[1], [0], [0], [1], [0, 0, 1, 1], [], []>} : vector<64x36xbf16>, vector<36x16xbf16>, vector<64x16xf32> -> vector<64x16xf32>
    %55 = vector.extract_strided_slice %54 {offsets = [0, 0], sizes = [64, 8], strides = [1, 1]} : vector<64x16xf32> to vector<64x8xf32>
    %56 = vector.extract_strided_slice %54 {offsets = [0, 8], sizes = [64, 8], strides = [1, 1]} : vector<64x16xf32> to vector<64x8xf32>
    %57 = vector.shape_cast %55 : vector<64x8xf32> to vector<8x8x8xf32>
    %c0_23 = arith.constant 0 : index
    %c0_24 = arith.constant 0 : index
    %58 = vector.load %arg3[%c0_23, %c0_24] : memref<1x8xf32, #tpu.memory_space<vmem>>, vector<1x8xf32>
    %59 = vector.shape_cast %58 : vector<1x8xf32> to vector<1x1x8xf32>
    %60 = vector.broadcast %59 : vector<1x1x8xf32> to vector<8x8x8xf32>
    %61 = arith.addf %57, %60 : vector<8x8x8xf32>
    %cst_25 = arith.constant 0.000000e+00 : f32
    %62 = vector.broadcast %cst_25 : f32 to vector<8x8x8xf32>
    %63 = arith.maximumf %61, %62 : vector<8x8x8xf32>
    %64 = vector.shape_cast %56 : vector<64x8xf32> to vector<8x8x8xf32>
    %c0_26 = arith.constant 0 : index
    %c0_27 = arith.constant 0 : index
    %65 = vector.load %arg6[%c0_26, %c0_27] : memref<1x8xf32, #tpu.memory_space<vmem>>, vector<1x8xf32>
    %66 = vector.shape_cast %65 : vector<1x8xf32> to vector<1x1x8xf32>
    %67 = vector.broadcast %66 : vector<1x1x8xf32> to vector<8x8x8xf32>
    %68 = arith.addf %64, %67 : vector<8x8x8xf32>
    %cst_28 = arith.constant 0.000000e+00 : f32
    %69 = vector.broadcast %cst_28 : f32 to vector<1x10x8xf32>
    %cst_29 = arith.constant 0.000000e+00 : f32
    %70 = vector.broadcast %cst_29 : f32 to vector<10x1x8xf32>
    %c0_30 = arith.constant 0 : index
    %c0_31 = arith.constant 0 : index
    %c0_32 = arith.constant 0 : index
    %71 = vector.load %arg9[%c0_30, %c0_31, %c0_32] : memref<10x10x8xf32, #tpu.memory_space<vmem>>, vector<1x10x8xf32>
    tpu.vector_store %arg9[%c0_30, %c0_31, %c0_32], %69 {strides = array<i32>} : memref<10x10x8xf32, #tpu.memory_space<vmem>>, vector<1x10x8xf32>,
    %c9 = arith.constant 9 : index
    %c0_33 = arith.constant 0 : index
    %c0_34 = arith.constant 0 : index
    %72 = vector.load %arg9[%c9, %c0_33, %c0_34] : memref<10x10x8xf32, #tpu.memory_space<vmem>>, vector<1x10x8xf32>
    tpu.vector_store %arg9[%c9, %c0_33, %c0_34], %69 {strides = array<i32>} : memref<10x10x8xf32, #tpu.memory_space<vmem>>, vector<1x10x8xf32>,
    %c0_35 = arith.constant 0 : index
    %c0_36 = arith.constant 0 : index
    %c0_37 = arith.constant 0 : index
    %73 = vector.load %arg9[%c0_35, %c0_36, %c0_37] : memref<10x10x8xf32, #tpu.memory_space<vmem>>, vector<10x1x8xf32>
    tpu.vector_store %arg9[%c0_35, %c0_36, %c0_37], %70 {strides = array<i32>} : memref<10x10x8xf32, #tpu.memory_space<vmem>>, vector<10x1x8xf32>,
    %c0_38 = arith.constant 0 : index
    %c9_39 = arith.constant 9 : index
    %c0_40 = arith.constant 0 : index
    %74 = vector.load %arg9[%c0_38, %c9_39, %c0_40] : memref<10x10x8xf32, #tpu.memory_space<vmem>>, vector<10x1x8xf32>
    tpu.vector_store %arg9[%c0_38, %c9_39, %c0_40], %70 {strides = array<i32>} : memref<10x10x8xf32, #tpu.memory_space<vmem>>, vector<10x1x8xf32>,
    %c1_41 = arith.constant 1 : index
    %c1_42 = arith.constant 1 : index
    %c0_43 = arith.constant 0 : index
    %75 = vector.load %arg9[%c1_41, %c1_42, %c0_43] : memref<10x10x8xf32, #tpu.memory_space<vmem>>, vector<8x8x8xf32>
    tpu.vector_store %arg9[%c1_41, %c1_42, %c0_43], %63 {strides = array<i32>} : memref<10x10x8xf32, #tpu.memory_space<vmem>>, vector<8x8x8xf32>,
    %c0_44 = arith.constant 0 : index
    %c0_45 = arith.constant 0 : index
    %c0_46 = arith.constant 0 : index
    %76 = vector.load %arg9[%c0_44, %c0_45, %c0_46] : memref<10x10x8xf32, #tpu.memory_space<vmem>>, vector<8x8x8xf32>
    %77 = vector.shape_cast %76 : vector<8x8x8xf32> to vector<64x8xf32>
    %78 = arith.truncf %77 : vector<64x8xf32> to vector<64x8xbf16>
    %c0_47 = arith.constant 0 : index
    %c1_48 = arith.constant 1 : index
    %c0_49 = arith.constant 0 : index
    %79 = vector.load %arg9[%c0_47, %c1_48, %c0_49] : memref<10x10x8xf32, #tpu.memory_space<vmem>>, vector<8x8x8xf32>
    %80 = vector.shape_cast %79 : vector<8x8x8xf32> to vector<64x8xf32>
    %81 = arith.truncf %80 : vector<64x8xf32> to vector<64x8xbf16>
    %c0_50 = arith.constant 0 : index
    %c2 = arith.constant 2 : index
    %c0_51 = arith.constant 0 : index
    %82 = vector.load %arg9[%c0_50, %c2, %c0_51] : memref<10x10x8xf32, #tpu.memory_space<vmem>>, vector<8x8x8xf32>
    %83 = vector.shape_cast %82 : vector<8x8x8xf32> to vector<64x8xf32>
    %84 = arith.truncf %83 : vector<64x8xf32> to vector<64x8xbf16>
    %c1_52 = arith.constant 1 : index
    %c0_53 = arith.constant 0 : index
    %c0_54 = arith.constant 0 : index
    %85 = vector.load %arg9[%c1_52, %c0_53, %c0_54] : memref<10x10x8xf32, #tpu.memory_space<vmem>>, vector<8x8x8xf32>
    %86 = vector.shape_cast %85 : vector<8x8x8xf32> to vector<64x8xf32>
    %87 = arith.truncf %86 : vector<64x8xf32> to vector<64x8xbf16>
    %c1_55 = arith.constant 1 : index
    %c1_56 = arith.constant 1 : index
    %c0_57 = arith.constant 0 : index
    %88 = vector.load %arg9[%c1_55, %c1_56, %c0_57] : memref<10x10x8xf32, #tpu.memory_space<vmem>>, vector<8x8x8xf32>
    %89 = vector.shape_cast %88 : vector<8x8x8xf32> to vector<64x8xf32>
    %90 = arith.truncf %89 : vector<64x8xf32> to vector<64x8xbf16>
    %c1_58 = arith.constant 1 : index
    %c2_59 = arith.constant 2 : index
    %c0_60 = arith.constant 0 : index
    %91 = vector.load %arg9[%c1_58, %c2_59, %c0_60] : memref<10x10x8xf32, #tpu.memory_space<vmem>>, vector<8x8x8xf32>
    %92 = vector.shape_cast %91 : vector<8x8x8xf32> to vector<64x8xf32>
    %93 = arith.truncf %92 : vector<64x8xf32> to vector<64x8xbf16>
    %c2_61 = arith.constant 2 : index
    %c0_62 = arith.constant 0 : index
    %c0_63 = arith.constant 0 : index
    %94 = vector.load %arg9[%c2_61, %c0_62, %c0_63] : memref<10x10x8xf32, #tpu.memory_space<vmem>>, vector<8x8x8xf32>
    %95 = vector.shape_cast %94 : vector<8x8x8xf32> to vector<64x8xf32>
    %96 = arith.truncf %95 : vector<64x8xf32> to vector<64x8xbf16>
    %c2_64 = arith.constant 2 : index
    %c1_65 = arith.constant 1 : index
    %c0_66 = arith.constant 0 : index
    %97 = vector.load %arg9[%c2_64, %c1_65, %c0_66] : memref<10x10x8xf32, #tpu.memory_space<vmem>>, vector<8x8x8xf32>
    %98 = vector.shape_cast %97 : vector<8x8x8xf32> to vector<64x8xf32>
    %99 = arith.truncf %98 : vector<64x8xf32> to vector<64x8xbf16>
    %c2_67 = arith.constant 2 : index
    %c2_68 = arith.constant 2 : index
    %c0_69 = arith.constant 0 : index
    %100 = vector.load %arg9[%c2_67, %c2_68, %c0_69] : memref<10x10x8xf32, #tpu.memory_space<vmem>>, vector<8x8x8xf32>
    %101 = vector.shape_cast %100 : vector<8x8x8xf32> to vector<64x8xf32>
    %102 = arith.truncf %101 : vector<64x8xf32> to vector<64x8xbf16>
    %103 = tpu.concatenate %78, %81, %84, %87, %90, %93, %96, %99, %102 in 1 : vector<64x8xbf16>, vector<64x8xbf16>, vector<64x8xbf16>, vector<64x8xbf16>, vector<64x8xbf16>, vector<64x8xbf16>, vector<64x8xbf16>, vector<64x8xbf16>, vector<64x8xbf16> -> vector<64x72xbf16>
    %c0_70 = arith.constant 0 : index
    %c0_71 = arith.constant 0 : index
    %104 = vector.load %arg4[%c0_70, %c0_71] : memref<72x8xbf16, #tpu.memory_space<vmem>>, vector<72x8xbf16>
    %cst_72 = arith.constant dense<0.000000e+00> : vector<64x8xf32>
    %105 = tpu.matmul %103, %104, %cst_72 {dimension_numbers = #tpu.dot_dimension_numbers<[1], [0], [0], [1], [0, 0, 1, 1], [], []>} : vector<64x72xbf16>, vector<72x8xbf16>, vector<64x8xf32> -> vector<64x8xf32>
    %106 = vector.shape_cast %105 : vector<64x8xf32> to vector<8x8x8xf32>
    %c0_73 = arith.constant 0 : index
    %c0_74 = arith.constant 0 : index
    %107 = vector.load %arg5[%c0_73, %c0_74] : memref<1x8xf32, #tpu.memory_space<vmem>>, vector<1x8xf32>
    %108 = vector.shape_cast %107 : vector<1x8xf32> to vector<1x1x8xf32>
    %109 = vector.broadcast %108 : vector<1x1x8xf32> to vector<8x8x8xf32>
    %110 = arith.addf %106, %109 : vector<8x8x8xf32>
    %111 = arith.addf %110, %68 : vector<8x8x8xf32>
    %cst_75 = arith.constant 0.000000e+00 : f32
    %112 = vector.broadcast %cst_75 : f32 to vector<8x8x8xf32>
    %113 = arith.maximumf %111, %112 : vector<8x8x8xf32>
    %c0_76 = arith.constant 0 : index
    %c0_77 = arith.constant 0 : index
    %c0_78 = arith.constant 0 : index
    %c0_79 = arith.constant 0 : index
    %114 = vector.load %arg7[%c0_76, %c0_77, %c0_78, %c0_79] : memref<1x8x8x8xf32, #tpu.memory_space<vmem>>, vector<1x8x8x8xf32>
    %115 = vector.shape_cast %114 : vector<1x8x8x8xf32> to vector<8x8x8xf32>
    %116 = vector.shape_cast %113 : vector<8x8x8xf32> to vector<1x8x8x8xf32>
    tpu.vector_store %arg7[%c0_76, %c0_77, %c0_78, %c0_79], %116 {strides = array<i32>} : memref<1x8x8x8xf32, #tpu.memory_space<vmem>>, vector<1x8x8x8xf32>,
    return
  }
  func.func @transform_0(%arg0: i32) -> (i32, i32, i32, i32) {
    %c0_i32 = arith.constant 0 : i32
    %c0_i32_0 = arith.constant 0 : i32
    %c0_i32_1 = arith.constant 0 : i32
    %c0_i32_2 = arith.constant 0 : i32
    return %arg0, %c0_i32, %c0_i32_0, %c0_i32_1 : i32, i32, i32, i32
  }
  func.func @transform_1(%arg0: i32) -> (i32, i32) {
    %c0_i32 = arith.constant 0 : i32
    %c0_i32_0 = arith.constant 0 : i32
    %c0_i32_1 = arith.constant 0 : i32
    return %c0_i32, %c0_i32_0 : i32, i32
  }
  func.func @transform_2(%arg0: i32) -> (i32, i32) {
    %c0_i32 = arith.constant 0 : i32
    %c0_i32_0 = arith.constant 0 : i32
    %c0_i32_1 = arith.constant 0 : i32
    return %c0_i32, %c0_i32_0 : i32, i32
  }
  func.func @transform_3(%arg0: i32) -> (i32, i32) {
    %c0_i32 = arith.constant 0 : i32
    %c0_i32_0 = arith.constant 0 : i32
    %c0_i32_1 = arith.constant 0 : i32
    return %c0_i32, %c0_i32_0 : i32, i32
  }
  func.func @transform_4(%arg0: i32) -> (i32, i32) {
    %c0_i32 = arith.constant 0 : i32
    %c0_i32_0 = arith.constant 0 : i32
    %c0_i32_1 = arith.constant 0 : i32
    return %c0_i32, %c0_i32_0 : i32, i32
  }
  func.func @transform_5(%arg0: i32) -> (i32, i32) {
    %c0_i32 = arith.constant 0 : i32
    %c0_i32_0 = arith.constant 0 : i32
    %c0_i32_1 = arith.constant 0 : i32
    return %c0_i32, %c0_i32_0 : i32, i32
  }
  func.func @transform_6(%arg0: i32) -> (i32, i32, i32, i32) {
    %c0_i32 = arith.constant 0 : i32
    %c0_i32_0 = arith.constant 0 : i32
    %c0_i32_1 = arith.constant 0 : i32
    %c0_i32_2 = arith.constant 0 : i32
    return %arg0, %c0_i32, %c0_i32_0, %c0_i32_1 : i32, i32, i32, i32
  }
}

module attributes {stable_mosaic.version = 11 : i64} {
  func.func @_basic_block_kernel(%arg0: i32, %arg1: memref<1x16x16x4xf32, #tpu.memory_space<vmem>>, %arg2: memref<36x16xbf16, #tpu.memory_space<vmem>>, %arg3: memref<1x8xf32, #tpu.memory_space<vmem>>, %arg4: memref<72x8xbf16, #tpu.memory_space<vmem>>, %arg5: memref<1x8xf32, #tpu.memory_space<vmem>>, %arg6: memref<1x8xf32, #tpu.memory_space<vmem>>, %arg7: memref<1x8x8x8xf32, #tpu.memory_space<vmem>>, %arg8: memref<18x18x4xf32, #tpu.memory_space<vmem>>, %arg9: memref<10x10x8xf32, #tpu.memory_space<vmem>>) attributes {dimension_semantics = [#tpu.dimension_semantics<parallel>], iteration_bounds = array<i64: 2>, scalar_prefetch = 0 : i64, scratch_operands = 2 : i64, tpu.core_type = #tpu.core_type<tc>, window_params = [{transform_indices = @transform_0, window_bounds = array<i64: 1, 16, 16, 4>}, {pipeline_mode = #tpu.pipeline_mode<synchronous>, transform_indices = @transform_1, window_bounds = array<i64: 36, 16>}, {pipeline_mode = #tpu.pipeline_mode<synchronous>, transform_indices = @transform_2, window_bounds = array<i64: 1, 8>}, {pipeline_mode = #tpu.pipeline_mode<synchronous>, transform_indices = @transform_3, window_bounds = array<i64: 72, 8>}, {pipeline_mode = #tpu.pipeline_mode<synchronous>, transform_indices = @transform_4, window_bounds = array<i64: 1, 8>}, {pipeline_mode = #tpu.pipeline_mode<synchronous>, transform_indices = @transform_5, window_bounds = array<i64: 1, 8>}, {transform_indices = @transform_6, window_bounds = array<i64: 1, 8, 8, 8>}]} {
    %c0 = arith.constant 0 : index
    %c0_0 = arith.constant 0 : index
    %c0_1 = arith.constant 0 : index
    %c0_2 = arith.constant 0 : index
    %0 = vector.load %arg1[%c0, %c0_0, %c0_1, %c0_2] : memref<1x16x16x4xf32, #tpu.memory_space<vmem>>, vector<1x16x16x4xf32>
    %1 = vector.shape_cast %0 : vector<1x16x16x4xf32> to vector<16x16x4xf32>
    %cst = arith.constant 0.000000e+00 : f32
    %2 = vector.broadcast %cst : f32 to vector<1x18x4xf32>
    %cst_3 = arith.constant 0.000000e+00 : f32
    %3 = vector.broadcast %cst_3 : f32 to vector<18x1x4xf32>
    %c0_4 = arith.constant 0 : index
    %c0_5 = arith.constant 0 : index
    %c0_6 = arith.constant 0 : index
    %4 = vector.load %arg8[%c0_4, %c0_5, %c0_6] : memref<18x18x4xf32, #tpu.memory_space<vmem>>, vector<1x18x4xf32>
    tpu.vector_store %arg8[%c0_4, %c0_5, %c0_6], %2 {strides = array<i32>} : memref<18x18x4xf32, #tpu.memory_space<vmem>>, vector<1x18x4xf32>,
    %c17 = arith.constant 17 : index
    %c0_7 = arith.constant 0 : index
    %c0_8 = arith.constant 0 : index
    %5 = vector.load %arg8[%c17, %c0_7, %c0_8] : memref<18x18x4xf32, #tpu.memory_space<vmem>>, vector<1x18x4xf32>
    tpu.vector_store %arg8[%c17, %c0_7, %c0_8], %2 {strides = array<i32>} : memref<18x18x4xf32, #tpu.memory_space<vmem>>, vector<1x18x4xf32>,
    %c0_9 = arith.constant 0 : index
    %c0_10 = arith.constant 0 : index
    %c0_11 = arith.constant 0 : index
    %6 = vector.load %arg8[%c0_9, %c0_10, %c0_11] : memref<18x18x4xf32, #tpu.memory_space<vmem>>, vector<18x1x4xf32>
    tpu.vector_store %arg8[%c0_9, %c0_10, %c0_11], %3 {strides = array<i32>} : memref<18x18x4xf32, #tpu.memory_space<vmem>>, vector<18x1x4xf32>,
    %c0_12 = arith.constant 0 : index
    %c17_13 = arith.constant 17 : index
    %c0_14 = arith.constant 0 : index
    %7 = vector.load %arg8[%c0_12, %c17_13, %c0_14] : memref<18x18x4xf32, #tpu.memory_space<vmem>>, vector<18x1x4xf32>
    tpu.vector_store %arg8[%c0_12, %c17_13, %c0_14], %3 {strides = array<i32>} : memref<18x18x4xf32, #tpu.memory_space<vmem>>, vector<18x1x4xf32>,
    %c1 = arith.constant 1 : index
    %c1_15 = arith.constant 1 : index
    %c0_16 = arith.constant 0 : index
    %8 = vector.load %arg8[%c1, %c1_15, %c0_16] : memref<18x18x4xf32, #tpu.memory_space<vmem>>, vector<16x16x4xf32>
    tpu.vector_store %arg8[%c1, %c1_15, %c0_16], %1 {strides = array<i32>} : memref<18x18x4xf32, #tpu.memory_space<vmem>>, vector<16x16x4xf32>,
    %c0_17 = arith.constant 0 : index
    %c0_18 = arith.constant 0 : index
    %c0_19 = arith.constant 0 : index
    %9 = vector.load %arg8[%c0_17, %c0_18, %c0_19] : memref<18x18x4xf32, #tpu.memory_space<vmem>>, vector<18x18x4xf32>
    %10 = vector.shape_cast %9 : vector<18x18x4xf32> to vector<9x2x18x4xf32>
    %11 = vector.extract_strided_slice %10 {offsets = [0, 0, 0, 0], sizes = [9, 1, 18, 4], strides = [1, 1, 1, 1]} : vector<9x2x18x4xf32> to vector<9x1x18x4xf32>
    %12 = vector.shape_cast %11 : vector<9x1x18x4xf32> to vector<9x18x4xf32>
    %13 = vector.shape_cast %12 : vector<9x18x4xf32> to vector<9x9x2x4xf32>
    %14 = vector.extract_strided_slice %13 {offsets = [0, 0, 0, 0], sizes = [9, 9, 1, 4], strides = [1, 1, 1, 1]} : vector<9x9x2x4xf32> to vector<9x9x1x4xf32>
    %15 = vector.shape_cast %14 : vector<9x9x1x4xf32> to vector<9x9x4xf32>
    %16 = vector.extract_strided_slice %13 {offsets = [0, 0, 1, 0], sizes = [9, 9, 1, 4], strides = [1, 1, 1, 1]} : vector<9x9x2x4xf32> to vector<9x9x1x4xf32>
    %17 = vector.shape_cast %16 : vector<9x9x1x4xf32> to vector<9x9x4xf32>
    %18 = vector.extract_strided_slice %10 {offsets = [0, 1, 0, 0], sizes = [9, 1, 18, 4], strides = [1, 1, 1, 1]} : vector<9x2x18x4xf32> to vector<9x1x18x4xf32>
    %19 = vector.shape_cast %18 : vector<9x1x18x4xf32> to vector<9x18x4xf32>
    %20 = vector.shape_cast %19 : vector<9x18x4xf32> to vector<9x9x2x4xf32>
    %21 = vector.extract_strided_slice %20 {offsets = [0, 0, 0, 0], sizes = [9, 9, 1, 4], strides = [1, 1, 1, 1]} : vector<9x9x2x4xf32> to vector<9x9x1x4xf32>
    %22 = vector.shape_cast %21 : vector<9x9x1x4xf32> to vector<9x9x4xf32>
    %23 = vector.extract_strided_slice %20 {offsets = [0, 0, 1, 0], sizes = [9, 9, 1, 4], strides = [1, 1, 1, 1]} : vector<9x9x2x4xf32> to vector<9x9x1x4xf32>
    %24 = vector.shape_cast %23 : vector<9x9x1x4xf32> to vector<9x9x4xf32>
    %25 = vector.extract_strided_slice %15 {offsets = [0, 0, 0], sizes = [8, 8, 4], strides = [1, 1, 1]} : vector<9x9x4xf32> to vector<8x8x4xf32>
    %26 = vector.shape_cast %25 : vector<8x8x4xf32> to vector<64x4xf32>
    %27 = arith.truncf %26 : vector<64x4xf32> to vector<64x4xbf16>
    %28 = vector.extract_strided_slice %17 {offsets = [0, 0, 0], sizes = [8, 8, 4], strides = [1, 1, 1]} : vector<9x9x4xf32> to vector<8x8x4xf32>
    %29 = vector.shape_cast %28 : vector<8x8x4xf32> to vector<64x4xf32>
    %30 = arith.truncf %29 : vector<64x4xf32> to vector<64x4xbf16>
    %31 = vector.extract_strided_slice %15 {offsets = [0, 1, 0], sizes = [8, 8, 4], strides = [1, 1, 1]} : vector<9x9x4xf32> to vector<8x8x4xf32>
    %32 = vector.shape_cast %31 : vector<8x8x4xf32> to vector<64x4xf32>
    %33 = arith.truncf %32 : vector<64x4xf32> to vector<64x4xbf16>
    %34 = vector.extract_strided_slice %22 {offsets = [0, 0, 0], sizes = [8, 8, 4], strides = [1, 1, 1]} : vector<9x9x4xf32> to vector<8x8x4xf32>
    %35 = vector.shape_cast %34 : vector<8x8x4xf32> to vector<64x4xf32>
    %36 = arith.truncf %35 : vector<64x4xf32> to vector<64x4xbf16>
    %37 = vector.extract_strided_slice %24 {offsets = [0, 0, 0], sizes = [8, 8, 4], strides = [1, 1, 1]} : vector<9x9x4xf32> to vector<8x8x4xf32>
    %38 = vector.shape_cast %37 : vector<8x8x4xf32> to vector<64x4xf32>
    %39 = arith.truncf %38 : vector<64x4xf32> to vector<64x4xbf16>
    %40 = vector.extract_strided_slice %22 {offsets = [0, 1, 0], sizes = [8, 8, 4], strides = [1, 1, 1]} : vector<9x9x4xf32> to vector<8x8x4xf32>
    %41 = vector.shape_cast %40 : vector<8x8x4xf32> to vector<64x4xf32>
    %42 = arith.truncf %41 : vector<64x4xf32> to vector<64x4xbf16>
    %43 = vector.extract_strided_slice %15 {offsets = [1, 0, 0], sizes = [8, 8, 4], strides = [1, 1, 1]} : vector<9x9x4xf32> to vector<8x8x4xf32>
    %44 = vector.shape_cast %43 : vector<8x8x4xf32> to vector<64x4xf32>
    %45 = arith.truncf %44 : vector<64x4xf32> to vector<64x4xbf16>
    %46 = vector.extract_strided_slice %17 {offsets = [1, 0, 0], sizes = [8, 8, 4], strides = [1, 1, 1]} : vector<9x9x4xf32> to vector<8x8x4xf32>
    %47 = vector.shape_cast %46 : vector<8x8x4xf32> to vector<64x4xf32>
    %48 = arith.truncf %47 : vector<64x4xf32> to vector<64x4xbf16>
    %49 = vector.extract_strided_slice %15 {offsets = [1, 1, 0], sizes = [8, 8, 4], strides = [1, 1, 1]} : vector<9x9x4xf32> to vector<8x8x4xf32>
    %50 = vector.shape_cast %49 : vector<8x8x4xf32> to vector<64x4xf32>
    %51 = arith.truncf %50 : vector<64x4xf32> to vector<64x4xbf16>
    %52 = tpu.concatenate %27, %30, %33, %36, %39, %42, %45, %48, %51 in 1 : vector<64x4xbf16>, vector<64x4xbf16>, vector<64x4xbf16>, vector<64x4xbf16>, vector<64x4xbf16>, vector<64x4xbf16>, vector<64x4xbf16>, vector<64x4xbf16>, vector<64x4xbf16> -> vector<64x36xbf16>
    %c0_20 = arith.constant 0 : index
    %c0_21 = arith.constant 0 : index
    %53 = vector.load %arg2[%c0_20, %c0_21] : memref<36x16xbf16, #tpu.memory_space<vmem>>, vector<36x16xbf16>
    %cst_22 = arith.constant dense<0.000000e+00> : vector<64x16xf32>
    %54 = tpu.matmul %52, %53, %cst_22 {dimension_numbers = #tpu.dot_dimension_numbers<[1], [0], [0], [1], [0, 0, 1, 1], [], []>} : vector<64x36xbf16>, vector<36x16xbf16>, vector<64x16xf32> -> vector<64x16xf32>
    %55 = vector.extract_strided_slice %54 {offsets = [0, 0], sizes = [64, 8], strides = [1, 1]} : vector<64x16xf32> to vector<64x8xf32>
    %56 = vector.extract_strided_slice %54 {offsets = [0, 8], sizes = [64, 8], strides = [1, 1]} : vector<64x16xf32> to vector<64x8xf32>
    %57 = vector.shape_cast %55 : vector<64x8xf32> to vector<8x8x8xf32>
    %c0_23 = arith.constant 0 : index
    %c0_24 = arith.constant 0 : index
    %58 = vector.load %arg3[%c0_23, %c0_24] : memref<1x8xf32, #tpu.memory_space<vmem>>, vector<1x8xf32>
    %59 = vector.shape_cast %58 : vector<1x8xf32> to vector<1x1x8xf32>
    %60 = vector.broadcast %59 : vector<1x1x8xf32> to vector<8x8x8xf32>
    %61 = arith.addf %57, %60 : vector<8x8x8xf32>
    %cst_25 = arith.constant 0.000000e+00 : f32
    %62 = vector.broadcast %cst_25 : f32 to vector<8x8x8xf32>
    %63 = arith.maximumf %61, %62 : vector<8x8x8xf32>
    %64 = vector.shape_cast %56 : vector<64x8xf32> to vector<8x8x8xf32>
    %c0_26 = arith.constant 0 : index
    %c0_27 = arith.constant 0 : index
    %65 = vector.load %arg6[%c0_26, %c0_27] : memref<1x8xf32, #tpu.memory_space<vmem>>, vector<1x8xf32>
    %66 = vector.shape_cast %65 : vector<1x8xf32> to vector<1x1x8xf32>
    %67 = vector.broadcast %66 : vector<1x1x8xf32> to vector<8x8x8xf32>
    %68 = arith.addf %64, %67 : vector<8x8x8xf32>
    %cst_28 = arith.constant 0.000000e+00 : f32
    %69 = vector.broadcast %cst_28 : f32 to vector<1x10x8xf32>
    %cst_29 = arith.constant 0.000000e+00 : f32
    %70 = vector.broadcast %cst_29 : f32 to vector<10x1x8xf32>
    %c0_30 = arith.constant 0 : index
    %c0_31 = arith.constant 0 : index
    %c0_32 = arith.constant 0 : index
    %71 = vector.load %arg9[%c0_30, %c0_31, %c0_32] : memref<10x10x8xf32, #tpu.memory_space<vmem>>, vector<1x10x8xf32>
    tpu.vector_store %arg9[%c0_30, %c0_31, %c0_32], %69 {strides = array<i32>} : memref<10x10x8xf32, #tpu.memory_space<vmem>>, vector<1x10x8xf32>,
    %c9 = arith.constant 9 : index
    %c0_33 = arith.constant 0 : index
    %c0_34 = arith.constant 0 : index
    %72 = vector.load %arg9[%c9, %c0_33, %c0_34] : memref<10x10x8xf32, #tpu.memory_space<vmem>>, vector<1x10x8xf32>
    tpu.vector_store %arg9[%c9, %c0_33, %c0_34], %69 {strides = array<i32>} : memref<10x10x8xf32, #tpu.memory_space<vmem>>, vector<1x10x8xf32>,
    %c0_35 = arith.constant 0 : index
    %c0_36 = arith.constant 0 : index
    %c0_37 = arith.constant 0 : index
    %73 = vector.load %arg9[%c0_35, %c0_36, %c0_37] : memref<10x10x8xf32, #tpu.memory_space<vmem>>, vector<10x1x8xf32>
    tpu.vector_store %arg9[%c0_35, %c0_36, %c0_37], %70 {strides = array<i32>} : memref<10x10x8xf32, #tpu.memory_space<vmem>>, vector<10x1x8xf32>,
    %c0_38 = arith.constant 0 : index
    %c9_39 = arith.constant 9 : index
    %c0_40 = arith.constant 0 : index
    %74 = vector.load %arg9[%c0_38, %c9_39, %c0_40] : memref<10x10x8xf32, #tpu.memory_space<vmem>>, vector<10x1x8xf32>
    tpu.vector_store %arg9[%c0_38, %c9_39, %c0_40], %70 {strides = array<i32>} : memref<10x10x8xf32, #tpu.memory_space<vmem>>, vector<10x1x8xf32>,
    %c1_41 = arith.constant 1 : index
    %c1_42 = arith.constant 1 : index
    %c0_43 = arith.constant 0 : index
    %75 = vector.load %arg9[%c1_41, %c1_42, %c0_43] : memref<10x10x8xf32, #tpu.memory_space<vmem>>, vector<8x8x8xf32>
    tpu.vector_store %arg9[%c1_41, %c1_42, %c0_43], %63 {strides = array<i32>} : memref<10x10x8xf32, #tpu.memory_space<vmem>>, vector<8x8x8xf32>,
    %c0_44 = arith.constant 0 : index
    %c0_45 = arith.constant 0 : index
    %c0_46 = arith.constant 0 : index
    %76 = vector.load %arg9[%c0_44, %c0_45, %c0_46] : memref<10x10x8xf32, #tpu.memory_space<vmem>>, vector<8x8x8xf32>
    %77 = vector.shape_cast %76 : vector<8x8x8xf32> to vector<64x8xf32>
    %78 = arith.truncf %77 : vector<64x8xf32> to vector<64x8xbf16>
    %c0_47 = arith.constant 0 : index
    %c1_48 = arith.constant 1 : index
    %c0_49 = arith.constant 0 : index
    %79 = vector.load %arg9[%c0_47, %c1_48, %c0_49] : memref<10x10x8xf32, #tpu.memory_space<vmem>>, vector<8x8x8xf32>
    %80 = vector.shape_cast %79 : vector<8x8x8xf32> to vector<64x8xf32>
    %81 = arith.truncf %80 : vector<64x8xf32> to vector<64x8xbf16>
    %c0_50 = arith.constant 0 : index
    %c2 = arith.constant 2 : index
    %c0_51 = arith.constant 0 : index
    %82 = vector.load %arg9[%c0_50, %c2, %c0_51] : memref<10x10x8xf32, #tpu.memory_space<vmem>>, vector<8x8x8xf32>
    %83 = vector.shape_cast %82 : vector<8x8x8xf32> to vector<64x8xf32>
    %84 = arith.truncf %83 : vector<64x8xf32> to vector<64x8xbf16>
    %c1_52 = arith.constant 1 : index
    %c0_53 = arith.constant 0 : index
    %c0_54 = arith.constant 0 : index
    %85 = vector.load %arg9[%c1_52, %c0_53, %c0_54] : memref<10x10x8xf32, #tpu.memory_space<vmem>>, vector<8x8x8xf32>
    %86 = vector.shape_cast %85 : vector<8x8x8xf32> to vector<64x8xf32>
    %87 = arith.truncf %86 : vector<64x8xf32> to vector<64x8xbf16>
    %c1_55 = arith.constant 1 : index
    %c1_56 = arith.constant 1 : index
    %c0_57 = arith.constant 0 : index
    %88 = vector.load %arg9[%c1_55, %c1_56, %c0_57] : memref<10x10x8xf32, #tpu.memory_space<vmem>>, vector<8x8x8xf32>
    %89 = vector.shape_cast %88 : vector<8x8x8xf32> to vector<64x8xf32>
    %90 = arith.truncf %89 : vector<64x8xf32> to vector<64x8xbf16>
    %c1_58 = arith.constant 1 : index
    %c2_59 = arith.constant 2 : index
    %c0_60 = arith.constant 0 : index
    %91 = vector.load %arg9[%c1_58, %c2_59, %c0_60] : memref<10x10x8xf32, #tpu.memory_space<vmem>>, vector<8x8x8xf32>
    %92 = vector.shape_cast %91 : vector<8x8x8xf32> to vector<64x8xf32>
    %93 = arith.truncf %92 : vector<64x8xf32> to vector<64x8xbf16>
    %c2_61 = arith.constant 2 : index
    %c0_62 = arith.constant 0 : index
    %c0_63 = arith.constant 0 : index
    %94 = vector.load %arg9[%c2_61, %c0_62, %c0_63] : memref<10x10x8xf32, #tpu.memory_space<vmem>>, vector<8x8x8xf32>
    %95 = vector.shape_cast %94 : vector<8x8x8xf32> to vector<64x8xf32>
    %96 = arith.truncf %95 : vector<64x8xf32> to vector<64x8xbf16>
    %c2_64 = arith.constant 2 : index
    %c1_65 = arith.constant 1 : index
    %c0_66 = arith.constant 0 : index
    %97 = vector.load %arg9[%c2_64, %c1_65, %c0_66] : memref<10x10x8xf32, #tpu.memory_space<vmem>>, vector<8x8x8xf32>
    %98 = vector.shape_cast %97 : vector<8x8x8xf32> to vector<64x8xf32>
    %99 = arith.truncf %98 : vector<64x8xf32> to vector<64x8xbf16>
    %c2_67 = arith.constant 2 : index
    %c2_68 = arith.constant 2 : index
    %c0_69 = arith.constant 0 : index
    %100 = vector.load %arg9[%c2_67, %c2_68, %c0_69] : memref<10x10x8xf32, #tpu.memory_space<vmem>>, vector<8x8x8xf32>
    %101 = vector.shape_cast %100 : vector<8x8x8xf32> to vector<64x8xf32>
    %102 = arith.truncf %101 : vector<64x8xf32> to vector<64x8xbf16>
    %103 = tpu.concatenate %78, %81, %84, %87, %90, %93, %96, %99, %102 in 1 : vector<64x8xbf16>, vector<64x8xbf16>, vector<64x8xbf16>, vector<64x8xbf16>, vector<64x8xbf16>, vector<64x8xbf16>, vector<64x8xbf16>, vector<64x8xbf16>, vector<64x8xbf16> -> vector<64x72xbf16>
    %c0_70 = arith.constant 0 : index
    %c0_71 = arith.constant 0 : index
    %104 = vector.load %arg4[%c0_70, %c0_71] : memref<72x8xbf16, #tpu.memory_space<vmem>>, vector<72x8xbf16>
    %cst_72 = arith.constant dense<0.000000e+00> : vector<64x8xf32>
    %105 = tpu.matmul %103, %104, %cst_72 {dimension_numbers = #tpu.dot_dimension_numbers<[1], [0], [0], [1], [0, 0, 1, 1], [], []>} : vector<64x72xbf16>, vector<72x8xbf16>, vector<64x8xf32> -> vector<64x8xf32>
    %106 = vector.shape_cast %105 : vector<64x8xf32> to vector<8x8x8xf32>
    %c0_73 = arith.constant 0 : index
    %c0_74 = arith.constant 0 : index
    %107 = vector.load %arg5[%c0_73, %c0_74] : memref<1x8xf32, #tpu.memory_space<vmem>>, vector<1x8xf32>
    %108 = vector.shape_cast %107 : vector<1x8xf32> to vector<1x1x8xf32>
    %109 = vector.broadcast %108 : vector<1x1x8xf32> to vector<8x8x8xf32>
    %110 = arith.addf %106, %109 : vector<8x8x8xf32>
    %111 = arith.addf %110, %68 : vector<8x8x8xf32>
    %cst_75 = arith.constant 0.000000e+00 : f32
    %112 = vector.broadcast %cst_75 : f32 to vector<8x8x8xf32>
    %113 = arith.maximumf %111, %112 : vector<8x8x8xf32>
    %c0_76 = arith.constant 0 : index
    %c0_77 = arith.constant 0 : index
    %c0_78 = arith.constant 0 : index
    %c0_79 = arith.constant 0 : index
    %114 = vector.load %arg7[%c0_76, %c0_77, %c0_78, %c0_79] : memref<1x8x8x8xf32, #tpu.memory_space<vmem>>, vector<1x8x8x8xf32>
    %115 = vector.shape_cast %114 : vector<1x8x8x8xf32> to vector<8x8x8xf32>
    %116 = vector.shape_cast %113 : vector<8x8x8xf32> to vector<1x8x8x8xf32>
    tpu.vector_store %arg7[%c0_76, %c0_77, %c0_78, %c0_79], %116 {strides = array<i32>} : memref<1x8x8x8xf32, #tpu.memory_space<vmem>>, vector<1x8x8x8xf32>,
    return
  }
  func.func @transform_0(%arg0: i32) -> (i32, i32, i32, i32) {
    %c0_i32 = arith.constant 0 : i32
    %c0_i32_0 = arith.constant 0 : i32
    %c0_i32_1 = arith.constant 0 : i32
    %c0_i32_2 = arith.constant 0 : i32
    return %arg0, %c0_i32, %c0_i32_0, %c0_i32_1 : i32, i32, i32, i32
  }
  func.func @transform_1(%arg0: i32) -> (i32, i32) {
    %c0_i32 = arith.constant 0 : i32
    %c0_i32_0 = arith.constant 0 : i32
    %c0_i32_1 = arith.constant 0 : i32
    return %c0_i32, %c0_i32_0 : i32, i32
  }
  func.func @transform_2(%arg0: i32) -> (i32, i32) {
    %c0_i32 = arith.constant 0 : i32
    %c0_i32_0 = arith.constant 0 : i32
    %c0_i32_1 = arith.constant 0 : i32
    return %c0_i32, %c0_i32_0 : i32, i32
  }
  func.func @transform_3(%arg0: i32) -> (i32, i32) {
    %c0_i32 = arith.constant 0 : i32
    %c0_i32_0 = arith.constant 0 : i32
    %c0_i32_1 = arith.constant 0 : i32
    return %c0_i32, %c0_i32_0 : i32, i32
  }
  func.func @transform_4(%arg0: i32) -> (i32, i32) {
    %c0_i32 = arith.constant 0 : i32
    %c0_i32_0 = arith.constant 0 : i32
    %c0_i32_1 = arith.constant 0 : i32
    return %c0_i32, %c0_i32_0 : i32, i32
  }
  func.func @transform_5(%arg0: i32) -> (i32, i32) {
    %c0_i32 = arith.constant 0 : i32
    %c0_i32_0 = arith.constant 0 : i32
    %c0_i32_1 = arith.constant 0 : i32
    return %c0_i32, %c0_i32_0 : i32, i32
  }
  func.func @transform_6(%arg0: i32) -> (i32, i32, i32, i32) {
    %c0_i32 = arith.constant 0 : i32
    %c0_i32_0 = arith.constant 0 : i32
    %c0_i32_1 = arith.constant 0 : i32
    %c0_i32_2 = arith.constant 0 : i32
    return %arg0, %c0_i32, %c0_i32_0, %c0_i32_1 : i32, i32, i32, i32
  }
}

</mosaic_0001>

<bundles_post_ra>
// kernel: tpu_custom_call.1
= control target key start
LH: loop header
LB: loop body
LE: loop exit
PB: predicated region body
PF: predicated region fallthrough
CT: control target
= control target key end

     0   :  { %11 = vsyncpa [#allocation5], 0  ;;  %s5629_s0 = inlined_call_operand.vmem [shape: f32[2,16,16,4], index: 0, kind: input, shape index: {}]   ;;  %s5630_s1 = inlined_call_operand.vmem [shape: bf16[36,16], index: 1, kind: input, shape index: {}]   ;;  %s5631_s2 = inlined_call_operand.vmem [shape: f32[1,8], index: 2, kind: input, shape index: {}]   ;;  %s5632_s3 = inlined_call_operand.vmem [shape: bf16[72,8], index: 3, kind: input, shape index: {}]   ;;  %s5633_s4 = inlined_call_operand.vmem [shape: f32[1,8], index: 4, kind: input, shape index: {}]   ;;  %s5634_s5 = inlined_call_operand.vmem [shape: f32[1,8], index: 5, kind: input, shape index: {}]   ;;  %s5635_s6 = inlined_call_operand.hbm [shape: f32[2,8,8,8], index: 6, kind: output, shape index: {}]  }
   0x1   :  { %13 = vsyncpa [#allocation5 + $0x1], 0  ;;  %s3590_s21 = smov 0   ;;  %s3592_s22 = smov 0  }
   0x2   :  { %s3594_s23 = smov 0   ;;  %s3596_s24 = smov 0  }
   0x3 LB: > { %s3611_s25 = sadd.s32 4294967295, %s3536_s24   ;;  %s3279_s26 = sadd.s32 4294967294, %s3536_s24   ;;  %s3536_s24 = sphi %s3596_s24, %s6015_s24   ;;  %s3532_s23 = sphi %s3594_s23, %s6014_s23   ;;  %s3528_s22 = sphi %s3592_s22, %s6013_s22   ;;  %s3524_s21 = sphi %s3590_s21, %s6012_s21  }
   0x4   : > { %s3615_s27 = sadd.s32 1, %s3536_s24   ;;  %s157_s28 = sadd.s32 1, %s3532_s23 }
   0x5   : > { %s154_s29 = ssub.s32 %s3536_s24, %s3615_s27  ;;  %p167_p0 = scmp.ne.s32.totalorder %s3532_s23, %s3528_s22 }
   0x6   : > { %p155_p1 = scmp.eq.s32.totalorder %s154_s29, 0  ;;  %p168_p2 = scmp.eq.s32.totalorder %s3611_s25, 1 }
   0x7   : > { %p173_p3 = scmp.ne.s32.totalorder %s3528_s22, %s3524_s21  ;;  %p174_p4 = scmp.eq.s32.totalorder %s3279_s26, 1 }
   0x8   : > { %s3626_s30 = scalar_select %p155_p1, %s3532_s23, %s157_s28  }
   0x9   : > { %p3628_p5 = por %p168_p2, %p167_p0  ;;  %p3632_p6 = por %p174_p4, %p173_p3 }
   0xa   : > { %p3282_p7 = scmp.ge.s32.totalorder %s3536_s24, 1  ;;  %p215_p8 = scmp.lt.s32.totalorder %s3536_s24, 3 }
   0xc   : > { %p216_p9 = pnand %p3282_p7, %p215_p8 }
   0xe   : > { %219 = sbr.rel (%p216_p9) target bundleno = 1049 (0x419), region = 44 }
  0x13   : > { %p245_p10 = scmp.lt.s32.totalorder %s3611_s25, 1  ;;  %vm283_vm0 = vcmask 31744   ;;  %vm292_vm1 = vcmask 24576   ;;  %v5636_v0 = vmov 0.0   ;;  %v3539_v1 = vmov 1983009808  }
  0x14   : > { %298 = vst.msk [vmem:[#allocation2 + $0x78] sm:$0x1] %vm292_vm1, %v5636_v0  ;;  %300 = vst.msk [vmem:[#allocation2 + $0xa8] sm:$0x1] %vm292_vm1, %v5636_v0  ;;  %v442_v2 = vunpack.c.l.s4 %v3539_v1  ;;  %v444_v3 = vlaneseq  ;;  %vm1596_vm2 = vcmask 1041409   ;;  %vm1599_vm3 = vcmask 1042434  }
  0x15   : > { %284 = vst.msk [vmem:[#allocation2] sm:$0xff] %vm283_vm0, %v5636_v0  ;;  %285 = vst.msk [vmem:[#allocation2 + $0x8] sm:$0xff] %vm283_vm0, %v5636_v0  ;;  %s246_s9 = scalar_select %p245_p10, %s3611_s25, 1  ;;  %vm1602_vm4 = vcmask 1043459   ;;  %vm1605_vm5 = vcmask 1044484   ;;  %vm1608_vm6 = vcmask 1045509  }
  0x16   : > { %294 = vst.msk [vmem:[#allocation2 + $0x18] sm:$0x1] %vm292_vm1, %v5636_v0  ;;  %295 = vst.msk [vmem:[#allocation2 + $0x30] sm:$0x1] %vm292_vm1, %v5636_v0  ;;  %v443_v4 = vunpack.c.0.s8 %v442_v2  ;;  %v445_v5 = vshrl.u32 %v444_v3, 7  ;;  %vm1611_vm7 = vcmask 1046534  }
  0x17   : > { %296 = vst.msk [vmem:[#allocation2 + $0x48] sm:$0x1] %vm292_vm1, %v5636_v0  ;;  %297 = vst.msk [vmem:[#allocation2 + $0x60] sm:$0x1] %vm292_vm1, %v5636_v0  ;;  %s3327_s10 = sshll.u32 %s246_s9, 8  ;;  %vm1614_vm8 = vcmask 1047559  }
  0x18   : > { %299 = vst.msk [vmem:[#allocation2 + $0x90] sm:$0x1] %vm292_vm1, %v5636_v0  ;;  %301 = vst.msk [vmem:[#allocation2 + $0xc0] sm:$0x1] %vm292_vm1, %v5636_v0  ;;  %s3715_s13 = scalar_lea.vmem %s5629_s0, %s3327_s10  ;;  %v3724_v10 = vsub.s32 %v443_v4, %v445_v5  ;;  %s3540_s14 = smov 12   ;;  %vm286_vm9 = vcmask 25600  }
  0x19   : > { %302 = vst.msk [vmem:[#allocation2 + $0xd8] sm:$0x1] %vm292_vm1, %v5636_v0  ;;  %303 = vst.msk [vmem:[#allocation2 + $0xf0] sm:$0x1] %vm292_vm1, %v5636_v0  ;;  %v259_v6 = vld [vmem:[%s3715_s13 + $0x40] sm:$0xff]  ;;  %v260_v7 = vld [vmem:[%s3715_s13 + $0x48] sm:$0xff] }
  0x1a   : > { %304 = vst.msk [vmem:[#allocation2 + $0x108] sm:$0x1] %vm292_vm1, %v5636_v0  ;;  %305 = vst.msk [vmem:[#allocation2 + $0x120] sm:$0x1] %vm292_vm1, %v5636_v0  ;;  %v263_v8 = vld [vmem:[%s3715_s13 + $0x60] sm:$0xff]  ;;  %v264_v9 = vld [vmem:[%s3715_s13 + $0x68] sm:$0xff] }
  0x1b   : > { %306 = vst.msk [vmem:[#allocation2 + $0x138] sm:$0x1] %vm292_vm1, %v5636_v0  ;;  %307 = vst.msk [vmem:[#allocation2 + $0x150] sm:$0x1] %vm292_vm1, %v5636_v0  ;;  %v253_v11 = vld [vmem:[%s3715_s13 + $0x10] sm:$0xff]  ;;  %v254_v12 = vld [vmem:[%s3715_s13 + $0x18] sm:$0xff] }
  0x1c   : > { %308 = vst.msk [vmem:[#allocation2 + $0x168] sm:$0x1] %vm292_vm1, %v5636_v0  ;;  %309 = vst.msk [vmem:[#allocation2 + $0x180] sm:$0x1] %vm292_vm1, %v5636_v0  ;;  %v257_v13 = vld [vmem:[%s3715_s13 + $0x30] sm:$0xff]  ;;  %v258_v14 = vld [vmem:[%s3715_s13 + $0x38] sm:$0xff] }
  0x1d   : > { %312 = vst.msk [vmem:[#allocation2 + $0x29] sm:$0x1] %vm292_vm1, %v5636_v0  ;;  %313 = vst.msk [vmem:[#allocation2 + $0x41] sm:$0x1] %vm292_vm1, %v5636_v0  ;;  %v363_v15 = vld [vmem:[#allocation2 + $0x8] sm:$0xff]  ;;  %v261_v19 = vld [vmem:[%s3715_s13 + $0x50] sm:$0xff] }
  0x1e   : > { %314 = vst.msk [vmem:[#allocation2 + $0x59] sm:$0x1] %vm292_vm1, %v5636_v0  ;;  %315 = vst.msk [vmem:[#allocation2 + $0x71] sm:$0x1] %vm292_vm1, %v5636_v0  ;;  %v457_v17 = vcombine.high %v363_v15, %v363_v15  ;;  %v464_v18 = vrot.slane %v363_v15, %v3724_v10  ;;  %v262_v20 = vld [vmem:[%s3715_s13 + $0x58] sm:$0xff]  ;;  %v265_v23 = vld [vmem:[%s3715_s13 + $0x70] sm:$0xff] }
  0x1f   : > { %316 = vst.msk [vmem:[#allocation2 + $0x89] sm:$0x1] %vm292_vm1, %v5636_v0  ;;  %317 = vst.msk [vmem:[#allocation2 + $0xa1] sm:$0x1] %vm292_vm1, %v5636_v0  ;;  %v266_v24 = vld [vmem:[%s3715_s13 + $0x78] sm:$0xff]  ;;  %v251_v25 = vld [vmem:[%s3715_s13] sm:$0xff] }
  0x20   : > { %318 = vst.msk [vmem:[#allocation2 + $0xb9] sm:$0x1] %vm292_vm1, %v5636_v0  ;;  %319 = vst.msk [vmem:[#allocation2 + $0xd1] sm:$0x1] %vm292_vm1, %v5636_v0  ;;  %v3745_v26 = vrot.slane %v457_v17, %v3724_v10  ;;  %v3747_v27 = vcombine.high %v464_v18, %v464_v18  ;;  %v1318_v28 = vpack.c.bf16 %v464_v18, %v464_v18  ;;  %v252_v29 = vld [vmem:[%s3715_s13 + $0x8] sm:$0xff]  ;;  %v255_v30 = vld [vmem:[%s3715_s13 + $0x20] sm:$0xff] }
  0x21   : > { %320 = vst.msk [vmem:[#allocation2 + $0xe9] sm:$0x1] %vm292_vm1, %v5636_v0  ;;  %321 = vst.msk [vmem:[#allocation2 + $0x101] sm:$0x1] %vm292_vm1, %v5636_v0  ;;  %v256_v31 = vld [vmem:[%s3715_s13 + $0x28] sm:$0xff]  ;;  %v269_v35 = vld [vmem:[%s3715_s13 + $0x90] sm:$0xff] }
  0x22   : > { %322 = vst.msk [vmem:[#allocation2 + $0x119] sm:$0x1] %vm292_vm1, %v5636_v0  ;;  %323 = vst.msk [vmem:[#allocation2 + $0x131] sm:$0x1] %vm292_vm1, %v5636_v0  ;;  %v270_v36 = vld [vmem:[%s3715_s13 + $0x98] sm:$0xff]  ;;  %v273_v37 = vld [vmem:[%s3715_s13 + $0xb0] sm:$0xff]  ;;  %v3768_v38 = vcombine.high %v3745_v26, %v3745_v26  ;;  %v1319_v39 = vpack.c.bf16 %v3747_v27, %v3747_v27  ;;  %v1320_v40 = vpack.c.bf16 %v3745_v26, %v3745_v26  ;;  %v3774_v41 = vunpack.c.l.b16 %v1318_v28 }
  0x23   : > { %324 = vst.msk [vmem:[#allocation2 + $0x149] sm:$0x1] %vm292_vm1, %v5636_v0  ;;  %325 = vst.msk [vmem:[#allocation2 + $0x161] sm:$0x1] %vm292_vm1, %v5636_v0  ;;  %v274_v42 = vld [vmem:[%s3715_s13 + $0xb8] sm:$0xff]  ;;  %v277_v43 = vld [vmem:[%s3715_s13 + $0xd0] sm:$0xff] }
  0x24   : > { %326 = vst.msk [vmem:[#allocation2 + $0x179] sm:$0x1] %vm292_vm1, %v5636_v0  ;;  %327 = vst.msk [vmem:[#allocation2 + $0x191] sm:$0x1] %vm292_vm1, %v5636_v0  ;;  %v278_v44 = vld [vmem:[%s3715_s13 + $0xd8] sm:$0xff]  ;;  %s3541_s15 = smov 4  }
  0x25   : > { %293 = vst.msk [vmem:[#allocation2] sm:$0x1] %vm292_vm1, %v5636_v0  ;;  %s3542_s16 = smov 16   ;;  %s3543_s17 = smov 24   ;;  %vm2504_vm10 = vcmask 64512   ;;  %vm2596_vm11 = vcmask 1041408  }
  0x26   : > { %338 = vst.msk [vmem:[#allocation2 + $0x79] sm:$0xff] %vm283_vm0, %v259_v6  ;;  %339 = vst.msk [vmem:[#allocation2 + $0x81] sm:$0xff] %vm283_vm0, %v260_v7  ;;  %s3544_s18 = smov 28   ;;  %s3545_s19 = smov 20   ;;  %vm2513_vm12 = vcmask 97280   ;;  %vm2522_vm13 = vcmask 130048  }
  0x27   : > { %342 = vst.msk [vmem:[#allocation2 + $0xa9] sm:$0xff] %vm283_vm0, %v263_v8  ;;  %343 = vst.msk [vmem:[#allocation2 + $0xb1] sm:$0xff] %vm283_vm0, %v264_v9  ;;  %s3546_s20 = smov 8   ;;  %s3547_s26 = smov 32   ;;  %vm2531_vm14 = vcmask 162816   ;;  %vm2540_vm15 = vcmask 195584  }
  0x28   : > { %332 = vst.msk [vmem:[#allocation2 + $0x31] sm:$0xff] %vm283_vm0, %v253_v11  ;;  %333 = vst.msk [vmem:[#allocation2 + $0x39] sm:$0xff] %vm283_vm0, %v254_v12  ;;  %s3549_s11 = smov 48   ;;  %s3328_s12 = sshll.u32 %s3611_s25, 10 }
  0x29   : > { %336 = vst.msk [vmem:[#allocation2 + $0x61] sm:$0xff] %vm283_vm0, %v257_v13  ;;  %337 = vst.msk [vmem:[#allocation2 + $0x69] sm:$0xff] %vm283_vm0, %v258_v14 }
  0x2a   : > { %340 = vst.msk [vmem:[#allocation2 + $0x91] sm:$0xff] %vm283_vm0, %v261_v19  ;;  %341 = vst.msk [vmem:[#allocation2 + $0x99] sm:$0xff] %vm283_vm0, %v262_v20 }
  0x2b   : > { %344 = vst.msk [vmem:[#allocation2 + $0xc1] sm:$0xff] %vm283_vm0, %v265_v23  ;;  %345 = vst.msk [vmem:[#allocation2 + $0xc9] sm:$0xff] %vm283_vm0, %v266_v24 }
  0x2c   : > { %v362_v16 = vld [vmem:[#allocation2] sm:$0xff]  ;;  %330 = vst.msk [vmem:[#allocation2 + $0x19] sm:$0xff] %vm283_vm0, %v251_v25  ;;  %331 = vst.msk [vmem:[#allocation2 + $0x21] sm:$0xff] %vm283_vm0, %v252_v29 }
  0x2d   : > { %v440_v21 = vcombine.high %v362_v16, %v362_v16  ;;  %v447_v22 = vrot.slane %v362_v16, %v3724_v10  ;;  %334 = vst.msk [vmem:[#allocation2 + $0x49] sm:$0xff] %vm283_vm0, %v255_v30  ;;  %335 = vst.msk [vmem:[#allocation2 + $0x51] sm:$0xff] %vm283_vm0, %v256_v31  ;;  %v377_v45 = vld [vmem:[#allocation2 + $0x78] sm:$0xff]  ;;  %v378_v46 = vld [vmem:[#allocation2 + $0x80] sm:$0xff] }
  0x2e   : > { %348 = vst.msk [vmem:[#allocation2 + $0xf1] sm:$0xff] %vm283_vm0, %v269_v35  ;;  %349 = vst.msk [vmem:[#allocation2 + $0xf9] sm:$0xff] %vm283_vm0, %v270_v36  ;;  %v383_v47 = vld [vmem:[#allocation2 + $0xa8] sm:$0xff]  ;;  %v384_v52 = vld [vmem:[#allocation2 + $0xb0] sm:$0xff]  ;;  %v996_v53 = vcombine.high %v377_v45, %v377_v45  ;;  %v1003_v54 = vrot.slane %v377_v45, %v3724_v10  ;;  %v1013_v55 = vcombine.high %v378_v46, %v378_v46 }
  0x2f   : > { %v3756_v32 = vrot.slane %v440_v21, %v3724_v10  ;;  %v3758_v33 = vcombine.high %v447_v22, %v447_v22  ;;  %v1314_v34 = vpack.c.bf16 %v447_v22, %v447_v22  ;;  %352 = vst.msk [vmem:[#allocation2 + $0x121] sm:$0xff] %vm283_vm0, %v273_v37  ;;  %353 = vst.msk [vmem:[#allocation2 + $0x129] sm:$0xff] %vm283_vm0, %v274_v42 }
  0x30   : > { %356 = vst.msk [vmem:[#allocation2 + $0x151] sm:$0xff] %vm283_vm0, %v277_v43  ;;  %357 = vst.msk [vmem:[#allocation2 + $0x159] sm:$0xff] %vm283_vm0, %v278_v44  ;;  %v1020_v56 = vrot.slane %v378_v46, %v3724_v10  ;;  %v1037_v57 = vcombine.high %v383_v47, %v383_v47  ;;  %v1044_v58 = vrot.slane %v383_v47, %v3724_v10 }
  0x31   : > { %v3784_v48 = vcombine.high %v3756_v32, %v3756_v32  ;;  %v1315_v49 = vpack.c.bf16 %v3758_v33, %v3758_v33  ;;  %v1316_v50 = vpack.c.bf16 %v3756_v32, %v3756_v32  ;;  %v3790_v51 = vunpack.c.l.b16 %v1314_v34 }
  0x32   : > { %v1054_v59 = vcombine.high %v384_v52, %v384_v52  ;;  %v1061_v60 = vrot.slane %v384_v52, %v3724_v10  ;;  %v1010_v61 = vrot.slane %v996_v53, %v3724_v10  ;;  %v1011_v62 = vcombine.high %v1003_v54, %v1003_v54 }
  0x33   : > { %v1027_v63 = vrot.slane %v1013_v55, %v3724_v10  ;;  %v1028_v1 = vcombine.high %v1020_v56, %v1020_v56  ;;  %v1051_v2 = vrot.slane %v1037_v57, %v3724_v10  ;;  %v1052_v3 = vcombine.high %v1044_v58, %v1044_v58 }
  0x34   : > { %v1068_v4 = vrot.slane %v1054_v59, %v3724_v10  ;;  %v1069_v5 = vcombine.high %v1061_v60, %v1061_v60  ;;  %v1012_v6 = vcombine.high %v1010_v61, %v1010_v61  ;;  %v1402_v8 = vpack.c.bf16 %v1003_v54, %v1003_v54 }
  0x35   : > { %v1029_v7 = vcombine.high %v1027_v63, %v1027_v63  ;;  %v1403_v9 = vpack.c.bf16 %v1011_v62, %v1011_v62  ;;  %v1053_v11 = vcombine.high %v1051_v2, %v1051_v2  ;;  %v1404_v13 = vpack.c.bf16 %v1010_v61, %v1010_v61 }
  0x36   : > { %v1070_v12 = vcombine.high %v1068_v4, %v1068_v4  ;;  %v1406_v14 = vpack.c.bf16 %v1020_v56, %v1020_v56  ;;  %v1405_v15 = vpack.c.bf16 %v1012_v6, %v1012_v6  ;;  %v1407_v16 = vpack.c.bf16 %v1028_v1, %v1028_v1 }
  0x37   : > { %v1408_v17 = vpack.c.bf16 %v1027_v63, %v1027_v63  ;;  %v1409_v18 = vpack.c.bf16 %v1029_v7, %v1029_v7  ;;  %v1410_v19 = vpack.c.bf16 %v1044_v58, %v1044_v58  ;;  %v1411_v20 = vpack.c.bf16 %v1052_v3, %v1052_v3 }
  0x38   : > { %v1412_v21 = vpack.c.bf16 %v1051_v2, %v1051_v2  ;;  %v1413_v22 = vpack.c.bf16 %v1053_v11, %v1053_v11  ;;  %v1414_v23 = vpack.c.bf16 %v1061_v60, %v1061_v60  ;;  %v1415_v24 = vpack.c.bf16 %v1069_v5, %v1069_v5 }
  0x39   : > { %v1416_v25 = vpack.c.bf16 %v1068_v4, %v1068_v4  ;;  %v1417_v28 = vpack.c.bf16 %v1070_v12, %v1070_v12  ;;  %v3803_v29 = vunpack.c.l.b16 %v1402_v8  ;;  %v3805_v30 = vunpack.c.l.b16 %v1403_v9  ;;  %v368_v4 = vld [vmem:[#allocation2 + $0x30] sm:$0xff]  ;;  %v369_v9 = vld [vmem:[#allocation2 + $0x38] sm:$0xff] }
  0x3a   : > { %v3807_v31 = vunpack.c.l.b16 %v1404_v13  ;;  %v3809_v34 = vunpack.c.l.b16 %v1405_v15  ;;  %v3811_v35 = vunpack.c.l.b16 %v1406_v14  ;;  %v3813_v36 = vunpack.c.l.b16 %v1407_v16 }
  0x3b   : > { %5783 = vst [vmem:[#allocation7_spill] sm:$0xff] %v3805_v30  ;;  %v3815_v37 = vunpack.c.l.b16 %v1408_v17  ;;  %v3817_v42 = vunpack.c.l.b16 %v1409_v18  ;;  %v3819_v43 = vunpack.c.l.b16 %v1410_v19  ;;  %v3821_v44 = vunpack.c.l.b16 %v1411_v20 }
  0x3c   : > { %5784 = vst [vmem:[#allocation8_spill] sm:$0xff] %v3807_v31  ;;  %5785 = vst [vmem:[#allocation9_spill] sm:$0xff] %v3809_v34  ;;  %v3823_v45 = vunpack.c.l.b16 %v1412_v21  ;;  %v3825_v46 = vunpack.c.l.b16 %v1413_v22  ;;  %v3827_v47 = vunpack.c.l.b16 %v1414_v23  ;;  %v3829_v52 = vunpack.c.l.b16 %v1415_v24  ;;  %v374_v21 = vld [vmem:[#allocation2 + $0x60] sm:$0xff] }
  0x3d   : > { %5786 = vst [vmem:[#allocation10_spill] sm:$0xff] %v3811_v35  ;;  %5787 = vst [vmem:[#allocation11_spill] sm:$0xff] %v3813_v36  ;;  %v3831_v53 = vunpack.c.l.b16 %v1416_v25  ;;  %v3833_v54 = vunpack.c.l.b16 %v1417_v28  ;;  %v2090_v55 = vrot.slane %v3805_v30, 7  ;;  %v2092_v56 = vrot.slane %v3807_v31, 6  ;;  %v375_v28 = vld [vmem:[#allocation2 + $0x68] sm:$0xff] }
  0x3e   : > { %5788 = vst [vmem:[#allocation12_spill] sm:$0xff] %v3815_v37  ;;  %5789 = vst [vmem:[#allocation13_spill] sm:$0xff] %v3817_v42  ;;  %v2094_v57 = vrot.slane %v3809_v34, 5  ;;  %v2096_v58 = vrot.slane %v3811_v35, 4  ;;  %v2098_v59 = vrot.slane %v3813_v36, 3  ;;  %v2100_v60 = vrot.slane %v3815_v37, 2 }
  0x3f   : > { %5790 = vst [vmem:[#allocation14_spill] sm:$0xff] %v3821_v44  ;;  %5791 = vst [vmem:[#allocation15_spill] sm:$0xff] %v3823_v45  ;;  %v2102_v61 = vrot.slane %v3817_v42, 1  ;;  %v2104_v62 = vrot.slane %v3821_v44, 7  ;;  %v2091_v63 = vsel %vm1596_vm2, %v2090_v55, %v3803_v29  ;;  %v2106_v1 = vrot.slane %v3823_v45, 6 }
  0x40   : > { %5792 = vst [vmem:[#allocation16_spill] sm:$0xff] %v3825_v46  ;;  %5793 = vst [vmem:[#allocation17_spill] sm:$0xff] %v3827_v47  ;;  %v2108_v2 = vrot.slane %v3825_v46, 5  ;;  %v2110_v3 = vrot.slane %v3827_v47, 4  ;;  %v2093_v5 = vsel %vm1599_vm3, %v2092_v56, %v2091_v63  ;;  %v2112_v7 = vrot.slane %v3829_v52, 3 }
  0x41   : > { %5794 = vst [vmem:[#allocation18_spill] sm:$0xff] %v3829_v52  ;;  %5795 = vst [vmem:[#allocation19_spill] sm:$0xff] %v3831_v53  ;;  %v2105_v6 = vsel %vm1596_vm2, %v2104_v62, %v3819_v43  ;;  %v2114_v8 = vrot.slane %v3831_v53, 2  ;;  %v2095_v11 = vsel %vm1602_vm4, %v2094_v57, %v2093_v5  ;;  %v2116_v13 = vrot.slane %v3833_v54, 1 }
  0x42   : > { %5796 = vst [vmem:[#allocation20_spill] sm:$0xff] %v3833_v54  ;;  %v2107_v12 = vsel %vm1599_vm3, %v2106_v1, %v2105_v6  ;;  %v2214_v14 = vrot.slane %v3803_v29, 1  ;;  %v2097_v15 = vsel %vm1605_vm5, %v2096_v58, %v2095_v11  ;;  %v2228_v17 = vrot.slane %v3819_v43, 1 }
  0x43   : > { %v2109_v16 = vsel %vm1602_vm4, %v2108_v2, %v2107_v12  ;;  %v481_v18 = vcombine.high %v368_v4, %v368_v4  ;;  %v2099_v19 = vsel %vm1608_vm6, %v2098_v59, %v2097_v15  ;;  %v488_v22 = vrot.slane %v368_v4, %v3724_v10 }
  0x44   : > { %v2111_v20 = vsel %vm1605_vm5, %v2110_v3, %v2109_v16  ;;  %v498_v23 = vcombine.high %v369_v9, %v369_v9  ;;  %v2101_v24 = vsel %vm1611_vm7, %v2100_v60, %v2099_v19  ;;  %v505_v56 = vrot.slane %v369_v9, %v3724_v10 }
  0x45   : > { %v2113_v25 = vsel %vm1608_vm6, %v2112_v7, %v2111_v20  ;;  %v495_v55 = vrot.slane %v481_v18, %v3724_v10  ;;  %v2103_v57 = vsel %vm1614_vm8, %v2102_v61, %v2101_v24  ;;  %v496_v59 = vcombine.high %v488_v22, %v488_v22 }
  0x46   : > { %v2115_v58 = vsel %vm1611_vm7, %v2114_v8, %v2113_v25  ;;  %v512_v62 = vrot.slane %v498_v23, %v3724_v10  ;;  %v513_v2 = vcombine.high %v505_v56, %v505_v56  ;;  %v522_v3 = vcombine.high %v374_v21, %v374_v21 }
  0x47   : > { %v2117_v63 = vsel %vm1614_vm8, %v2116_v13, %v2115_v58  ;;  %v497_v1 = vcombine.high %v495_v55, %v495_v55  ;;  %v529_v5 = vrot.slane %v374_v21, %v3724_v10  ;;  %v539_v6 = vcombine.high %v375_v28, %v375_v28 }
  0x48   : > { %v2175_v60 = vpack.c.b16 %v2117_v63, %v2103_v57  ;;  %v514_v4 = vcombine.high %v512_v62, %v512_v62  ;;  %v536_v7 = vrot.slane %v522_v3, %v3724_v10  ;;  %v546_v9 = vrot.slane %v375_v28, %v3724_v10 }
  0x49   : > { %v1317_v61 = vpack.c.bf16 %v3784_v48, %v3784_v48  ;;  %v1321_v8 = vpack.c.bf16 %v3768_v38, %v3768_v38  ;;  %v537_v11 = vcombine.high %v529_v5, %v529_v5  ;;  %v553_v12 = vrot.slane %v539_v6, %v3724_v10 }
  0x4a   : > { %2180 = vrot.lane.b32.xlu1 %v2175_v60, %s3540_s14  ;;  %v1322_v13 = vpack.c.bf16 %v488_v22, %v488_v22  ;;  %v1323_v15 = vpack.c.bf16 %v496_v59, %v496_v59  ;;  %v538_v16 = vcombine.high %v536_v7, %v536_v7  ;;  %v554_v18 = vcombine.high %v546_v9, %v546_v9 }
  0x4b   : > { %v1324_v19 = vpack.c.bf16 %v495_v55, %v495_v55  ;;  %v1325_v20 = vpack.c.bf16 %v497_v1, %v497_v1  ;;  %v555_v21 = vcombine.high %v553_v12, %v553_v12  ;;  %v1326_v23 = vpack.c.bf16 %v505_v56, %v505_v56 }
  0x4c   : > { %v1327_v24 = vpack.c.bf16 %v513_v2, %v513_v2  ;;  %v1328_v25 = vpack.c.bf16 %v512_v62, %v512_v62  ;;  %v1329_v48 = vpack.c.bf16 %v514_v4, %v514_v4  ;;  %v1330_v28 = vpack.c.bf16 %v529_v5, %v529_v5 }
  0x4d   : > { %v1331_v57 = vpack.c.bf16 %v537_v11, %v537_v11  ;;  %v1332_v38 = vpack.c.bf16 %v536_v7, %v536_v7  ;;  %v1333_v58 = vpack.c.bf16 %v538_v16, %v538_v16  ;;  %v1334_v63 = vpack.c.bf16 %v546_v9, %v546_v9 }
  0x4e   : > { %v1335_v3 = vpack.c.bf16 %v554_v18, %v554_v18  ;;  %v1336_v60 = vpack.c.bf16 %v553_v12, %v553_v12  ;;  %v1337_v0 = vpack.c.bf16 %v555_v21, %v555_v21  ;;  %v3883_v22 = vunpack.c.l.b16 %v1315_v49  ;;  %v275_v12 = vld [vmem:[%s3715_s13 + $0xc0] sm:$0xff] }
  0x4f   : > { %v3888_v55 = vunpack.c.l.b16 %v1316_v50  ;;  %v3890_v56 = vunpack.c.l.b16 %v1317_v61  ;;  %v3895_v59 = vunpack.c.l.b16 %v1319_v39  ;;  %v3900_v62 = vunpack.c.l.b16 %v1320_v40  ;;  %354 = vst.msk [vmem:[#allocation2 + $0x139] sm:$0xff] %vm283_vm0, %v275_v12 }
  0x50   : > { %v3902_v33 = vunpack.c.l.b16 %v1321_v8  ;;  %v3904_v49 = vunpack.c.l.b16 %v1322_v13  ;;  %v3906_v1 = vunpack.c.l.b16 %v1323_v15  ;;  %v3908_v32 = vunpack.c.l.b16 %v1324_v19  ;;  %v279_v13 = vld [vmem:[%s3715_s13 + $0xe0] sm:$0xff] }
  0x51   : > { %v3910_v50 = vunpack.c.l.b16 %v1325_v20  ;;  %v3912_v27 = vunpack.c.l.b16 %v1326_v23  ;;  %v3914_v39 = vunpack.c.l.b16 %v1327_v24  ;;  %v3916_v2 = vunpack.c.l.b16 %v1328_v25  ;;  %358 = vst.msk [vmem:[#allocation2 + $0x169] sm:$0xff] %vm283_vm0, %v279_v13 }
  0x52   : > { %v3918_v26 = vunpack.c.l.b16 %v1329_v48  ;;  %v3920_v40 = vunpack.c.l.b16 %v1330_v28  ;;  %v3922_v4 = vunpack.c.l.b16 %v1331_v57  ;;  %v3924_v5 = vunpack.c.l.b16 %v1332_v38 }
  0x53   : > { %v3926_v6 = vunpack.c.l.b16 %v1333_v58  ;;  %v3928_v7 = vunpack.c.l.b16 %v1334_v63  ;;  %v3930_v9 = vunpack.c.l.b16 %v1335_v3  ;;  %v3932_v61 = vunpack.c.l.b16 %v1336_v60  ;;  %v276_v3 = vld [vmem:[%s3715_s13 + $0xc8] sm:$0xff] }
  0x54   : > { %5797 = vst [vmem:[#allocation21_spill] sm:$0xff] %v3920_v40  ;;  %5798 = vst [vmem:[#allocation22_spill] sm:$0xff] %v3922_v4  ;;  %v3934_v8 = vunpack.c.l.b16 %v1337_v0  ;;  %v1718_v20 = vrot.slane %v3790_v51, 1  ;;  %v5638_v21 = vrot.slane %v3888_v55, 7  ;;  %v5639_v23 = vrot.slane %v3890_v56, 6  ;;  %v280_v60 = vld [vmem:[%s3715_s13 + $0xe8] sm:$0xff] }
  0x55   : > { %5799 = vst [vmem:[#allocation23_spill] sm:$0xff] %v3924_v5  ;;  %5800 = vst [vmem:[#allocation24_spill] sm:$0xff] %v3926_v6  ;;  %v5640_v24 = vrot.slane %v3774_v41, 5  ;;  %v5641_v25 = vrot.slane %v3895_v59, 4  ;;  %v5656_v48 = vrot.slane %v3900_v62, 3  ;;  %v5652_v28 = vrot.slane %v3902_v33, 2 }
  0x56   : > { %5801 = vst [vmem:[#allocation25_spill] sm:$0xff] %v3928_v7  ;;  %5802 = vst [vmem:[#allocation26_spill] sm:$0xff] %v3930_v9  ;;  %v1719_v57 = vsel %vm1596_vm2, %v3883_v22, %v1718_v20  ;;  %v1732_v38 = vrot.slane %v3904_v49, 1  ;;  %v5664_v58 = vrot.slane %v3908_v32, 7  ;;  %v5657_v63 = vrot.slane %v3910_v50, 6 }
  0x57   : > { %5803 = vst [vmem:[#allocation27_spill] sm:$0xff] %v3932_v61  ;;  %5804 = vst [vmem:[#allocation28_spill] sm:$0xff] %v3934_v8  ;;  %v1721_v12 = vsel %vm1599_vm3, %v5638_v21, %v1719_v57  ;;  %v5655_v13 = vrot.slane %v3912_v27, 5  ;;  %v5651_v0 = vrot.slane %v3914_v39, 4  ;;  %v5645_v19 = vrot.slane %v3916_v2, 3 }
  0x58   : > { %355 = vst.msk [vmem:[#allocation2 + $0x141] sm:$0xff] %vm283_vm0, %v276_v3  ;;  %359 = vst.msk [vmem:[#allocation2 + $0x171] sm:$0xff] %vm283_vm0, %v280_v60  ;;  %v1723_v20 = vsel %vm1602_vm4, %v5639_v23, %v1721_v12  ;;  %v1733_v18 = vsel %vm1596_vm2, %v3906_v1, %v1732_v38  ;;  %v5647_v16 = vrot.slane %v3918_v26, 2  ;;  %v1746_v57 = vrot.slane %v3920_v40, 1 }
  0x59   : > { %v1725_v21 = vsel %vm1605_vm5, %v5640_v24, %v1723_v20  ;;  %v1735_v3 = vsel %vm1599_vm3, %v5664_v58, %v1733_v18  ;;  %v5642_v60 = vrot.slane %v3924_v5, 7  ;;  %v5643_v15 = vrot.slane %v3926_v6, 6 }
  0x5a   : > { %v1727_v38 = vsel %vm1608_vm6, %v5641_v25, %v1725_v21  ;;  %v1737_v12 = vsel %vm1602_vm4, %v5657_v63, %v1735_v3  ;;  %v1747_v23 = vsel %vm1596_vm2, %v3922_v4, %v1746_v57  ;;  %v5644_v20 = vrot.slane %v3928_v7, 5 }
  0x5b   : > { %v1729_v18 = vsel %vm1611_vm7, %v5656_v48, %v1727_v38  ;;  %v1739_v24 = vsel %vm1605_vm5, %v5655_v13, %v1737_v12  ;;  %v1749_v21 = vsel %vm1599_vm3, %v5642_v60, %v1747_v23  ;;  %v5646_v25 = vrot.slane %v3930_v9, 4 }
  0x5c   : > { %v1731_v57 = vsel %vm1614_vm8, %v5652_v28, %v1729_v18  ;;  %v1741_v3 = vsel %vm1608_vm6, %v5651_v0, %v1739_v24  ;;  %v1751_v38 = vsel %vm1602_vm4, %v5643_v15, %v1749_v21  ;;  %v5650_v12 = vrot.slane %v3932_v61, 3  ;;  %v381_v28 = vld [vmem:[#allocation2 + $0x98] sm:$0xff] }
  0x5d   : > { %v1743_v23 = vsel %vm1611_vm7, %v5645_v19, %v1741_v3  ;;  %v1753_v60 = vsel %vm1605_vm5, %v5644_v20, %v1751_v38  ;;  %v5649_v18 = vrot.slane %v3934_v8, 2  ;;  %v2215_v24 = vsel %vm1596_vm2, %v3805_v30, %v2214_v14  ;;  %v371_v30 = vld [vmem:[#allocation2 + $0x48] sm:$0xff] }
  0x5e   : > { %v4026_v21 = vsel %vm1614_vm8, %v5647_v16, %v1743_v23  ;;  %v1755_v3 = vsel %vm1608_vm6, %v5646_v25, %v1753_v60  ;;  %v5648_v15 = vrot.slane %v3807_v31, 7  ;;  %v5653_v38 = vrot.slane %v3809_v34, 6 }
  0x5f   : > { %5805 = vst [vmem:[#allocation29_spill] sm:$0xff] %v4026_v21  ;;  %v1757_v29 = vsel %vm1611_vm7, %v5650_v12, %v1755_v3  ;;  %v1830_v20 = vpack.c.b16 %v4026_v21, %v1731_v57  ;;  %v5654_v14 = vrot.slane %v3811_v35, 5  ;;  %v5662_v19 = vrot.slane %v3813_v36, 4 }
  0x60   : > { %v4042_v23 = vsel %vm1614_vm8, %v5649_v18, %v1757_v29  ;;  %v2217_v60 = vsel %vm1599_vm3, %v5648_v15, %v2215_v24  ;;  %v5658_v25 = vrot.slane %v3815_v37, 3  ;;  %v5661_v16 = vrot.slane %v3817_v42, 2  ;;  %v380_v15 = vld [vmem:[#allocation2 + $0x90] sm:$0xff] }
  0x61   : > { %5806 = vst [vmem:[#allocation30_spill] sm:$0xff] %v4042_v23  ;;  %1834 = vrot.lane.b32.xlu0 %v1830_v20, %s3541_s15  ;;  %v2219_v3 = vsel %vm1602_vm4, %v5653_v38, %v2217_v60  ;;  %v2229_v24 = vsel %vm1596_vm2, %v3821_v44, %v2228_v17  ;;  %v5660_v29 = vrot.slane %v3823_v45, 7  ;;  %v5659_v12 = vrot.slane %v3825_v46, 6  ;;  %v366_v44 = vld [vmem:[#allocation2 + $0x20] sm:$0xff] }
  0x62   : > { %v2221_v18 = vsel %vm1605_vm5, %v5654_v14, %v2219_v3  ;;  %v5663_v20 = vrot.slane %v3827_v47, 5  ;;  %v5665_v0 = vrot.slane %v3829_v52, 4  ;;  %v5666_v60 = vrot.slane %v3831_v53, 3  ;;  %v267_v3 = vld [vmem:[%s3715_s13 + $0x80] sm:$0xff] }
  0x63   : > { %v2223_v43 = vsel %vm1608_vm6, %v5662_v19, %v2221_v18  ;;  %v2231_v17 = vsel %vm1599_vm3, %v5660_v29, %v2229_v24  ;;  %v5668_v38 = vrot.slane %v3833_v54, 2  ;;  %v271_v14 = vld [vmem:[%s3715_s13 + $0xa0] sm:$0xff]  ;;  %v563_v63 = vcombine.high %v380_v15, %v380_v15  ;;  %346 = vst.msk [vmem:[#allocation2 + $0xd9] sm:$0xff] %vm283_vm0, %v267_v3 }
  0x64   : > { %v2225_v13 = vsel %vm1611_vm7, %v5658_v25, %v2223_v43  ;;  %v2233_v48 = vsel %vm1602_vm4, %v5659_v12, %v2231_v17  ;;  %v570_v18 = vrot.slane %v380_v15, %v3724_v10  ;;  %350 = vst.msk [vmem:[#allocation2 + $0x109] sm:$0xff] %vm283_vm0, %v271_v14  ;;  %v580_v25 = vcombine.high %v381_v28, %v381_v28 }
  0x65   : > { %v2227_v24 = vsel %vm1614_vm8, %v5661_v16, %v2225_v13  ;;  %v2235_v43 = vsel %vm1605_vm5, %v5663_v20, %v2233_v48  ;;  %v587_v17 = vrot.slane %v381_v28, %v3724_v10  ;;  %v577_v12 = vrot.slane %v563_v63, %v3724_v10  ;;  %v268_v48 = vld [vmem:[%s3715_s13 + $0x88] sm:$0xff] }
  0x66   : > { %v2237_v15 = vsel %vm1608_vm6, %v5665_v0, %v2235_v43  ;;  %v578_v3 = vcombine.high %v570_v18, %v570_v18  ;;  %v1338_v29 = vpack.c.bf16 %v570_v18, %v570_v18  ;;  %v594_v13 = vrot.slane %v580_v25, %v3724_v10  ;;  %v272_v20 = vld [vmem:[%s3715_s13 + $0xa8] sm:$0xff]  ;;  %347 = vst.msk [vmem:[#allocation2 + $0xe1] sm:$0xff] %vm283_vm0, %v268_v48  ;;  %v386_v25 = vld [vmem:[#allocation2 + $0xc0] sm:$0xff] }
  0x67   : > { %v2239_v14 = vsel %vm1611_vm7, %v5666_v60, %v2237_v15  ;;  %v595_v16 = vcombine.high %v587_v17, %v587_v17  ;;  %v1342_v19 = vpack.c.bf16 %v587_v17, %v587_v17  ;;  %v579_v58 = vcombine.high %v577_v12, %v577_v12  ;;  %351 = vst.msk [vmem:[#allocation2 + $0x111] sm:$0xff] %vm283_vm0, %v272_v20 }
  0x68   : > { %v2241_v28 = vsel %vm1614_vm8, %v5668_v38, %v2239_v14  ;;  %v1339_v43 = vpack.c.bf16 %v578_v3, %v578_v3  ;;  %v1340_v0 = vpack.c.bf16 %v577_v12, %v577_v12  ;;  %v596_v18 = vcombine.high %v594_v13, %v594_v13 }
  0x69   : > { %v2299_v63 = vpack.c.b16 %v2241_v28, %v2227_v24  ;;  %v1343_v15 = vpack.c.bf16 %v595_v16, %v595_v16  ;;  %v1344_v60 = vpack.c.bf16 %v594_v13, %v594_v13  ;;  %v1341_v57 = vpack.c.bf16 %v579_v58, %v579_v58 }
  0x6a   : > { %v1555_v17 = vunpack.c.l.b16 %v1338_v29  ;;  %v4107_v11 = vunpack.c.l.b16 %v1339_v43  ;;  %v4109_v53 = vunpack.c.l.b16 %v1340_v0  ;;  %v1345_v3 = vpack.c.bf16 %v596_v18, %v596_v18  ;;  %v387_v29 = vld [vmem:[#allocation2 + $0xc8] sm:$0xff] }
  0x6b   : > { %2304 = vrot.lane.b32.xlu1 %v2299_v63, %s3542_s16  ;;  %v4112_v12 = vunpack.c.l.b16 %v1342_v19  ;;  %v4114_v14 = vunpack.c.l.b16 %v1343_v15  ;;  %v4116_v20 = vunpack.c.l.b16 %v1344_v60  ;;  %v4118_v24 = vunpack.c.l.b16 %v1341_v57 }
  0x6c   : > { %5807 = vst [vmem:[#allocation31_spill] sm:$0xff] %v4107_v11  ;;  %5808 = vst [vmem:[#allocation32_spill] sm:$0xff] %v4109_v53  ;;  %v1760_v16 = vrot.slane %v1555_v17, 1  ;;  %v5671_v58 = vrot.slane %v4109_v53, 7  ;;  %v604_v13 = vcombine.high %v386_v25, %v386_v25  ;;  %v4121_v48 = vunpack.c.l.b16 %v1345_v3 }
  0x6d   : > { %5809 = vst [vmem:[#allocation33_spill] sm:$0xff] %v4112_v12  ;;  %5810 = vst [vmem:[#allocation34_spill] sm:$0xff] %v4114_v14  ;;  %v5674_v60 = vrot.slane %v4118_v24, 6  ;;  %v611_v57 = vrot.slane %v386_v25, %v3724_v10  ;;  %v621_v3 = vcombine.high %v387_v29, %v387_v29  ;;  %v628_v38 = vrot.slane %v387_v29, %v3724_v10 }
  0x6e   : > { %5811 = vst [vmem:[#allocation35_spill] sm:$0xff] %v4116_v20  ;;  %5812 = vst [vmem:[#allocation36_spill] sm:$0xff] %v4118_v24  ;;  %v1761_v43 = vsel %vm1596_vm2, %v4107_v11, %v1760_v16  ;;  %v618_v63 = vrot.slane %v604_v13, %v3724_v10  ;;  %v5814_v25 = vrot.slane %v4112_v12, 5 }
  0x6f   : > { %5813 = vst [vmem:[#allocation37_spill] sm:$0xff] %v4121_v48  ;;  %v1763_v18 = vsel %vm1599_vm3, %v5671_v58, %v1761_v43  ;;  %v619_v16 = vcombine.high %v611_v57, %v611_v57  ;;  %v1346_v0 = vpack.c.bf16 %v611_v57, %v611_v57  ;;  %v635_v54 = vrot.slane %v621_v3, %v3724_v10 }
  0x70   : > { %v1765_v19 = vsel %vm1602_vm4, %v5674_v60, %v1763_v18  ;;  %v620_v28 = vcombine.high %v618_v63, %v618_v63  ;;  %v636_v52 = vcombine.high %v628_v38, %v628_v38  ;;  %v1348_v43 = vpack.c.bf16 %v618_v63, %v618_v63 }
  0x71   : > { %v1767_v13 = vsel %vm1605_vm5, %v5814_v25, %v1765_v19  ;;  %v5815_v58 = vrot.slane %v4114_v14, 4  ;;  %v1347_v29 = vpack.c.bf16 %v619_v16, %v619_v16  ;;  %v1350_v42 = vpack.c.bf16 %v628_v38, %v628_v38 }
  0x72   : > { %v1349_v47 = vpack.c.bf16 %v620_v28, %v620_v28  ;;  %v5816_v18 = vrot.slane %v4116_v20, 3  ;;  %v637_v57 = vcombine.high %v635_v54, %v635_v54  ;;  %v1351_v46 = vpack.c.bf16 %v636_v52, %v636_v52 }
  0x73   : > { %v1769_v15 = vsel %vm1608_vm6, %v5815_v58, %v1767_v13  ;;  %v1352_v37 = vpack.c.bf16 %v635_v54, %v635_v54  ;;  %v5817_v19 = vrot.slane %v4121_v48, 2  ;;  %v4154_v63 = vunpack.c.l.b16 %v1346_v0 }
  0x74   : > { %v1771_v60 = vsel %vm1611_vm7, %v5816_v18, %v1769_v15  ;;  %v4156_v25 = vunpack.c.l.b16 %v1347_v29  ;;  %v4158_v58 = vunpack.c.l.b16 %v1348_v43  ;;  %v1353_v28 = vpack.c.bf16 %v637_v57, %v637_v57  ;;  %v365_v57 = vld [vmem:[#allocation2 + $0x18] sm:$0xff] }
  0x75   : > { %v4152_v3 = vsel %vm1614_vm8, %v5817_v19, %v1771_v60  ;;  %v4162_v16 = vunpack.c.l.b16 %v1349_v47  ;;  %v4164_v15 = vunpack.c.l.b16 %v1350_v42  ;;  %v4166_v52 = vunpack.c.l.b16 %v1351_v46 }
  0x76   : > { %5818 = vst [vmem:[#allocation38_spill] sm:$0xff] %v4156_v25  ;;  %5819 = vst [vmem:[#allocation39_spill] sm:$0xff] %v4158_v58  ;;  %v1831_v38 = vpack.c.b16 %v4152_v3, %v4042_v23  ;;  %v4168_v54 = vunpack.c.l.b16 %v1352_v37  ;;  %v1644_v60 = vrot.slane %v4107_v11, 7  ;;  %v1646_v0 = vrot.slane %v4109_v53, 6 }
  0x77   : > { %5820 = vst [vmem:[#allocation40_spill] sm:$0xff] %v4162_v16  ;;  %5821 = vst [vmem:[#allocation41_spill] sm:$0xff] %v4164_v15  ;;  %v4173_v13 = vunpack.c.l.b16 %v1353_v28  ;;  %v1648_v43 = vrot.slane %v4118_v24, 5  ;;  %v1650_v29 = vrot.slane %v4112_v12, 4  ;;  %v1652_v47 = vrot.slane %v4114_v14, 3  ;;  %v372_v12 = vld [vmem:[#allocation2 + $0x50] sm:$0xff] }
  0x78   : > { %5822 = vst [vmem:[#allocation42_spill] sm:$0xff] %v4166_v52  ;;  %5823 = vst [vmem:[#allocation43_spill] sm:$0xff] %v4168_v54  ;;  %1836 = vrot.lane.b32.xlu0 %v1831_v38, %s3541_s15  ;;  %v1645_v42 = vsel %vm1596_vm2, %v1644_v60, %v1555_v17  ;;  %v1654_v46 = vrot.slane %v4116_v20, 2  ;;  %v1656_v37 = vrot.slane %v4121_v48, 1  ;;  %v1658_v18 = vrot.slane %v4156_v25, 7 }
  0x79   : > { %5824 = vst [vmem:[#allocation44_spill] sm:$0xff] %v4173_v13  ;;  %v1647_v19 = vsel %vm1599_vm3, %v1646_v0, %v1645_v42  ;;  %v1660_v38 = vrot.slane %v4158_v58, 6  ;;  %v1662_v28 = vrot.slane %v4162_v16, 5  ;;  %v1664_v45 = vrot.slane %v4164_v15, 4 }
  0x7a   : > { %v1649_v36 = vsel %vm1602_vm4, %v1648_v43, %v1647_v19  ;;  %v1659_v17 = vsel %vm1596_vm2, %v1658_v18, %v4154_v63  ;;  %v1666_v60 = vrot.slane %v4166_v52, 3  ;;  %v1668_v35 = vrot.slane %v4168_v54, 2 }
  0x7b   : > { %v1651_v48 = vsel %vm1605_vm5, %v1650_v29, %v1649_v36  ;;  %v1661_v0 = vsel %vm1599_vm3, %v1660_v38, %v1659_v17  ;;  %v1670_v42 = vrot.slane %v4173_v13, 1  ;;  %v914_v34 = vcombine.high %v365_v57, %v365_v57 }
  0x7c   : > { %v1653_v20 = vsel %vm1608_vm6, %v1652_v47, %v1651_v48  ;;  %v1663_v31 = vsel %vm1602_vm4, %v1662_v28, %v1661_v0  ;;  %v921_v43 = vrot.slane %v365_v57, %v3724_v10  ;;  %v931_v19 = vcombine.high %v366_v44, %v366_v44 }
  0x7d   : > { %v1655_v18 = vsel %vm1611_vm7, %v1654_v46, %v1653_v20  ;;  %v1665_v14 = vsel %vm1605_vm5, %v1664_v45, %v1663_v31  ;;  %v928_v36 = vrot.slane %v914_v34, %v3724_v10  ;;  %v938_v29 = vrot.slane %v366_v44, %v3724_v10 }
  0x7e   : > { %v4202_v38 = vsel %vm1614_vm8, %v1656_v37, %v1655_v18  ;;  %v1667_v48 = vsel %vm1608_vm6, %v1666_v60, %v1665_v14  ;;  %v929_v47 = vcombine.high %v921_v43, %v921_v43  ;;  %v945_v28 = vrot.slane %v931_v19, %v3724_v10 }
  0x7f   : > { %5825 = vst [vmem:[#allocation45_spill] sm:$0xff] %v4202_v38  ;;  %v1669_v57 = vsel %vm1611_vm7, %v1668_v35, %v1667_v48  ;;  %v930_v17 = vcombine.high %v928_v36, %v928_v36  ;;  %v946_v0 = vcombine.high %v938_v29, %v938_v29  ;;  %v955_v20 = vcombine.high %v371_v30, %v371_v30 }
  0x80   : > { %v4208_v31 = vsel %vm1614_vm8, %v1670_v42, %v1669_v57  ;;  %v947_v45 = vcombine.high %v945_v28, %v945_v28  ;;  %v962_v34 = vrot.slane %v371_v30, %v3724_v10  ;;  %v972_v44 = vcombine.high %v372_v12, %v372_v12 }
  0x81   : > { %5826 = vst [vmem:[#allocation46_spill] sm:$0xff] %v4208_v31  ;;  %v2433_v46 = vpack.c.b16 %v4208_v31, %v4202_v38  ;;  %v969_v14 = vrot.slane %v955_v20, %v3724_v10  ;;  %v979_v37 = vrot.slane %v372_v12, %v3724_v10  ;;  %v1386_v60 = vpack.c.bf16 %v921_v43, %v921_v43 }
  0x82   : > { %v970_v19 = vcombine.high %v962_v34, %v962_v34  ;;  %v986_v35 = vrot.slane %v972_v44, %v3724_v10  ;;  %v1387_v18 = vpack.c.bf16 %v929_v47, %v929_v47  ;;  %v1388_v48 = vpack.c.bf16 %v928_v36, %v928_v36 }
  0x83   : > { %2438 = vrot.lane.b32.xlu1 %v2433_v46, %s3543_s17  ;;  %v971_v42 = vcombine.high %v969_v14, %v969_v14  ;;  %v987_v57 = vcombine.high %v979_v37, %v979_v37  ;;  %v1389_v30 = vpack.c.bf16 %v930_v17, %v930_v17  ;;  %v1390_v24 = vpack.c.bf16 %v938_v29, %v938_v29 }
  0x84   : > { %v988_v53 = vcombine.high %v986_v35, %v986_v35  ;;  %v1391_v11 = vpack.c.bf16 %v946_v0, %v946_v0  ;;  %v1392_v31 = vpack.c.bf16 %v945_v28, %v945_v28  ;;  %v1393_v21 = vpack.c.bf16 %v947_v45, %v947_v45 }
  0x85   : > { %v1394_v20 = vpack.c.bf16 %v962_v34, %v962_v34  ;;  %v1395_v23 = vpack.c.bf16 %v970_v19, %v970_v19  ;;  %v1396_v12 = vpack.c.bf16 %v969_v14, %v969_v14  ;;  %v1397_v43 = vpack.c.bf16 %v971_v42, %v971_v42 }
  0x86   : > { %v1398_v38 = vpack.c.bf16 %v979_v37, %v979_v37  ;;  %v1399_v8 = vpack.c.bf16 %v987_v57, %v987_v57  ;;  %v1400_v44 = vpack.c.bf16 %v986_v35, %v986_v35  ;;  %v1401_v47 = vpack.c.bf16 %v988_v53, %v988_v53 }
  0x87   : > { %v4217_v36 = vunpack.c.l.b16 %v1386_v60  ;;  %v4219_v61 = vunpack.c.l.b16 %v1387_v18  ;;  %v4221_v46 = vunpack.c.l.b16 %v1388_v48  ;;  %v4223_v17 = vunpack.c.l.b16 %v1389_v30 }
  0x88   : > { %v4225_v29 = vunpack.c.l.b16 %v1390_v24  ;;  %v4227_v28 = vunpack.c.l.b16 %v1391_v11  ;;  %v4229_v0 = vunpack.c.l.b16 %v1392_v31  ;;  %v4231_v45 = vunpack.c.l.b16 %v1393_v21 }
  0x89   : > { %v4233_v34 = vunpack.c.l.b16 %v1394_v20  ;;  %v4235_v14 = vunpack.c.l.b16 %v1395_v23  ;;  %v4237_v53 = vunpack.c.l.b16 %v1396_v12  ;;  %v4239_v37 = vunpack.c.l.b16 %v1397_v43 }
  0x8a   : > { %v4241_v60 = vunpack.c.l.b16 %v1398_v38  ;;  %v4243_v19 = vunpack.c.l.b16 %v1399_v8  ;;  %v4245_v24 = vunpack.c.l.b16 %v1400_v44  ;;  %v4247_v11 = vunpack.c.l.b16 %v1401_v47 }
  0x8b   : > { %v2062_v31 = vrot.slane %v4219_v61, 7  ;;  %v2064_v21 = vrot.slane %v4221_v46, 6  ;;  %v2066_v35 = vrot.slane %v4223_v17, 5  ;;  %v2068_v23 = vrot.slane %v4225_v29, 4 }
  0x8c   : > { %v2070_v18 = vrot.slane %v4227_v28, 3  ;;  %v2072_v48 = vrot.slane %v4229_v0, 2  ;;  %v2074_v38 = vrot.slane %v4231_v45, 1  ;;  %v2076_v8 = vrot.slane %v4235_v14, 7 }
  0x8d   : > { %v2063_v42 = vsel %vm1596_vm2, %v2062_v31, %v4217_v36  ;;  %v2078_v57 = vrot.slane %v4237_v53, 6  ;;  %v2080_v30 = vrot.slane %v4239_v37, 5  ;;  %v2082_v20 = vrot.slane %v4241_v60, 4 }
  0x8e   : > { %v2065_v12 = vsel %vm1599_vm3, %v2064_v21, %v2063_v42  ;;  %v2077_v43 = vsel %vm1596_vm2, %v2076_v8, %v4233_v34  ;;  %v2084_v44 = vrot.slane %v4243_v19, 3  ;;  %v2086_v47 = vrot.slane %v4245_v24, 2 }
  0x8f   : > { %v2067_v40 = vsel %vm1602_vm4, %v2066_v35, %v2065_v12  ;;  %v2079_v9 = vsel %vm1599_vm3, %v2078_v57, %v2077_v43  ;;  %v2088_v31 = vrot.slane %v4247_v11, 1  ;;  %v1774_v7 = vrot.slane %v4154_v63, 1  ;;  %v281_v12 = vld [vmem:[%s3715_s13 + $0xf0] sm:$0xff] }
  0x90   : > { %v2069_v6 = vsel %vm1605_vm5, %v2068_v23, %v2067_v40  ;;  %v2081_v5 = vsel %vm1602_vm4, %v2080_v30, %v2079_v9  ;;  %v5716_v21 = vrot.slane %v4158_v58, 7  ;;  %v5715_v8 = vrot.slane %v4162_v16, 6  ;;  %360 = vst.msk [vmem:[#allocation2 + $0x181] sm:$0xff] %vm283_vm0, %v281_v12  ;;  %v282_v12 = vld [vmem:[%s3715_s13 + $0xf8] sm:$0xff] }
  0x91   : > { %v2071_v42 = vsel %vm1608_vm6, %v2070_v18, %v2069_v6  ;;  %v2083_v4 = vsel %vm1605_vm5, %v2082_v20, %v2081_v5  ;;  %v1775_v35 = vsel %vm1596_vm2, %v4156_v25, %v1774_v7  ;;  %v5714_v57 = vrot.slane %v4164_v15, 5  ;;  %361 = vst.msk [vmem:[#allocation2 + $0x189] sm:$0xff] %vm283_vm0, %v282_v12 }
  0x92   : > { %v2073_v63 = vsel %vm1611_vm7, %v2072_v48, %v2071_v42  ;;  %v2085_v40 = vsel %vm1608_vm6, %v2084_v44, %v2083_v4  ;;  %v1777_v9 = vsel %vm1599_vm3, %v5716_v21, %v1775_v35  ;;  %v5713_v23 = vrot.slane %v4166_v52, 4 }
  0x93   : > { %v2075_v6 = vsel %vm1614_vm8, %v2074_v38, %v2073_v63  ;;  %v2087_v18 = vsel %vm1611_vm7, %v2086_v47, %v2085_v40  ;;  %v1779_v5 = vsel %vm1602_vm4, %v5715_v8, %v1777_v9  ;;  %v5712_v7 = vrot.slane %v4168_v54, 3 }
  0x94   : > { %v2089_v48 = vsel %vm1614_vm8, %v2088_v31, %v2087_v18  ;;  %v1781_v4 = vsel %vm1605_vm5, %v5714_v57, %v1779_v5  ;;  %v5711_v30 = vrot.slane %v4173_v13, 2  ;;  %v2186_v20 = vrot.slane %v4217_v36, 1  ;;  %v405_v13 = vld [vmem:[#allocation2 + $0x158] sm:$0xff] }
  0x95   : > { %v2174_v38 = vpack.c.b16 %v2089_v48, %v2075_v6  ;;  %v1783_v43 = vsel %vm1608_vm6, %v5713_v23, %v1781_v4  ;;  %v5730_v44 = vrot.slane %v4221_v46, 7  ;;  %v5725_v47 = vrot.slane %v4223_v17, 6 }
  0x96   : > { %v1785_v31 = vsel %vm1611_vm7, %v5712_v7, %v1783_v43  ;;  %v2187_v36 = vsel %vm1596_vm2, %v4219_v61, %v2186_v20  ;;  %v5721_v42 = vrot.slane %v4225_v29, 5  ;;  %v5719_v35 = vrot.slane %v4227_v28, 4  ;;  %v392_v20 = vld [vmem:[#allocation2 + $0xf0] sm:$0xff] }
  0x97   : > { %2178 = vrot.lane.b32.xlu0 %v2174_v38, %s3540_s14  ;;  %v4316_v63 = vsel %vm1614_vm8, %v5711_v30, %v1785_v31  ;;  %v2189_v40 = vsel %vm1599_vm3, %v5730_v44, %v2187_v36  ;;  %v5717_v9 = vrot.slane %v4229_v0, 3  ;;  %v5718_v6 = vrot.slane %v4231_v45, 2  ;;  %v393_v36 = vld [vmem:[#allocation2 + $0xf8] sm:$0xff] }
  0x98   : > { %v2459_v18 = vpack.c.b16 %v4316_v63, %v4152_v3  ;;  %v2191_v5 = vsel %vm1602_vm4, %v5725_v47, %v2189_v40  ;;  %v2200_v48 = vrot.slane %v4233_v34, 1  ;;  %v5723_v4 = vrot.slane %v4237_v53, 7 }
  0x99   : > { %v2193_v38 = vsel %vm1605_vm5, %v5721_v42, %v2191_v5  ;;  %v5720_v43 = vrot.slane %v4239_v37, 6  ;;  %v5722_v31 = vrot.slane %v4241_v60, 5  ;;  %v5724_v3 = vrot.slane %v4243_v19, 4 }
  0x9a   : > { %2464 = vrot.lane.b32.xlu1 %v2459_v18, %s3544_s18  ;;  %v2195_v34 = vsel %vm1608_vm6, %v5719_v35, %v2193_v38  ;;  %v2201_v40 = vsel %vm1596_vm2, %v4235_v14, %v2200_v48  ;;  %v5728_v5 = vrot.slane %v4245_v24, 3  ;;  %v5726_v30 = vrot.slane %v4247_v11, 2 }
  0x9b   : > { %v2197_v7 = vsel %vm1611_vm7, %v5717_v9, %v2195_v34  ;;  %v2203_v12 = vsel %vm1599_vm3, %v5723_v4, %v2201_v40  ;;  %v645_v18 = vcombine.high %v392_v20, %v392_v20  ;;  %v652_v23 = vrot.slane %v392_v20, %v3724_v10 }
  0x9c   : > { %v2199_v38 = vsel %vm1614_vm8, %v5718_v6, %v2197_v7  ;;  %v2205_v48 = vsel %vm1602_vm4, %v5720_v43, %v2203_v12  ;;  %v662_v57 = vcombine.high %v393_v36, %v393_v36  ;;  %v669_v8 = vrot.slane %v393_v36, %v3724_v10 }
  0x9d   : > { %v2207_v34 = vsel %vm1605_vm5, %v5722_v31, %v2205_v48  ;;  %v659_v40 = vrot.slane %v645_v18, %v3724_v10  ;;  %v660_v21 = vcombine.high %v652_v23, %v652_v23  ;;  %v1354_v9 = vpack.c.bf16 %v652_v23, %v652_v23 }
  0x9e   : > { %v2209_v20 = vsel %vm1608_vm6, %v5724_v3, %v2207_v34  ;;  %v676_v7 = vrot.slane %v662_v57, %v3724_v10  ;;  %v677_v6 = vcombine.high %v669_v8, %v669_v8  ;;  %v1358_v35 = vpack.c.bf16 %v669_v8, %v669_v8 }
  0x9f   : > { %v2211_v36 = vsel %vm1611_vm7, %v5728_v5, %v2209_v20  ;;  %v661_v12 = vcombine.high %v659_v40, %v659_v40  ;;  %v1355_v43 = vpack.c.bf16 %v660_v21, %v660_v21  ;;  %v1356_v42 = vpack.c.bf16 %v659_v40, %v659_v40 }
  0xa0   : > { %v2213_v18 = vsel %vm1614_vm8, %v5726_v30, %v2211_v36  ;;  %v678_v23 = vcombine.high %v676_v7, %v676_v7  ;;  %v1359_v48 = vpack.c.bf16 %v677_v6, %v677_v6  ;;  %v1360_v31 = vpack.c.bf16 %v676_v7, %v676_v7 }
  0xa1   : > { %v2298_v4 = vpack.c.b16 %v2213_v18, %v2199_v38  ;;  %v1357_v34 = vpack.c.bf16 %v661_v12, %v661_v12  ;;  %v4374_v3 = vunpack.c.l.b16 %v1354_v9  ;;  %v4376_v57 = vunpack.c.l.b16 %v1355_v43 }
  0xa2   : > { %v1361_v8 = vpack.c.bf16 %v678_v23, %v678_v23  ;;  %v4378_v47 = vunpack.c.l.b16 %v1356_v42  ;;  %v4380_v20 = vunpack.c.l.b16 %v1358_v35  ;;  %v4382_v21 = vunpack.c.l.b16 %v1359_v48 }
  0xa3   : > { %5827 = vst [vmem:[#allocation47_spill] sm:$0xff] %v4374_v3  ;;  %5828 = vst [vmem:[#allocation48_spill] sm:$0xff] %v4376_v57  ;;  %2302 = vrot.lane.b32.xlu0 %v2298_v4, %s3542_s16  ;;  %v4385_v40 = vunpack.c.l.b16 %v1357_v34  ;;  %v4387_v36 = vunpack.c.l.b16 %v1360_v31  ;;  %v1788_v6 = vrot.slane %v4374_v3, 1  ;;  %v1595_v9 = vrot.slane %v3883_v22, 7 }
  0xa4   : > { %5829 = vst [vmem:[#allocation49_spill] sm:$0xff] %v4378_v47  ;;  %5830 = vst [vmem:[#allocation50_spill] sm:$0xff] %v4380_v20  ;;  %v4391_v38 = vunpack.c.l.b16 %v1361_v8  ;;  %v5727_v43 = vrot.slane %v4378_v47, 7  ;;  %v5734_v42 = vrot.slane %v4380_v20, 5  ;;  %v5732_v35 = vrot.slane %v4382_v21, 4  ;;  %v5851_v20 = vld [vmem:[#allocation28_spill] sm:$0xff] }
  0xa5   : > { %5831 = vst [vmem:[#allocation51_spill] sm:$0xff] %v4382_v21  ;;  %5832 = vst [vmem:[#allocation52_spill] sm:$0xff] %v4385_v40  ;;  %v1789_v7 = vsel %vm1596_vm2, %v4376_v57, %v1788_v6  ;;  %v5729_v4 = vrot.slane %v4385_v40, 6  ;;  %v5731_v31 = vrot.slane %v4387_v36, 3  ;;  %v1597_v12 = vsel %vm1596_vm2, %v1595_v9, %v3790_v51 }
  0xa6   : > { %5833 = vst [vmem:[#allocation53_spill] sm:$0xff] %v4387_v36  ;;  %5834 = vst [vmem:[#allocation54_spill] sm:$0xff] %v4391_v38  ;;  %v1791_v18 = vsel %vm1599_vm3, %v5727_v43, %v1789_v7  ;;  %v5733_v23 = vrot.slane %v4391_v38, 2  ;;  %v5835_v48 = vrot.slane %v3888_v55, 6  ;;  %v1616_v8 = vrot.slane %v3906_v1, 7  ;;  %v5847_v38 = vld [vmem:[#allocation26_spill] sm:$0xff] }
  0xa7   : > { %v1793_v6 = vsel %vm1602_vm4, %v5729_v4, %v1791_v18  ;;  %v5836_v30 = vrot.slane %v3890_v56, 5  ;;  %v1618_v9 = vrot.slane %v3908_v32, 6  ;;  %v1620_v7 = vrot.slane %v3910_v50, 5  ;;  %v404_v36 = vld [vmem:[#allocation2 + $0x150] sm:$0xff] }
  0xa8   : > { %v1600_v34 = vsel %vm1599_vm3, %v5835_v48, %v1597_v12  ;;  %v1795_v43 = vsel %vm1605_vm5, %v5734_v42, %v1793_v6  ;;  %v5837_v12 = vrot.slane %v3774_v41, 4  ;;  %v1617_v5 = vsel %vm1596_vm2, %v1616_v8, %v3904_v49  ;;  %v5845_v42 = vld [vmem:[#allocation24_spill] sm:$0xff] }
  0xa9   : > { %v1603_v51 = vsel %vm1602_vm4, %v5836_v30, %v1600_v34  ;;  %v1622_v18 = vrot.slane %v3912_v27, 4  ;;  %v1797_v30 = vsel %vm1608_vm6, %v5732_v35, %v1795_v43  ;;  %v5838_v34 = vrot.slane %v3895_v59, 3 }
  0xaa   : > { %v1606_v48 = vsel %vm1605_vm5, %v5837_v12, %v1603_v51  ;;  %v1619_v44 = vsel %vm1599_vm3, %v1618_v9, %v1617_v5  ;;  %v1624_v6 = vrot.slane %v3914_v39, 3  ;;  %v1799_v51 = vsel %vm1611_vm7, %v5731_v31, %v1797_v30  ;;  %v5844_v31 = vld [vmem:[#allocation23_spill] sm:$0xff] }
  0xab   : > { %v1609_v4 = vsel %vm1608_vm6, %v5838_v34, %v1606_v48  ;;  %v5839_v49 = vrot.slane %v3900_v62, 2  ;;  %v1621_v12 = vsel %vm1602_vm4, %v1620_v7, %v1619_v44  ;;  %v1626_v43 = vrot.slane %v3916_v2, 2  ;;  %v5843_v7 = vld [vmem:[#allocation22_spill] sm:$0xff] }
  0xac   : > { %v4446_v48 = vsel %vm1614_vm8, %v5733_v23, %v1799_v51  ;;  %v5841_v5 = vrot.slane %v3902_v33, 1  ;;  %v1623_v30 = vsel %vm1605_vm5, %v1622_v18, %v1621_v12  ;;  %v1628_v34 = vrot.slane %v3918_v26, 1  ;;  %v398_v51 = vld [vmem:[#allocation2 + $0x120] sm:$0xff]  ;;  %v399_v12 = vld [vmem:[#allocation2 + $0x128] sm:$0xff] }
  0xad   : > { %v1612_v8 = vsel %vm1611_vm7, %v5839_v49, %v1609_v4  ;;  %5840 = vst [vmem:[#allocation55_spill] sm:$0xff] %v4446_v48  ;;  %v1832_v4 = vpack.c.b16 %v4446_v48, %v4316_v63  ;;  %v1625_v44 = vsel %vm1608_vm6, %v1624_v6, %v1623_v30  ;;  %v1630_v49 = vrot.slane %v5843_v7, 7  ;;  %v5849_v6 = vld [vmem:[#allocation21_spill] sm:$0xff]  ;;  %v5850_v48 = vld [vmem:[#allocation27_spill] sm:$0xff] }
  0xae   : > { %v4451_v9 = vsel %vm1614_vm8, %v5841_v5, %v1612_v8  ;;  %v1632_v35 = vrot.slane %v5844_v31, 6  ;;  %v1627_v23 = vsel %vm1611_vm7, %v1626_v43, %v1625_v44  ;;  %v1634_v3 = vrot.slane %v5845_v42, 5  ;;  %v5846_v8 = vld [vmem:[#allocation25_spill] sm:$0xff] }
  0xaf   : > { %5842 = vst [vmem:[#allocation56_spill] sm:$0xff] %v4451_v9  ;;  %v1636_v5 = vrot.slane %v5846_v8, 4  ;;  %v1638_v18 = vrot.slane %v5847_v38, 3  ;;  %1838 = vrot.lane.b32.xlu1 %v1832_v4, %s3541_s15  ;;  %v4466_v63 = vsel %vm1614_vm8, %v1628_v34, %v1627_v23  ;;  %v1631_v30 = vsel %vm1596_vm2, %v1630_v49, %v5849_v6 }
  0xb0   : > { %5848 = vst [vmem:[#allocation22_spill] sm:$0xff] %v4466_v63  ;;  %v1640_v21 = vrot.slane %v5850_v48, 2  ;;  %v1642_v43 = vrot.slane %v5851_v20, 1  ;;  %v1633_v44 = vsel %vm1599_vm3, %v1632_v35, %v1631_v30  ;;  %v686_v47 = vcombine.high %v398_v51, %v398_v51 }
  0xb1   : > { %v693_v57 = vrot.slane %v398_v51, %v3724_v10  ;;  %v1635_v4 = vsel %vm1602_vm4, %v1634_v3, %v1633_v44  ;;  %v703_v23 = vcombine.high %v399_v12, %v399_v12  ;;  %v710_v34 = vrot.slane %v399_v12, %v3724_v10 }
  0xb2   : > { %v727_v54 = vcombine.high %v404_v36, %v404_v36  ;;  %v1637_v49 = vsel %vm1605_vm5, %v1636_v5, %v1635_v4  ;;  %v700_v6 = vrot.slane %v686_v47, %v3724_v10  ;;  %v734_v35 = vrot.slane %v404_v36, %v3724_v10 }
  0xb3   : > { %v701_v52 = vcombine.high %v693_v57, %v693_v57  ;;  %v1639_v30 = vsel %vm1608_vm6, %v1638_v18, %v1637_v49  ;;  %v717_v40 = vrot.slane %v703_v23, %v3724_v10  ;;  %v718_v9 = vcombine.high %v710_v34, %v710_v34 }
  0xb4   : > { %v741_v51 = vrot.slane %v727_v54, %v3724_v10  ;;  %v1641_v3 = vsel %vm1611_vm7, %v1640_v21, %v1639_v30  ;;  %v702_v44 = vcombine.high %v700_v6, %v700_v6  ;;  %v742_v15 = vcombine.high %v734_v35, %v734_v35 }
  0xb5   : > { %v744_v12 = vcombine.high %v405_v13, %v405_v13  ;;  %v4486_v16 = vsel %vm1614_vm8, %v1642_v43, %v1641_v3  ;;  %v719_v5 = vcombine.high %v717_v40, %v717_v40  ;;  %v751_v4 = vrot.slane %v405_v13, %v3724_v10 }
  0xb6   : > { %5852 = vst [vmem:[#allocation23_spill] sm:$0xff] %v4486_v16  ;;  %v743_v47 = vcombine.high %v741_v51, %v741_v51  ;;  %v2432_v23 = vpack.c.b16 %v4486_v16, %v4466_v63  ;;  %v1362_v49 = vpack.c.bf16 %v693_v57, %v693_v57  ;;  %v1363_v30 = vpack.c.bf16 %v701_v52, %v701_v52 }
  0xb7   : > { %v758_v54 = vrot.slane %v744_v12, %v3724_v10  ;;  %v759_v21 = vcombine.high %v751_v4, %v751_v4  ;;  %v1364_v58 = vpack.c.bf16 %v700_v6, %v700_v6  ;;  %v1365_v25 = vpack.c.bf16 %v702_v44, %v702_v44 }
  0xb8   : > { %2436 = vrot.lane.b32.xlu0 %v2432_v23, %s3543_s17  ;;  %v1366_v3 = vpack.c.bf16 %v710_v34, %v710_v34  ;;  %v1367_v20 = vpack.c.bf16 %v718_v9, %v718_v9  ;;  %v1368_v48 = vpack.c.bf16 %v717_v40, %v717_v40  ;;  %v1369_v13 = vpack.c.bf16 %v719_v5, %v719_v5 }
  0xb9   : > { %v760_v43 = vcombine.high %v758_v54, %v758_v54  ;;  %v1370_v38 = vpack.c.bf16 %v734_v35, %v734_v35  ;;  %v1371_v8 = vpack.c.bf16 %v742_v15, %v742_v15  ;;  %v1372_v18 = vpack.c.bf16 %v741_v51, %v741_v51  ;;  %v5861_v15 = vld [vmem:[#allocation30_spill] sm:$0xff]  ;;  %v5862_v35 = vld [vmem:[#allocation29_spill] sm:$0xff] }
  0xba   : > { %v1373_v36 = vpack.c.bf16 %v743_v47, %v743_v47  ;;  %v1374_v42 = vpack.c.bf16 %v751_v4, %v751_v4  ;;  %v1375_v16 = vpack.c.bf16 %v759_v21, %v759_v21  ;;  %v1376_v63 = vpack.c.bf16 %v758_v54, %v758_v54 }
  0xbb   : > { %v1377_v12 = vpack.c.bf16 %v760_v43, %v760_v43  ;;  %v4495_v57 = vunpack.c.l.b16 %v1362_v49  ;;  %v4497_v52 = vunpack.c.l.b16 %v1363_v30  ;;  %v4499_v6 = vunpack.c.l.b16 %v1364_v58 }
  0xbc   : > { %v4501_v44 = vunpack.c.l.b16 %v1365_v25  ;;  %v4503_v34 = vunpack.c.l.b16 %v1366_v3  ;;  %v4505_v40 = vunpack.c.l.b16 %v1367_v20  ;;  %v4507_v9 = vunpack.c.l.b16 %v1368_v48 }
  0xbd   : > { %5854 = vst [vmem:[#allocation21_spill] sm:$0xff] %v4495_v57  ;;  %5855 = vst [vmem:[#allocation57_spill] sm:$0xff] %v4497_v52  ;;  %v5863_v51 = vpack.c.b16 %v5861_v15, %v5862_v35  ;;  %v4513_v5 = vunpack.c.l.b16 %v1369_v13  ;;  %v4515_v47 = vunpack.c.l.b16 %v1370_v38  ;;  %v4517_v4 = vunpack.c.l.b16 %v1371_v8  ;;  %v3287_v8 = vld.sshfl [vmem:[#allocation2 + $0x40] sm:$0x3 pattern:$0x76325410] }
  0xbe   : > { %5856 = vst [vmem:[#allocation58_spill] sm:$0xff] %v4499_v6  ;;  %5857 = vst [vmem:[#allocation59_spill] sm:$0xff] %v4501_v44  ;;  %v4519_v58 = vunpack.c.l.b16 %v1372_v18  ;;  %v4521_v25 = vunpack.c.l.b16 %v1373_v36  ;;  %v4523_v23 = vunpack.c.l.b16 %v1374_v42  ;;  %v4525_v20 = vunpack.c.l.b16 %v1375_v16 }
  0xbf   : > { %5858 = vst [vmem:[#allocation60_spill] sm:$0xff] %v4503_v34  ;;  %5859 = vst [vmem:[#allocation61_spill] sm:$0xff] %v4505_v40  ;;  %2462 = vrot.lane.b32.xlu0 %v5863_v51, %s3544_s18  ;;  %v4527_v48 = vunpack.c.l.b16 %v1376_v63  ;;  %v4529_v54 = vunpack.c.l.b16 %v1377_v12  ;;  %v1802_v49 = vrot.slane %v4495_v57, 1  ;;  %v5761_v21 = vrot.slane %v4499_v6, 7 }
  0xc0   : > { %5860 = vst [vmem:[#allocation62_spill] sm:$0xff] %v4507_v9  ;;  %5864 = vst [vmem:[#allocation30_spill] sm:$0xff] %v4513_v5  ;;  %v5762_v38 = vrot.slane %v4501_v44, 6  ;;  %v1808_v18 = vrot.slane %v4503_v34, 5  ;;  %v5764_v36 = vrot.slane %v4505_v40, 4  ;;  %v1812_v42 = vrot.slane %v4507_v9, 3 }
  0xc1   : > { %v1803_v63 = vsel %vm1596_vm2, %v4497_v52, %v1802_v49  ;;  %v1816_v30 = vrot.slane %v4515_v47, 1  ;;  %v1818_v43 = vrot.slane %v4519_v58, 7  ;;  %v5763_v3 = vrot.slane %v4521_v25, 6 }
  0xc2   : > { %v1805_v13 = vsel %vm1599_vm3, %v5761_v21, %v1803_v63  ;;  %v5765_v12 = vrot.slane %v4523_v23, 5  ;;  %v1828_v16 = vrot.slane %v4529_v54, 2  ;;  %v5865_v15 = vmov 0.0  }
  0xc3   : > { %v1807_v51 = vsel %vm1602_vm4, %v5762_v38, %v1805_v13  ;;  %v1817_v49 = vsel %vm1596_vm2, %v4517_v4, %v1816_v30  ;;  %287 = vst.msk [vmem:[#allocation2 + $0x10] sm:$0x3] %vm286_vm9, %v5865_v15  ;;  %v1379_v35 = vpack.c.bf16 %v3287_v8, %v3287_v8  ;;  %v5866_v13 = vrot.slane %v3888_v55, 7 }
  0xc4   : > { %v1809_v63 = vsel %vm1605_vm5, %v1808_v18, %v1807_v51  ;;  %v1819_v21 = vsel %vm1599_vm3, %v1818_v43, %v1817_v49  ;;  %311 = vst.msk [vmem:[#allocation2 + $0x11] sm:$0x1] %vm292_vm1, %v5865_v15  ;;  %v5867_v49 = vrot.slane %v3890_v56, 6  ;;  %v5868_v55 = vrot.slane %v3908_v32, 7 }
  0xc5   : > { %v1858_v38 = vsel %vm1596_vm2, %v5866_v13, %v3883_v22  ;;  %v1811_v30 = vsel %vm1608_vm6, %v5764_v36, %v1809_v63  ;;  %v1821_v51 = vsel %vm1602_vm4, %v5763_v3, %v1819_v21  ;;  %v1851_v13 = vunpack.c.l.b16 %v1379_v35  ;;  %v3295_v36 = vld.sshfl [vmem:[#allocation2 + $0x28] sm:$0x3 pattern:$0x76325410] }
  0xc6   : > { %v1859_v8 = vsel %vm1599_vm3, %v5867_v49, %v1858_v38  ;;  %v1866_v22 = vsel %vm1596_vm2, %v5868_v55, %v3906_v1  ;;  %v1813_v63 = vsel %vm1611_vm7, %v1812_v42, %v1811_v30  ;;  %v1823_v21 = vsel %vm1605_vm5, %v5765_v12, %v1821_v51  ;;  %v3296_v51 = vld.sshfl [vmem:[#allocation2 + $0x58] sm:$0x3 pattern:$0x76325410] }
  0xc7   : > { %v5869_v3 = vrot.slane %v3774_v41, 5  ;;  %v5870_v38 = vrot.slane %v4513_v5, 2  ;;  %v5872_v1 = vrot.slane %v4525_v20, 4  ;;  %v5873_v30 = vrot.slane %v3895_v59, 4 }
  0xc8   : > { %v5874_v35 = vrot.slane %v3910_v50, 6  ;;  %v5877_v12 = vrot.slane %v3912_v27, 5  ;;  %v1872_v59 = vrot.slane %v1851_v13, 1  ;;  %vm2549_vm1 = vcmask 228352  }
  0xc9   : > { %v1860_v56 = vsel %vm1602_vm4, %v5869_v3, %v1859_v8  ;;  %v4593_v32 = vsel %vm1614_vm8, %v5870_v38, %v1813_v63  ;;  %v1825_v49 = vsel %vm1608_vm6, %v5872_v1, %v1823_v21  ;;  %v5875_v3 = vrot.slane %v4527_v48, 3 }
  0xca   : > { %5871 = vst [vmem:[#allocation29_spill] sm:$0xff] %v4593_v32  ;;  %v1861_v55 = vsel %vm1605_vm5, %v5873_v30, %v1860_v56  ;;  %v1867_v41 = vsel %vm1599_vm3, %v5874_v35, %v1866_v22  ;;  %v5876_v63 = vrot.slane %v3900_v62, 3  ;;  %v5879_v22 = vrot.slane %v3902_v33, 2 }
  0xcb   : > { %v1827_v8 = vsel %vm1611_vm7, %v5875_v3, %v1825_v49  ;;  %v1868_v21 = vsel %vm1602_vm4, %v5877_v12, %v1867_v41  ;;  %v5880_v1 = vrot.slane %v3914_v39, 4  ;;  %v1450_v49 = vpack.c.bf16 %v3295_v36, %v3295_v36  ;;  %v3288_v35 = vld.sshfl [vmem:[#allocation2 + $0x70] sm:$0x3 pattern:$0x76325410] }
  0xcc   : > { %v1862_v38 = vsel %vm1608_vm6, %v5876_v63, %v1861_v55  ;;  %v4616_v50 = vsel %vm1614_vm8, %v1828_v16, %v1827_v8  ;;  %v5881_v12 = vrot.slane %v3916_v2, 3  ;;  %v1451_v30 = vpack.c.bf16 %v3296_v51, %v3296_v51  ;;  %v3289_v63 = vld.sshfl [vmem:[#allocation2 + $0xa0] sm:$0x3 pattern:$0x76325410] }
  0xcd   : > { %5878 = vst [vmem:[#allocation63_spill] sm:$0xff] %v4616_v50  ;;  %v1863_v56 = vsel %vm1611_vm7, %v5879_v22, %v1862_v38  ;;  %v1869_v62 = vsel %vm1605_vm5, %v5880_v1, %v1868_v21  ;;  %v1833_v27 = vpack.c.b16 %v4616_v50, %v4593_v32  ;;  %v5882_v55 = vrot.slane %v4221_v46, 7  ;;  %v3286_v46 = vld.sshfl [vmem:[#allocation2 + $0x10] sm:$0x3 pattern:$0x76325410] }
  0xce   : > { %v1870_v13 = vsel %vm1608_vm6, %v5881_v12, %v1869_v62  ;;  %v5883_v41 = vrot.slane %v3918_v26, 2  ;;  %v2318_v3 = vunpack.c.l.b16 %v1450_v49  ;;  %v5884_v36 = vrot.slane %v4223_v17, 6  ;;  %v395_v50 = vld [vmem:[#allocation2 + $0x108] sm:$0xff] }
  0xcf   : > { %v2326_v33 = vsel %vm1596_vm2, %v5882_v55, %v4219_v61  ;;  %v5885_v2 = vrot.slane %v4237_v53, 7  ;;  %1840 = vrot.lane.b32.xlu1 %v1833_v27, %s3541_s15  ;;  %v2319_v38 = vunpack.c.l.b16 %v1451_v30  ;;  %v5886_v26 = vrot.slane %v4225_v29, 5  ;;  %s3548_s15 = smov 40  }
  0xd0   : > { %v1871_v39 = vsel %vm1611_vm7, %v5883_v41, %v1870_v13  ;;  %v2327_v8 = vsel %vm1599_vm3, %v5884_v36, %v2326_v33  ;;  %v5887_v17 = vrot.slane %v4239_v37, 6  ;;  %v1378_v1 = vpack.c.bf16 %v3286_v46, %v3286_v46 }
  0xd1   : > { %v2334_v51 = vsel %vm1596_vm2, %v5885_v2, %v4235_v14  ;;  %v1873_v61 = vsel %vm1614_vm8, %v1872_v59, %v1871_v39  ;;  %v2328_v21 = vsel %vm1602_vm4, %v5886_v26, %v2327_v8  ;;  %v5888_v53 = vrot.slane %v4227_v28, 4 }
  0xd2   : > { %v2335_v22 = vsel %vm1599_vm3, %v5887_v17, %v2334_v51  ;;  %v2332_v62 = vrot.slane %v2318_v3, 1  ;;  %v5889_v49 = vrot.slane %v4241_v60, 5  ;;  %v5890_v59 = vrot.slane %v4229_v0, 3 }
  0xd3   : > { %v2329_v14 = vsel %vm1605_vm5, %v5888_v53, %v2328_v21  ;;  %v5891_v12 = vrot.slane %v4243_v19, 4  ;;  %v2340_v13 = vrot.slane %v2319_v38, 1  ;;  %v1380_v30 = vpack.c.bf16 %v3288_v35, %v3288_v35  ;;  %v3297_v38 = vld.sshfl [vmem:[#allocation2 + $0x88] sm:$0x3 pattern:$0x76325410] }
  0xd4   : > { %v2336_v27 = vsel %vm1602_vm4, %v5889_v49, %v2335_v22  ;;  %v2330_v29 = vsel %vm1608_vm6, %v5890_v59, %v2329_v14  ;;  %v1850_v55 = vunpack.c.l.b16 %v1378_v1  ;;  %v5892_v28 = vrot.slane %v4231_v45, 2  ;;  %v5898_v21 = vld [vmem:[#allocation25_spill] sm:$0xff]  ;;  %v5900_v1 = vld [vmem:[#allocation31_spill] sm:$0xff]  ;;  %v5901_v53 = vld [vmem:[#allocation32_spill] sm:$0xff] }
  0xd5   : > { %v2337_v37 = vsel %vm1605_vm5, %v5891_v12, %v2336_v27  ;;  %v5893_v41 = vrot.slane %v4245_v24, 3  ;;  %v1381_v39 = vpack.c.bf16 %v3289_v63, %v3289_v63  ;;  %v5894_v3 = vrot.slane %v4247_v11, 2  ;;  %v5896_v24 = vld [vmem:[#allocation24_spill] sm:$0xff]  ;;  %v5903_v49 = vld [vmem:[#allocation26_spill] sm:$0xff] }
  0xd6   : > { %v2331_v33 = vsel %vm1611_vm7, %v5892_v28, %v2330_v29  ;;  %v1852_v36 = vunpack.c.l.b16 %v1380_v30  ;;  %v5895_v35 = vrot.slane %v5844_v31, 7  ;;  %v1864_v45 = vrot.slane %v1850_v55, 1  ;;  %v3298_v14 = vld.sshfl [vmem:[#allocation2 + $0xb8] sm:$0x3 pattern:$0x76325410] }
  0xd7   : > { %v2338_v60 = vsel %vm1608_vm6, %v5893_v41, %v2337_v37  ;;  %v2333_v0 = vsel %vm1614_vm8, %v2332_v62, %v2331_v33  ;;  %v1853_v51 = vunpack.c.l.b16 %v1381_v39  ;;  %v5897_v46 = vrot.slane %v5896_v24, 6  ;;  %v5905_v29 = vld [vmem:[#allocation36_spill] sm:$0xff]  ;;  %v5907_v55 = vld [vmem:[#allocation27_spill] sm:$0xff]  ;;  %v5909_v41 = vld [vmem:[#allocation33_spill] sm:$0xff] }
  0xd8   : > { %v2339_v19 = vsel %vm1611_vm7, %v5894_v3, %v2338_v60  ;;  %v1874_v8 = vsel %vm1596_vm2, %v5895_v35, %v5843_v7  ;;  %v5899_v11 = vrot.slane %v5898_v21, 5  ;;  %v1880_v22 = vrot.slane %v1852_v36, 1  ;;  %v5913_v36 = vld [vmem:[#allocation34_spill] sm:$0xff] }
  0xd9   : > { %v2341_v2 = vsel %vm1614_vm8, %v2340_v13, %v2339_v19  ;;  %v1875_v63 = vsel %vm1599_vm3, %v5897_v46, %v1874_v8  ;;  %v5902_v31 = vrot.slane %v5901_v53, 7  ;;  %v1865_v62 = vsel %vm1614_vm8, %v1864_v45, %v1863_v56 }
  0xda   : > { %v2390_v26 = vpack.c.b16 %v2341_v2, %v2333_v0  ;;  %v1876_v17 = vsel %vm1602_vm4, %v5899_v11, %v1875_v63  ;;  %v5904_v27 = vrot.slane %v5903_v49, 4  ;;  %v5906_v12 = vrot.slane %v5905_v29, 6  ;;  %v5911_v0 = vld [vmem:[#allocation28_spill] sm:$0xff]  ;;  %v5915_v2 = vld [vmem:[#allocation7_spill] sm:$0xff] }
  0xdb   : > { %v1882_v7 = vsel %vm1596_vm2, %v5902_v31, %v5900_v1  ;;  %v1888_v13 = vrot.slane %v1853_v51, 1  ;;  %v1922_v30 = vpack.c.b16 %v1873_v61, %v1865_v62  ;;  %v5908_v28 = vrot.slane %v5907_v55, 3  ;;  %v5916_v51 = vld [vmem:[#allocation8_spill] sm:$0xff]  ;;  %v5922_v31 = vld [vmem:[#allocation37_spill] sm:$0xff] }
  0xdc   : > { %v1877_v59 = vsel %vm1605_vm5, %v5904_v27, %v1876_v17  ;;  %v1883_v37 = vsel %vm1599_vm3, %v5906_v12, %v1882_v7  ;;  %2394 = vrot.lane.b32.xlu0 %v2390_v26, %s3545_s19  ;;  %v5910_v60 = vrot.slane %v5909_v41, 5  ;;  %v1452_v39 = vpack.c.bf16 %v3297_v38, %v3297_v38  ;;  %v5918_v38 = vld [vmem:[#allocation35_spill] sm:$0xff]  ;;  %v5920_v17 = vld [vmem:[#allocation9_spill] sm:$0xff]  ;;  %v5924_v27 = vld [vmem:[#allocation10_spill] sm:$0xff] }
  0xdd   : > { %v1878_v33 = vsel %vm1608_vm6, %v5908_v28, %v1877_v59  ;;  %v5912_v3 = vrot.slane %v5911_v0, 2  ;;  %v5914_v35 = vrot.slane %v5913_v36, 4  ;;  %v1453_v45 = vpack.c.bf16 %v3298_v14, %v3298_v14  ;;  %1926 = vrot.lane.b32.xlu1 %v1922_v30, %s3546_s20  ;;  %v5929_v41 = vld [vmem:[#allocation15_spill] sm:$0xff]  ;;  %v5931_v0 = vld [vmem:[#allocation12_spill] sm:$0xff] }
  0xde   : > { %v1884_v56 = vsel %vm1602_vm4, %v5910_v60, %v1883_v37  ;;  %v5917_v24 = vrot.slane %v5916_v51, 7  ;;  %v5919_v26 = vrot.slane %v5918_v38, 3  ;;  %v2320_v11 = vunpack.c.l.b16 %v1452_v39  ;;  %v5926_v37 = vld [vmem:[#allocation11_spill] sm:$0xff] }
  0xdf   : > { %v1879_v19 = vsel %vm1611_vm7, %v5912_v3, %v1878_v33  ;;  %v1885_v8 = vsel %vm1605_vm5, %v5914_v35, %v1884_v56  ;;  %v5921_v1 = vrot.slane %v5920_v17, 6  ;;  %v5923_v7 = vrot.slane %v5922_v31, 2  ;;  %v5928_v33 = vld [vmem:[#allocation14_spill] sm:$0xff] }
  0xe0   : > { %v2342_v46 = vsel %vm1596_vm2, %v5917_v24, %v5915_v2  ;;  %v1881_v63 = vsel %vm1614_vm8, %v1880_v22, %v1879_v19  ;;  %v1886_v21 = vsel %vm1608_vm6, %v5919_v26, %v1885_v8  ;;  %v2321_v49 = vunpack.c.l.b16 %v1453_v45  ;;  %v3290_v22 = vld.sshfl [vmem:[#allocation2 + $0xd0] sm:$0x3 pattern:$0x76325410]  ;;  %v5935_v2 = vld [vmem:[#allocation13_spill] sm:$0xff]  ;;  %v5942_v31 = vld [vmem:[#allocation18_spill] sm:$0xff] }
  0xe1   : > { %v2343_v53 = vsel %vm1599_vm3, %v5921_v1, %v2342_v46  ;;  %v1887_v14 = vsel %vm1611_vm7, %v5923_v7, %v1886_v21  ;;  %v2480_v62 = vpack.c.b16 %v1881_v63, %v1873_v61  ;;  %v5925_v59 = vrot.slane %v5924_v27, 5  ;;  %v3292_v39 = vld.sshfl [vmem:[#allocation2 + $0x130] sm:$0x3 pattern:$0x76325410]  ;;  %v5937_v46 = vld [vmem:[#allocation17_spill] sm:$0xff] }
  0xe2   : > { %v1889_v12 = vsel %vm1614_vm8, %v1888_v13, %v1887_v14  ;;  %v5927_v30 = vrot.slane %v5926_v37, 4  ;;  %v2348_v28 = vrot.slane %v2320_v11, 1  ;;  %v5930_v60 = vrot.slane %v5929_v41, 7  ;;  %v5933_v13 = vld [vmem:[#allocation16_spill] sm:$0xff]  ;;  %v5939_v21 = vld [vmem:[#allocation38_spill] sm:$0xff]  ;;  %v5940_v11 = vld [vmem:[#allocation39_spill] sm:$0xff] }
  0xe3   : > { %v2344_v29 = vsel %vm1602_vm4, %v5925_v59, %v2343_v53  ;;  %v1923_v61 = vpack.c.b16 %v1889_v12, %v1881_v63  ;;  %2484 = vrot.lane.b32.xlu0 %v2480_v62, %s3547_s26  ;;  %v5932_v3 = vrot.slane %v5931_v0, 3  ;;  %v5934_v36 = vrot.slane %v5933_v13, 6  ;;  %v3293_v45 = vld.sshfl [vmem:[#allocation2 + $0x160] sm:$0x3 pattern:$0x76325410] }
  0xe4   : > { %v2345_v55 = vsel %vm1605_vm5, %v5927_v30, %v2344_v29  ;;  %v2350_v56 = vsel %vm1596_vm2, %v5930_v60, %v5928_v33  ;;  %v2356_v8 = vrot.slane %v2321_v49, 1  ;;  %v5936_v51 = vrot.slane %v5935_v2, 2  ;;  %v5944_v62 = vld [vmem:[#allocation40_spill] sm:$0xff]  ;;  %v5946_v29 = vld [vmem:[#allocation19_spill] sm:$0xff]  ;;  %v5952_v0 = vld [vmem:[#allocation42_spill] sm:$0xff] }
  0xe5   : > { %v2346_v19 = vsel %vm1608_vm6, %v5932_v3, %v2345_v55  ;;  %v2351_v35 = vsel %vm1599_vm3, %v5934_v36, %v2350_v56  ;;  %v5938_v38 = vrot.slane %v5937_v46, 5  ;;  %v1382_v26 = vpack.c.bf16 %v3290_v22, %v3290_v22  ;;  %1928 = vrot.lane.b32.xlu1 %v1923_v61, %s3546_s20  ;;  %v5948_v55 = vld [vmem:[#allocation41_spill] sm:$0xff]  ;;  %v5955_v2 = vld [vmem:[#allocation43_spill] sm:$0xff] }
  0xe6   : > { %v2347_v24 = vsel %vm1611_vm7, %v5936_v51, %v2346_v19  ;;  %v5941_v17 = vrot.slane %v5940_v11, 7  ;;  %v5943_v7 = vrot.slane %v5942_v31, 4  ;;  %v5945_v49 = vrot.slane %v5944_v62, 6 }
  0xe7   : > { %v2352_v63 = vsel %vm1602_vm4, %v5938_v38, %v2351_v35  ;;  %v2349_v53 = vsel %vm1614_vm8, %v2348_v28, %v2347_v24  ;;  %v1384_v59 = vpack.c.bf16 %v3292_v39, %v3292_v39  ;;  %v5947_v22 = vrot.slane %v5946_v29, 3  ;;  %v5950_v28 = vld [vmem:[#allocation20_spill] sm:$0xff]  ;;  %v3291_v38 = vld.sshfl [vmem:[#allocation2 + $0x100] sm:$0x3 pattern:$0x76325410] }
  0xe8   : > { %v1890_v1 = vsel %vm1596_vm2, %v5941_v17, %v5939_v21  ;;  %v2353_v14 = vsel %vm1605_vm5, %v5943_v7, %v2352_v63  ;;  %v1854_v30 = vunpack.c.l.b16 %v1382_v26  ;;  %v5949_v33 = vrot.slane %v5948_v55, 5  ;;  %v5957_v26 = vld [vmem:[#allocation44_spill] sm:$0xff] }
  0xe9   : > { %v1891_v27 = vsel %vm1599_vm3, %v5945_v49, %v1890_v1  ;;  %v2354_v37 = vsel %vm1608_vm6, %v5947_v22, %v2353_v14  ;;  %v1385_v60 = vpack.c.bf16 %v3293_v45, %v3293_v45  ;;  %v5951_v56 = vrot.slane %v5950_v28, 2  ;;  %v401_v7 = vld [vmem:[#allocation2 + $0x138] sm:$0xff] }
  0xea   : > { %v1892_v41 = vsel %vm1602_vm4, %v5949_v33, %v1891_v27  ;;  %v5953_v3 = vrot.slane %v5952_v0, 4  ;;  %v1856_v13 = vunpack.c.l.b16 %v1384_v59  ;;  %v5954_v39 = vrot.slane %v4499_v6, 7  ;;  %v5963_v55 = vld [vmem:[#allocation48_spill] sm:$0xff]  ;;  %v5964_v33 = vld [vmem:[#allocation49_spill] sm:$0xff] }
  0xeb   : > { %v2355_v61 = vsel %vm1611_vm7, %v5951_v56, %v2354_v37  ;;  %v5956_v51 = vrot.slane %v5955_v2, 3  ;;  %v1896_v24 = vrot.slane %v1854_v30, 1  ;;  %v1857_v46 = vunpack.c.l.b16 %v1385_v60 }
  0xec   : > { %v1893_v19 = vsel %vm1605_vm5, %v5953_v3, %v1892_v41  ;;  %v1906_v36 = vsel %vm1596_vm2, %v5954_v39, %v4497_v52  ;;  %v2357_v35 = vsel %vm1614_vm8, %v2356_v8, %v2355_v61  ;;  %v5958_v21 = vrot.slane %v5957_v26, 2  ;;  %v5968_v3 = vld [vmem:[#allocation52_spill] sm:$0xff]  ;;  %v402_v39 = vld [vmem:[#allocation2 + $0x140] sm:$0xff] }
  0xed   : > { %v1894_v45 = vsel %vm1608_vm6, %v5956_v51, %v1893_v19  ;;  %v2391_v63 = vpack.c.b16 %v2357_v35, %v2349_v53  ;;  %v5959_v17 = vrot.slane %v4501_v44, 6  ;;  %v1912_v31 = vrot.slane %v1856_v13, 1  ;;  %v5972_v51 = vld [vmem:[#allocation50_spill] sm:$0xff] }
  0xee   : > { %v1895_v11 = vsel %vm1611_vm7, %v5958_v21, %v1894_v45  ;;  %v1914_v53 = vsel %vm1596_vm2, %v1818_v43, %v4517_v4  ;;  %v1920_v62 = vrot.slane %v1857_v46, 1  ;;  %v5960_v27 = vrot.slane %v4505_v40, 4 }
  0xef   : > { %v1907_v1 = vsel %vm1599_vm3, %v5959_v17, %v1906_v36  ;;  %v1897_v8 = vsel %vm1614_vm8, %v1896_v24, %v1895_v11  ;;  %2396 = vrot.lane.b32.xlu1 %v2391_v63, %s3545_s19  ;;  %v5961_v29 = vrot.slane %v4521_v25, 6  ;;  %v1383_v37 = vpack.c.bf16 %v3291_v38, %v3291_v38  ;;  %v5974_v63 = vld [vmem:[#allocation51_spill] sm:$0xff]  ;;  %v407_v17 = vld [vmem:[#allocation2 + $0x168] sm:$0xff] }
  0xf0   : > { %v1908_v14 = vsel %vm1602_vm4, %v1808_v18, %v1907_v1  ;;  %v2481_v49 = vpack.c.b16 %v1897_v8, %v1889_v12  ;;  %v5962_v30 = vrot.slane %v4523_v23, 5  ;;  %v5965_v12 = vrot.slane %v5964_v33, 7 }
  0xf1   : > { %v1909_v59 = vsel %vm1605_vm5, %v5960_v27, %v1908_v14  ;;  %v1915_v22 = vsel %vm1599_vm3, %v5961_v29, %v1914_v53  ;;  %v1160_v60 = vcombine.high %v401_v7, %v401_v7  ;;  %v5966_v28 = vrot.slane %v4513_v5, 2  ;;  %v5977_v14 = vld [vmem:[#allocation53_spill] sm:$0xff]  ;;  %v5979_v29 = vld [vmem:[#allocation54_spill] sm:$0xff]  ;;  %v396_v5 = vld [vmem:[#allocation2 + $0x110] sm:$0xff] }
  0xf2   : > { %v1910_v18 = vsel %vm1608_vm6, %v1812_v42, %v1909_v59  ;;  %v1916_v43 = vsel %vm1602_vm4, %v5962_v30, %v1915_v22  ;;  %v1898_v41 = vsel %vm1596_vm2, %v5965_v12, %v5963_v55  ;;  %2486 = vrot.lane.b32.xlu0 %v2481_v49, %s3547_s26  ;;  %v5967_v61 = vrot.slane %v4525_v20, 4 }
  0xf3   : > { %v1911_v56 = vsel %vm1611_vm7, %v5966_v28, %v1910_v18  ;;  %v1855_v0 = vunpack.c.l.b16 %v1383_v37  ;;  %v5969_v19 = vrot.slane %v5968_v3, 6  ;;  %v5971_v35 = vrot.slane %v4527_v48, 3 }
  0xf4   : > { %v1917_v42 = vsel %vm1605_vm5, %v5967_v61, %v1916_v43  ;;  %v4821_v36 = vsel %vm1614_vm8, %v1912_v31, %v1911_v56  ;;  %v5973_v45 = vrot.slane %v5972_v51, 5  ;;  %v1167_v46 = vrot.slane %v401_v7, %v3724_v10  ;;  %v408_v7 = vld [vmem:[#allocation2 + $0x170] sm:$0xff] }
  0xf5   : > { %v1899_v13 = vsel %vm1599_vm3, %v5969_v19, %v1898_v41  ;;  %5970 = vst [vmem:[#allocation24_spill] sm:$0xff] %v4821_v36  ;;  %v1918_v2 = vsel %vm1608_vm6, %v5971_v35, %v1917_v42  ;;  %v5975_v26 = vrot.slane %v5974_v63, 4  ;;  %v1904_v11 = vrot.slane %v1855_v0, 1 }
  0xf6   : > { %v1900_v24 = vsel %vm1602_vm4, %v5973_v45, %v1899_v13  ;;  %v1919_v38 = vsel %vm1611_vm7, %v1828_v16, %v1918_v2  ;;  %v1174_v1 = vrot.slane %v1160_v60, %v3724_v10  ;;  %v5978_v53 = vrot.slane %v5977_v14, 3 }
  0xf7   : > { %v1901_v21 = vsel %vm1605_vm5, %v5975_v26, %v1900_v24  ;;  %v4838_v31 = vsel %vm1614_vm8, %v1920_v62, %v1919_v38  ;;  %v1175_v27 = vcombine.high %v1167_v46, %v1167_v46  ;;  %v1177_v59 = vcombine.high %v402_v39, %v402_v39 }
  0xf8   : > { %5976 = vst [vmem:[#allocation25_spill] sm:$0xff] %v4838_v31  ;;  %v1902_v49 = vsel %vm1608_vm6, %v5978_v53, %v1901_v21  ;;  %v1925_v16 = vpack.c.b16 %v4838_v31, %v4821_v36  ;;  %v5980_v22 = vrot.slane %v5979_v29, 2  ;;  %v1176_v18 = vcombine.high %v1174_v1, %v1174_v1 }
  0xf9   : > { %v1184_v30 = vrot.slane %v402_v39, %v3724_v10  ;;  %v1191_v43 = vrot.slane %v1177_v59, %v3724_v10  ;;  %v1201_v12 = vcombine.high %v407_v17, %v407_v17  ;;  %v1208_v41 = vrot.slane %v407_v17, %v3724_v10 }
  0xfa   : > { %v1903_v37 = vsel %vm1611_vm7, %v5980_v22, %v1902_v49  ;;  %1932 = vrot.lane.b32.xlu1 %v1925_v16, %s3546_s20  ;;  %v1218_v56 = vcombine.high %v408_v7, %v408_v7  ;;  %v1225_v61 = vrot.slane %v408_v7, %v3724_v10  ;;  %v1434_v13 = vpack.c.bf16 %v1167_v46, %v1167_v46 }
  0xfb   : > { %v4850_v62 = vsel %vm1614_vm8, %v1904_v11, %v1903_v37  ;;  %v1192_v28 = vcombine.high %v1184_v30, %v1184_v30  ;;  %v1193_v42 = vcombine.high %v1191_v43, %v1191_v43  ;;  %v1215_v0 = vrot.slane %v1201_v12, %v3724_v10 }
  0xfc   : > { %5981 = vst [vmem:[#allocation31_spill] sm:$0xff] %v4850_v62  ;;  %v1924_v60 = vpack.c.b16 %v4850_v62, %v1897_v8  ;;  %v1216_v19 = vcombine.high %v1208_v41, %v1208_v41  ;;  %v1232_v39 = vrot.slane %v1218_v56, %v3724_v10  ;;  %v1233_v35 = vcombine.high %v1225_v61, %v1225_v61 }
  0xfd   : > { %v1435_v2 = vpack.c.bf16 %v1175_v27, %v1175_v27  ;;  %v1436_v45 = vpack.c.bf16 %v1174_v1, %v1174_v1  ;;  %v1217_v24 = vcombine.high %v1215_v0, %v1215_v0  ;;  %v1437_v38 = vpack.c.bf16 %v1176_v18, %v1176_v18 }
  0xfe   : > { %1930 = vrot.lane.b32.xlu0 %v1924_v60, %s3546_s20  ;;  %v1438_v26 = vpack.c.bf16 %v1184_v30, %v1184_v30  ;;  %v1439_v8 = vpack.c.bf16 %v1192_v28, %v1192_v28  ;;  %v1234_v21 = vcombine.high %v1232_v39, %v1232_v39  ;;  %v1440_v11 = vpack.c.bf16 %v1191_v43, %v1191_v43 }
  0xff   : > { %v1441_v17 = vpack.c.bf16 %v1193_v42, %v1193_v42  ;;  %v1442_v53 = vpack.c.bf16 %v1208_v41, %v1208_v41  ;;  %v1443_v49 = vpack.c.bf16 %v1216_v19, %v1216_v19  ;;  %v1444_v7 = vpack.c.bf16 %v1215_v0, %v1215_v0 }
 0x100   : > { %v1445_v59 = vpack.c.bf16 %v1217_v24, %v1217_v24  ;;  %v1446_v16 = vpack.c.bf16 %v1225_v61, %v1225_v61  ;;  %v1447_v46 = vpack.c.bf16 %v1233_v35, %v1233_v35  ;;  %v1448_v22 = vpack.c.bf16 %v1232_v39, %v1232_v39 }
 0x101   : > { %v1449_v37 = vpack.c.bf16 %v1234_v21, %v1234_v21  ;;  %v4860_v12 = vunpack.c.l.b16 %v1434_v13  ;;  %v4862_v60 = vunpack.c.l.b16 %v1435_v2  ;;  %v4864_v1 = vunpack.c.l.b16 %v1436_v45 }
 0x102   : > { %v4866_v27 = vunpack.c.l.b16 %v1437_v38  ;;  %v4868_v18 = vunpack.c.l.b16 %v1438_v26  ;;  %v4870_v30 = vunpack.c.l.b16 %v1439_v8  ;;  %v4872_v43 = vunpack.c.l.b16 %v1440_v11 }
 0x103   : > { %v4874_v41 = vunpack.c.l.b16 %v1441_v17  ;;  %v4876_v28 = vunpack.c.l.b16 %v1442_v53  ;;  %v4878_v56 = vunpack.c.l.b16 %v1443_v49  ;;  %v4880_v61 = vunpack.c.l.b16 %v1444_v7  ;;  %v389_v17 = vld [vmem:[#allocation2 + $0xd8] sm:$0xff] }
 0x104   : > { %v4882_v42 = vunpack.c.l.b16 %v1445_v59  ;;  %v4884_v0 = vunpack.c.l.b16 %v1446_v16  ;;  %v4886_v19 = vunpack.c.l.b16 %v1447_v46  ;;  %v4888_v13 = vunpack.c.l.b16 %v1448_v22  ;;  %v390_v16 = vld [vmem:[#allocation2 + $0xe0] sm:$0xff] }
 0x105   : > { %v4890_v39 = vunpack.c.l.b16 %v1449_v37  ;;  %v2146_v35 = vrot.slane %v4862_v60, 7  ;;  %v2148_v2 = vrot.slane %v4864_v1, 6  ;;  %v2150_v45 = vrot.slane %v4866_v27, 5 }
 0x106   : > { %v2152_v24 = vrot.slane %v4868_v18, 4  ;;  %v2154_v38 = vrot.slane %v4870_v30, 3  ;;  %v2156_v8 = vrot.slane %v4872_v43, 2  ;;  %v2158_v21 = vrot.slane %v4874_v41, 1 }
 0x107   : > { %v2147_v26 = vsel %vm1596_vm2, %v2146_v35, %v4860_v12  ;;  %v2160_v11 = vrot.slane %v4878_v56, 7  ;;  %v2162_v49 = vrot.slane %v4880_v61, 6  ;;  %v2164_v7 = vrot.slane %v4882_v42, 5 }
 0x108   : > { %v2149_v53 = vsel %vm1599_vm3, %v2148_v2, %v2147_v26  ;;  %v2166_v59 = vrot.slane %v4884_v0, 4  ;;  %v2168_v37 = vrot.slane %v4886_v19, 3  ;;  %v2170_v35 = vrot.slane %v4888_v13, 2 }
 0x109   : > { %v2151_v46 = vsel %vm1602_vm4, %v2150_v45, %v2149_v53  ;;  %v2161_v22 = vsel %vm1596_vm2, %v2160_v11, %v4876_v28  ;;  %v2172_v26 = vrot.slane %v4890_v39, 1  ;;  %v1078_v36 = vcombine.high %v389_v17, %v389_v17 }
 0x10a   : > { %v2153_v31 = vsel %vm1605_vm5, %v2152_v24, %v2151_v46  ;;  %v2163_v2 = vsel %vm1599_vm3, %v2162_v49, %v2161_v22  ;;  %v1085_v45 = vrot.slane %v389_v17, %v3724_v10  ;;  %v1095_v53 = vcombine.high %v390_v16, %v390_v16 }
 0x10b   : > { %v2155_v62 = vsel %vm1608_vm6, %v2154_v38, %v2153_v31  ;;  %v2165_v15 = vsel %vm1602_vm4, %v2164_v7, %v2163_v2  ;;  %v1092_v24 = vrot.slane %v1078_v36, %v3724_v10  ;;  %v1102_v49 = vrot.slane %v390_v16, %v3724_v10 }
 0x10c   : > { %v2157_v11 = vsel %vm1611_vm7, %v2156_v8, %v2155_v62  ;;  %v2167_v32 = vsel %vm1605_vm5, %v2166_v59, %v2165_v15  ;;  %v1093_v31 = vcombine.high %v1085_v45, %v1085_v45  ;;  %v1109_v38 = vrot.slane %v1095_v53, %v3724_v10 }
 0x10d   : > { %v2159_v46 = vsel %vm1614_vm8, %v2158_v21, %v2157_v11  ;;  %v2169_v22 = vsel %vm1608_vm6, %v2168_v37, %v2167_v32  ;;  %v1094_v17 = vcombine.high %v1092_v24, %v1092_v24  ;;  %v1110_v2 = vcombine.high %v1102_v49, %v1102_v49 }
 0x10e   : > { %v2171_v7 = vsel %vm1611_vm7, %v2170_v35, %v2169_v22  ;;  %v1119_v9 = vcombine.high %v395_v50, %v395_v50  ;;  %v1111_v15 = vcombine.high %v1109_v38, %v1109_v38  ;;  %v1126_v8 = vrot.slane %v395_v50, %v3724_v10 }
 0x10f   : > { %v2173_v62 = vsel %vm1614_vm8, %v2172_v26, %v2171_v7  ;;  %v1136_v36 = vcombine.high %v396_v5, %v396_v5  ;;  %v1143_v21 = vrot.slane %v396_v5, %v3724_v10  ;;  %v1418_v32 = vpack.c.bf16 %v1085_v45, %v1085_v45 }
 0x110   : > { %v2177_v59 = vpack.c.b16 %v2173_v62, %v2159_v46  ;;  %v1133_v16 = vrot.slane %v1119_v9, %v3724_v10  ;;  %v1134_v37 = vcombine.high %v1126_v8, %v1126_v8  ;;  %v1419_v11 = vpack.c.bf16 %v1093_v31, %v1093_v31 }
 0x111   : > { %v1150_v53 = vrot.slane %v1136_v36, %v3724_v10  ;;  %v1420_v35 = vpack.c.bf16 %v1092_v24, %v1092_v24  ;;  %v1151_v40 = vcombine.high %v1143_v21, %v1143_v21  ;;  %v1421_v26 = vpack.c.bf16 %v1094_v17, %v1094_v17 }
 0x112   : > { %2184 = vrot.lane.b32.xlu1 %v2177_v59, %s3540_s14  ;;  %v1135_v22 = vcombine.high %v1133_v16, %v1133_v16  ;;  %v1422_v7 = vpack.c.bf16 %v1102_v49, %v1102_v49  ;;  %v1423_v50 = vpack.c.bf16 %v1110_v2, %v1110_v2  ;;  %v1424_v34 = vpack.c.bf16 %v1109_v38, %v1109_v38 }
 0x113   : > { %v1152_v57 = vcombine.high %v1150_v53, %v1150_v53  ;;  %v1425_v46 = vpack.c.bf16 %v1111_v15, %v1111_v15  ;;  %v1426_v62 = vpack.c.bf16 %v1126_v8, %v1126_v8  ;;  %v1427_v9 = vpack.c.bf16 %v1134_v37, %v1134_v37 }
 0x114   : > { %v1428_v44 = vpack.c.bf16 %v1133_v16, %v1133_v16  ;;  %v1429_v5 = vpack.c.bf16 %v1135_v22, %v1135_v22  ;;  %v1430_v45 = vpack.c.bf16 %v1143_v21, %v1143_v21  ;;  %v1431_v6 = vpack.c.bf16 %v1151_v40, %v1151_v40 }
 0x115   : > { %v1432_v52 = vpack.c.bf16 %v1150_v53, %v1150_v53  ;;  %v1433_v36 = vpack.c.bf16 %v1152_v57, %v1152_v57  ;;  %v4931_v31 = vunpack.c.l.b16 %v1418_v32  ;;  %v4933_v24 = vunpack.c.l.b16 %v1419_v11 }
 0x116   : > { %v4935_v59 = vunpack.c.l.b16 %v1420_v35  ;;  %v4937_v17 = vunpack.c.l.b16 %v1421_v26  ;;  %v4939_v49 = vunpack.c.l.b16 %v1422_v7  ;;  %v4941_v38 = vunpack.c.l.b16 %v1423_v50 }
 0x117   : > { %v4943_v2 = vunpack.c.l.b16 %v1424_v34  ;;  %v4945_v15 = vunpack.c.l.b16 %v1425_v46  ;;  %v4947_v8 = vunpack.c.l.b16 %v1426_v62  ;;  %v4949_v40 = vunpack.c.l.b16 %v1427_v9 }
 0x118   : > { %v4951_v57 = vunpack.c.l.b16 %v1428_v44  ;;  %v4953_v16 = vunpack.c.l.b16 %v1429_v5  ;;  %v4955_v21 = vunpack.c.l.b16 %v1430_v45  ;;  %v4957_v32 = vunpack.c.l.b16 %v1431_v6 }
 0x119   : > { %v4959_v37 = vunpack.c.l.b16 %v1432_v52  ;;  %v4961_v53 = vunpack.c.l.b16 %v1433_v36  ;;  %v2118_v34 = vrot.slane %v4933_v24, 7  ;;  %v2120_v11 = vrot.slane %v4935_v59, 6 }
 0x11a   : > { %v2122_v35 = vrot.slane %v4937_v17, 5  ;;  %v2124_v22 = vrot.slane %v4939_v49, 4  ;;  %v2126_v44 = vrot.slane %v4941_v38, 3  ;;  %v2128_v26 = vrot.slane %v4943_v2, 2 }
 0x11b   : > { %v2130_v7 = vrot.slane %v4945_v15, 1  ;;  %v2132_v6 = vrot.slane %v4949_v40, 7  ;;  %v2119_v52 = vsel %vm1596_vm2, %v2118_v34, %v4931_v31  ;;  %v2134_v50 = vrot.slane %v4951_v57, 6 }
 0x11c   : > { %v2136_v46 = vrot.slane %v4953_v16, 5  ;;  %v2138_v62 = vrot.slane %v4955_v21, 4  ;;  %v2121_v9 = vsel %vm1599_vm3, %v2120_v11, %v2119_v52  ;;  %v2140_v45 = vrot.slane %v4957_v32, 3 }
 0x11d   : > { %v2133_v5 = vsel %vm1596_vm2, %v2132_v6, %v4947_v8  ;;  %v2142_v36 = vrot.slane %v4959_v37, 2  ;;  %v2123_v29 = vsel %vm1602_vm4, %v2122_v35, %v2121_v9  ;;  %v2144_v34 = vrot.slane %v4961_v53, 1 }
 0x11e   : > { %v2135_v14 = vsel %vm1599_vm3, %v2134_v50, %v2133_v5  ;;  %v2270_v63 = vrot.slane %v4860_v12, 1  ;;  %v2125_v51 = vsel %vm1605_vm5, %v2124_v22, %v2123_v29  ;;  %v2272_v11 = vrot.slane %v4864_v1, 7 }
 0x11f   : > { %v2137_v3 = vsel %vm1602_vm4, %v2136_v46, %v2135_v14  ;;  %v2274_v6 = vrot.slane %v4866_v27, 6  ;;  %v2127_v52 = vsel %vm1608_vm6, %v2126_v44, %v2125_v51  ;;  %v2276_v50 = vrot.slane %v4868_v18, 5 }
 0x120   : > { %v2139_v33 = vsel %vm1605_vm5, %v2138_v62, %v2137_v3  ;;  %v2271_v35 = vsel %vm1596_vm2, %v4862_v60, %v2270_v63  ;;  %v2129_v9 = vsel %vm1611_vm7, %v2128_v26, %v2127_v52  ;;  %v2278_v29 = vrot.slane %v4870_v30, 4 }
 0x121   : > { %v2141_v12 = vsel %vm1608_vm6, %v2140_v45, %v2139_v33  ;;  %v2273_v14 = vsel %vm1599_vm3, %v2272_v11, %v2271_v35  ;;  %v2131_v22 = vsel %vm1614_vm8, %v2130_v7, %v2129_v9  ;;  %v2280_v63 = vrot.slane %v4872_v43, 3 }
 0x122   : > { %v2143_v51 = vsel %vm1611_vm7, %v2142_v36, %v2141_v12  ;;  %v2275_v3 = vsel %vm1602_vm4, %v2274_v6, %v2273_v14  ;;  %v2282_v26 = vrot.slane %v4874_v41, 2  ;;  %v2284_v46 = vrot.slane %v4876_v28, 1 }
 0x123   : > { %v2145_v44 = vsel %vm1614_vm8, %v2144_v34, %v2143_v51  ;;  %v2277_v33 = vsel %vm1605_vm5, %v2276_v50, %v2275_v3  ;;  %v2286_v5 = vrot.slane %v4880_v61, 7  ;;  %v2288_v45 = vrot.slane %v4882_v42, 6 }
 0x124   : > { %v2176_v62 = vpack.c.b16 %v2145_v44, %v2131_v22  ;;  %v2279_v7 = vsel %vm1608_vm6, %v2278_v29, %v2277_v33  ;;  %v2285_v34 = vsel %vm1596_vm2, %v4878_v56, %v2284_v46  ;;  %v2290_v52 = vrot.slane %v4884_v0, 5 }
 0x125   : > { %v2281_v36 = vsel %vm1611_vm7, %v2280_v63, %v2279_v7  ;;  %v2292_v28 = vrot.slane %v4886_v19, 4  ;;  %v2287_v61 = vsel %vm1599_vm3, %v2286_v5, %v2285_v34  ;;  %v2294_v42 = vrot.slane %v4888_v13, 3  ;;  %v3301_v34 = vld.sshfl [vmem:[#allocation2 + $0x148] sm:$0x3 pattern:$0x76325410] }
 0x126   : > { %2182 = vrot.lane.b32.xlu0 %v2176_v62, %s3540_s14  ;;  %v2283_v35 = vsel %vm1614_vm8, %v2282_v26, %v2281_v36  ;;  %v2296_v9 = vrot.slane %v4890_v39, 2  ;;  %v2289_v12 = vsel %vm1602_vm4, %v2288_v45, %v2287_v61  ;;  %v2242_v14 = vrot.slane %v4931_v31, 1  ;;  %v5124_v39 = vpop.permute.xlu0 %1834  ;;  %s3550_s14 = smov 56  }
 0x127   : > { %v2244_v0 = vrot.slane %v4935_v59, 7  ;;  %v2246_v19 = vrot.slane %v4937_v17, 6  ;;  %v2291_v22 = vsel %vm1605_vm5, %v2290_v52, %v2289_v12  ;;  %v2248_v51 = vrot.slane %v4939_v49, 5 }
 0x128   : > { %v2250_v3 = vrot.slane %v4941_v38, 4  ;;  %v5780_v44 = vrot.slane %v4943_v2, 3  ;;  %v2293_v13 = vsel %vm1608_vm6, %v2292_v28, %v2291_v22  ;;  %v2243_v33 = vsel %vm1596_vm2, %v4933_v24, %v2242_v14  ;;  %v3302_v22 = vld.sshfl [vmem:[#allocation2 + $0x178] sm:$0x3 pattern:$0x76325410] }
 0x129   : > { %v2254_v46 = vrot.slane %v4945_v15, 2  ;;  %v2256_v31 = vrot.slane %v4947_v8, 1  ;;  %v2295_v59 = vsel %vm1611_vm7, %v2294_v42, %v2293_v13  ;;  %v2245_v62 = vsel %vm1599_vm3, %v2244_v0, %v2243_v33 }
 0x12a   : > { %v2258_v7 = vrot.slane %v4951_v57, 7  ;;  %v2260_v36 = vrot.slane %v4953_v16, 6  ;;  %v2297_v61 = vsel %vm1614_vm8, %v2296_v9, %v2295_v59  ;;  %v2247_v12 = vsel %vm1602_vm4, %v2246_v19, %v2245_v62 }
 0x12b   : > { %v2257_v8 = vsel %vm1596_vm2, %v4949_v40, %v2256_v31  ;;  %v2262_v14 = vrot.slane %v4955_v21, 5  ;;  %v2301_v13 = vpack.c.b16 %v2297_v61, %v2283_v35  ;;  %v2249_v57 = vsel %vm1605_vm5, %v2248_v51, %v2247_v12 }
 0x12c   : > { %v2259_v16 = vsel %vm1599_vm3, %v2258_v7, %v2257_v8  ;;  %v2264_v33 = vrot.slane %v4957_v32, 4  ;;  %v2251_v59 = vsel %vm1608_vm6, %v2250_v3, %v2249_v57  ;;  %v2266_v31 = vrot.slane %v4959_v37, 3  ;;  %v3299_v8 = vld.sshfl [vmem:[#allocation2 + $0xe8] sm:$0x3 pattern:$0x76325410] }
 0x12d   : > { %v2261_v62 = vsel %vm1602_vm4, %v2260_v36, %v2259_v16  ;;  %v2268_v21 = vrot.slane %v4961_v53, 2  ;;  %2308 = vrot.lane.b32.xlu1 %v2301_v13, %s3542_s16  ;;  %v2253_v35 = vsel %vm1611_vm7, %v5780_v44, %v2251_v59  ;;  %v1456_v12 = vpack.c.bf16 %v3301_v34, %v3301_v34  ;;  %v3300_v44 = vld.sshfl [vmem:[#allocation2 + $0x118] sm:$0x3 pattern:$0x76325410] }
 0x12e   : > { %v2263_v61 = vsel %vm1605_vm5, %v2262_v14, %v2261_v62  ;;  %v1457_v32 = vpack.c.bf16 %v3302_v22, %v3302_v22  ;;  %v2255_v57 = vsel %vm1614_vm8, %v2254_v46, %v2253_v35  ;;  %v2374_v37 = vsel %vm1596_vm2, %v2272_v11, %v4862_v60 }
 0x12f   : > { %v2265_v16 = vsel %vm1608_vm6, %v2264_v33, %v2263_v61  ;;  %v2382_v13 = vsel %vm1596_vm2, %v2286_v5, %v4878_v56  ;;  %v2324_v62 = vunpack.c.l.b16 %v1456_v12  ;;  %v2375_v22 = vsel %vm1599_vm3, %v2274_v6, %v2374_v37 }
 0x130   : > { %v2267_v59 = vsel %vm1611_vm7, %v2266_v31, %v2265_v16  ;;  %v2325_v34 = vunpack.c.l.b16 %v1457_v32  ;;  %v2376_v60 = vsel %vm1602_vm4, %v2276_v50, %v2375_v22  ;;  %v2383_v1 = vsel %vm1599_vm3, %v2288_v45, %v2382_v13 }
 0x131   : > { %v2269_v35 = vsel %vm1614_vm8, %v2268_v21, %v2267_v59  ;;  %v1454_v56 = vpack.c.bf16 %v3299_v8, %v3299_v8  ;;  %v2377_v5 = vsel %vm1605_vm5, %v2278_v29, %v2376_v60  ;;  %v2380_v27 = vrot.slane %v2324_v62, 1  ;;  %v411_v8 = vld [vmem:[#allocation2 + $0x188] sm:$0xff] }
 0x132   : > { %v2300_v11 = vpack.c.b16 %v2269_v35, %v2255_v57  ;;  %v2384_v6 = vsel %vm1602_vm4, %v2290_v52, %v2383_v1  ;;  %v2378_v61 = vsel %vm1608_vm6, %v2280_v63, %v2377_v5  ;;  %v2388_v18 = vrot.slane %v2325_v34, 1  ;;  %v5109_v52 = vpop.permute.xlu1 %2180 }
 0x133   : > { %v2385_v12 = vsel %vm1605_vm5, %v2292_v28, %v2384_v6  ;;  %v1455_v32 = vpack.c.bf16 %v3300_v44, %v3300_v44  ;;  %v2379_v50 = vsel %vm1611_vm7, %v2282_v26, %v2378_v61  ;;  %v2322_v29 = vunpack.c.l.b16 %v1454_v56  ;;  %v410_v26 = vld [vmem:[#allocation2 + $0x180] sm:$0xff]  ;;  %v5151_v56 = vpop.permute.xlu0 %1836 }
 0x134   : > { %2306 = vrot.lane.b32.xlu0 %v2300_v11, %s3542_s16  ;;  %v2386_v30 = vsel %vm1608_vm6, %v2294_v42, %v2385_v12  ;;  %v2358_v45 = vsel %vm1596_vm2, %v2244_v0, %v4933_v24  ;;  %v2381_v43 = vsel %vm1614_vm8, %v2380_v27, %v2379_v50  ;;  %v2366_v44 = vsel %vm1596_vm2, %v2258_v7, %v4949_v40 }
 0x135   : > { %v2387_v63 = vsel %vm1611_vm7, %v2296_v9, %v2386_v30  ;;  %v2323_v28 = vunpack.c.l.b16 %v1455_v32  ;;  %v2359_v41 = vsel %vm1599_vm3, %v2246_v19, %v2358_v45  ;;  %v2364_v0 = vrot.slane %v2322_v29, 1 }
 0x136   : > { %v2389_v42 = vsel %vm1614_vm8, %v2388_v18, %v2387_v63  ;;  %v2360_v24 = vsel %vm1602_vm4, %v2248_v51, %v2359_v41  ;;  %v2367_v19 = vsel %vm1599_vm3, %v2260_v36, %v2366_v44  ;;  %v5982_v16 = vrot.slane %v4943_v2, 3  ;;  %v5144_v62 = vpop.permute.xlu1 %2304 }
 0x137   : > { %v2393_v9 = vpack.c.b16 %v2389_v42, %v2381_v43  ;;  %v2361_v17 = vsel %vm1605_vm5, %v2250_v3, %v2360_v24  ;;  %v2372_v57 = vrot.slane %v2323_v28, 1  ;;  %v2368_v51 = vsel %vm1602_vm4, %v2262_v14, %v2367_v19 }
 0x138   : > { %v2362_v49 = vsel %vm1608_vm6, %v5982_v16, %v2361_v17  ;;  %v768_v37 = vcombine.high %v410_v26, %v410_v26  ;;  %v775_v40 = vrot.slane %v410_v26, %v3724_v10  ;;  %v2369_v3 = vsel %vm1605_vm5, %v2264_v33, %v2368_v51 }
 0x139   : > { %2400 = vrot.lane.b32.xlu1 %v2393_v9, %s3545_s19  ;;  %v2363_v38 = vsel %vm1611_vm7, %v2254_v46, %v2362_v49  ;;  %v785_v7 = vcombine.high %v411_v8, %v411_v8  ;;  %v792_v36 = vrot.slane %v411_v8, %v3724_v10  ;;  %v2370_v13 = vsel %vm1608_vm6, %v2266_v31, %v2369_v3 }
 0x13a   : > { %v2365_v2 = vsel %vm1614_vm8, %v2364_v0, %v2363_v38  ;;  %v782_v14 = vrot.slane %v768_v37, %v3724_v10  ;;  %v783_v59 = vcombine.high %v775_v40, %v775_v40  ;;  %v2371_v15 = vsel %vm1611_vm7, %v2268_v21, %v2370_v13  ;;  %v5983_v37 = vld [vmem:[#allocation49_spill] sm:$0xff] }
 0x13b   : > { %v799_v46 = vrot.slane %v785_v7, %v3724_v10  ;;  %v800_v34 = vcombine.high %v792_v36, %v792_v36  ;;  %v1458_v33 = vpack.c.bf16 %v775_v40, %v775_v40  ;;  %v2373_v22 = vsel %vm1614_vm8, %v2372_v57, %v2371_v15  ;;  %v5984_v7 = vld [vmem:[#allocation52_spill] sm:$0xff] }
 0x13c   : > { %v784_v35 = vcombine.high %v782_v14, %v782_v14  ;;  %v1459_v60 = vpack.c.bf16 %v783_v59, %v783_v59  ;;  %v1460_v1 = vpack.c.bf16 %v782_v14, %v782_v14  ;;  %v2392_v31 = vpack.c.b16 %v2373_v22, %v2365_v2  ;;  %v5985_v2 = vld [vmem:[#allocation50_spill] sm:$0xff]  ;;  %v5986_v14 = vld [vmem:[#allocation51_spill] sm:$0xff] }
 0x13d   : > { %v801_v11 = vcombine.high %v799_v46, %v799_v46  ;;  %v1462_v5 = vpack.c.bf16 %v792_v36, %v792_v36  ;;  %v1463_v27 = vpack.c.bf16 %v800_v34, %v800_v34  ;;  %v1464_v61 = vpack.c.bf16 %v799_v46, %v799_v46  ;;  %v5987_v46 = vld [vmem:[#allocation47_spill] sm:$0xff] }
 0x13e   : > { %v1461_v6 = vpack.c.bf16 %v784_v35, %v784_v35  ;;  %v1700_v53 = vrot.slane %v4517_v4, 7  ;;  %v1702_v21 = vrot.slane %v4519_v58, 6  ;;  %2398 = vrot.lane.b32.xlu0 %v2392_v31, %s3545_s19  ;;  %v1704_v12 = vrot.slane %v4521_v25, 5  ;;  %v5165_v4 = vpop.permute.xlu1 %2438  ;;  %s5578_s19 = scalar_lea.hbm %s5635_s6, %s3328_s12 }
 0x13f   : > { %v1465_v10 = vpack.c.bf16 %v801_v11, %v801_v11  ;;  %v1706_v18 = vrot.slane %v4523_v23, 4  ;;  %v1708_v32 = vrot.slane %v4525_v20, 3  ;;  %v1710_v30 = vrot.slane %v4527_v48, 2  ;;  %v5990_v11 = vld [vmem:[#allocation57_spill] sm:$0xff] }
 0x140   : > { %v1701_v50 = vsel %vm1596_vm2, %v1700_v53, %v4515_v47  ;;  %v1712_v29 = vrot.slane %v4529_v54, 1  ;;  %v5163_v45 = vunpack.c.l.b16 %v1458_v33  ;;  %v5168_v43 = vunpack.c.l.b16 %v1459_v60  ;;  %v5181_v54 = vpop.permute.xlu0 %2178  ;;  %v5988_v33 = vld [vmem:[#allocation53_spill] sm:$0xff] }
 0x141   : > { %v1703_v58 = vsel %vm1599_vm3, %v1702_v21, %v1701_v50  ;;  %v5170_v25 = vunpack.c.l.b16 %v1460_v1  ;;  %v5172_v23 = vunpack.c.l.b16 %v1461_v6  ;;  %v5175_v63 = vunpack.c.l.b16 %v1462_v5  ;;  %v5992_v21 = vld [vmem:[#allocation59_spill] sm:$0xff] }
 0x142   : > { %v1705_v20 = vsel %vm1602_vm4, %v1704_v12, %v1703_v58  ;;  %v5177_v47 = vunpack.c.l.b16 %v1463_v27  ;;  %v5179_v48 = vunpack.c.l.b16 %v1464_v61  ;;  %v5184_v41 = vunpack.c.l.b16 %v1465_v10  ;;  %v5203_v38 = vpop.permute.xlu1 %2464  ;;  %v5991_v27 = vld [vmem:[#allocation58_spill] sm:$0xff]  ;;  %v5993_v12 = vld [vmem:[#allocation60_spill] sm:$0xff]  ;;  %v5995_v58 = vld [vmem:[#allocation61_spill] sm:$0xff] }
 0x143   : > { %v1707_v28 = vsel %vm1605_vm5, %v1706_v18, %v1705_v20  ;;  %v2418_v26 = vrot.slane %v5168_v43, 7  ;;  %v2420_v42 = vrot.slane %v5170_v25, 6  ;;  %v2422_v0 = vrot.slane %v5172_v23, 5 }
 0x144   : > { %v1709_v24 = vsel %vm1608_vm6, %v1708_v32, %v1707_v28  ;;  %v2424_v44 = vrot.slane %v5175_v63, 4  ;;  %v2426_v8 = vrot.slane %v5177_v47, 3  ;;  %v2428_v19 = vrot.slane %v5179_v48, 2  ;;  %v5214_v60 = vpop.permute.xlu0 %2302 }
 0x145   : > { %v1711_v9 = vsel %vm1611_vm7, %v1710_v30, %v1709_v24  ;;  %v2419_v17 = vsel %vm1596_vm2, %v2418_v26, %v5163_v45  ;;  %v2430_v57 = vrot.slane %v5184_v41, 1  ;;  %v1672_v51 = vrot.slane %v5963_v55, 7  ;;  %v5989_v55 = vld [vmem:[#allocation54_spill] sm:$0xff]  ;;  %v5994_v30 = vld [vmem:[#allocation21_spill] sm:$0xff] }
 0x146   : > { %v5198_v16 = vsel %vm1614_vm8, %v1712_v29, %v1711_v9  ;;  %v2421_v49 = vsel %vm1599_vm3, %v2420_v42, %v2419_v17  ;;  %v1674_v40 = vrot.slane %v5983_v37, 6  ;;  %v1676_v36 = vrot.slane %v5984_v7, 5  ;;  %v5996_v24 = vld [vmem:[#allocation62_spill] sm:$0xff] }
 0x147   : > { %v2423_v3 = vsel %vm1602_vm4, %v2422_v0, %v2421_v49  ;;  %v1678_v13 = vrot.slane %v5985_v2, 4  ;;  %v1680_v59 = vrot.slane %v5986_v14, 3  ;;  %v1673_v34 = vsel %vm1596_vm2, %v1672_v51, %v5987_v46  ;;  %v5997_v17 = vld [vmem:[#allocation30_spill] sm:$0xff] }
 0x148   : > { %v2425_v15 = vsel %vm1605_vm5, %v2424_v44, %v2423_v3  ;;  %v1682_v22 = vrot.slane %v5988_v33, 2  ;;  %v1684_v35 = vrot.slane %v5989_v55, 1  ;;  %v1675_v31 = vsel %vm1599_vm3, %v1674_v40, %v1673_v34  ;;  %v1839_v44 = vpop.permute.xlu1 %1838  ;;  %v5241_v40 = vpop.permute.xlu0 %2436 }
 0x149   : > { %v2427_v1 = vsel %vm1608_vm6, %v2426_v8, %v2425_v15  ;;  %v1686_v5 = vrot.slane %v5990_v11, 7  ;;  %v1688_v6 = vrot.slane %v5991_v27, 6  ;;  %v1677_v53 = vsel %vm1602_vm4, %v1676_v36, %v1675_v31  ;;  %v5998_v15 = vld [vmem:[#allocation46_spill] sm:$0xff]  ;;  %v5999_v11 = vld [vmem:[#allocation55_spill] sm:$0xff] }
 0x14a   : > { %v2429_v61 = vsel %vm1611_vm7, %v2428_v19, %v2427_v1  ;;  %v1690_v10 = vrot.slane %v5992_v21, 5  ;;  %v1692_v18 = vrot.slane %v5993_v12, 4  ;;  %v1679_v50 = vsel %vm1605_vm5, %v1678_v13, %v1677_v53  ;;  %v6001_v12 = vld [vmem:[#allocation63_spill] sm:$0xff] }
 0x14b   : > { %v2431_v32 = vsel %vm1614_vm8, %v2430_v57, %v2429_v61  ;;  %v1687_v29 = vsel %vm1596_vm2, %v1686_v5, %v5994_v30  ;;  %v1694_v20 = vrot.slane %v5995_v58, 3  ;;  %v1681_v26 = vsel %vm1608_vm6, %v1680_v59, %v1679_v50  ;;  %v6000_v5 = vld [vmem:[#allocation29_spill] sm:$0xff]  ;;  %v3469_v58 = vld [vmem:[%s5630_s1 + $0x8] sm:$0xff]  }
 0x14c   : > { %v2435_v28 = vpack.c.b16 %v2431_v32, %v5198_v16  ;;  %v1689_v42 = vsel %vm1599_vm3, %v1688_v6, %v1687_v29  ;;  %v1696_v0 = vrot.slane %v5996_v24, 2  ;;  %v1683_v8 = vsel %vm1611_vm7, %v1682_v22, %v1681_v26  ;;  %v1841_v1 = vpop.permute.xlu1 %1840  ;;  %v2463_v6 = vpop.permute.xlu0 %2462  ;;  %v6004_v26 = vld [vmem:[#allocation24_spill] sm:$0xff] }
 0x14d   : > { %v1691_v9 = vsel %vm1602_vm4, %v1690_v10, %v1689_v42  ;;  %v1698_v19 = vrot.slane %v5997_v17, 1  ;;  %v2444_v57 = vrot.slane %v5163_v45, 1  ;;  %v2446_v51 = vrot.slane %v5170_v25, 7  ;;  %v3468_v10 = vld [vmem:[%s5630_s1 + $0x10] ss:$0 sps:$4 sm:$0x33]  }
 0x14e   : > { %2442 = vrot.lane.b32.xlu1 %v2435_v28, %s3543_s17  ;;  %v1693_v49 = vsel %vm1605_vm5, %v1692_v18, %v1691_v9  ;;  %v2448_v37 = vrot.slane %v5172_v23, 6  ;;  %v1685_v3 = vsel %vm1614_vm8, %v1684_v35, %v1683_v8  ;;  %v2450_v2 = vrot.slane %v5175_v63, 5  ;;  %v3294_v45 = vld.sshfl [vmem:[#allocation2 + $0x190] sm:$0x3 pattern:$0x76325410]  ;;  %3377 = vmatprep.subr.msk.bf16.mxu0 %vm2596_vm11, %v3468_v10 }
 0x14f   : > { %v1695_v7 = vsel %vm1608_vm6, %v1694_v20, %v1693_v49  ;;  %v2445_v36 = vsel %vm1596_vm2, %v5168_v43, %v2444_v57  ;;  %v2452_v25 = vrot.slane %v5177_v47, 4  ;;  %v2454_v23 = vrot.slane %v5179_v48, 3  ;;  %v6003_v28 = vld [vmem:[#allocation31_spill] sm:$0xff]  ;;  %v6006_v9 = vld [vmem:[#allocation22_spill] sm:$0xff]  ;;  %v6007_v17 = vld [vmem:[#allocation56_spill] sm:$0xff] }
 0x150   : > { %v1697_v13 = vsel %vm1611_vm7, %v1696_v0, %v1695_v7  ;;  %v2447_v14 = vsel %vm1599_vm3, %v2446_v51, %v2445_v36  ;;  %v1716_v46 = vpack.c.b16 %v1685_v3, %v5998_v15  ;;  %v2456_v33 = vrot.slane %v5184_v41, 2  ;;  %v1927_v49 = vpop.permute.xlu1 %1926 }
 0x151   : > { %v1699_v59 = vsel %vm1614_vm8, %v1698_v19, %v1697_v13  ;;  %v2449_v34 = vsel %vm1602_vm4, %v2448_v37, %v2447_v14  ;;  %v1466_v35 = vpack.c.bf16 %v3294_v45, %v3294_v45  ;;  %v2472_v47 = vsel %vm1596_vm2, %v2446_v51, %v5168_v43  ;;  %v2395_v51 = vpop.permute.xlu0 %2394  ;;  %v6010_v45 = vld [vmem:[#allocation23_spill] sm:$0xff] }
 0x152   : > { %v1717_v22 = vpack.c.b16 %v5198_v16, %v1699_v59  ;;  %v2434_v63 = vpack.c.b16 %v1699_v59, %v1685_v3  ;;  %v2451_v55 = vsel %vm1605_vm5, %v2450_v2, %v2449_v34  ;;  %v2460_v27 = vpack.c.b16 %v6000_v5, %v5999_v11  ;;  %v3470_v3 = vld [vmem:[%s5630_s1] sm:$0xff]  }
 0x153   : > { %v2453_v31 = vsel %vm1608_vm6, %v2452_v25, %v2451_v55  ;;  %v2471_v41 = vunpack.c.l.b16 %v1466_v35  ;;  %v2473_v16 = vsel %vm1599_vm3, %v2448_v37, %v2472_v47  ;;  %v5269_v21 = vsel %vm283_vm0, %v1716_v46, %v1839_v44  ;;  %v6005_v44 = vld [vmem:[#allocation25_spill] sm:$0xff] }
 0x154   : > { %2440 = vrot.lane.b32.xlu0 %v2434_v63, %s3543_s17  ;;  %v2455_v48 = vsel %vm1611_vm7, %v2454_v23, %v2453_v31  ;;  %v2474_v53 = vsel %vm1602_vm4, %v2450_v2, %v2473_v16  ;;  %v2503_v43 = vsel %vm283_vm0, %v1717_v22, %v1841_v1  ;;  %v6002_v29 = vmov 0.0   ;;  %v6009_v2 = vld [vmem:[#allocation45_spill] sm:$0xff] }
 0x155   : > { %v2457_v61 = vsel %vm1614_vm8, %v2456_v33, %v2455_v48  ;;  %v2475_v32 = vsel %vm1605_vm5, %v2452_v25, %v2474_v53  ;;  %v2478_v50 = vrot.slane %v2471_v41, 1  ;;  %2705 = vst.msk [vmem:[#allocation3] sm:$0xff] %vm2504_vm10, %v6002_v29  ;;  %2709 = vst.msk [vmem:[#allocation3 + $0x90] sm:$0xff] %vm2504_vm10, %v6002_v29  ;;  %v2482_v42 = vpack.c.b16 %v6004_v26, %v6003_v28  ;;  %v5392_v28 = vld [vmem:[%s5631_s2] ss:$0 sm:$0xff] }
 0x156   : > { %v2461_v18 = vpack.c.b16 %v2457_v61, %v6001_v12  ;;  %v2476_v30 = vsel %vm1608_vm6, %v2454_v23, %v2475_v32  ;;  %v2598_v0 = vsel %vm2596_vm11, %v3468_v10, 0  ;;  %v6008_v19 = vpack.c.b16 %v6006_v9, %v6007_v17 }
 0x157   : > { %v2477_v20 = vsel %vm1611_vm7, %v2456_v33, %v2476_v30  ;;  %3346 = vmatpush3.bf16.msra.mxu0 %v2598_v0  ;;  %vm2558_vm2 = vcmask 261120   ;;  %v6011_v13 = vpack.c.b16 %v6009_v2, %v6010_v45  ;;  %v1929_v23 = vpop.permute.xlu1 %1928  ;;  %vm2587_vm3 = vcmask 293888  }
 0x158   : > { %2468 = vrot.lane.b32.xlu1 %v2461_v18, %s3544_s18  ;;  %2466 = vrot.lane.b32.xlu0 %v2460_v27, %s3544_s18  ;;  %v2479_v24 = vsel %vm1614_vm8, %v2478_v50, %v2477_v20  ;;  %v2494_v57 = vsel %vm283_vm0, %v6008_v19, %v5124_v39  ;;  %vm2711_vm4 = vcmask 57344   ;;  %vm3063_vm5 = vcmask 1043456   ;;  %s3551_s18 = smov 64  }
 0x159   : > { %v2483_v8 = vpack.c.b16 %v2479_v24, %v6005_v44  ;;  %v2506_v37 = vsel %vm2504_vm10, %v2494_v57, %v1927_v49  ;;  %3347 = vmatprep.subr.bf16.mxu0 %v3469_v58  ;;  %v2497_v14 = vsel %vm283_vm0, %v6011_v13, %v5151_v56  ;;  %vm2706_vm0 = vcmask 58368   ;;  %2715 = vst.msk [vmem:[#allocation3 + $0x30] sm:$0x1] %vm2711_vm4, %v6002_v29  ;;  %2716 = vst.msk [vmem:[#allocation3 + $0x40] sm:$0x1] %vm2711_vm4, %v6002_v29 }
 0x15a   : > { %v2515_v7 = vsel %vm2513_vm12, %v2506_v37, %v5181_v54  ;;  %v2508_v54 = vsel %vm2504_vm10, %v2497_v14, %v1929_v23  ;;  %2707 = vst.msk [vmem:[#allocation3 + $0x8] sm:$0x3] %vm2706_vm0, %v6002_v29  ;;  %2710 = vst.msk [vmem:[#allocation3 + $0x98] sm:$0x3] %vm2706_vm0, %v6002_v29  ;;  %vm2982_vm6 = vcmask 326656   ;;  %vm2991_vm7 = vcmask 392192  }
 0x15b   : > { %v2524_v39 = vsel %vm2522_vm13, %v2515_v7, %v5214_v60  ;;  %3348 = vmatpush3.bf16.msra.mxu0 %v3469_v58  ;;  %v2485_v60 = vpop.permute.xlu0 %2484  ;;  %v2517_v15 = vsel %vm2513_vm12, %v2508_v54, %v5109_v52  ;;  %2712 = vst.msk [vmem:[#allocation3] sm:$0x1] %vm2711_vm4, %v6002_v29  ;;  %2713 = vst.msk [vmem:[#allocation3 + $0x10] sm:$0x1] %vm2711_vm4, %v6002_v29  ;;  %vm3000_vm8 = vcmask 457728   ;;  %vm3009_vm9 = vcmask 523264  }
 0x15c   : > { %2490 = vrot.lane.b32.xlu1 %v2483_v8, %s3547_s26  ;;  %2488 = vrot.lane.b32.xlu0 %v2482_v42, %s3547_s26  ;;  %v2533_v36 = vsel %vm2531_vm14, %v2524_v39, %v2395_v51  ;;  %v2526_v56 = vsel %vm2522_vm13, %v2517_v15, %v5144_v62  ;;  %2714 = vst.msk [vmem:[#allocation3 + $0x20] sm:$0x1] %vm2711_vm4, %v6002_v29  ;;  %2717 = vst.msk [vmem:[#allocation3 + $0x50] sm:$0x1] %vm2711_vm4, %v6002_v29  ;;  %vm3054_vm11 = vcmask 588800  }
 0x15d   : > { %v2542_v25 = vsel %vm2540_vm15, %v2533_v36, %v5241_v40  ;;  %3349 = vmatprep.subr.bf16.mxu0 %v3470_v3  ;;  %2718 = vst.msk [vmem:[#allocation3 + $0x60] sm:$0x1] %vm2711_vm4, %v6002_v29  ;;  %2719 = vst.msk [vmem:[#allocation3 + $0x70] sm:$0x1] %vm2711_vm4, %v6002_v29 }
 0x15e   : > { %v2551_v59 = vsel %vm2549_vm1, %v2542_v25, %v2463_v6  ;;  %2720 = vst.msk [vmem:[#allocation3 + $0x80] sm:$0x1] %vm2711_vm4, %v6002_v29  ;;  %2721 = vst.msk [vmem:[#allocation3 + $0x90] sm:$0x1] %vm2711_vm4, %v6002_v29 }
 0x15f   : > { %v2560_v46 = vsel %vm2558_vm2, %v2551_v59, %v2485_v60  ;;  %3350 = vmatpush3.bf16.msra.mxu0 %v3470_v3  ;;  %2722 = vst.msk [vmem:[#allocation3 + $0x9] sm:$0x1] %vm2711_vm4, %v6002_v29  ;;  %2723 = vst.msk [vmem:[#allocation3 + $0x19] sm:$0x1] %vm2711_vm4, %v6002_v29 }
 0x160   : > { %3351 = vmatprep.mubr.msk.bf16.mxu0 %vm2587_vm3, %v2560_v46  ;;  %2724 = vst.msk [vmem:[#allocation3 + $0x29] sm:$0x1] %vm2711_vm4, %v6002_v29  ;;  %2725 = vst.msk [vmem:[#allocation3 + $0x39] sm:$0x1] %vm2711_vm4, %v6002_v29 }
 0x161   : > { %v2397_v40 = vpop.permute.xlu1 %2396  ;;  %2726 = vst.msk [vmem:[#allocation3 + $0x49] sm:$0x1] %vm2711_vm4, %v6002_v29  ;;  %2727 = vst.msk [vmem:[#allocation3 + $0x59] sm:$0x1] %vm2711_vm4, %v6002_v29  ;;  %v2753_v37 = vld [vmem:[#allocation3 + $0x1] sm:$0xff] }
 0x162   : > { %v2535_v34 = vsel %vm2531_vm14, %v2526_v56, %v2397_v40  ;;  %2728 = vst.msk [vmem:[#allocation3 + $0x69] sm:$0x1] %vm2711_vm4, %v6002_v29  ;;  %2729 = vst.msk [vmem:[#allocation3 + $0x79] sm:$0x1] %vm2711_vm4, %v6002_v29 }
 0x163   : > { %v2544_v33 = vsel %vm2540_vm15, %v2535_v34, %v5165_v4  ;;  %2730 = vst.msk [vmem:[#allocation3 + $0x89] sm:$0x1] %vm2711_vm4, %v6002_v29  ;;  %2731 = vst.msk [vmem:[#allocation3 + $0x99] sm:$0x1] %vm2711_vm4, %v6002_v29 }
 0x164   : > { %v2553_v22 = vsel %vm2549_vm1, %v2544_v33, %v5203_v38  ;;  %v2487_v63 = vpop.permute.xlu0 %2486 }
 0x165   : > { %v2562_v52 = vsel %vm2558_vm2, %v2553_v22, %v2487_v63 }
 0x166   : > { %3352 = vmatmul.mubr.msk.bf16.vlgmr.msra.gmra.mxu0 %vm2587_vm3, %v2562_v52  ;;  %v2765_v39 = vld [vmem:[#allocation3 + $0x2] sm:$0xff] }
 0x16c   : > { %v1933_v55 = vpop.permute.xlu1 %1932 }
 0x16d   : > { %v2512_v35 = vsel %vm2504_vm10, %v2503_v43, %v1933_v55  ;;  %v3471_v55 = vld [vmem:[%s5632_s3 + $0x20] ss:$0 sps:$4 sm:$0xff]  }
 0x16e   : > { %3378 = vmatprep.subr.msk.bf16.mxu1 %vm3063_vm5, %v3471_v55 }
 0x170   : > { %v1931_v31 = vpop.permute.xlu0 %1930 }
 0x171   : > { %v2510_v47 = vsel %vm2504_vm10, %v5269_v21, %v1931_v31 }
 0x184   : > { %v2185_v1 = vpop.permute.xlu1 %2184 }
 0x185   : > { %v2521_v62 = vsel %vm2513_vm12, %v2512_v35, %v2185_v1  ;;  %v3472_v35 = vld [vmem:[%s5632_s3 + $0x18] sm:$0xff]  }
 0x198   : > { %v2183_v48 = vpop.permute.xlu0 %2182 }
 0x199   : > { %v2519_v4 = vsel %vm2513_vm12, %v2510_v47, %v2183_v48  ;;  %v3473_v47 = vld [vmem:[%s5632_s3 + $0x10] sm:$0xff]   ;;  %v3474_v48 = vld [vmem:[%s5632_s3 + $0x8] sm:$0xff]  }
 0x19f   : > { %v2309_v38 = vpop.permute.xlu1 %2308 }
 0x1a0   : > { %v2530_v53 = vsel %vm2522_vm13, %v2521_v62, %v2309_v38  ;;  %v3065_v62 = vsel %vm3063_vm5, %v3471_v55, 0  ;;  %v2845_v55 = vld [vmem:[#allocation3 + $0x92] sm:$0xff] }
 0x1a1   : > { %3360 = vmatpush3.bf16.msra.mxu1 %v3065_v62 }
 0x1a2   : > { %3361 = vmatprep.subr.bf16.mxu1 %v3472_v35 }
 0x1a5   : > { %3362 = vmatpush3.bf16.msra.mxu1 %v3472_v35 }
 0x1a6   : > { %v2307_v11 = vpop.permute.xlu0 %2306  ;;  %3363 = vmatprep.subr.bf16.mxu1 %v3473_v47 }
 0x1a7   : > { %v2528_v21 = vsel %vm2522_vm13, %v2519_v4, %v2307_v11 }
 0x1a9   : > { %3364 = vmatpush3.bf16.msra.mxu1 %v3473_v47 }
 0x1aa   : > { %3365 = vmatprep.subr.bf16.mxu1 %v3474_v48 }
 0x1ab   : > { %v2401_v5 = vpop.permute.xlu1 %2400 }
 0x1ac   : > { %v2539_v43 = vsel %vm2531_vm14, %v2530_v53, %v2401_v5 }
 0x1ad   : > { %3366 = vmatpush3.bf16.msra.mxu1 %v3474_v48 }
 0x1b0   : > { %v2399_v27 = vpop.permute.xlu0 %2398 }
 0x1b1   : > { %v2537_v10 = vsel %vm2531_vm14, %v2528_v21, %v2399_v27 }
 0x1c0   : > { %v2443_v41 = vpop.permute.xlu1 %2442 }
 0x1c1   : > { %v2548_v12 = vsel %vm2540_vm15, %v2539_v43, %v2443_v41 }
 0x1c6   : > { %v2441_v16 = vpop.permute.xlu0 %2440 }
 0x1c7   : > { %v2546_v18 = vsel %vm2540_vm15, %v2537_v10, %v2441_v16  ;;  %v3475_v16 = vld [vmem:[%s5632_s3] sm:$0xff]  }
 0x1c8   : > { %3367 = vmatprep.subr.bf16.mxu1 %v3475_v16 }
 0x1c9   : > { %3368 = vmatpush3.bf16.msra.mxu1 %v3475_v16 }
 0x1ca   : > { %v2469_v6 = vpop.permute.xlu1 %2468  ;;  %v2467_v61 = vpop.permute.xlu0 %2466 }
 0x1cb   : > { %v2557_v32 = vsel %vm2549_vm1, %v2548_v12, %v2469_v6  ;;  %v2555_v50 = vsel %vm2549_vm1, %v2546_v18, %v2467_v61 }
 0x1ce   : > { %v2491_v30 = vpop.permute.xlu1 %2490  ;;  %v2489_v29 = vpop.permute.xlu0 %2488 }
 0x1cf   : > { %v2566_v58 = vsel %vm2558_vm2, %v2557_v32, %v2491_v30  ;;  %v2564_v20 = vsel %vm2558_vm2, %v2555_v50, %v2489_v29 }
 0x1d0   : > { %3355 = vmatprep.mubr.msk.bf16.mxu0 %vm2587_vm3, %v2564_v20 }
 0x1d1   : > { %3356 = vmatmul.mubr.msk.bf16.gmra.mxu0 %vm2587_vm3, %v2566_v58 }
 0x226   : > { %v5394_v26 = vpop.f32.mrf.mxu0 }
 0x227   : > { %v2674_v42 = vadd.f32 %v5394_v26, %v5392_v28 }
 0x228   : > { %v5398_v24 = vpop.f32.mrf.mxu0 }
 0x229   : > { %v2682_v0 = vmax.f32 %v2674_v42, 0.0  ;;  %v2672_v44 = vadd.f32 %v5392_v28, %v5398_v24 }
 0x22a   : > { %v5402_v8 = vpop.f32.mrf.mxu0 }
 0x22b   : > { %2735 = vst.msk [vmem:[#allocation3 + $0x31] sm:$0xff] %vm2504_vm10, %v2682_v0  ;;  %v2680_v9 = vmax.f32 %v2672_v44, 0.0  ;;  %v2675_v17 = vadd.f32 %v5402_v8, %v5392_v28 }
 0x22c   : > { %v5407_v19 = vpop.f32.mrf.mxu0 }
 0x22d   : > { %2733 = vst.msk [vmem:[#allocation3 + $0x11] sm:$0xff] %vm2504_vm10, %v2680_v9  ;;  %v2683_v57 = vmax.f32 %v2675_v17, 0.0  ;;  %v2673_v49 = vadd.f32 %v5392_v28, %v5407_v19 }
 0x22f   : > { %2736 = vst.msk [vmem:[#allocation3 + $0x41] sm:$0xff] %vm2504_vm10, %v2683_v57  ;;  %v2681_v51 = vmax.f32 %v2673_v49, 0.0 }
 0x231   : > { %2734 = vst.msk [vmem:[#allocation3 + $0x21] sm:$0xff] %vm2504_vm10, %v2681_v51 }
 0x232   : > { %v2779_v36 = vld [vmem:[#allocation3 + $0x30] sm:$0xff] }
 0x233   : > { %v2791_v23 = vld [vmem:[#allocation3 + $0x31] sm:$0xff] }
 0x234   : > { %v2754_v3 = vld [vmem:[#allocation3 + $0x11] sm:$0xff] }
 0x235   : > { %v2761_v7 = vpack.c.bf16 %v2754_v3, %v2753_v37  ;;  %v2766_v45 = vld [vmem:[#allocation3 + $0x12] sm:$0xff] }
 0x236   : > { %v5414_v2 = vld [vmem:[#allocation3 + $0x40] sm:$0xff]  ;;  %v2773_v25 = vpack.c.bf16 %v2766_v45, %v2765_v39  ;;  %v5423_v59 = vld [vmem:[#allocation3 + $0x10] sm:$0xff] }
 0x237   : > { %2854 = vrot.lane.b32.xlu0 %v2761_v7, %s3546_s20  ;;  %v2786_v13 = vpack.c.bf16 %v5414_v2, %v2779_v36  ;;  %v5418_v14 = vld [vmem:[#allocation3 + $0x41] sm:$0xff]  ;;  %v2803_v56 = vld [vmem:[#allocation3 + $0x32] sm:$0xff] }
 0x238   : > { %v2778_v54 = vld [vmem:[#allocation3 + $0x20] sm:$0xff]  ;;  %v2798_v60 = vpack.c.bf16 %v5418_v14, %v2791_v23 }
 0x239   : > { %2880 = vrot.lane.b32.xlu1 %v2786_v13, %s3543_s17  ;;  %v2804_v15 = vld [vmem:[#allocation3 + $0x42] sm:$0xff]  ;;  %v2785_v46 = vpack.c.bf16 %v2778_v54, %v5423_v59  ;;  %v5439_v31 = vpack.c.bf16 %v2779_v36, %v2778_v54  ;;  %v2821_v13 = vld [vmem:[#allocation3 + $0x90] sm:$0xff] }
 0x23a   : > { %v2790_v40 = vld [vmem:[#allocation3 + $0x21] sm:$0xff]  ;;  %v2810_v34 = vpack.c.bf16 %v2804_v15, %v2803_v56 }
 0x23b   : > { %2866 = vrot.lane.b32.xlu0 %v2773_v25, %s3542_s16  ;;  %v2797_v33 = vpack.c.bf16 %v2790_v40, %v2754_v3  ;;  %v2802_v22 = vld [vmem:[#allocation3 + $0x22] sm:$0xff]  ;;  %v2762_v63 = vpack.c.bf16 %v2791_v23, %v2790_v40  ;;  %v2833_v40 = vld [vmem:[#allocation3 + $0x91] sm:$0xff] }
 0x23c   : > { %v2809_v52 = vpack.c.bf16 %v2802_v22, %v2766_v45  ;;  %v2774_v1 = vpack.c.bf16 %v2803_v56, %v2802_v22  ;;  %v3311_v56 = vld [vmem:[%s5634_s5] ss:$0 sm:$0xff] }
 0x23d   : > { %2892 = vrot.lane.b32.xlu1 %v2798_v60, %s3547_s26 }
 0x23f   : > { %2878 = vrot.lane.b32.xlu0 %v2785_v46, %s3543_s17  ;;  %v2741_v46 = vld [vmem:[#allocation3] sm:$0xff] }
 0x241   : > { %2904 = vrot.lane.b32.xlu1 %v2810_v34, %s3548_s15  ;;  %v2749_v34 = vpack.c.bf16 %v5423_v59, %v2741_v46 }
 0x243   : > { %2890 = vrot.lane.b32.xlu0 %v2797_v33, %s3547_s26 }
 0x245   : > { %2856 = vrot.lane.b32.xlu1 %v2762_v63, %s3546_s20 }
 0x247   : > { %2902 = vrot.lane.b32.xlu0 %v2809_v52, %s3548_s15 }
 0x249   : > { %2868 = vrot.lane.b32.xlu1 %v2774_v1, %s3542_s16 }
 0x24b   : > { %2914 = vrot.lane.b32.xlu0 %v5439_v31, %s3549_s11 }
 0x24f   : > { %2926 = vrot.lane.b32.xlu0 %v2762_v63, %s3550_s14 }
 0x253   : > { %2938 = vrot.lane.b32.xlu0 %v2774_v1, %s3551_s18 }
 0x291   : > { %v5451_v4 = vpop.f32.mrf.mxu0 }
 0x292   : > { %v2678_v38 = vadd.f32 %v5451_v4, %v5392_v28 }
 0x293   : > { %v5455_v11 = vpop.f32.mrf.mxu0 }
 0x294   : > { %v2686_v5 = vmax.f32 %v2678_v38, 0.0  ;;  %v2676_v27 = vadd.f32 %v5392_v28, %v5455_v11 }
 0x295   : > { %v5459_v41 = vpop.f32.mrf.mxu0 }
 0x296   : > { %2739 = vst.msk [vmem:[#allocation3 + $0x71] sm:$0xff] %vm2504_vm10, %v2686_v5  ;;  %v2684_v6 = vmax.f32 %v2676_v27, 0.0  ;;  %v2679_v61 = vadd.f32 %v5459_v41, %v5392_v28 }
 0x297   : > { %v5467_v53 = vpop.f32.mrf.mxu0 }
 0x298   : > { %2737 = vst.msk [vmem:[#allocation3 + $0x51] sm:$0xff] %vm2504_vm10, %v2684_v6  ;;  %v2687_v21 = vmax.f32 %v2679_v61, 0.0  ;;  %v2677_v43 = vadd.f32 %v5392_v28, %v5467_v53 }
 0x29a   : > { %2740 = vst.msk [vmem:[#allocation3 + $0x81] sm:$0xff] %vm2504_vm10, %v2687_v21  ;;  %v2685_v10 = vmax.f32 %v2677_v43, 0.0 }
 0x29c   : > { %2738 = vst.msk [vmem:[#allocation3 + $0x61] sm:$0xff] %vm2504_vm10, %v2685_v10 }
 0x29d   : > { %v2783_v0 = vld [vmem:[#allocation3 + $0x70] sm:$0xff] }
 0x29e   : > { %v2795_v51 = vld [vmem:[#allocation3 + $0x71] sm:$0xff] }
 0x29f   : > { %v2817_v12 = vld [vmem:[#allocation3 + $0x50] sm:$0xff] }
 0x2a0   : > { %v2841_v18 = vld [vmem:[#allocation3 + $0x52] sm:$0xff]  ;;  %v5475_v32 = vpack.c.bf16 %v2817_v12, %v5414_v2 }
 0x2a1   : > { %v2847_v50 = vpack.c.bf16 %v2841_v18, %v2804_v15  ;;  %v2829_v30 = vld [vmem:[#allocation3 + $0x51] sm:$0xff]  ;;  %v2784_v28 = vld [vmem:[#allocation3 + $0x80] sm:$0xff] }
 0x2a2   : > { %2916 = vrot.lane.b32.xlu1 %v5475_v32, %s3549_s11  ;;  %v2835_v29 = vpack.c.bf16 %v2829_v30, %v5418_v14  ;;  %v2788_v44 = vpack.c.bf16 %v2784_v28, %v2783_v0  ;;  %v2796_v17 = vld [vmem:[#allocation3 + $0x81] sm:$0xff]  ;;  %v2807_v36 = vld [vmem:[#allocation3 + $0x72] sm:$0xff]  ;;  %v2825_v25 = vpack.c.bf16 %v2821_v13, %v2784_v28 }
 0x2a3   : > { %2940 = vrot.lane.b32.xlu0 %v2847_v50, %s3551_s18  ;;  %v2782_v58 = vld [vmem:[#allocation3 + $0x60] sm:$0xff]  ;;  %v2800_v37 = vpack.c.bf16 %v2796_v17, %v2795_v51  ;;  %v2837_v63 = vpack.c.bf16 %v2833_v40, %v2796_v17 }
 0x2a4   : > { %v2787_v20 = vpack.c.bf16 %v2782_v58, %v2817_v12  ;;  %v2794_v42 = vld [vmem:[#allocation3 + $0x61] sm:$0xff]  ;;  %v5489_v45 = vpack.c.bf16 %v2783_v0, %v2782_v58 }
 0x2a5   : > { %v2799_v9 = vpack.c.bf16 %v2794_v42, %v2829_v30  ;;  %v2806_v57 = vld [vmem:[#allocation3 + $0x62] sm:$0xff]  ;;  %v2764_v23 = vpack.c.bf16 %v2795_v51, %v2794_v42 }
 0x2a6   : > { %2928 = vrot.lane.b32.xlu1 %v2835_v29, %s3550_s14  ;;  %v2811_v3 = vpack.c.bf16 %v2806_v57, %v2841_v18  ;;  %v2808_v7 = vld [vmem:[#allocation3 + $0x82] sm:$0xff]  ;;  %v2776_v60 = vpack.c.bf16 %v2807_v36, %v2806_v57 }
 0x2a7   : > { %2870 = vrot.lane.b32.xlu0 %v2847_v50, %s3542_s16  ;;  %v2812_v2 = vpack.c.bf16 %v2808_v7, %v2807_v36  ;;  %v2849_v47 = vpack.c.bf16 %v2845_v55, %v2808_v7 }
 0x2a9   : > { %v2855_v49 = vpop.permute.xlu0 %2854 }
 0x2aa   : > { %2858 = vrot.lane.b32.xlu1 %v2835_v29, %s3546_s20  ;;  %v2948_v22 = vsel %vm2504_vm10, %v2749_v34, %v2855_v49 }
 0x2ab   : > { %2882 = vrot.lane.b32.xlu0 %v2787_v20, %s3543_s17  ;;  %v2881_v16 = vpop.permute.xlu1 %2880 }
 0x2ad   : > { %v2867_v39 = vpop.permute.xlu0 %2866 }
 0x2ae   : > { %2884 = vrot.lane.b32.xlu1 %v2788_v44, %s3543_s17  ;;  %v2959_v52 = vsel %vm2522_vm13, %v2948_v22, %v2867_v39  ;;  %s3553_s17 = smov [#allocation4]  }
 0x2af   : > { %2894 = vrot.lane.b32.xlu0 %v2799_v9, %s3547_s26  ;;  %v2893_v6 = vpop.permute.xlu1 %2892 }
 0x2b1   : > { %v2879_v14 = vpop.permute.xlu0 %2878 }
 0x2b2   : > { %2896 = vrot.lane.b32.xlu1 %v2800_v37, %s3547_s26  ;;  %v2967_v35 = vsel %vm2540_vm15, %v2959_v52, %v2879_v14  ;;  %s3480_s26 = sshll.u32 %s3553_s17, 4  ;;  %s3481_s26 = int_to_ptr.vmem [resolvable:$false] %s3480_s26 }
 0x2b3   : > { %2906 = vrot.lane.b32.xlu0 %v2811_v3, %s3548_s15  ;;  %v2905_v61 = vpop.permute.xlu1 %2904 }
 0x2b5   : > { %v2891_v54 = vpop.permute.xlu0 %2890 }
 0x2b6   : > { %2908 = vrot.lane.b32.xlu1 %v2812_v2, %s3548_s15  ;;  %v2975_v59 = vsel %vm2558_vm2, %v2967_v35, %v2891_v54  ;;  %s242_s15 = sand.u32 1, %s3528_s22  }
 0x2b7   : > { %2918 = vrot.lane.b32.xlu0 %v5489_v45, %s3549_s11  ;;  %v2857_v21 = vpop.permute.xlu1 %2856  ;;  %s3283_s10 = sshll.u32 %s242_s15, 6  ;;  %s5588_s25 = scalar_lea.sflag [#allocation5], %s242_s15 }
 0x2b8   : > { %v2951_v10 = vsel %vm2504_vm10, %v5439_v31, %v2857_v21 }
 0x2b9   : > { %v2903_v15 = vpop.permute.xlu0 %2902 }
 0x2ba   : > { %2920 = vrot.lane.b32.xlu1 %v2825_v25, %s3549_s11  ;;  %v2984_v62 = vsel %vm2982_vm6, %v2975_v59, %v2903_v15  ;;  %s5559_s11 = scalar_lea.vmem [#allocation4], %s3283_s10 }
 0x2bb   : > { %2930 = vrot.lane.b32.xlu0 %v2764_v23, %s3550_s14  ;;  %v2869_v43 = vpop.permute.xlu1 %2868  ;;  %s3217_s13 = sshll.u32 %s5559_s11, 4  ;;  %s5582_s13 = int_to_ptr.vmem [resolvable:$true] %s3217_s13 }
 0x2bc   : > { %v2961_v12 = vsel %vm2522_vm13, %v2951_v10, %v2869_v43  ;;  %s3476_s28 = scalar_lea.vmem %s5582_s13, 1024  ;;  %p3483_p0 = scmp.lt.s32.totalorder %s5582_s13, %s3481_s26 }
 0x2bd   : > { %v2915_v33 = vpop.permute.xlu0 %2914  ;;  %v2969_v18 = vsel %vm2540_vm15, %v2961_v12, %v2881_v16  ;;  %p3477_p11 = scmp.ne.s32.totalorder %s5582_s13, %s3476_s28 }
 0x2be   : > { %2860 = vrot.lane.b32.xlu1 %v2764_v23, %s3546_s20  ;;  %v2993_v48 = vsel %vm2991_vm7, %v2984_v62, %v2915_v33  ;;  %v2977_v50 = vsel %vm2558_vm2, %v2969_v18, %v2893_v6 }
 0x2bf   : > { %2942 = vrot.lane.b32.xlu0 %v2776_v60, %s3551_s18  ;;  %v2986_v58 = vsel %vm2982_vm6, %v2977_v50, %v2905_v61  ;;  %p3478_p12 = pnand %p3477_p11, %p3628_p5 }
 0x2c1   : > { %v2927_v1 = vpop.permute.xlu0 %2926  ;;  %p3479_p13 = pneg %p3478_p12 }
 0x2c2   : > { %2872 = vrot.lane.b32.xlu1 %v2776_v60, %s3542_s16  ;;  %v3002_v38 = vsel %vm3000_vm8, %v2993_v48, %v2927_v1  ;;  %s3552_s16 = smov 120  }
 0x2c3   : > { %2694 = vrot.lane.b32.xlu0 %v3311_v56, %s3546_s20 }
 0x2c5   : > { %v2939_v5 = vpop.permute.xlu0 %2938 }
 0x2c6   : > { %2932 = vrot.lane.b32.xlu1 %v2837_v63, %s3550_s14  ;;  %v3011_v27 = vsel %vm3009_vm9, %v3002_v38, %v2939_v5  ;;  %v3321_v5 = vld [vmem:[%s5633_s4] ss:$0 sm:$0xff] }
 0x2c7   : > { %3369 = vmatprep.mubr.msk.bf16.mxu1 %vm3054_vm11, %v3011_v27 }
 0x2ca   : > { %2944 = vrot.lane.b32.xlu1 %v2849_v47, %s3551_s18 }
 0x314   : > { %v2917_v30 = vpop.permute.xlu1 %2916 }
 0x315   : > { %v2941_v29 = vpop.permute.xlu0 %2940  ;;  %v2995_v20 = vsel %vm2991_vm7, %v2986_v58, %v2917_v30 }
 0x318   : > { %v2929_v28 = vpop.permute.xlu1 %2928 }
 0x319   : > { %v2871_v42 = vpop.permute.xlu0 %2870  ;;  %v3004_v0 = vsel %vm3000_vm8, %v2995_v20, %v2929_v28 }
 0x31a   : > { %v3013_v44 = vsel %vm3009_vm9, %v3004_v0, %v2941_v29 }
 0x31b   : > { %3370 = vmatmul.mubr.msk.bf16.vlgmr.msra.gmra.mxu1 %vm3054_vm11, %v3013_v44 }
 0x31c   : > { %v2859_v31 = vpop.permute.xlu1 %2858 }
 0x31d   : > { %v2883_v9 = vpop.permute.xlu0 %2882  ;;  %v2954_v37 = vsel %vm2504_vm10, %v5475_v32, %v2859_v31 }
 0x31e   : > { %v2963_v39 = vsel %vm2522_vm13, %v2954_v37, %v2871_v42 }
 0x31f   : > { %v2971_v36 = vsel %vm2540_vm15, %v2963_v39, %v2883_v9 }
 0x320   : > { %v2885_v17 = vpop.permute.xlu1 %2884 }
 0x321   : > { %v2895_v57 = vpop.permute.xlu0 %2894 }
 0x322   : > { %v2979_v14 = vsel %vm2558_vm2, %v2971_v36, %v2895_v57 }
 0x324   : > { %v2897_v49 = vpop.permute.xlu1 %2896 }
 0x325   : > { %v2907_v51 = vpop.permute.xlu0 %2906 }
 0x326   : > { %v2988_v25 = vsel %vm2982_vm6, %v2979_v14, %v2907_v51 }
 0x328   : > { %v2909_v3 = vpop.permute.xlu1 %2908 }
 0x329   : > { %v2919_v7 = vpop.permute.xlu0 %2918 }
 0x32a   : > { %v2997_v23 = vsel %vm2991_vm7, %v2988_v25, %v2919_v7 }
 0x32c   : > { %v2921_v2 = vpop.permute.xlu1 %2920 }
 0x32d   : > { %v2931_v13 = vpop.permute.xlu0 %2930 }
 0x32e   : > { %v3006_v60 = vsel %vm3000_vm8, %v2997_v23, %v2931_v13 }
 0x330   : > { %v2861_v54 = vpop.permute.xlu1 %2860 }
 0x331   : > { %v2943_v15 = vpop.permute.xlu0 %2942  ;;  %v2957_v46 = vsel %vm2504_vm10, %v5489_v45, %v2861_v54 }
 0x332   : > { %v3015_v32 = vsel %vm3009_vm9, %v3006_v60, %v2943_v15 }
 0x333   : > { %3373 = vmatprep.mubr.msk.bf16.mxu1 %vm3054_vm11, %v3015_v32 }
 0x334   : > { %v2873_v56 = vpop.permute.xlu1 %2872 }
 0x335   : > { %v2695_v40 = vpop.permute.xlu0 %2694  ;;  %v2965_v34 = vsel %vm2522_vm13, %v2957_v46, %v2873_v56 }
 0x336   : > { %v2698_v33 = vadd.f32 %v2695_v40, %v5407_v19  ;;  %v2697_v22 = vadd.f32 %v2695_v40, %v5398_v24  ;;  %v2973_v63 = vsel %vm2540_vm15, %v2965_v34, %v2885_v17  ;;  %v2700_v1 = vadd.f32 %v5402_v8, %v2695_v40 }
 0x337   : > { %v2981_v52 = vsel %vm2558_vm2, %v2973_v63, %v2897_v49  ;;  %v2699_v59 = vadd.f32 %v5394_v26, %v2695_v40  ;;  %v2702_v47 = vadd.f32 %v2695_v40, %v5467_v53  ;;  %v2701_v48 = vadd.f32 %v2695_v40, %v5455_v11 }
 0x338   : > { %3157 = vrot.lane.b32.xlu0 %v2698_v33, %s3552_s16  ;;  %3155 = vrot.lane.b32.xlu1 %v2697_v22, %s3552_s16  ;;  %v2933_v55 = vpop.permute.xlu1 %2932  ;;  %v2990_v35 = vsel %vm2982_vm6, %v2981_v52, %v2909_v3  ;;  %v2704_v8 = vadd.f32 %v5459_v41, %v2695_v40  ;;  %v2703_v26 = vadd.f32 %v5451_v4, %v2695_v40 }
 0x339   : > { %v2999_v45 = vsel %vm2991_vm7, %v2990_v35, %v2921_v2 }
 0x33a   : > { %v3008_v24 = vsel %vm3000_vm8, %v2999_v45, %v2933_v55 }
 0x33c   : > { %3161 = vrot.lane.b32.xlu0 %v2700_v1, %s3552_s16  ;;  %3159 = vrot.lane.b32.xlu1 %v2699_v59, %s3552_s16  ;;  %v2945_v19 = vpop.permute.xlu1 %2944 }
 0x33d   : > { %v3017_v62 = vsel %vm3009_vm9, %v3008_v24, %v2945_v19 }
 0x33e   : > { %3374 = vmatmul.mubr.msk.bf16.gmra.mxu1 %vm3054_vm11, %v3017_v62 }
 0x340   : > { %3165 = vrot.lane.b32.xlu0 %v2702_v47, %s3552_s16  ;;  %3163 = vrot.lane.b32.xlu1 %v2701_v48, %s3552_s16 }
 0x344   : > { %3169 = vrot.lane.b32.xlu0 %v2704_v8, %s3552_s16  ;;  %3167 = vrot.lane.b32.xlu1 %v2703_v26, %s3552_s16  ;;  %s3482_s16 = scalar_lea.vmem %s3481_s26, 2048 }
 0x345   : > { %p3484_p1 = scmp.lt.s32.totalorder %s3482_s16, %s3476_s28 }
 0x347   : > { %p3485_p2 = por %p3484_p1, %p3483_p0 }
 0x349   : > { %p3486_p3 = pnand %p3485_p2, %p3479_p13 }
 0x3aa   : > { %v3156_v38 = vpop.permute.xlu1 %3155  ;;  %v3158_v27 = vpop.permute.xlu0 %3157 }
 0x3ae   : > { %v3160_v16 = vpop.permute.xlu1 %3159  ;;  %v3162_v12 = vpop.permute.xlu0 %3161 }
 0x3b2   : > { %v3164_v42 = vpop.permute.xlu1 %3163  ;;  %v3166_v0 = vpop.permute.xlu0 %3165 }
 0x3b6   : > { %v3168_v9 = vpop.permute.xlu1 %3167  ;;  %v3170_v39 = vpop.permute.xlu0 %3169 }
 0x3db   : > { %v3371_v53 = vpop.f32.mrf.mxu1 }
 0x3dc   : > { %v3141_v11 = vadd.f32 %v3371_v53, %v3321_v5 }
 0x3dd   : > { %v3101_v6 = vpop.f32.mrf.mxu1 }
 0x3de   : > { %v3181_v61 = vadd.f32 %v3160_v16, %v3141_v11  ;;  %v3139_v21 = vadd.f32 %v3321_v5, %v3101_v6 }
 0x3df   : > { %v3372_v41 = vpop.f32.mrf.mxu1 }
 0x3e0   : > { %v3189_v43 = vmax.f32 %v3181_v61, 0.0  ;;  %v3179_v4 = vadd.f32 %v3156_v38, %v3139_v21  ;;  %v3142_v10 = vadd.f32 %v3372_v41, %v3321_v5 }
 0x3e1   : > { %v3104_v18 = vpop.f32.mrf.mxu1 }
 0x3e2   : > { %3197 = vst.msk [vmem:[%s5559_s11 + $0x10] sm:$0xff] %vm2504_vm10, %v3189_v43  ;;  %v3187_v50 = vmax.f32 %v3179_v4, 0.0  ;;  %v3182_v30 = vadd.f32 %v3162_v12, %v3142_v10  ;;  %v3140_v29 = vadd.f32 %v3321_v5, %v3104_v18 }
 0x3e4   : > { %3195 = vst.msk [vmem:[%s5559_s11] sm:$0xff] %vm2504_vm10, %v3187_v50  ;;  %v3190_v58 = vmax.f32 %v3182_v30, 0.0  ;;  %v3180_v20 = vadd.f32 %v3158_v27, %v3140_v29 }
 0x3e6   : > { %3198 = vst.msk [vmem:[%s5559_s11 + $0x18] sm:$0xff] %vm2504_vm10, %v3190_v58  ;;  %v3188_v28 = vmax.f32 %v3180_v20, 0.0 }
 0x3e8   : > { %3196 = vst.msk [vmem:[%s5559_s11 + $0x8] sm:$0xff] %vm2504_vm10, %v3188_v28 }
 0x3fe   : > { %v3375_v44 = vpop.f32.mrf.mxu1 }
 0x3ff   : > { %v3145_v31 = vadd.f32 %v3375_v44, %v3321_v5 }
 0x400   : > { %v3117_v17 = vpop.f32.mrf.mxu1 }
 0x401   : > { %v3185_v57 = vadd.f32 %v3168_v9, %v3145_v31  ;;  %v3143_v49 = vadd.f32 %v3321_v5, %v3117_v17 }
 0x402   : > { %v3376_v51 = vpop.f32.mrf.mxu1 }
 0x403   : > { %v3193_v37 = vmax.f32 %v3185_v57, 0.0  ;;  %v3183_v3 = vadd.f32 %v3164_v42, %v3143_v49  ;;  %v3146_v7 = vadd.f32 %v3376_v51, %v3321_v5 }
 0x404   : > { %v3120_v36 = vpop.f32.mrf.mxu1 }
 0x405   : > { %3201 = vst.msk [vmem:[%s5559_s11 + $0x30] sm:$0xff] %vm2504_vm10, %v3193_v37  ;;  %v3191_v2 = vmax.f32 %v3183_v3, 0.0  ;;  %v3186_v13 = vadd.f32 %v3170_v39, %v3146_v7  ;;  %v3144_v14 = vadd.f32 %v3321_v5, %v3120_v36 }
 0x407   : > { %3199 = vst.msk [vmem:[%s5559_s11 + $0x20] sm:$0xff] %vm2504_vm10, %v3191_v2  ;;  %v3194_v25 = vmax.f32 %v3186_v13, 0.0  ;;  %v3184_v23 = vadd.f32 %v3166_v0, %v3144_v14 }
 0x409   : > { %3202 = vst.msk [vmem:[%s5559_s11 + $0x38] sm:$0xff] %vm2504_vm10, %v3194_v25  ;;  %v3192_v54 = vmax.f32 %v3184_v23, 0.0 }
 0x40b   : > { %3200 = vst.msk [vmem:[%s5559_s11 + $0x28] sm:$0xff] %vm2504_vm10, %v3192_v54 }
 0x40c   : > { %3489 = shalt.err (!%p3486_p3)
}
 0x40d   : > { %s3490_s15 = scalar_lea.hbm %s5578_s19, 1024  ;;  %s3494_s10 = scalar_lea.hbm %s5635_s6, 2048 }
 0x40e   : > { %p3491_p4 = scmp.ne.s32.totalorder %s5578_s19, %s3490_s15  ;;  %p3495_p9 = scmp.lt.s32.totalorder %s5578_s19, %s5635_s6 }
 0x40f   : > { %p3496_p10 = scmp.lt.s32.totalorder %s3494_s10, %s3490_s15 }
 0x410   : > { %p3492_p7 = pnand %p3491_p4, %p3628_p5 }
 0x411   : > { %p3497_p11 = por %p3496_p10, %p3495_p9 }
 0x412   : > { %p3493_p8 = pneg %p3492_p7 }
 0x414   : > { %p3498_p12 = pnand %p3497_p11, %p3493_p8 }
 0x416   : > { %3501 = shalt.err (!%p3498_p12)
}
 0x417   : > { %s3554_s14 = smov 128  }
 0x418   : > { %3379 = dma.vmem_to_hbm [thread:$0]  (%p3628_p5), %s5582_s13, 1024, %s5578_s19, %s5588_s25, %s3554_s14, %s3554_s14, %s3546_s20  }
 0x419 PF: > { %p3385_p13 = scmp.ge.s32.totalorder %s3536_s24, 2  ;;  %s3232_s18 = sand.u32 1, %s3524_s21  }
 0x41a   : > { %s3233_s28 = scalar_lea.sflag [#allocation5], %s3232_s18 }
 0x41b   : > { %p3382_p0 = pnand %p3385_p13, %p3632_p6 }
 0x41d   : > { %p3383_p1 = pneg %p3382_p0 }
 0x41f   : > { %3519 = dma.done.wait (%p3383_p1), %s3233_s28, 1024  }
 0x420   : > { %3521 = vsyncadd (%p3383_p1), %s3233_s28, 4294966272  ;;  %p16_p2 = scmp.ge.s32.totalorder %s3615_s27, 4   ;;  %s6012_s21 = smov %s3528_s22 }
 0x421   : > { %s6013_s22 = smov %s3532_s23  ;;  %s6014_s23 = smov %s3626_s30 }
 0x422   : > { %s6015_s24 = smov %s3615_s27  ;;  %18 = sbr.rel (!%p16_p2) target bundleno = 3 (0x3), region = 84 }
 0x427   :  { %3238 = vsyncpa [#allocation5], 1 }
 0x428   :  { %3240 = vsyncpa [#allocation5 + $0x1], 1 }

// kernel: tpu_custom_call.1
= control target key start
LH: loop header
LB: loop body
LE: loop exit
PB: predicated region body
PF: predicated region fallthrough
CT: control target
= control target key end

     0   :  { %11 = vsyncpa [#allocation5], 0  ;;  %s5629_s0 = inlined_call_operand.vmem [shape: f32[2,16,16,4], index: 0, kind: input, shape index: {}]   ;;  %s5630_s1 = inlined_call_operand.vmem [shape: bf16[36,16], index: 1, kind: input, shape index: {}]   ;;  %s5631_s2 = inlined_call_operand.vmem [shape: f32[1,8], index: 2, kind: input, shape index: {}]   ;;  %s5632_s3 = inlined_call_operand.vmem [shape: bf16[72,8], index: 3, kind: input, shape index: {}]   ;;  %s5633_s4 = inlined_call_operand.vmem [shape: f32[1,8], index: 4, kind: input, shape index: {}]   ;;  %s5634_s5 = inlined_call_operand.vmem [shape: f32[1,8], index: 5, kind: input, shape index: {}]   ;;  %s5635_s6 = inlined_call_operand.hbm [shape: f32[2,8,8,8], index: 6, kind: output, shape index: {}]  }
   0x1   :  { %13 = vsyncpa [#allocation5 + $0x1], 0  ;;  %s3590_s21 = smov 0   ;;  %s3592_s22 = smov 0  }
   0x2   :  { %s3594_s23 = smov 0   ;;  %s3596_s24 = smov 0  }
   0x3 LB: > { %s3611_s25 = sadd.s32 4294967295, %s3536_s24   ;;  %s3279_s26 = sadd.s32 4294967294, %s3536_s24   ;;  %s3536_s24 = sphi %s3596_s24, %s6015_s24   ;;  %s3532_s23 = sphi %s3594_s23, %s6014_s23   ;;  %s3528_s22 = sphi %s3592_s22, %s6013_s22   ;;  %s3524_s21 = sphi %s3590_s21, %s6012_s21  }
   0x4   : > { %s3615_s27 = sadd.s32 1, %s3536_s24   ;;  %s157_s28 = sadd.s32 1, %s3532_s23 }
   0x5   : > { %s154_s29 = ssub.s32 %s3536_s24, %s3615_s27  ;;  %p167_p0 = scmp.ne.s32.totalorder %s3532_s23, %s3528_s22 }
   0x6   : > { %p155_p1 = scmp.eq.s32.totalorder %s154_s29, 0  ;;  %p168_p2 = scmp.eq.s32.totalorder %s3611_s25, 1 }
   0x7   : > { %p173_p3 = scmp.ne.s32.totalorder %s3528_s22, %s3524_s21  ;;  %p174_p4 = scmp.eq.s32.totalorder %s3279_s26, 1 }
   0x8   : > { %s3626_s30 = scalar_select %p155_p1, %s3532_s23, %s157_s28  }
   0x9   : > { %p3628_p5 = por %p168_p2, %p167_p0  ;;  %p3632_p6 = por %p174_p4, %p173_p3 }
   0xa   : > { %p3282_p7 = scmp.ge.s32.totalorder %s3536_s24, 1  ;;  %p215_p8 = scmp.lt.s32.totalorder %s3536_s24, 3 }
   0xc   : > { %p216_p9 = pnand %p3282_p7, %p215_p8 }
   0xe   : > { %219 = sbr.rel (%p216_p9) target bundleno = 1049 (0x419), region = 44 }
  0x13   : > { %p245_p10 = scmp.lt.s32.totalorder %s3611_s25, 1  ;;  %vm283_vm0 = vcmask 31744   ;;  %vm292_vm1 = vcmask 24576   ;;  %v5636_v0 = vmov 0.0   ;;  %v3539_v1 = vmov 1983009808  }
  0x14   : > { %298 = vst.msk [vmem:[#allocation2 + $0x78] sm:$0x1] %vm292_vm1, %v5636_v0  ;;  %300 = vst.msk [vmem:[#allocation2 + $0xa8] sm:$0x1] %vm292_vm1, %v5636_v0  ;;  %v442_v2 = vunpack.c.l.s4 %v3539_v1  ;;  %v444_v3 = vlaneseq  ;;  %vm1596_vm2 = vcmask 1041409   ;;  %vm1599_vm3 = vcmask 1042434  }
  0x15   : > { %284 = vst.msk [vmem:[#allocation2] sm:$0xff] %vm283_vm0, %v5636_v0  ;;  %285 = vst.msk [vmem:[#allocation2 + $0x8] sm:$0xff] %vm283_vm0, %v5636_v0  ;;  %s246_s9 = scalar_select %p245_p10, %s3611_s25, 1  ;;  %vm1602_vm4 = vcmask 1043459   ;;  %vm1605_vm5 = vcmask 1044484   ;;  %vm1608_vm6 = vcmask 1045509  }
  0x16   : > { %294 = vst.msk [vmem:[#allocation2 + $0x18] sm:$0x1] %vm292_vm1, %v5636_v0  ;;  %295 = vst.msk [vmem:[#allocation2 + $0x30] sm:$0x1] %vm292_vm1, %v5636_v0  ;;  %v443_v4 = vunpack.c.0.s8 %v442_v2  ;;  %v445_v5 = vshrl.u32 %v444_v3, 7  ;;  %vm1611_vm7 = vcmask 1046534  }
  0x17   : > { %296 = vst.msk [vmem:[#allocation2 + $0x48] sm:$0x1] %vm292_vm1, %v5636_v0  ;;  %297 = vst.msk [vmem:[#allocation2 + $0x60] sm:$0x1] %vm292_vm1, %v5636_v0  ;;  %s3327_s10 = sshll.u32 %s246_s9, 8  ;;  %vm1614_vm8 = vcmask 1047559  }
  0x18   : > { %299 = vst.msk [vmem:[#allocation2 + $0x90] sm:$0x1] %vm292_vm1, %v5636_v0  ;;  %301 = vst.msk [vmem:[#allocation2 + $0xc0] sm:$0x1] %vm292_vm1, %v5636_v0  ;;  %s3715_s13 = scalar_lea.vmem %s5629_s0, %s3327_s10  ;;  %v3724_v10 = vsub.s32 %v443_v4, %v445_v5  ;;  %s3540_s14 = smov 12   ;;  %vm286_vm9 = vcmask 25600  }
  0x19   : > { %302 = vst.msk [vmem:[#allocation2 + $0xd8] sm:$0x1] %vm292_vm1, %v5636_v0  ;;  %303 = vst.msk [vmem:[#allocation2 + $0xf0] sm:$0x1] %vm292_vm1, %v5636_v0  ;;  %v259_v6 = vld [vmem:[%s3715_s13 + $0x40] sm:$0xff]  ;;  %v260_v7 = vld [vmem:[%s3715_s13 + $0x48] sm:$0xff] }
  0x1a   : > { %304 = vst.msk [vmem:[#allocation2 + $0x108] sm:$0x1] %vm292_vm1, %v5636_v0  ;;  %305 = vst.msk [vmem:[#allocation2 + $0x120] sm:$0x1] %vm292_vm1, %v5636_v0  ;;  %v263_v8 = vld [vmem:[%s3715_s13 + $0x60] sm:$0xff]  ;;  %v264_v9 = vld [vmem:[%s3715_s13 + $0x68] sm:$0xff] }
  0x1b   : > { %306 = vst.msk [vmem:[#allocation2 + $0x138] sm:$0x1] %vm292_vm1, %v5636_v0  ;;  %307 = vst.msk [vmem:[#allocation2 + $0x150] sm:$0x1] %vm292_vm1, %v5636_v0  ;;  %v253_v11 = vld [vmem:[%s3715_s13 + $0x10] sm:$0xff]  ;;  %v254_v12 = vld [vmem:[%s3715_s13 + $0x18] sm:$0xff] }
  0x1c   : > { %308 = vst.msk [vmem:[#allocation2 + $0x168] sm:$0x1] %vm292_vm1, %v5636_v0  ;;  %309 = vst.msk [vmem:[#allocation2 + $0x180] sm:$0x1] %vm292_vm1, %v5636_v0  ;;  %v257_v13 = vld [vmem:[%s3715_s13 + $0x30] sm:$0xff]  ;;  %v258_v14 = vld [vmem:[%s3715_s13 + $0x38] sm:$0xff] }
  0x1d   : > { %312 = vst.msk [vmem:[#allocation2 + $0x29] sm:$0x1] %vm292_vm1, %v5636_v0  ;;  %313 = vst.msk [vmem:[#allocation2 + $0x41] sm:$0x1] %vm292_vm1, %v5636_v0  ;;  %v363_v15 = vld [vmem:[#allocation2 + $0x8] sm:$0xff]  ;;  %v261_v19 = vld [vmem:[%s3715_s13 + $0x50] sm:$0xff] }
  0x1e   : > { %314 = vst.msk [vmem:[#allocation2 + $0x59] sm:$0x1] %vm292_vm1, %v5636_v0  ;;  %315 = vst.msk [vmem:[#allocation2 + $0x71] sm:$0x1] %vm292_vm1, %v5636_v0  ;;  %v457_v17 = vcombine.high %v363_v15, %v363_v15  ;;  %v464_v18 = vrot.slane %v363_v15, %v3724_v10  ;;  %v262_v20 = vld [vmem:[%s3715_s13 + $0x58] sm:$0xff]  ;;  %v265_v23 = vld [vmem:[%s3715_s13 + $0x70] sm:$0xff] }
  0x1f   : > { %316 = vst.msk [vmem:[#allocation2 + $0x89] sm:$0x1] %vm292_vm1, %v5636_v0  ;;  %317 = vst.msk [vmem:[#allocation2 + $0xa1] sm:$0x1] %vm292_vm1, %v5636_v0  ;;  %v266_v24 = vld [vmem:[%s3715_s13 + $0x78] sm:$0xff]  ;;  %v251_v25 = vld [vmem:[%s3715_s13] sm:$0xff] }
  0x20   : > { %318 = vst.msk [vmem:[#allocation2 + $0xb9] sm:$0x1] %vm292_vm1, %v5636_v0  ;;  %319 = vst.msk [vmem:[#allocation2 + $0xd1] sm:$0x1] %vm292_vm1, %v5636_v0  ;;  %v3745_v26 = vrot.slane %v457_v17, %v3724_v10  ;;  %v3747_v27 = vcombine.high %v464_v18, %v464_v18  ;;  %v1318_v28 = vpack.c.bf16 %v464_v18, %v464_v18  ;;  %v252_v29 = vld [vmem:[%s3715_s13 + $0x8] sm:$0xff]  ;;  %v255_v30 = vld [vmem:[%s3715_s13 + $0x20] sm:$0xff] }
  0x21   : > { %320 = vst.msk [vmem:[#allocation2 + $0xe9] sm:$0x1] %vm292_vm1, %v5636_v0  ;;  %321 = vst.msk [vmem:[#allocation2 + $0x101] sm:$0x1] %vm292_vm1, %v5636_v0  ;;  %v256_v31 = vld [vmem:[%s3715_s13 + $0x28] sm:$0xff]  ;;  %v269_v35 = vld [vmem:[%s3715_s13 + $0x90] sm:$0xff] }
  0x22   : > { %322 = vst.msk [vmem:[#allocation2 + $0x119] sm:$0x1] %vm292_vm1, %v5636_v0  ;;  %323 = vst.msk [vmem:[#allocation2 + $0x131] sm:$0x1] %vm292_vm1, %v5636_v0  ;;  %v270_v36 = vld [vmem:[%s3715_s13 + $0x98] sm:$0xff]  ;;  %v273_v37 = vld [vmem:[%s3715_s13 + $0xb0] sm:$0xff]  ;;  %v3768_v38 = vcombine.high %v3745_v26, %v3745_v26  ;;  %v1319_v39 = vpack.c.bf16 %v3747_v27, %v3747_v27  ;;  %v1320_v40 = vpack.c.bf16 %v3745_v26, %v3745_v26  ;;  %v3774_v41 = vunpack.c.l.b16 %v1318_v28 }
  0x23   : > { %324 = vst.msk [vmem:[#allocation2 + $0x149] sm:$0x1] %vm292_vm1, %v5636_v0  ;;  %325 = vst.msk [vmem:[#allocation2 + $0x161] sm:$0x1] %vm292_vm1, %v5636_v0  ;;  %v274_v42 = vld [vmem:[%s3715_s13 + $0xb8] sm:$0xff]  ;;  %v277_v43 = vld [vmem:[%s3715_s13 + $0xd0] sm:$0xff] }
  0x24   : > { %326 = vst.msk [vmem:[#allocation2 + $0x179] sm:$0x1] %vm292_vm1, %v5636_v0  ;;  %327 = vst.msk [vmem:[#allocation2 + $0x191] sm:$0x1] %vm292_vm1, %v5636_v0  ;;  %v278_v44 = vld [vmem:[%s3715_s13 + $0xd8] sm:$0xff]  ;;  %s3541_s15 = smov 4  }
  0x25   : > { %293 = vst.msk [vmem:[#allocation2] sm:$0x1] %vm292_vm1, %v5636_v0  ;;  %s3542_s16 = smov 16   ;;  %s3543_s17 = smov 24   ;;  %vm2504_vm10 = vcmask 64512   ;;  %vm2596_vm11 = vcmask 1041408  }
  0x26   : > { %338 = vst.msk [vmem:[#allocation2 + $0x79] sm:$0xff] %vm283_vm0, %v259_v6  ;;  %339 = vst.msk [vmem:[#allocation2 + $0x81] sm:$0xff] %vm283_vm0, %v260_v7  ;;  %s3544_s18 = smov 28   ;;  %s3545_s19 = smov 20   ;;  %vm2513_vm12 = vcmask 97280   ;;  %vm2522_vm13 = vcmask 130048  }
  0x27   : > { %342 = vst.msk [vmem:[#allocation2 + $0xa9] sm:$0xff] %vm283_vm0, %v263_v8  ;;  %343 = vst.msk [vmem:[#allocation2 + $0xb1] sm:$0xff] %vm283_vm0, %v264_v9  ;;  %s3546_s20 = smov 8   ;;  %s3547_s26 = smov 32   ;;  %vm2531_vm14 = vcmask 162816   ;;  %vm2540_vm15 = vcmask 195584  }
  0x28   : > { %332 = vst.msk [vmem:[#allocation2 + $0x31] sm:$0xff] %vm283_vm0, %v253_v11  ;;  %333 = vst.msk [vmem:[#allocation2 + $0x39] sm:$0xff] %vm283_vm0, %v254_v12  ;;  %s3549_s11 = smov 48   ;;  %s3328_s12 = sshll.u32 %s3611_s25, 10 }
  0x29   : > { %336 = vst.msk [vmem:[#allocation2 + $0x61] sm:$0xff] %vm283_vm0, %v257_v13  ;;  %337 = vst.msk [vmem:[#allocation2 + $0x69] sm:$0xff] %vm283_vm0, %v258_v14 }
  0x2a   : > { %340 = vst.msk [vmem:[#allocation2 + $0x91] sm:$0xff] %vm283_vm0, %v261_v19  ;;  %341 = vst.msk [vmem:[#allocation2 + $0x99] sm:$0xff] %vm283_vm0, %v262_v20 }
  0x2b   : > { %344 = vst.msk [vmem:[#allocation2 + $0xc1] sm:$0xff] %vm283_vm0, %v265_v23  ;;  %345 = vst.msk [vmem:[#allocation2 + $0xc9] sm:$0xff] %vm283_vm0, %v266_v24 }
  0x2c   : > { %v362_v16 = vld [vmem:[#allocation2] sm:$0xff]  ;;  %330 = vst.msk [vmem:[#allocation2 + $0x19] sm:$0xff] %vm283_vm0, %v251_v25  ;;  %331 = vst.msk [vmem:[#allocation2 + $0x21] sm:$0xff] %vm283_vm0, %v252_v29 }
  0x2d   : > { %v440_v21 = vcombine.high %v362_v16, %v362_v16  ;;  %v447_v22 = vrot.slane %v362_v16, %v3724_v10  ;;  %334 = vst.msk [vmem:[#allocation2 + $0x49] sm:$0xff] %vm283_vm0, %v255_v30  ;;  %335 = vst.msk [vmem:[#allocation2 + $0x51] sm:$0xff] %vm283_vm0, %v256_v31  ;;  %v377_v45 = vld [vmem:[#allocation2 + $0x78] sm:$0xff]  ;;  %v378_v46 = vld [vmem:[#allocation2 + $0x80] sm:$0xff] }
  0x2e   : > { %348 = vst.msk [vmem:[#allocation2 + $0xf1] sm:$0xff] %vm283_vm0, %v269_v35  ;;  %349 = vst.msk [vmem:[#allocation2 + $0xf9] sm:$0xff] %vm283_vm0, %v270_v36  ;;  %v383_v47 = vld [vmem:[#allocation2 + $0xa8] sm:$0xff]  ;;  %v384_v52 = vld [vmem:[#allocation2 + $0xb0] sm:$0xff]  ;;  %v996_v53 = vcombine.high %v377_v45, %v377_v45  ;;  %v1003_v54 = vrot.slane %v377_v45, %v3724_v10  ;;  %v1013_v55 = vcombine.high %v378_v46, %v378_v46 }
  0x2f   : > { %v3756_v32 = vrot.slane %v440_v21, %v3724_v10  ;;  %v3758_v33 = vcombine.high %v447_v22, %v447_v22  ;;  %v1314_v34 = vpack.c.bf16 %v447_v22, %v447_v22  ;;  %352 = vst.msk [vmem:[#allocation2 + $0x121] sm:$0xff] %vm283_vm0, %v273_v37  ;;  %353 = vst.msk [vmem:[#allocation2 + $0x129] sm:$0xff] %vm283_vm0, %v274_v42 }
  0x30   : > { %356 = vst.msk [vmem:[#allocation2 + $0x151] sm:$0xff] %vm283_vm0, %v277_v43  ;;  %357 = vst.msk [vmem:[#allocation2 + $0x159] sm:$0xff] %vm283_vm0, %v278_v44  ;;  %v1020_v56 = vrot.slane %v378_v46, %v3724_v10  ;;  %v1037_v57 = vcombine.high %v383_v47, %v383_v47  ;;  %v1044_v58 = vrot.slane %v383_v47, %v3724_v10 }
  0x31   : > { %v3784_v48 = vcombine.high %v3756_v32, %v3756_v32  ;;  %v1315_v49 = vpack.c.bf16 %v3758_v33, %v3758_v33  ;;  %v1316_v50 = vpack.c.bf16 %v3756_v32, %v3756_v32  ;;  %v3790_v51 = vunpack.c.l.b16 %v1314_v34 }
  0x32   : > { %v1054_v59 = vcombine.high %v384_v52, %v384_v52  ;;  %v1061_v60 = vrot.slane %v384_v52, %v3724_v10  ;;  %v1010_v61 = vrot.slane %v996_v53, %v3724_v10  ;;  %v1011_v62 = vcombine.high %v1003_v54, %v1003_v54 }
  0x33   : > { %v1027_v63 = vrot.slane %v1013_v55, %v3724_v10  ;;  %v1028_v1 = vcombine.high %v1020_v56, %v1020_v56  ;;  %v1051_v2 = vrot.slane %v1037_v57, %v3724_v10  ;;  %v1052_v3 = vcombine.high %v1044_v58, %v1044_v58 }
  0x34   : > { %v1068_v4 = vrot.slane %v1054_v59, %v3724_v10  ;;  %v1069_v5 = vcombine.high %v1061_v60, %v1061_v60  ;;  %v1012_v6 = vcombine.high %v1010_v61, %v1010_v61  ;;  %v1402_v8 = vpack.c.bf16 %v1003_v54, %v1003_v54 }
  0x35   : > { %v1029_v7 = vcombine.high %v1027_v63, %v1027_v63  ;;  %v1403_v9 = vpack.c.bf16 %v1011_v62, %v1011_v62  ;;  %v1053_v11 = vcombine.high %v1051_v2, %v1051_v2  ;;  %v1404_v13 = vpack.c.bf16 %v1010_v61, %v1010_v61 }
  0x36   : > { %v1070_v12 = vcombine.high %v1068_v4, %v1068_v4  ;;  %v1406_v14 = vpack.c.bf16 %v1020_v56, %v1020_v56  ;;  %v1405_v15 = vpack.c.bf16 %v1012_v6, %v1012_v6  ;;  %v1407_v16 = vpack.c.bf16 %v1028_v1, %v1028_v1 }
  0x37   : > { %v1408_v17 = vpack.c.bf16 %v1027_v63, %v1027_v63  ;;  %v1409_v18 = vpack.c.bf16 %v1029_v7, %v1029_v7  ;;  %v1410_v19 = vpack.c.bf16 %v1044_v58, %v1044_v58  ;;  %v1411_v20 = vpack.c.bf16 %v1052_v3, %v1052_v3 }
  0x38   : > { %v1412_v21 = vpack.c.bf16 %v1051_v2, %v1051_v2  ;;  %v1413_v22 = vpack.c.bf16 %v1053_v11, %v1053_v11  ;;  %v1414_v23 = vpack.c.bf16 %v1061_v60, %v1061_v60  ;;  %v1415_v24 = vpack.c.bf16 %v1069_v5, %v1069_v5 }
  0x39   : > { %v1416_v25 = vpack.c.bf16 %v1068_v4, %v1068_v4  ;;  %v1417_v28 = vpack.c.bf16 %v1070_v12, %v1070_v12  ;;  %v3803_v29 = vunpack.c.l.b16 %v1402_v8  ;;  %v3805_v30 = vunpack.c.l.b16 %v1403_v9  ;;  %v368_v4 = vld [vmem:[#allocation2 + $0x30] sm:$0xff]  ;;  %v369_v9 = vld [vmem:[#allocation2 + $0x38] sm:$0xff] }
  0x3a   : > { %v3807_v31 = vunpack.c.l.b16 %v1404_v13  ;;  %v3809_v34 = vunpack.c.l.b16 %v1405_v15  ;;  %v3811_v35 = vunpack.c.l.b16 %v1406_v14  ;;  %v3813_v36 = vunpack.c.l.b16 %v1407_v16 }
  0x3b   : > { %5783 = vst [vmem:[#allocation7_spill] sm:$0xff] %v3805_v30  ;;  %v3815_v37 = vunpack.c.l.b16 %v1408_v17  ;;  %v3817_v42 = vunpack.c.l.b16 %v1409_v18  ;;  %v3819_v43 = vunpack.c.l.b16 %v1410_v19  ;;  %v3821_v44 = vunpack.c.l.b16 %v1411_v20 }
  0x3c   : > { %5784 = vst [vmem:[#allocation8_spill] sm:$0xff] %v3807_v31  ;;  %5785 = vst [vmem:[#allocation9_spill] sm:$0xff] %v3809_v34  ;;  %v3823_v45 = vunpack.c.l.b16 %v1412_v21  ;;  %v3825_v46 = vunpack.c.l.b16 %v1413_v22  ;;  %v3827_v47 = vunpack.c.l.b16 %v1414_v23  ;;  %v3829_v52 = vunpack.c.l.b16 %v1415_v24  ;;  %v374_v21 = vld [vmem:[#allocation2 + $0x60] sm:$0xff] }
  0x3d   : > { %5786 = vst [vmem:[#allocation10_spill] sm:$0xff] %v3811_v35  ;;  %5787 = vst [vmem:[#allocation11_spill] sm:$0xff] %v3813_v36  ;;  %v3831_v53 = vunpack.c.l.b16 %v1416_v25  ;;  %v3833_v54 = vunpack.c.l.b16 %v1417_v28  ;;  %v2090_v55 = vrot.slane %v3805_v30, 7  ;;  %v2092_v56 = vrot.slane %v3807_v31, 6  ;;  %v375_v28 = vld [vmem:[#allocation2 + $0x68] sm:$0xff] }
  0x3e   : > { %5788 = vst [vmem:[#allocation12_spill] sm:$0xff] %v3815_v37  ;;  %5789 = vst [vmem:[#allocation13_spill] sm:$0xff] %v3817_v42  ;;  %v2094_v57 = vrot.slane %v3809_v34, 5  ;;  %v2096_v58 = vrot.slane %v3811_v35, 4  ;;  %v2098_v59 = vrot.slane %v3813_v36, 3  ;;  %v2100_v60 = vrot.slane %v3815_v37, 2 }
  0x3f   : > { %5790 = vst [vmem:[#allocation14_spill] sm:$0xff] %v3821_v44  ;;  %5791 = vst [vmem:[#allocation15_spill] sm:$0xff] %v3823_v45  ;;  %v2102_v61 = vrot.slane %v3817_v42, 1  ;;  %v2104_v62 = vrot.slane %v3821_v44, 7  ;;  %v2091_v63 = vsel %vm1596_vm2, %v2090_v55, %v3803_v29  ;;  %v2106_v1 = vrot.slane %v3823_v45, 6 }
  0x40   : > { %5792 = vst [vmem:[#allocation16_spill] sm:$0xff] %v3825_v46  ;;  %5793 = vst [vmem:[#allocation17_spill] sm:$0xff] %v3827_v47  ;;  %v2108_v2 = vrot.slane %v3825_v46, 5  ;;  %v2110_v3 = vrot.slane %v3827_v47, 4  ;;  %v2093_v5 = vsel %vm1599_vm3, %v2092_v56, %v2091_v63  ;;  %v2112_v7 = vrot.slane %v3829_v52, 3 }
  0x41   : > { %5794 = vst [vmem:[#allocation18_spill] sm:$0xff] %v3829_v52  ;;  %5795 = vst [vmem:[#allocation19_spill] sm:$0xff] %v3831_v53  ;;  %v2105_v6 = vsel %vm1596_vm2, %v2104_v62, %v3819_v43  ;;  %v2114_v8 = vrot.slane %v3831_v53, 2  ;;  %v2095_v11 = vsel %vm1602_vm4, %v2094_v57, %v2093_v5  ;;  %v2116_v13 = vrot.slane %v3833_v54, 1 }
  0x42   : > { %5796 = vst [vmem:[#allocation20_spill] sm:$0xff] %v3833_v54  ;;  %v2107_v12 = vsel %vm1599_vm3, %v2106_v1, %v2105_v6  ;;  %v2214_v14 = vrot.slane %v3803_v29, 1  ;;  %v2097_v15 = vsel %vm1605_vm5, %v2096_v58, %v2095_v11  ;;  %v2228_v17 = vrot.slane %v3819_v43, 1 }
  0x43   : > { %v2109_v16 = vsel %vm1602_vm4, %v2108_v2, %v2107_v12  ;;  %v481_v18 = vcombine.high %v368_v4, %v368_v4  ;;  %v2099_v19 = vsel %vm1608_vm6, %v2098_v59, %v2097_v15  ;;  %v488_v22 = vrot.slane %v368_v4, %v3724_v10 }
  0x44   : > { %v2111_v20 = vsel %vm1605_vm5, %v2110_v3, %v2109_v16  ;;  %v498_v23 = vcombine.high %v369_v9, %v369_v9  ;;  %v2101_v24 = vsel %vm1611_vm7, %v2100_v60, %v2099_v19  ;;  %v505_v56 = vrot.slane %v369_v9, %v3724_v10 }
  0x45   : > { %v2113_v25 = vsel %vm1608_vm6, %v2112_v7, %v2111_v20  ;;  %v495_v55 = vrot.slane %v481_v18, %v3724_v10  ;;  %v2103_v57 = vsel %vm1614_vm8, %v2102_v61, %v2101_v24  ;;  %v496_v59 = vcombine.high %v488_v22, %v488_v22 }
  0x46   : > { %v2115_v58 = vsel %vm1611_vm7, %v2114_v8, %v2113_v25  ;;  %v512_v62 = vrot.slane %v498_v23, %v3724_v10  ;;  %v513_v2 = vcombine.high %v505_v56, %v505_v56  ;;  %v522_v3 = vcombine.high %v374_v21, %v374_v21 }
  0x47   : > { %v2117_v63 = vsel %vm1614_vm8, %v2116_v13, %v2115_v58  ;;  %v497_v1 = vcombine.high %v495_v55, %v495_v55  ;;  %v529_v5 = vrot.slane %v374_v21, %v3724_v10  ;;  %v539_v6 = vcombine.high %v375_v28, %v375_v28 }
  0x48   : > { %v2175_v60 = vpack.c.b16 %v2117_v63, %v2103_v57  ;;  %v514_v4 = vcombine.high %v512_v62, %v512_v62  ;;  %v536_v7 = vrot.slane %v522_v3, %v3724_v10  ;;  %v546_v9 = vrot.slane %v375_v28, %v3724_v10 }
  0x49   : > { %v1317_v61 = vpack.c.bf16 %v3784_v48, %v3784_v48  ;;  %v1321_v8 = vpack.c.bf16 %v3768_v38, %v3768_v38  ;;  %v537_v11 = vcombine.high %v529_v5, %v529_v5  ;;  %v553_v12 = vrot.slane %v539_v6, %v3724_v10 }
  0x4a   : > { %2180 = vrot.lane.b32.xlu1 %v2175_v60, %s3540_s14  ;;  %v1322_v13 = vpack.c.bf16 %v488_v22, %v488_v22  ;;  %v1323_v15 = vpack.c.bf16 %v496_v59, %v496_v59  ;;  %v538_v16 = vcombine.high %v536_v7, %v536_v7  ;;  %v554_v18 = vcombine.high %v546_v9, %v546_v9 }
  0x4b   : > { %v1324_v19 = vpack.c.bf16 %v495_v55, %v495_v55  ;;  %v1325_v20 = vpack.c.bf16 %v497_v1, %v497_v1  ;;  %v555_v21 = vcombine.high %v553_v12, %v553_v12  ;;  %v1326_v23 = vpack.c.bf16 %v505_v56, %v505_v56 }
  0x4c   : > { %v1327_v24 = vpack.c.bf16 %v513_v2, %v513_v2  ;;  %v1328_v25 = vpack.c.bf16 %v512_v62, %v512_v62  ;;  %v1329_v48 = vpack.c.bf16 %v514_v4, %v514_v4  ;;  %v1330_v28 = vpack.c.bf16 %v529_v5, %v529_v5 }
  0x4d   : > { %v1331_v57 = vpack.c.bf16 %v537_v11, %v537_v11  ;;  %v1332_v38 = vpack.c.bf16 %v536_v7, %v536_v7  ;;  %v1333_v58 = vpack.c.bf16 %v538_v16, %v538_v16  ;;  %v1334_v63 = vpack.c.bf16 %v546_v9, %v546_v9 }
  0x4e   : > { %v1335_v3 = vpack.c.bf16 %v554_v18, %v554_v18  ;;  %v1336_v60 = vpack.c.bf16 %v553_v12, %v553_v12  ;;  %v1337_v0 = vpack.c.bf16 %v555_v21, %v555_v21  ;;  %v3883_v22 = vunpack.c.l.b16 %v1315_v49  ;;  %v275_v12 = vld [vmem:[%s3715_s13 + $0xc0] sm:$0xff] }
  0x4f   : > { %v3888_v55 = vunpack.c.l.b16 %v1316_v50  ;;  %v3890_v56 = vunpack.c.l.b16 %v1317_v61  ;;  %v3895_v59 = vunpack.c.l.b16 %v1319_v39  ;;  %v3900_v62 = vunpack.c.l.b16 %v1320_v40  ;;  %354 = vst.msk [vmem:[#allocation2 + $0x139] sm:$0xff] %vm283_vm0, %v275_v12 }
  0x50   : > { %v3902_v33 = vunpack.c.l.b16 %v1321_v8  ;;  %v3904_v49 = vunpack.c.l.b16 %v1322_v13  ;;  %v3906_v1 = vunpack.c.l.b16 %v1323_v15  ;;  %v3908_v32 = vunpack.c.l.b16 %v1324_v19  ;;  %v279_v13 = vld [vmem:[%s3715_s13 + $0xe0] sm:$0xff] }
  0x51   : > { %v3910_v50 = vunpack.c.l.b16 %v1325_v20  ;;  %v3912_v27 = vunpack.c.l.b16 %v1326_v23  ;;  %v3914_v39 = vunpack.c.l.b16 %v1327_v24  ;;  %v3916_v2 = vunpack.c.l.b16 %v1328_v25  ;;  %358 = vst.msk [vmem:[#allocation2 + $0x169] sm:$0xff] %vm283_vm0, %v279_v13 }
  0x52   : > { %v3918_v26 = vunpack.c.l.b16 %v1329_v48  ;;  %v3920_v40 = vunpack.c.l.b16 %v1330_v28  ;;  %v3922_v4 = vunpack.c.l.b16 %v1331_v57  ;;  %v3924_v5 = vunpack.c.l.b16 %v1332_v38 }
  0x53   : > { %v3926_v6 = vunpack.c.l.b16 %v1333_v58  ;;  %v3928_v7 = vunpack.c.l.b16 %v1334_v63  ;;  %v3930_v9 = vunpack.c.l.b16 %v1335_v3  ;;  %v3932_v61 = vunpack.c.l.b16 %v1336_v60  ;;  %v276_v3 = vld [vmem:[%s3715_s13 + $0xc8] sm:$0xff] }
  0x54   : > { %5797 = vst [vmem:[#allocation21_spill] sm:$0xff] %v3920_v40  ;;  %5798 = vst [vmem:[#allocation22_spill] sm:$0xff] %v3922_v4  ;;  %v3934_v8 = vunpack.c.l.b16 %v1337_v0  ;;  %v1718_v20 = vrot.slane %v3790_v51, 1  ;;  %v5638_v21 = vrot.slane %v3888_v55, 7  ;;  %v5639_v23 = vrot.slane %v3890_v56, 6  ;;  %v280_v60 = vld [vmem:[%s3715_s13 + $0xe8] sm:$0xff] }
  0x55   : > { %5799 = vst [vmem:[#allocation23_spill] sm:$0xff] %v3924_v5  ;;  %5800 = vst [vmem:[#allocation24_spill] sm:$0xff] %v3926_v6  ;;  %v5640_v24 = vrot.slane %v3774_v41, 5  ;;  %v5641_v25 = vrot.slane %v3895_v59, 4  ;;  %v5656_v48 = vrot.slane %v3900_v62, 3  ;;  %v5652_v28 = vrot.slane %v3902_v33, 2 }
  0x56   : > { %5801 = vst [vmem:[#allocation25_spill] sm:$0xff] %v3928_v7  ;;  %5802 = vst [vmem:[#allocation26_spill] sm:$0xff] %v3930_v9  ;;  %v1719_v57 = vsel %vm1596_vm2, %v3883_v22, %v1718_v20  ;;  %v1732_v38 = vrot.slane %v3904_v49, 1  ;;  %v5664_v58 = vrot.slane %v3908_v32, 7  ;;  %v5657_v63 = vrot.slane %v3910_v50, 6 }
  0x57   : > { %5803 = vst [vmem:[#allocation27_spill] sm:$0xff] %v3932_v61  ;;  %5804 = vst [vmem:[#allocation28_spill] sm:$0xff] %v3934_v8  ;;  %v1721_v12 = vsel %vm1599_vm3, %v5638_v21, %v1719_v57  ;;  %v5655_v13 = vrot.slane %v3912_v27, 5  ;;  %v5651_v0 = vrot.slane %v3914_v39, 4  ;;  %v5645_v19 = vrot.slane %v3916_v2, 3 }
  0x58   : > { %355 = vst.msk [vmem:[#allocation2 + $0x141] sm:$0xff] %vm283_vm0, %v276_v3  ;;  %359 = vst.msk [vmem:[#allocation2 + $0x171] sm:$0xff] %vm283_vm0, %v280_v60  ;;  %v1723_v20 = vsel %vm1602_vm4, %v5639_v23, %v1721_v12  ;;  %v1733_v18 = vsel %vm1596_vm2, %v3906_v1, %v1732_v38  ;;  %v5647_v16 = vrot.slane %v3918_v26, 2  ;;  %v1746_v57 = vrot.slane %v3920_v40, 1 }
  0x59   : > { %v1725_v21 = vsel %vm1605_vm5, %v5640_v24, %v1723_v20  ;;  %v1735_v3 = vsel %vm1599_vm3, %v5664_v58, %v1733_v18  ;;  %v5642_v60 = vrot.slane %v3924_v5, 7  ;;  %v5643_v15 = vrot.slane %v3926_v6, 6 }
  0x5a   : > { %v1727_v38 = vsel %vm1608_vm6, %v5641_v25, %v1725_v21  ;;  %v1737_v12 = vsel %vm1602_vm4, %v5657_v63, %v1735_v3  ;;  %v1747_v23 = vsel %vm1596_vm2, %v3922_v4, %v1746_v57  ;;  %v5644_v20 = vrot.slane %v3928_v7, 5 }
  0x5b   : > { %v1729_v18 = vsel %vm1611_vm7, %v5656_v48, %v1727_v38  ;;  %v1739_v24 = vsel %vm1605_vm5, %v5655_v13, %v1737_v12  ;;  %v1749_v21 = vsel %vm1599_vm3, %v5642_v60, %v1747_v23  ;;  %v5646_v25 = vrot.slane %v3930_v9, 4 }
  0x5c   : > { %v1731_v57 = vsel %vm1614_vm8, %v5652_v28, %v1729_v18  ;;  %v1741_v3 = vsel %vm1608_vm6, %v5651_v0, %v1739_v24  ;;  %v1751_v38 = vsel %vm1602_vm4, %v5643_v15, %v1749_v21  ;;  %v5650_v12 = vrot.slane %v3932_v61, 3  ;;  %v381_v28 = vld [vmem:[#allocation2 + $0x98] sm:$0xff] }
  0x5d   : > { %v1743_v23 = vsel %vm1611_vm7, %v5645_v19, %v1741_v3  ;;  %v1753_v60 = vsel %vm1605_vm5, %v5644_v20, %v1751_v38  ;;  %v5649_v18 = vrot.slane %v3934_v8, 2  ;;  %v2215_v24 = vsel %vm1596_vm2, %v3805_v30, %v2214_v14  ;;  %v371_v30 = vld [vmem:[#allocation2 + $0x48] sm:$0xff] }
  0x5e   : > { %v4026_v21 = vsel %vm1614_vm8, %v5647_v16, %v1743_v23  ;;  %v1755_v3 = vsel %vm1608_vm6, %v5646_v25, %v1753_v60  ;;  %v5648_v15 = vrot.slane %v3807_v31, 7  ;;  %v5653_v38 = vrot.slane %v3809_v34, 6 }
  0x5f   : > { %5805 = vst [vmem:[#allocation29_spill] sm:$0xff] %v4026_v21  ;;  %v1757_v29 = vsel %vm1611_vm7, %v5650_v12, %v1755_v3  ;;  %v1830_v20 = vpack.c.b16 %v4026_v21, %v1731_v57  ;;  %v5654_v14 = vrot.slane %v3811_v35, 5  ;;  %v5662_v19 = vrot.slane %v3813_v36, 4 }
  0x60   : > { %v4042_v23 = vsel %vm1614_vm8, %v5649_v18, %v1757_v29  ;;  %v2217_v60 = vsel %vm1599_vm3, %v5648_v15, %v2215_v24  ;;  %v5658_v25 = vrot.slane %v3815_v37, 3  ;;  %v5661_v16 = vrot.slane %v3817_v42, 2  ;;  %v380_v15 = vld [vmem:[#allocation2 + $0x90] sm:$0xff] }
  0x61   : > { %5806 = vst [vmem:[#allocation30_spill] sm:$0xff] %v4042_v23  ;;  %1834 = vrot.lane.b32.xlu0 %v1830_v20, %s3541_s15  ;;  %v2219_v3 = vsel %vm1602_vm4, %v5653_v38, %v2217_v60  ;;  %v2229_v24 = vsel %vm1596_vm2, %v3821_v44, %v2228_v17  ;;  %v5660_v29 = vrot.slane %v3823_v45, 7  ;;  %v5659_v12 = vrot.slane %v3825_v46, 6  ;;  %v366_v44 = vld [vmem:[#allocation2 + $0x20] sm:$0xff] }
  0x62   : > { %v2221_v18 = vsel %vm1605_vm5, %v5654_v14, %v2219_v3  ;;  %v5663_v20 = vrot.slane %v3827_v47, 5  ;;  %v5665_v0 = vrot.slane %v3829_v52, 4  ;;  %v5666_v60 = vrot.slane %v3831_v53, 3  ;;  %v267_v3 = vld [vmem:[%s3715_s13 + $0x80] sm:$0xff] }
  0x63   : > { %v2223_v43 = vsel %vm1608_vm6, %v5662_v19, %v2221_v18  ;;  %v2231_v17 = vsel %vm1599_vm3, %v5660_v29, %v2229_v24  ;;  %v5668_v38 = vrot.slane %v3833_v54, 2  ;;  %v271_v14 = vld [vmem:[%s3715_s13 + $0xa0] sm:$0xff]  ;;  %v563_v63 = vcombine.high %v380_v15, %v380_v15  ;;  %346 = vst.msk [vmem:[#allocation2 + $0xd9] sm:$0xff] %vm283_vm0, %v267_v3 }
  0x64   : > { %v2225_v13 = vsel %vm1611_vm7, %v5658_v25, %v2223_v43  ;;  %v2233_v48 = vsel %vm1602_vm4, %v5659_v12, %v2231_v17  ;;  %v570_v18 = vrot.slane %v380_v15, %v3724_v10  ;;  %350 = vst.msk [vmem:[#allocation2 + $0x109] sm:$0xff] %vm283_vm0, %v271_v14  ;;  %v580_v25 = vcombine.high %v381_v28, %v381_v28 }
  0x65   : > { %v2227_v24 = vsel %vm1614_vm8, %v5661_v16, %v2225_v13  ;;  %v2235_v43 = vsel %vm1605_vm5, %v5663_v20, %v2233_v48  ;;  %v587_v17 = vrot.slane %v381_v28, %v3724_v10  ;;  %v577_v12 = vrot.slane %v563_v63, %v3724_v10  ;;  %v268_v48 = vld [vmem:[%s3715_s13 + $0x88] sm:$0xff] }
  0x66   : > { %v2237_v15 = vsel %vm1608_vm6, %v5665_v0, %v2235_v43  ;;  %v578_v3 = vcombine.high %v570_v18, %v570_v18  ;;  %v1338_v29 = vpack.c.bf16 %v570_v18, %v570_v18  ;;  %v594_v13 = vrot.slane %v580_v25, %v3724_v10  ;;  %v272_v20 = vld [vmem:[%s3715_s13 + $0xa8] sm:$0xff]  ;;  %347 = vst.msk [vmem:[#allocation2 + $0xe1] sm:$0xff] %vm283_vm0, %v268_v48  ;;  %v386_v25 = vld [vmem:[#allocation2 + $0xc0] sm:$0xff] }
  0x67   : > { %v2239_v14 = vsel %vm1611_vm7, %v5666_v60, %v2237_v15  ;;  %v595_v16 = vcombine.high %v587_v17, %v587_v17  ;;  %v1342_v19 = vpack.c.bf16 %v587_v17, %v587_v17  ;;  %v579_v58 = vcombine.high %v577_v12, %v577_v12  ;;  %351 = vst.msk [vmem:[#allocation2 + $0x111] sm:$0xff] %vm283_vm0, %v272_v20 }
  0x68   : > { %v2241_v28 = vsel %vm1614_vm8, %v5668_v38, %v2239_v14  ;;  %v1339_v43 = vpack.c.bf16 %v578_v3, %v578_v3  ;;  %v1340_v0 = vpack.c.bf16 %v577_v12, %v577_v12  ;;  %v596_v18 = vcombine.high %v594_v13, %v594_v13 }
  0x69   : > { %v2299_v63 = vpack.c.b16 %v2241_v28, %v2227_v24  ;;  %v1343_v15 = vpack.c.bf16 %v595_v16, %v595_v16  ;;  %v1344_v60 = vpack.c.bf16 %v594_v13, %v594_v13  ;;  %v1341_v57 = vpack.c.bf16 %v579_v58, %v579_v58 }
  0x6a   : > { %v1555_v17 = vunpack.c.l.b16 %v1338_v29  ;;  %v4107_v11 = vunpack.c.l.b16 %v1339_v43  ;;  %v4109_v53 = vunpack.c.l.b16 %v1340_v0  ;;  %v1345_v3 = vpack.c.bf16 %v596_v18, %v596_v18  ;;  %v387_v29 = vld [vmem:[#allocation2 + $0xc8] sm:$0xff] }
  0x6b   : > { %2304 = vrot.lane.b32.xlu1 %v2299_v63, %s3542_s16  ;;  %v4112_v12 = vunpack.c.l.b16 %v1342_v19  ;;  %v4114_v14 = vunpack.c.l.b16 %v1343_v15  ;;  %v4116_v20 = vunpack.c.l.b16 %v1344_v60  ;;  %v4118_v24 = vunpack.c.l.b16 %v1341_v57 }
  0x6c   : > { %5807 = vst [vmem:[#allocation31_spill] sm:$0xff] %v4107_v11  ;;  %5808 = vst [vmem:[#allocation32_spill] sm:$0xff] %v4109_v53  ;;  %v1760_v16 = vrot.slane %v1555_v17, 1  ;;  %v5671_v58 = vrot.slane %v4109_v53, 7  ;;  %v604_v13 = vcombine.high %v386_v25, %v386_v25  ;;  %v4121_v48 = vunpack.c.l.b16 %v1345_v3 }
  0x6d   : > { %5809 = vst [vmem:[#allocation33_spill] sm:$0xff] %v4112_v12  ;;  %5810 = vst [vmem:[#allocation34_spill] sm:$0xff] %v4114_v14  ;;  %v5674_v60 = vrot.slane %v4118_v24, 6  ;;  %v611_v57 = vrot.slane %v386_v25, %v3724_v10  ;;  %v621_v3 = vcombine.high %v387_v29, %v387_v29  ;;  %v628_v38 = vrot.slane %v387_v29, %v3724_v10 }
  0x6e   : > { %5811 = vst [vmem:[#allocation35_spill] sm:$0xff] %v4116_v20  ;;  %5812 = vst [vmem:[#allocation36_spill] sm:$0xff] %v4118_v24  ;;  %v1761_v43 = vsel %vm1596_vm2, %v4107_v11, %v1760_v16  ;;  %v618_v63 = vrot.slane %v604_v13, %v3724_v10  ;;  %v5814_v25 = vrot.slane %v4112_v12, 5 }
  0x6f   : > { %5813 = vst [vmem:[#allocation37_spill] sm:$0xff] %v4121_v48  ;;  %v1763_v18 = vsel %vm1599_vm3, %v5671_v58, %v1761_v43  ;;  %v619_v16 = vcombine.high %v611_v57, %v611_v57  ;;  %v1346_v0 = vpack.c.bf16 %v611_v57, %v611_v57  ;;  %v635_v54 = vrot.slane %v621_v3, %v3724_v10 }
  0x70   : > { %v1765_v19 = vsel %vm1602_vm4, %v5674_v60, %v1763_v18  ;;  %v620_v28 = vcombine.high %v618_v63, %v618_v63  ;;  %v636_v52 = vcombine.high %v628_v38, %v628_v38  ;;  %v1348_v43 = vpack.c.bf16 %v618_v63, %v618_v63 }
  0x71   : > { %v1767_v13 = vsel %vm1605_vm5, %v5814_v25, %v1765_v19  ;;  %v5815_v58 = vrot.slane %v4114_v14, 4  ;;  %v1347_v29 = vpack.c.bf16 %v619_v16, %v619_v16  ;;  %v1350_v42 = vpack.c.bf16 %v628_v38, %v628_v38 }
  0x72   : > { %v1349_v47 = vpack.c.bf16 %v620_v28, %v620_v28  ;;  %v5816_v18 = vrot.slane %v4116_v20, 3  ;;  %v637_v57 = vcombine.high %v635_v54, %v635_v54  ;;  %v1351_v46 = vpack.c.bf16 %v636_v52, %v636_v52 }
  0x73   : > { %v1769_v15 = vsel %vm1608_vm6, %v5815_v58, %v1767_v13  ;;  %v1352_v37 = vpack.c.bf16 %v635_v54, %v635_v54  ;;  %v5817_v19 = vrot.slane %v4121_v48, 2  ;;  %v4154_v63 = vunpack.c.l.b16 %v1346_v0 }
  0x74   : > { %v1771_v60 = vsel %vm1611_vm7, %v5816_v18, %v1769_v15  ;;  %v4156_v25 = vunpack.c.l.b16 %v1347_v29  ;;  %v4158_v58 = vunpack.c.l.b16 %v1348_v43  ;;  %v1353_v28 = vpack.c.bf16 %v637_v57, %v637_v57  ;;  %v365_v57 = vld [vmem:[#allocation2 + $0x18] sm:$0xff] }
  0x75   : > { %v4152_v3 = vsel %vm1614_vm8, %v5817_v19, %v1771_v60  ;;  %v4162_v16 = vunpack.c.l.b16 %v1349_v47  ;;  %v4164_v15 = vunpack.c.l.b16 %v1350_v42  ;;  %v4166_v52 = vunpack.c.l.b16 %v1351_v46 }
  0x76   : > { %5818 = vst [vmem:[#allocation38_spill] sm:$0xff] %v4156_v25  ;;  %5819 = vst [vmem:[#allocation39_spill] sm:$0xff] %v4158_v58  ;;  %v1831_v38 = vpack.c.b16 %v4152_v3, %v4042_v23  ;;  %v4168_v54 = vunpack.c.l.b16 %v1352_v37  ;;  %v1644_v60 = vrot.slane %v4107_v11, 7  ;;  %v1646_v0 = vrot.slane %v4109_v53, 6 }
  0x77   : > { %5820 = vst [vmem:[#allocation40_spill] sm:$0xff] %v4162_v16  ;;  %5821 = vst [vmem:[#allocation41_spill] sm:$0xff] %v4164_v15  ;;  %v4173_v13 = vunpack.c.l.b16 %v1353_v28  ;;  %v1648_v43 = vrot.slane %v4118_v24, 5  ;;  %v1650_v29 = vrot.slane %v4112_v12, 4  ;;  %v1652_v47 = vrot.slane %v4114_v14, 3  ;;  %v372_v12 = vld [vmem:[#allocation2 + $0x50] sm:$0xff] }
  0x78   : > { %5822 = vst [vmem:[#allocation42_spill] sm:$0xff] %v4166_v52  ;;  %5823 = vst [vmem:[#allocation43_spill] sm:$0xff] %v4168_v54  ;;  %1836 = vrot.lane.b32.xlu0 %v1831_v38, %s3541_s15  ;;  %v1645_v42 = vsel %vm1596_vm2, %v1644_v60, %v1555_v17  ;;  %v1654_v46 = vrot.slane %v4116_v20, 2  ;;  %v1656_v37 = vrot.slane %v4121_v48, 1  ;;  %v1658_v18 = vrot.slane %v4156_v25, 7 }
  0x79   : > { %5824 = vst [vmem:[#allocation44_spill] sm:$0xff] %v4173_v13  ;;  %v1647_v19 = vsel %vm1599_vm3, %v1646_v0, %v1645_v42  ;;  %v1660_v38 = vrot.slane %v4158_v58, 6  ;;  %v1662_v28 = vrot.slane %v4162_v16, 5  ;;  %v1664_v45 = vrot.slane %v4164_v15, 4 }
  0x7a   : > { %v1649_v36 = vsel %vm1602_vm4, %v1648_v43, %v1647_v19  ;;  %v1659_v17 = vsel %vm1596_vm2, %v1658_v18, %v4154_v63  ;;  %v1666_v60 = vrot.slane %v4166_v52, 3  ;;  %v1668_v35 = vrot.slane %v4168_v54, 2 }
  0x7b   : > { %v1651_v48 = vsel %vm1605_vm5, %v1650_v29, %v1649_v36  ;;  %v1661_v0 = vsel %vm1599_vm3, %v1660_v38, %v1659_v17  ;;  %v1670_v42 = vrot.slane %v4173_v13, 1  ;;  %v914_v34 = vcombine.high %v365_v57, %v365_v57 }
  0x7c   : > { %v1653_v20 = vsel %vm1608_vm6, %v1652_v47, %v1651_v48  ;;  %v1663_v31 = vsel %vm1602_vm4, %v1662_v28, %v1661_v0  ;;  %v921_v43 = vrot.slane %v365_v57, %v3724_v10  ;;  %v931_v19 = vcombine.high %v366_v44, %v366_v44 }
  0x7d   : > { %v1655_v18 = vsel %vm1611_vm7, %v1654_v46, %v1653_v20  ;;  %v1665_v14 = vsel %vm1605_vm5, %v1664_v45, %v1663_v31  ;;  %v928_v36 = vrot.slane %v914_v34, %v3724_v10  ;;  %v938_v29 = vrot.slane %v366_v44, %v3724_v10 }
  0x7e   : > { %v4202_v38 = vsel %vm1614_vm8, %v1656_v37, %v1655_v18  ;;  %v1667_v48 = vsel %vm1608_vm6, %v1666_v60, %v1665_v14  ;;  %v929_v47 = vcombine.high %v921_v43, %v921_v43  ;;  %v945_v28 = vrot.slane %v931_v19, %v3724_v10 }
  0x7f   : > { %5825 = vst [vmem:[#allocation45_spill] sm:$0xff] %v4202_v38  ;;  %v1669_v57 = vsel %vm1611_vm7, %v1668_v35, %v1667_v48  ;;  %v930_v17 = vcombine.high %v928_v36, %v928_v36  ;;  %v946_v0 = vcombine.high %v938_v29, %v938_v29  ;;  %v955_v20 = vcombine.high %v371_v30, %v371_v30 }
  0x80   : > { %v4208_v31 = vsel %vm1614_vm8, %v1670_v42, %v1669_v57  ;;  %v947_v45 = vcombine.high %v945_v28, %v945_v28  ;;  %v962_v34 = vrot.slane %v371_v30, %v3724_v10  ;;  %v972_v44 = vcombine.high %v372_v12, %v372_v12 }
  0x81   : > { %5826 = vst [vmem:[#allocation46_spill] sm:$0xff] %v4208_v31  ;;  %v2433_v46 = vpack.c.b16 %v4208_v31, %v4202_v38  ;;  %v969_v14 = vrot.slane %v955_v20, %v3724_v10  ;;  %v979_v37 = vrot.slane %v372_v12, %v3724_v10  ;;  %v1386_v60 = vpack.c.bf16 %v921_v43, %v921_v43 }
  0x82   : > { %v970_v19 = vcombine.high %v962_v34, %v962_v34  ;;  %v986_v35 = vrot.slane %v972_v44, %v3724_v10  ;;  %v1387_v18 = vpack.c.bf16 %v929_v47, %v929_v47  ;;  %v1388_v48 = vpack.c.bf16 %v928_v36, %v928_v36 }
  0x83   : > { %2438 = vrot.lane.b32.xlu1 %v2433_v46, %s3543_s17  ;;  %v971_v42 = vcombine.high %v969_v14, %v969_v14  ;;  %v987_v57 = vcombine.high %v979_v37, %v979_v37  ;;  %v1389_v30 = vpack.c.bf16 %v930_v17, %v930_v17  ;;  %v1390_v24 = vpack.c.bf16 %v938_v29, %v938_v29 }
  0x84   : > { %v988_v53 = vcombine.high %v986_v35, %v986_v35  ;;  %v1391_v11 = vpack.c.bf16 %v946_v0, %v946_v0  ;;  %v1392_v31 = vpack.c.bf16 %v945_v28, %v945_v28  ;;  %v1393_v21 = vpack.c.bf16 %v947_v45, %v947_v45 }
  0x85   : > { %v1394_v20 = vpack.c.bf16 %v962_v34, %v962_v34  ;;  %v1395_v23 = vpack.c.bf16 %v970_v19, %v970_v19  ;;  %v1396_v12 = vpack.c.bf16 %v969_v14, %v969_v14  ;;  %v1397_v43 = vpack.c.bf16 %v971_v42, %v971_v42 }
  0x86   : > { %v1398_v38 = vpack.c.bf16 %v979_v37, %v979_v37  ;;  %v1399_v8 = vpack.c.bf16 %v987_v57, %v987_v57  ;;  %v1400_v44 = vpack.c.bf16 %v986_v35, %v986_v35  ;;  %v1401_v47 = vpack.c.bf16 %v988_v53, %v988_v53 }
  0x87   : > { %v4217_v36 = vunpack.c.l.b16 %v1386_v60  ;;  %v4219_v61 = vunpack.c.l.b16 %v1387_v18  ;;  %v4221_v46 = vunpack.c.l.b16 %v1388_v48  ;;  %v4223_v17 = vunpack.c.l.b16 %v1389_v30 }
  0x88   : > { %v4225_v29 = vunpack.c.l.b16 %v1390_v24  ;;  %v4227_v28 = vunpack.c.l.b16 %v1391_v11  ;;  %v4229_v0 = vunpack.c.l.b16 %v1392_v31  ;;  %v4231_v45 = vunpack.c.l.b16 %v1393_v21 }
  0x89   : > { %v4233_v34 = vunpack.c.l.b16 %v1394_v20  ;;  %v4235_v14 = vunpack.c.l.b16 %v1395_v23  ;;  %v4237_v53 = vunpack.c.l.b16 %v1396_v12  ;;  %v4239_v37 = vunpack.c.l.b16 %v1397_v43 }
  0x8a   : > { %v4241_v60 = vunpack.c.l.b16 %v1398_v38  ;;  %v4243_v19 = vunpack.c.l.b16 %v1399_v8  ;;  %v4245_v24 = vunpack.c.l.b16 %v1400_v44  ;;  %v4247_v11 = vunpack.c.l.b16 %v1401_v47 }
  0x8b   : > { %v2062_v31 = vrot.slane %v4219_v61, 7  ;;  %v2064_v21 = vrot.slane %v4221_v46, 6  ;;  %v2066_v35 = vrot.slane %v4223_v17, 5  ;;  %v2068_v23 = vrot.slane %v4225_v29, 4 }
  0x8c   : > { %v2070_v18 = vrot.slane %v4227_v28, 3  ;;  %v2072_v48 = vrot.slane %v4229_v0, 2  ;;  %v2074_v38 = vrot.slane %v4231_v45, 1  ;;  %v2076_v8 = vrot.slane %v4235_v14, 7 }
  0x8d   : > { %v2063_v42 = vsel %vm1596_vm2, %v2062_v31, %v4217_v36  ;;  %v2078_v57 = vrot.slane %v4237_v53, 6  ;;  %v2080_v30 = vrot.slane %v4239_v37, 5  ;;  %v2082_v20 = vrot.slane %v4241_v60, 4 }
  0x8e   : > { %v2065_v12 = vsel %vm1599_vm3, %v2064_v21, %v2063_v42  ;;  %v2077_v43 = vsel %vm1596_vm2, %v2076_v8, %v4233_v34  ;;  %v2084_v44 = vrot.slane %v4243_v19, 3  ;;  %v2086_v47 = vrot.slane %v4245_v24, 2 }
  0x8f   : > { %v2067_v40 = vsel %vm1602_vm4, %v2066_v35, %v2065_v12  ;;  %v2079_v9 = vsel %vm1599_vm3, %v2078_v57, %v2077_v43  ;;  %v2088_v31 = vrot.slane %v4247_v11, 1  ;;  %v1774_v7 = vrot.slane %v4154_v63, 1  ;;  %v281_v12 = vld [vmem:[%s3715_s13 + $0xf0] sm:$0xff] }
  0x90   : > { %v2069_v6 = vsel %vm1605_vm5, %v2068_v23, %v2067_v40  ;;  %v2081_v5 = vsel %vm1602_vm4, %v2080_v30, %v2079_v9  ;;  %v5716_v21 = vrot.slane %v4158_v58, 7  ;;  %v5715_v8 = vrot.slane %v4162_v16, 6  ;;  %360 = vst.msk [vmem:[#allocation2 + $0x181] sm:$0xff] %vm283_vm0, %v281_v12  ;;  %v282_v12 = vld [vmem:[%s3715_s13 + $0xf8] sm:$0xff] }
  0x91   : > { %v2071_v42 = vsel %vm1608_vm6, %v2070_v18, %v2069_v6  ;;  %v2083_v4 = vsel %vm1605_vm5, %v2082_v20, %v2081_v5  ;;  %v1775_v35 = vsel %vm1596_vm2, %v4156_v25, %v1774_v7  ;;  %v5714_v57 = vrot.slane %v4164_v15, 5  ;;  %361 = vst.msk [vmem:[#allocation2 + $0x189] sm:$0xff] %vm283_vm0, %v282_v12 }
  0x92   : > { %v2073_v63 = vsel %vm1611_vm7, %v2072_v48, %v2071_v42  ;;  %v2085_v40 = vsel %vm1608_vm6, %v2084_v44, %v2083_v4  ;;  %v1777_v9 = vsel %vm1599_vm3, %v5716_v21, %v1775_v35  ;;  %v5713_v23 = vrot.slane %v4166_v52, 4 }
  0x93   : > { %v2075_v6 = vsel %vm1614_vm8, %v2074_v38, %v2073_v63  ;;  %v2087_v18 = vsel %vm1611_vm7, %v2086_v47, %v2085_v40  ;;  %v1779_v5 = vsel %vm1602_vm4, %v5715_v8, %v1777_v9  ;;  %v5712_v7 = vrot.slane %v4168_v54, 3 }
  0x94   : > { %v2089_v48 = vsel %vm1614_vm8, %v2088_v31, %v2087_v18  ;;  %v1781_v4 = vsel %vm1605_vm5, %v5714_v57, %v1779_v5  ;;  %v5711_v30 = vrot.slane %v4173_v13, 2  ;;  %v2186_v20 = vrot.slane %v4217_v36, 1  ;;  %v405_v13 = vld [vmem:[#allocation2 + $0x158] sm:$0xff] }
  0x95   : > { %v2174_v38 = vpack.c.b16 %v2089_v48, %v2075_v6  ;;  %v1783_v43 = vsel %vm1608_vm6, %v5713_v23, %v1781_v4  ;;  %v5730_v44 = vrot.slane %v4221_v46, 7  ;;  %v5725_v47 = vrot.slane %v4223_v17, 6 }
  0x96   : > { %v1785_v31 = vsel %vm1611_vm7, %v5712_v7, %v1783_v43  ;;  %v2187_v36 = vsel %vm1596_vm2, %v4219_v61, %v2186_v20  ;;  %v5721_v42 = vrot.slane %v4225_v29, 5  ;;  %v5719_v35 = vrot.slane %v4227_v28, 4  ;;  %v392_v20 = vld [vmem:[#allocation2 + $0xf0] sm:$0xff] }
  0x97   : > { %2178 = vrot.lane.b32.xlu0 %v2174_v38, %s3540_s14  ;;  %v4316_v63 = vsel %vm1614_vm8, %v5711_v30, %v1785_v31  ;;  %v2189_v40 = vsel %vm1599_vm3, %v5730_v44, %v2187_v36  ;;  %v5717_v9 = vrot.slane %v4229_v0, 3  ;;  %v5718_v6 = vrot.slane %v4231_v45, 2  ;;  %v393_v36 = vld [vmem:[#allocation2 + $0xf8] sm:$0xff] }
  0x98   : > { %v2459_v18 = vpack.c.b16 %v4316_v63, %v4152_v3  ;;  %v2191_v5 = vsel %vm1602_vm4, %v5725_v47, %v2189_v40  ;;  %v2200_v48 = vrot.slane %v4233_v34, 1  ;;  %v5723_v4 = vrot.slane %v4237_v53, 7 }
  0x99   : > { %v2193_v38 = vsel %vm1605_vm5, %v5721_v42, %v2191_v5  ;;  %v5720_v43 = vrot.slane %v4239_v37, 6  ;;  %v5722_v31 = vrot.slane %v4241_v60, 5  ;;  %v5724_v3 = vrot.slane %v4243_v19, 4 }
  0x9a   : > { %2464 = vrot.lane.b32.xlu1 %v2459_v18, %s3544_s18  ;;  %v2195_v34 = vsel %vm1608_vm6, %v5719_v35, %v2193_v38  ;;  %v2201_v40 = vsel %vm1596_vm2, %v4235_v14, %v2200_v48  ;;  %v5728_v5 = vrot.slane %v4245_v24, 3  ;;  %v5726_v30 = vrot.slane %v4247_v11, 2 }
  0x9b   : > { %v2197_v7 = vsel %vm1611_vm7, %v5717_v9, %v2195_v34  ;;  %v2203_v12 = vsel %vm1599_vm3, %v5723_v4, %v2201_v40  ;;  %v645_v18 = vcombine.high %v392_v20, %v392_v20  ;;  %v652_v23 = vrot.slane %v392_v20, %v3724_v10 }
  0x9c   : > { %v2199_v38 = vsel %vm1614_vm8, %v5718_v6, %v2197_v7  ;;  %v2205_v48 = vsel %vm1602_vm4, %v5720_v43, %v2203_v12  ;;  %v662_v57 = vcombine.high %v393_v36, %v393_v36  ;;  %v669_v8 = vrot.slane %v393_v36, %v3724_v10 }
  0x9d   : > { %v2207_v34 = vsel %vm1605_vm5, %v5722_v31, %v2205_v48  ;;  %v659_v40 = vrot.slane %v645_v18, %v3724_v10  ;;  %v660_v21 = vcombine.high %v652_v23, %v652_v23  ;;  %v1354_v9 = vpack.c.bf16 %v652_v23, %v652_v23 }
  0x9e   : > { %v2209_v20 = vsel %vm1608_vm6, %v5724_v3, %v2207_v34  ;;  %v676_v7 = vrot.slane %v662_v57, %v3724_v10  ;;  %v677_v6 = vcombine.high %v669_v8, %v669_v8  ;;  %v1358_v35 = vpack.c.bf16 %v669_v8, %v669_v8 }
  0x9f   : > { %v2211_v36 = vsel %vm1611_vm7, %v5728_v5, %v2209_v20  ;;  %v661_v12 = vcombine.high %v659_v40, %v659_v40  ;;  %v1355_v43 = vpack.c.bf16 %v660_v21, %v660_v21  ;;  %v1356_v42 = vpack.c.bf16 %v659_v40, %v659_v40 }
  0xa0   : > { %v2213_v18 = vsel %vm1614_vm8, %v5726_v30, %v2211_v36  ;;  %v678_v23 = vcombine.high %v676_v7, %v676_v7  ;;  %v1359_v48 = vpack.c.bf16 %v677_v6, %v677_v6  ;;  %v1360_v31 = vpack.c.bf16 %v676_v7, %v676_v7 }
  0xa1   : > { %v2298_v4 = vpack.c.b16 %v2213_v18, %v2199_v38  ;;  %v1357_v34 = vpack.c.bf16 %v661_v12, %v661_v12  ;;  %v4374_v3 = vunpack.c.l.b16 %v1354_v9  ;;  %v4376_v57 = vunpack.c.l.b16 %v1355_v43 }
  0xa2   : > { %v1361_v8 = vpack.c.bf16 %v678_v23, %v678_v23  ;;  %v4378_v47 = vunpack.c.l.b16 %v1356_v42  ;;  %v4380_v20 = vunpack.c.l.b16 %v1358_v35  ;;  %v4382_v21 = vunpack.c.l.b16 %v1359_v48 }
  0xa3   : > { %5827 = vst [vmem:[#allocation47_spill] sm:$0xff] %v4374_v3  ;;  %5828 = vst [vmem:[#allocation48_spill] sm:$0xff] %v4376_v57  ;;  %2302 = vrot.lane.b32.xlu0 %v2298_v4, %s3542_s16  ;;  %v4385_v40 = vunpack.c.l.b16 %v1357_v34  ;;  %v4387_v36 = vunpack.c.l.b16 %v1360_v31  ;;  %v1788_v6 = vrot.slane %v4374_v3, 1  ;;  %v1595_v9 = vrot.slane %v3883_v22, 7 }
  0xa4   : > { %5829 = vst [vmem:[#allocation49_spill] sm:$0xff] %v4378_v47  ;;  %5830 = vst [vmem:[#allocation50_spill] sm:$0xff] %v4380_v20  ;;  %v4391_v38 = vunpack.c.l.b16 %v1361_v8  ;;  %v5727_v43 = vrot.slane %v4378_v47, 7  ;;  %v5734_v42 = vrot.slane %v4380_v20, 5  ;;  %v5732_v35 = vrot.slane %v4382_v21, 4  ;;  %v5851_v20 = vld [vmem:[#allocation28_spill] sm:$0xff] }
  0xa5   : > { %5831 = vst [vmem:[#allocation51_spill] sm:$0xff] %v4382_v21  ;;  %5832 = vst [vmem:[#allocation52_spill] sm:$0xff] %v4385_v40  ;;  %v1789_v7 = vsel %vm1596_vm2, %v4376_v57, %v1788_v6  ;;  %v5729_v4 = vrot.slane %v4385_v40, 6  ;;  %v5731_v31 = vrot.slane %v4387_v36, 3  ;;  %v1597_v12 = vsel %vm1596_vm2, %v1595_v9, %v3790_v51 }
  0xa6   : > { %5833 = vst [vmem:[#allocation53_spill] sm:$0xff] %v4387_v36  ;;  %5834 = vst [vmem:[#allocation54_spill] sm:$0xff] %v4391_v38  ;;  %v1791_v18 = vsel %vm1599_vm3, %v5727_v43, %v1789_v7  ;;  %v5733_v23 = vrot.slane %v4391_v38, 2  ;;  %v5835_v48 = vrot.slane %v3888_v55, 6  ;;  %v1616_v8 = vrot.slane %v3906_v1, 7  ;;  %v5847_v38 = vld [vmem:[#allocation26_spill] sm:$0xff] }
  0xa7   : > { %v1793_v6 = vsel %vm1602_vm4, %v5729_v4, %v1791_v18  ;;  %v5836_v30 = vrot.slane %v3890_v56, 5  ;;  %v1618_v9 = vrot.slane %v3908_v32, 6  ;;  %v1620_v7 = vrot.slane %v3910_v50, 5  ;;  %v404_v36 = vld [vmem:[#allocation2 + $0x150] sm:$0xff] }
  0xa8   : > { %v1600_v34 = vsel %vm1599_vm3, %v5835_v48, %v1597_v12  ;;  %v1795_v43 = vsel %vm1605_vm5, %v5734_v42, %v1793_v6  ;;  %v5837_v12 = vrot.slane %v3774_v41, 4  ;;  %v1617_v5 = vsel %vm1596_vm2, %v1616_v8, %v3904_v49  ;;  %v5845_v42 = vld [vmem:[#allocation24_spill] sm:$0xff] }
  0xa9   : > { %v1603_v51 = vsel %vm1602_vm4, %v5836_v30, %v1600_v34  ;;  %v1622_v18 = vrot.slane %v3912_v27, 4  ;;  %v1797_v30 = vsel %vm1608_vm6, %v5732_v35, %v1795_v43  ;;  %v5838_v34 = vrot.slane %v3895_v59, 3 }
  0xaa   : > { %v1606_v48 = vsel %vm1605_vm5, %v5837_v12, %v1603_v51  ;;  %v1619_v44 = vsel %vm1599_vm3, %v1618_v9, %v1617_v5  ;;  %v1624_v6 = vrot.slane %v3914_v39, 3  ;;  %v1799_v51 = vsel %vm1611_vm7, %v5731_v31, %v1797_v30  ;;  %v5844_v31 = vld [vmem:[#allocation23_spill] sm:$0xff] }
  0xab   : > { %v1609_v4 = vsel %vm1608_vm6, %v5838_v34, %v1606_v48  ;;  %v5839_v49 = vrot.slane %v3900_v62, 2  ;;  %v1621_v12 = vsel %vm1602_vm4, %v1620_v7, %v1619_v44  ;;  %v1626_v43 = vrot.slane %v3916_v2, 2  ;;  %v5843_v7 = vld [vmem:[#allocation22_spill] sm:$0xff] }
  0xac   : > { %v4446_v48 = vsel %vm1614_vm8, %v5733_v23, %v1799_v51  ;;  %v5841_v5 = vrot.slane %v3902_v33, 1  ;;  %v1623_v30 = vsel %vm1605_vm5, %v1622_v18, %v1621_v12  ;;  %v1628_v34 = vrot.slane %v3918_v26, 1  ;;  %v398_v51 = vld [vmem:[#allocation2 + $0x120] sm:$0xff]  ;;  %v399_v12 = vld [vmem:[#allocation2 + $0x128] sm:$0xff] }
  0xad   : > { %v1612_v8 = vsel %vm1611_vm7, %v5839_v49, %v1609_v4  ;;  %5840 = vst [vmem:[#allocation55_spill] sm:$0xff] %v4446_v48  ;;  %v1832_v4 = vpack.c.b16 %v4446_v48, %v4316_v63  ;;  %v1625_v44 = vsel %vm1608_vm6, %v1624_v6, %v1623_v30  ;;  %v1630_v49 = vrot.slane %v5843_v7, 7  ;;  %v5849_v6 = vld [vmem:[#allocation21_spill] sm:$0xff]  ;;  %v5850_v48 = vld [vmem:[#allocation27_spill] sm:$0xff] }
  0xae   : > { %v4451_v9 = vsel %vm1614_vm8, %v5841_v5, %v1612_v8  ;;  %v1632_v35 = vrot.slane %v5844_v31, 6  ;;  %v1627_v23 = vsel %vm1611_vm7, %v1626_v43, %v1625_v44  ;;  %v1634_v3 = vrot.slane %v5845_v42, 5  ;;  %v5846_v8 = vld [vmem:[#allocation25_spill] sm:$0xff] }
  0xaf   : > { %5842 = vst [vmem:[#allocation56_spill] sm:$0xff] %v4451_v9  ;;  %v1636_v5 = vrot.slane %v5846_v8, 4  ;;  %v1638_v18 = vrot.slane %v5847_v38, 3  ;;  %1838 = vrot.lane.b32.xlu1 %v1832_v4, %s3541_s15  ;;  %v4466_v63 = vsel %vm1614_vm8, %v1628_v34, %v1627_v23  ;;  %v1631_v30 = vsel %vm1596_vm2, %v1630_v49, %v5849_v6 }
  0xb0   : > { %5848 = vst [vmem:[#allocation22_spill] sm:$0xff] %v4466_v63  ;;  %v1640_v21 = vrot.slane %v5850_v48, 2  ;;  %v1642_v43 = vrot.slane %v5851_v20, 1  ;;  %v1633_v44 = vsel %vm1599_vm3, %v1632_v35, %v1631_v30  ;;  %v686_v47 = vcombine.high %v398_v51, %v398_v51 }
  0xb1   : > { %v693_v57 = vrot.slane %v398_v51, %v3724_v10  ;;  %v1635_v4 = vsel %vm1602_vm4, %v1634_v3, %v1633_v44  ;;  %v703_v23 = vcombine.high %v399_v12, %v399_v12  ;;  %v710_v34 = vrot.slane %v399_v12, %v3724_v10 }
  0xb2   : > { %v727_v54 = vcombine.high %v404_v36, %v404_v36  ;;  %v1637_v49 = vsel %vm1605_vm5, %v1636_v5, %v1635_v4  ;;  %v700_v6 = vrot.slane %v686_v47, %v3724_v10  ;;  %v734_v35 = vrot.slane %v404_v36, %v3724_v10 }
  0xb3   : > { %v701_v52 = vcombine.high %v693_v57, %v693_v57  ;;  %v1639_v30 = vsel %vm1608_vm6, %v1638_v18, %v1637_v49  ;;  %v717_v40 = vrot.slane %v703_v23, %v3724_v10  ;;  %v718_v9 = vcombine.high %v710_v34, %v710_v34 }
  0xb4   : > { %v741_v51 = vrot.slane %v727_v54, %v3724_v10  ;;  %v1641_v3 = vsel %vm1611_vm7, %v1640_v21, %v1639_v30  ;;  %v702_v44 = vcombine.high %v700_v6, %v700_v6  ;;  %v742_v15 = vcombine.high %v734_v35, %v734_v35 }
  0xb5   : > { %v744_v12 = vcombine.high %v405_v13, %v405_v13  ;;  %v4486_v16 = vsel %vm1614_vm8, %v1642_v43, %v1641_v3  ;;  %v719_v5 = vcombine.high %v717_v40, %v717_v40  ;;  %v751_v4 = vrot.slane %v405_v13, %v3724_v10 }
  0xb6   : > { %5852 = vst [vmem:[#allocation23_spill] sm:$0xff] %v4486_v16  ;;  %v743_v47 = vcombine.high %v741_v51, %v741_v51  ;;  %v2432_v23 = vpack.c.b16 %v4486_v16, %v4466_v63  ;;  %v1362_v49 = vpack.c.bf16 %v693_v57, %v693_v57  ;;  %v1363_v30 = vpack.c.bf16 %v701_v52, %v701_v52 }
  0xb7   : > { %v758_v54 = vrot.slane %v744_v12, %v3724_v10  ;;  %v759_v21 = vcombine.high %v751_v4, %v751_v4  ;;  %v1364_v58 = vpack.c.bf16 %v700_v6, %v700_v6  ;;  %v1365_v25 = vpack.c.bf16 %v702_v44, %v702_v44 }
  0xb8   : > { %2436 = vrot.lane.b32.xlu0 %v2432_v23, %s3543_s17  ;;  %v1366_v3 = vpack.c.bf16 %v710_v34, %v710_v34  ;;  %v1367_v20 = vpack.c.bf16 %v718_v9, %v718_v9  ;;  %v1368_v48 = vpack.c.bf16 %v717_v40, %v717_v40  ;;  %v1369_v13 = vpack.c.bf16 %v719_v5, %v719_v5 }
  0xb9   : > { %v760_v43 = vcombine.high %v758_v54, %v758_v54  ;;  %v1370_v38 = vpack.c.bf16 %v734_v35, %v734_v35  ;;  %v1371_v8 = vpack.c.bf16 %v742_v15, %v742_v15  ;;  %v1372_v18 = vpack.c.bf16 %v741_v51, %v741_v51  ;;  %v5861_v15 = vld [vmem:[#allocation30_spill] sm:$0xff]  ;;  %v5862_v35 = vld [vmem:[#allocation29_spill] sm:$0xff] }
  0xba   : > { %v1373_v36 = vpack.c.bf16 %v743_v47, %v743_v47  ;;  %v1374_v42 = vpack.c.bf16 %v751_v4, %v751_v4  ;;  %v1375_v16 = vpack.c.bf16 %v759_v21, %v759_v21  ;;  %v1376_v63 = vpack.c.bf16 %v758_v54, %v758_v54 }
  0xbb   : > { %v1377_v12 = vpack.c.bf16 %v760_v43, %v760_v43  ;;  %v4495_v57 = vunpack.c.l.b16 %v1362_v49  ;;  %v4497_v52 = vunpack.c.l.b16 %v1363_v30  ;;  %v4499_v6 = vunpack.c.l.b16 %v1364_v58 }
  0xbc   : > { %v4501_v44 = vunpack.c.l.b16 %v1365_v25  ;;  %v4503_v34 = vunpack.c.l.b16 %v1366_v3  ;;  %v4505_v40 = vunpack.c.l.b16 %v1367_v20  ;;  %v4507_v9 = vunpack.c.l.b16 %v1368_v48 }
  0xbd   : > { %5854 = vst [vmem:[#allocation21_spill] sm:$0xff] %v4495_v57  ;;  %5855 = vst [vmem:[#allocation57_spill] sm:$0xff] %v4497_v52  ;;  %v5863_v51 = vpack.c.b16 %v5861_v15, %v5862_v35  ;;  %v4513_v5 = vunpack.c.l.b16 %v1369_v13  ;;  %v4515_v47 = vunpack.c.l.b16 %v1370_v38  ;;  %v4517_v4 = vunpack.c.l.b16 %v1371_v8  ;;  %v3287_v8 = vld.sshfl [vmem:[#allocation2 + $0x40] sm:$0x3 pattern:$0x76325410] }
  0xbe   : > { %5856 = vst [vmem:[#allocation58_spill] sm:$0xff] %v4499_v6  ;;  %5857 = vst [vmem:[#allocation59_spill] sm:$0xff] %v4501_v44  ;;  %v4519_v58 = vunpack.c.l.b16 %v1372_v18  ;;  %v4521_v25 = vunpack.c.l.b16 %v1373_v36  ;;  %v4523_v23 = vunpack.c.l.b16 %v1374_v42  ;;  %v4525_v20 = vunpack.c.l.b16 %v1375_v16 }
  0xbf   : > { %5858 = vst [vmem:[#allocation60_spill] sm:$0xff] %v4503_v34  ;;  %5859 = vst [vmem:[#allocation61_spill] sm:$0xff] %v4505_v40  ;;  %2462 = vrot.lane.b32.xlu0 %v5863_v51, %s3544_s18  ;;  %v4527_v48 = vunpack.c.l.b16 %v1376_v63  ;;  %v4529_v54 = vunpack.c.l.b16 %v1377_v12  ;;  %v1802_v49 = vrot.slane %v4495_v57, 1  ;;  %v5761_v21 = vrot.slane %v4499_v6, 7 }
  0xc0   : > { %5860 = vst [vmem:[#allocation62_spill] sm:$0xff] %v4507_v9  ;;  %5864 = vst [vmem:[#allocation30_spill] sm:$0xff] %v4513_v5  ;;  %v5762_v38 = vrot.slane %v4501_v44, 6  ;;  %v1808_v18 = vrot.slane %v4503_v34, 5  ;;  %v5764_v36 = vrot.slane %v4505_v40, 4  ;;  %v1812_v42 = vrot.slane %v4507_v9, 3 }
  0xc1   : > { %v1803_v63 = vsel %vm1596_vm2, %v4497_v52, %v1802_v49  ;;  %v1816_v30 = vrot.slane %v4515_v47, 1  ;;  %v1818_v43 = vrot.slane %v4519_v58, 7  ;;  %v5763_v3 = vrot.slane %v4521_v25, 6 }
  0xc2   : > { %v1805_v13 = vsel %vm1599_vm3, %v5761_v21, %v1803_v63  ;;  %v5765_v12 = vrot.slane %v4523_v23, 5  ;;  %v1828_v16 = vrot.slane %v4529_v54, 2  ;;  %v5865_v15 = vmov 0.0  }
  0xc3   : > { %v1807_v51 = vsel %vm1602_vm4, %v5762_v38, %v1805_v13  ;;  %v1817_v49 = vsel %vm1596_vm2, %v4517_v4, %v1816_v30  ;;  %287 = vst.msk [vmem:[#allocation2 + $0x10] sm:$0x3] %vm286_vm9, %v5865_v15  ;;  %v1379_v35 = vpack.c.bf16 %v3287_v8, %v3287_v8  ;;  %v5866_v13 = vrot.slane %v3888_v55, 7 }
  0xc4   : > { %v1809_v63 = vsel %vm1605_vm5, %v1808_v18, %v1807_v51  ;;  %v1819_v21 = vsel %vm1599_vm3, %v1818_v43, %v1817_v49  ;;  %311 = vst.msk [vmem:[#allocation2 + $0x11] sm:$0x1] %vm292_vm1, %v5865_v15  ;;  %v5867_v49 = vrot.slane %v3890_v56, 6  ;;  %v5868_v55 = vrot.slane %v3908_v32, 7 }
  0xc5   : > { %v1858_v38 = vsel %vm1596_vm2, %v5866_v13, %v3883_v22  ;;  %v1811_v30 = vsel %vm1608_vm6, %v5764_v36, %v1809_v63  ;;  %v1821_v51 = vsel %vm1602_vm4, %v5763_v3, %v1819_v21  ;;  %v1851_v13 = vunpack.c.l.b16 %v1379_v35  ;;  %v3295_v36 = vld.sshfl [vmem:[#allocation2 + $0x28] sm:$0x3 pattern:$0x76325410] }
  0xc6   : > { %v1859_v8 = vsel %vm1599_vm3, %v5867_v49, %v1858_v38  ;;  %v1866_v22 = vsel %vm1596_vm2, %v5868_v55, %v3906_v1  ;;  %v1813_v63 = vsel %vm1611_vm7, %v1812_v42, %v1811_v30  ;;  %v1823_v21 = vsel %vm1605_vm5, %v5765_v12, %v1821_v51  ;;  %v3296_v51 = vld.sshfl [vmem:[#allocation2 + $0x58] sm:$0x3 pattern:$0x76325410] }
  0xc7   : > { %v5869_v3 = vrot.slane %v3774_v41, 5  ;;  %v5870_v38 = vrot.slane %v4513_v5, 2  ;;  %v5872_v1 = vrot.slane %v4525_v20, 4  ;;  %v5873_v30 = vrot.slane %v3895_v59, 4 }
  0xc8   : > { %v5874_v35 = vrot.slane %v3910_v50, 6  ;;  %v5877_v12 = vrot.slane %v3912_v27, 5  ;;  %v1872_v59 = vrot.slane %v1851_v13, 1  ;;  %vm2549_vm1 = vcmask 228352  }
  0xc9   : > { %v1860_v56 = vsel %vm1602_vm4, %v5869_v3, %v1859_v8  ;;  %v4593_v32 = vsel %vm1614_vm8, %v5870_v38, %v1813_v63  ;;  %v1825_v49 = vsel %vm1608_vm6, %v5872_v1, %v1823_v21  ;;  %v5875_v3 = vrot.slane %v4527_v48, 3 }
  0xca   : > { %5871 = vst [vmem:[#allocation29_spill] sm:$0xff] %v4593_v32  ;;  %v1861_v55 = vsel %vm1605_vm5, %v5873_v30, %v1860_v56  ;;  %v1867_v41 = vsel %vm1599_vm3, %v5874_v35, %v1866_v22  ;;  %v5876_v63 = vrot.slane %v3900_v62, 3  ;;  %v5879_v22 = vrot.slane %v3902_v33, 2 }
  0xcb   : > { %v1827_v8 = vsel %vm1611_vm7, %v5875_v3, %v1825_v49  ;;  %v1868_v21 = vsel %vm1602_vm4, %v5877_v12, %v1867_v41  ;;  %v5880_v1 = vrot.slane %v3914_v39, 4  ;;  %v1450_v49 = vpack.c.bf16 %v3295_v36, %v3295_v36  ;;  %v3288_v35 = vld.sshfl [vmem:[#allocation2 + $0x70] sm:$0x3 pattern:$0x76325410] }
  0xcc   : > { %v1862_v38 = vsel %vm1608_vm6, %v5876_v63, %v1861_v55  ;;  %v4616_v50 = vsel %vm1614_vm8, %v1828_v16, %v1827_v8  ;;  %v5881_v12 = vrot.slane %v3916_v2, 3  ;;  %v1451_v30 = vpack.c.bf16 %v3296_v51, %v3296_v51  ;;  %v3289_v63 = vld.sshfl [vmem:[#allocation2 + $0xa0] sm:$0x3 pattern:$0x76325410] }
  0xcd   : > { %5878 = vst [vmem:[#allocation63_spill] sm:$0xff] %v4616_v50  ;;  %v1863_v56 = vsel %vm1611_vm7, %v5879_v22, %v1862_v38  ;;  %v1869_v62 = vsel %vm1605_vm5, %v5880_v1, %v1868_v21  ;;  %v1833_v27 = vpack.c.b16 %v4616_v50, %v4593_v32  ;;  %v5882_v55 = vrot.slane %v4221_v46, 7  ;;  %v3286_v46 = vld.sshfl [vmem:[#allocation2 + $0x10] sm:$0x3 pattern:$0x76325410] }
  0xce   : > { %v1870_v13 = vsel %vm1608_vm6, %v5881_v12, %v1869_v62  ;;  %v5883_v41 = vrot.slane %v3918_v26, 2  ;;  %v2318_v3 = vunpack.c.l.b16 %v1450_v49  ;;  %v5884_v36 = vrot.slane %v4223_v17, 6  ;;  %v395_v50 = vld [vmem:[#allocation2 + $0x108] sm:$0xff] }
  0xcf   : > { %v2326_v33 = vsel %vm1596_vm2, %v5882_v55, %v4219_v61  ;;  %v5885_v2 = vrot.slane %v4237_v53, 7  ;;  %1840 = vrot.lane.b32.xlu1 %v1833_v27, %s3541_s15  ;;  %v2319_v38 = vunpack.c.l.b16 %v1451_v30  ;;  %v5886_v26 = vrot.slane %v4225_v29, 5  ;;  %s3548_s15 = smov 40  }
  0xd0   : > { %v1871_v39 = vsel %vm1611_vm7, %v5883_v41, %v1870_v13  ;;  %v2327_v8 = vsel %vm1599_vm3, %v5884_v36, %v2326_v33  ;;  %v5887_v17 = vrot.slane %v4239_v37, 6  ;;  %v1378_v1 = vpack.c.bf16 %v3286_v46, %v3286_v46 }
  0xd1   : > { %v2334_v51 = vsel %vm1596_vm2, %v5885_v2, %v4235_v14  ;;  %v1873_v61 = vsel %vm1614_vm8, %v1872_v59, %v1871_v39  ;;  %v2328_v21 = vsel %vm1602_vm4, %v5886_v26, %v2327_v8  ;;  %v5888_v53 = vrot.slane %v4227_v28, 4 }
  0xd2   : > { %v2335_v22 = vsel %vm1599_vm3, %v5887_v17, %v2334_v51  ;;  %v2332_v62 = vrot.slane %v2318_v3, 1  ;;  %v5889_v49 = vrot.slane %v4241_v60, 5  ;;  %v5890_v59 = vrot.slane %v4229_v0, 3 }
  0xd3   : > { %v2329_v14 = vsel %vm1605_vm5, %v5888_v53, %v2328_v21  ;;  %v5891_v12 = vrot.slane %v4243_v19, 4  ;;  %v2340_v13 = vrot.slane %v2319_v38, 1  ;;  %v1380_v30 = vpack.c.bf16 %v3288_v35, %v3288_v35  ;;  %v3297_v38 = vld.sshfl [vmem:[#allocation2 + $0x88] sm:$0x3 pattern:$0x76325410] }
  0xd4   : > { %v2336_v27 = vsel %vm1602_vm4, %v5889_v49, %v2335_v22  ;;  %v2330_v29 = vsel %vm1608_vm6, %v5890_v59, %v2329_v14  ;;  %v1850_v55 = vunpack.c.l.b16 %v1378_v1  ;;  %v5892_v28 = vrot.slane %v4231_v45, 2  ;;  %v5898_v21 = vld [vmem:[#allocation25_spill] sm:$0xff]  ;;  %v5900_v1 = vld [vmem:[#allocation31_spill] sm:$0xff]  ;;  %v5901_v53 = vld [vmem:[#allocation32_spill] sm:$0xff] }
  0xd5   : > { %v2337_v37 = vsel %vm1605_vm5, %v5891_v12, %v2336_v27  ;;  %v5893_v41 = vrot.slane %v4245_v24, 3  ;;  %v1381_v39 = vpack.c.bf16 %v3289_v63, %v3289_v63  ;;  %v5894_v3 = vrot.slane %v4247_v11, 2  ;;  %v5896_v24 = vld [vmem:[#allocation24_spill] sm:$0xff]  ;;  %v5903_v49 = vld [vmem:[#allocation26_spill] sm:$0xff] }
  0xd6   : > { %v2331_v33 = vsel %vm1611_vm7, %v5892_v28, %v2330_v29  ;;  %v1852_v36 = vunpack.c.l.b16 %v1380_v30  ;;  %v5895_v35 = vrot.slane %v5844_v31, 7  ;;  %v1864_v45 = vrot.slane %v1850_v55, 1  ;;  %v3298_v14 = vld.sshfl [vmem:[#allocation2 + $0xb8] sm:$0x3 pattern:$0x76325410] }
  0xd7   : > { %v2338_v60 = vsel %vm1608_vm6, %v5893_v41, %v2337_v37  ;;  %v2333_v0 = vsel %vm1614_vm8, %v2332_v62, %v2331_v33  ;;  %v1853_v51 = vunpack.c.l.b16 %v1381_v39  ;;  %v5897_v46 = vrot.slane %v5896_v24, 6  ;;  %v5905_v29 = vld [vmem:[#allocation36_spill] sm:$0xff]  ;;  %v5907_v55 = vld [vmem:[#allocation27_spill] sm:$0xff]  ;;  %v5909_v41 = vld [vmem:[#allocation33_spill] sm:$0xff] }
  0xd8   : > { %v2339_v19 = vsel %vm1611_vm7, %v5894_v3, %v2338_v60  ;;  %v1874_v8 = vsel %vm1596_vm2, %v5895_v35, %v5843_v7  ;;  %v5899_v11 = vrot.slane %v5898_v21, 5  ;;  %v1880_v22 = vrot.slane %v1852_v36, 1  ;;  %v5913_v36 = vld [vmem:[#allocation34_spill] sm:$0xff] }
  0xd9   : > { %v2341_v2 = vsel %vm1614_vm8, %v2340_v13, %v2339_v19  ;;  %v1875_v63 = vsel %vm1599_vm3, %v5897_v46, %v1874_v8  ;;  %v5902_v31 = vrot.slane %v5901_v53, 7  ;;  %v1865_v62 = vsel %vm1614_vm8, %v1864_v45, %v1863_v56 }
  0xda   : > { %v2390_v26 = vpack.c.b16 %v2341_v2, %v2333_v0  ;;  %v1876_v17 = vsel %vm1602_vm4, %v5899_v11, %v1875_v63  ;;  %v5904_v27 = vrot.slane %v5903_v49, 4  ;;  %v5906_v12 = vrot.slane %v5905_v29, 6  ;;  %v5911_v0 = vld [vmem:[#allocation28_spill] sm:$0xff]  ;;  %v5915_v2 = vld [vmem:[#allocation7_spill] sm:$0xff] }
  0xdb   : > { %v1882_v7 = vsel %vm1596_vm2, %v5902_v31, %v5900_v1  ;;  %v1888_v13 = vrot.slane %v1853_v51, 1  ;;  %v1922_v30 = vpack.c.b16 %v1873_v61, %v1865_v62  ;;  %v5908_v28 = vrot.slane %v5907_v55, 3  ;;  %v5916_v51 = vld [vmem:[#allocation8_spill] sm:$0xff]  ;;  %v5922_v31 = vld [vmem:[#allocation37_spill] sm:$0xff] }
  0xdc   : > { %v1877_v59 = vsel %vm1605_vm5, %v5904_v27, %v1876_v17  ;;  %v1883_v37 = vsel %vm1599_vm3, %v5906_v12, %v1882_v7  ;;  %2394 = vrot.lane.b32.xlu0 %v2390_v26, %s3545_s19  ;;  %v5910_v60 = vrot.slane %v5909_v41, 5  ;;  %v1452_v39 = vpack.c.bf16 %v3297_v38, %v3297_v38  ;;  %v5918_v38 = vld [vmem:[#allocation35_spill] sm:$0xff]  ;;  %v5920_v17 = vld [vmem:[#allocation9_spill] sm:$0xff]  ;;  %v5924_v27 = vld [vmem:[#allocation10_spill] sm:$0xff] }
  0xdd   : > { %v1878_v33 = vsel %vm1608_vm6, %v5908_v28, %v1877_v59  ;;  %v5912_v3 = vrot.slane %v5911_v0, 2  ;;  %v5914_v35 = vrot.slane %v5913_v36, 4  ;;  %v1453_v45 = vpack.c.bf16 %v3298_v14, %v3298_v14  ;;  %1926 = vrot.lane.b32.xlu1 %v1922_v30, %s3546_s20  ;;  %v5929_v41 = vld [vmem:[#allocation15_spill] sm:$0xff]  ;;  %v5931_v0 = vld [vmem:[#allocation12_spill] sm:$0xff] }
  0xde   : > { %v1884_v56 = vsel %vm1602_vm4, %v5910_v60, %v1883_v37  ;;  %v5917_v24 = vrot.slane %v5916_v51, 7  ;;  %v5919_v26 = vrot.slane %v5918_v38, 3  ;;  %v2320_v11 = vunpack.c.l.b16 %v1452_v39  ;;  %v5926_v37 = vld [vmem:[#allocation11_spill] sm:$0xff] }
  0xdf   : > { %v1879_v19 = vsel %vm1611_vm7, %v5912_v3, %v1878_v33  ;;  %v1885_v8 = vsel %vm1605_vm5, %v5914_v35, %v1884_v56  ;;  %v5921_v1 = vrot.slane %v5920_v17, 6  ;;  %v5923_v7 = vrot.slane %v5922_v31, 2  ;;  %v5928_v33 = vld [vmem:[#allocation14_spill] sm:$0xff] }
  0xe0   : > { %v2342_v46 = vsel %vm1596_vm2, %v5917_v24, %v5915_v2  ;;  %v1881_v63 = vsel %vm1614_vm8, %v1880_v22, %v1879_v19  ;;  %v1886_v21 = vsel %vm1608_vm6, %v5919_v26, %v1885_v8  ;;  %v2321_v49 = vunpack.c.l.b16 %v1453_v45  ;;  %v3290_v22 = vld.sshfl [vmem:[#allocation2 + $0xd0] sm:$0x3 pattern:$0x76325410]  ;;  %v5935_v2 = vld [vmem:[#allocation13_spill] sm:$0xff]  ;;  %v5942_v31 = vld [vmem:[#allocation18_spill] sm:$0xff] }
  0xe1   : > { %v2343_v53 = vsel %vm1599_vm3, %v5921_v1, %v2342_v46  ;;  %v1887_v14 = vsel %vm1611_vm7, %v5923_v7, %v1886_v21  ;;  %v2480_v62 = vpack.c.b16 %v1881_v63, %v1873_v61  ;;  %v5925_v59 = vrot.slane %v5924_v27, 5  ;;  %v3292_v39 = vld.sshfl [vmem:[#allocation2 + $0x130] sm:$0x3 pattern:$0x76325410]  ;;  %v5937_v46 = vld [vmem:[#allocation17_spill] sm:$0xff] }
  0xe2   : > { %v1889_v12 = vsel %vm1614_vm8, %v1888_v13, %v1887_v14  ;;  %v5927_v30 = vrot.slane %v5926_v37, 4  ;;  %v2348_v28 = vrot.slane %v2320_v11, 1  ;;  %v5930_v60 = vrot.slane %v5929_v41, 7  ;;  %v5933_v13 = vld [vmem:[#allocation16_spill] sm:$0xff]  ;;  %v5939_v21 = vld [vmem:[#allocation38_spill] sm:$0xff]  ;;  %v5940_v11 = vld [vmem:[#allocation39_spill] sm:$0xff] }
  0xe3   : > { %v2344_v29 = vsel %vm1602_vm4, %v5925_v59, %v2343_v53  ;;  %v1923_v61 = vpack.c.b16 %v1889_v12, %v1881_v63  ;;  %2484 = vrot.lane.b32.xlu0 %v2480_v62, %s3547_s26  ;;  %v5932_v3 = vrot.slane %v5931_v0, 3  ;;  %v5934_v36 = vrot.slane %v5933_v13, 6  ;;  %v3293_v45 = vld.sshfl [vmem:[#allocation2 + $0x160] sm:$0x3 pattern:$0x76325410] }
  0xe4   : > { %v2345_v55 = vsel %vm1605_vm5, %v5927_v30, %v2344_v29  ;;  %v2350_v56 = vsel %vm1596_vm2, %v5930_v60, %v5928_v33  ;;  %v2356_v8 = vrot.slane %v2321_v49, 1  ;;  %v5936_v51 = vrot.slane %v5935_v2, 2  ;;  %v5944_v62 = vld [vmem:[#allocation40_spill] sm:$0xff]  ;;  %v5946_v29 = vld [vmem:[#allocation19_spill] sm:$0xff]  ;;  %v5952_v0 = vld [vmem:[#allocation42_spill] sm:$0xff] }
  0xe5   : > { %v2346_v19 = vsel %vm1608_vm6, %v5932_v3, %v2345_v55  ;;  %v2351_v35 = vsel %vm1599_vm3, %v5934_v36, %v2350_v56  ;;  %v5938_v38 = vrot.slane %v5937_v46, 5  ;;  %v1382_v26 = vpack.c.bf16 %v3290_v22, %v3290_v22  ;;  %1928 = vrot.lane.b32.xlu1 %v1923_v61, %s3546_s20  ;;  %v5948_v55 = vld [vmem:[#allocation41_spill] sm:$0xff]  ;;  %v5955_v2 = vld [vmem:[#allocation43_spill] sm:$0xff] }
  0xe6   : > { %v2347_v24 = vsel %vm1611_vm7, %v5936_v51, %v2346_v19  ;;  %v5941_v17 = vrot.slane %v5940_v11, 7  ;;  %v5943_v7 = vrot.slane %v5942_v31, 4  ;;  %v5945_v49 = vrot.slane %v5944_v62, 6 }
  0xe7   : > { %v2352_v63 = vsel %vm1602_vm4, %v5938_v38, %v2351_v35  ;;  %v2349_v53 = vsel %vm1614_vm8, %v2348_v28, %v2347_v24  ;;  %v1384_v59 = vpack.c.bf16 %v3292_v39, %v3292_v39  ;;  %v5947_v22 = vrot.slane %v5946_v29, 3  ;;  %v5950_v28 = vld [vmem:[#allocation20_spill] sm:$0xff]  ;;  %v3291_v38 = vld.sshfl [vmem:[#allocation2 + $0x100] sm:$0x3 pattern:$0x76325410] }
  0xe8   : > { %v1890_v1 = vsel %vm1596_vm2, %v5941_v17, %v5939_v21  ;;  %v2353_v14 = vsel %vm1605_vm5, %v5943_v7, %v2352_v63  ;;  %v1854_v30 = vunpack.c.l.b16 %v1382_v26  ;;  %v5949_v33 = vrot.slane %v5948_v55, 5  ;;  %v5957_v26 = vld [vmem:[#allocation44_spill] sm:$0xff] }
  0xe9   : > { %v1891_v27 = vsel %vm1599_vm3, %v5945_v49, %v1890_v1  ;;  %v2354_v37 = vsel %vm1608_vm6, %v5947_v22, %v2353_v14  ;;  %v1385_v60 = vpack.c.bf16 %v3293_v45, %v3293_v45  ;;  %v5951_v56 = vrot.slane %v5950_v28, 2  ;;  %v401_v7 = vld [vmem:[#allocation2 + $0x138] sm:$0xff] }
  0xea   : > { %v1892_v41 = vsel %vm1602_vm4, %v5949_v33, %v1891_v27  ;;  %v5953_v3 = vrot.slane %v5952_v0, 4  ;;  %v1856_v13 = vunpack.c.l.b16 %v1384_v59  ;;  %v5954_v39 = vrot.slane %v4499_v6, 7  ;;  %v5963_v55 = vld [vmem:[#allocation48_spill] sm:$0xff]  ;;  %v5964_v33 = vld [vmem:[#allocation49_spill] sm:$0xff] }
  0xeb   : > { %v2355_v61 = vsel %vm1611_vm7, %v5951_v56, %v2354_v37  ;;  %v5956_v51 = vrot.slane %v5955_v2, 3  ;;  %v1896_v24 = vrot.slane %v1854_v30, 1  ;;  %v1857_v46 = vunpack.c.l.b16 %v1385_v60 }
  0xec   : > { %v1893_v19 = vsel %vm1605_vm5, %v5953_v3, %v1892_v41  ;;  %v1906_v36 = vsel %vm1596_vm2, %v5954_v39, %v4497_v52  ;;  %v2357_v35 = vsel %vm1614_vm8, %v2356_v8, %v2355_v61  ;;  %v5958_v21 = vrot.slane %v5957_v26, 2  ;;  %v5968_v3 = vld [vmem:[#allocation52_spill] sm:$0xff]  ;;  %v402_v39 = vld [vmem:[#allocation2 + $0x140] sm:$0xff] }
  0xed   : > { %v1894_v45 = vsel %vm1608_vm6, %v5956_v51, %v1893_v19  ;;  %v2391_v63 = vpack.c.b16 %v2357_v35, %v2349_v53  ;;  %v5959_v17 = vrot.slane %v4501_v44, 6  ;;  %v1912_v31 = vrot.slane %v1856_v13, 1  ;;  %v5972_v51 = vld [vmem:[#allocation50_spill] sm:$0xff] }
  0xee   : > { %v1895_v11 = vsel %vm1611_vm7, %v5958_v21, %v1894_v45  ;;  %v1914_v53 = vsel %vm1596_vm2, %v1818_v43, %v4517_v4  ;;  %v1920_v62 = vrot.slane %v1857_v46, 1  ;;  %v5960_v27 = vrot.slane %v4505_v40, 4 }
  0xef   : > { %v1907_v1 = vsel %vm1599_vm3, %v5959_v17, %v1906_v36  ;;  %v1897_v8 = vsel %vm1614_vm8, %v1896_v24, %v1895_v11  ;;  %2396 = vrot.lane.b32.xlu1 %v2391_v63, %s3545_s19  ;;  %v5961_v29 = vrot.slane %v4521_v25, 6  ;;  %v1383_v37 = vpack.c.bf16 %v3291_v38, %v3291_v38  ;;  %v5974_v63 = vld [vmem:[#allocation51_spill] sm:$0xff]  ;;  %v407_v17 = vld [vmem:[#allocation2 + $0x168] sm:$0xff] }
  0xf0   : > { %v1908_v14 = vsel %vm1602_vm4, %v1808_v18, %v1907_v1  ;;  %v2481_v49 = vpack.c.b16 %v1897_v8, %v1889_v12  ;;  %v5962_v30 = vrot.slane %v4523_v23, 5  ;;  %v5965_v12 = vrot.slane %v5964_v33, 7 }
  0xf1   : > { %v1909_v59 = vsel %vm1605_vm5, %v5960_v27, %v1908_v14  ;;  %v1915_v22 = vsel %vm1599_vm3, %v5961_v29, %v1914_v53  ;;  %v1160_v60 = vcombine.high %v401_v7, %v401_v7  ;;  %v5966_v28 = vrot.slane %v4513_v5, 2  ;;  %v5977_v14 = vld [vmem:[#allocation53_spill] sm:$0xff]  ;;  %v5979_v29 = vld [vmem:[#allocation54_spill] sm:$0xff]  ;;  %v396_v5 = vld [vmem:[#allocation2 + $0x110] sm:$0xff] }
  0xf2   : > { %v1910_v18 = vsel %vm1608_vm6, %v1812_v42, %v1909_v59  ;;  %v1916_v43 = vsel %vm1602_vm4, %v5962_v30, %v1915_v22  ;;  %v1898_v41 = vsel %vm1596_vm2, %v5965_v12, %v5963_v55  ;;  %2486 = vrot.lane.b32.xlu0 %v2481_v49, %s3547_s26  ;;  %v5967_v61 = vrot.slane %v4525_v20, 4 }
  0xf3   : > { %v1911_v56 = vsel %vm1611_vm7, %v5966_v28, %v1910_v18  ;;  %v1855_v0 = vunpack.c.l.b16 %v1383_v37  ;;  %v5969_v19 = vrot.slane %v5968_v3, 6  ;;  %v5971_v35 = vrot.slane %v4527_v48, 3 }
  0xf4   : > { %v1917_v42 = vsel %vm1605_vm5, %v5967_v61, %v1916_v43  ;;  %v4821_v36 = vsel %vm1614_vm8, %v1912_v31, %v1911_v56  ;;  %v5973_v45 = vrot.slane %v5972_v51, 5  ;;  %v1167_v46 = vrot.slane %v401_v7, %v3724_v10  ;;  %v408_v7 = vld [vmem:[#allocation2 + $0x170] sm:$0xff] }
  0xf5   : > { %v1899_v13 = vsel %vm1599_vm3, %v5969_v19, %v1898_v41  ;;  %5970 = vst [vmem:[#allocation24_spill] sm:$0xff] %v4821_v36  ;;  %v1918_v2 = vsel %vm1608_vm6, %v5971_v35, %v1917_v42  ;;  %v5975_v26 = vrot.slane %v5974_v63, 4  ;;  %v1904_v11 = vrot.slane %v1855_v0, 1 }
  0xf6   : > { %v1900_v24 = vsel %vm1602_vm4, %v5973_v45, %v1899_v13  ;;  %v1919_v38 = vsel %vm1611_vm7, %v1828_v16, %v1918_v2  ;;  %v1174_v1 = vrot.slane %v1160_v60, %v3724_v10  ;;  %v5978_v53 = vrot.slane %v5977_v14, 3 }
  0xf7   : > { %v1901_v21 = vsel %vm1605_vm5, %v5975_v26, %v1900_v24  ;;  %v4838_v31 = vsel %vm1614_vm8, %v1920_v62, %v1919_v38  ;;  %v1175_v27 = vcombine.high %v1167_v46, %v1167_v46  ;;  %v1177_v59 = vcombine.high %v402_v39, %v402_v39 }
  0xf8   : > { %5976 = vst [vmem:[#allocation25_spill] sm:$0xff] %v4838_v31  ;;  %v1902_v49 = vsel %vm1608_vm6, %v5978_v53, %v1901_v21  ;;  %v1925_v16 = vpack.c.b16 %v4838_v31, %v4821_v36  ;;  %v5980_v22 = vrot.slane %v5979_v29, 2  ;;  %v1176_v18 = vcombine.high %v1174_v1, %v1174_v1 }
  0xf9   : > { %v1184_v30 = vrot.slane %v402_v39, %v3724_v10  ;;  %v1191_v43 = vrot.slane %v1177_v59, %v3724_v10  ;;  %v1201_v12 = vcombine.high %v407_v17, %v407_v17  ;;  %v1208_v41 = vrot.slane %v407_v17, %v3724_v10 }
  0xfa   : > { %v1903_v37 = vsel %vm1611_vm7, %v5980_v22, %v1902_v49  ;;  %1932 = vrot.lane.b32.xlu1 %v1925_v16, %s3546_s20  ;;  %v1218_v56 = vcombine.high %v408_v7, %v408_v7  ;;  %v1225_v61 = vrot.slane %v408_v7, %v3724_v10  ;;  %v1434_v13 = vpack.c.bf16 %v1167_v46, %v1167_v46 }
  0xfb   : > { %v4850_v62 = vsel %vm1614_vm8, %v1904_v11, %v1903_v37  ;;  %v1192_v28 = vcombine.high %v1184_v30, %v1184_v30  ;;  %v1193_v42 = vcombine.high %v1191_v43, %v1191_v43  ;;  %v1215_v0 = vrot.slane %v1201_v12, %v3724_v10 }
  0xfc   : > { %5981 = vst [vmem:[#allocation31_spill] sm:$0xff] %v4850_v62  ;;  %v1924_v60 = vpack.c.b16 %v4850_v62, %v1897_v8  ;;  %v1216_v19 = vcombine.high %v1208_v41, %v1208_v41  ;;  %v1232_v39 = vrot.slane %v1218_v56, %v3724_v10  ;;  %v1233_v35 = vcombine.high %v1225_v61, %v1225_v61 }
  0xfd   : > { %v1435_v2 = vpack.c.bf16 %v1175_v27, %v1175_v27  ;;  %v1436_v45 = vpack.c.bf16 %v1174_v1, %v1174_v1  ;;  %v1217_v24 = vcombine.high %v1215_v0, %v1215_v0  ;;  %v1437_v38 = vpack.c.bf16 %v1176_v18, %v1176_v18 }
  0xfe   : > { %1930 = vrot.lane.b32.xlu0 %v1924_v60, %s3546_s20  ;;  %v1438_v26 = vpack.c.bf16 %v1184_v30, %v1184_v30  ;;  %v1439_v8 = vpack.c.bf16 %v1192_v28, %v1192_v28  ;;  %v1234_v21 = vcombine.high %v1232_v39, %v1232_v39  ;;  %v1440_v11 = vpack.c.bf16 %v1191_v43, %v1191_v43 }
  0xff   : > { %v1441_v17 = vpack.c.bf16 %v1193_v42, %v1193_v42  ;;  %v1442_v53 = vpack.c.bf16 %v1208_v41, %v1208_v41  ;;  %v1443_v49 = vpack.c.bf16 %v1216_v19, %v1216_v19  ;;  %v1444_v7 = vpack.c.bf16 %v1215_v0, %v1215_v0 }
 0x100   : > { %v1445_v59 = vpack.c.bf16 %v1217_v24, %v1217_v24  ;;  %v1446_v16 = vpack.c.bf16 %v1225_v61, %v1225_v61  ;;  %v1447_v46 = vpack.c.bf16 %v1233_v35, %v1233_v35  ;;  %v1448_v22 = vpack.c.bf16 %v1232_v39, %v1232_v39 }
 0x101   : > { %v1449_v37 = vpack.c.bf16 %v1234_v21, %v1234_v21  ;;  %v4860_v12 = vunpack.c.l.b16 %v1434_v13  ;;  %v4862_v60 = vunpack.c.l.b16 %v1435_v2  ;;  %v4864_v1 = vunpack.c.l.b16 %v1436_v45 }
 0x102   : > { %v4866_v27 = vunpack.c.l.b16 %v1437_v38  ;;  %v4868_v18 = vunpack.c.l.b16 %v1438_v26  ;;  %v4870_v30 = vunpack.c.l.b16 %v1439_v8  ;;  %v4872_v43 = vunpack.c.l.b16 %v1440_v11 }
 0x103   : > { %v4874_v41 = vunpack.c.l.b16 %v1441_v17  ;;  %v4876_v28 = vunpack.c.l.b16 %v1442_v53  ;;  %v4878_v56 = vunpack.c.l.b16 %v1443_v49  ;;  %v4880_v61 = vunpack.c.l.b16 %v1444_v7  ;;  %v389_v17 = vld [vmem:[#allocation2 + $0xd8] sm:$0xff] }
 0x104   : > { %v4882_v42 = vunpack.c.l.b16 %v1445_v59  ;;  %v4884_v0 = vunpack.c.l.b16 %v1446_v16  ;;  %v4886_v19 = vunpack.c.l.b16 %v1447_v46  ;;  %v4888_v13 = vunpack.c.l.b16 %v1448_v22  ;;  %v390_v16 = vld [vmem:[#allocation2 + $0xe0] sm:$0xff] }
 0x105   : > { %v4890_v39 = vunpack.c.l.b16 %v1449_v37  ;;  %v2146_v35 = vrot.slane %v4862_v60, 7  ;;  %v2148_v2 = vrot.slane %v4864_v1, 6  ;;  %v2150_v45 = vrot.slane %v4866_v27, 5 }
 0x106   : > { %v2152_v24 = vrot.slane %v4868_v18, 4  ;;  %v2154_v38 = vrot.slane %v4870_v30, 3  ;;  %v2156_v8 = vrot.slane %v4872_v43, 2  ;;  %v2158_v21 = vrot.slane %v4874_v41, 1 }
 0x107   : > { %v2147_v26 = vsel %vm1596_vm2, %v2146_v35, %v4860_v12  ;;  %v2160_v11 = vrot.slane %v4878_v56, 7  ;;  %v2162_v49 = vrot.slane %v4880_v61, 6  ;;  %v2164_v7 = vrot.slane %v4882_v42, 5 }
 0x108   : > { %v2149_v53 = vsel %vm1599_vm3, %v2148_v2, %v2147_v26  ;;  %v2166_v59 = vrot.slane %v4884_v0, 4  ;;  %v2168_v37 = vrot.slane %v4886_v19, 3  ;;  %v2170_v35 = vrot.slane %v4888_v13, 2 }
 0x109   : > { %v2151_v46 = vsel %vm1602_vm4, %v2150_v45, %v2149_v53  ;;  %v2161_v22 = vsel %vm1596_vm2, %v2160_v11, %v4876_v28  ;;  %v2172_v26 = vrot.slane %v4890_v39, 1  ;;  %v1078_v36 = vcombine.high %v389_v17, %v389_v17 }
 0x10a   : > { %v2153_v31 = vsel %vm1605_vm5, %v2152_v24, %v2151_v46  ;;  %v2163_v2 = vsel %vm1599_vm3, %v2162_v49, %v2161_v22  ;;  %v1085_v45 = vrot.slane %v389_v17, %v3724_v10  ;;  %v1095_v53 = vcombine.high %v390_v16, %v390_v16 }
 0x10b   : > { %v2155_v62 = vsel %vm1608_vm6, %v2154_v38, %v2153_v31  ;;  %v2165_v15 = vsel %vm1602_vm4, %v2164_v7, %v2163_v2  ;;  %v1092_v24 = vrot.slane %v1078_v36, %v3724_v10  ;;  %v1102_v49 = vrot.slane %v390_v16, %v3724_v10 }
 0x10c   : > { %v2157_v11 = vsel %vm1611_vm7, %v2156_v8, %v2155_v62  ;;  %v2167_v32 = vsel %vm1605_vm5, %v2166_v59, %v2165_v15  ;;  %v1093_v31 = vcombine.high %v1085_v45, %v1085_v45  ;;  %v1109_v38 = vrot.slane %v1095_v53, %v3724_v10 }
 0x10d   : > { %v2159_v46 = vsel %vm1614_vm8, %v2158_v21, %v2157_v11  ;;  %v2169_v22 = vsel %vm1608_vm6, %v2168_v37, %v2167_v32  ;;  %v1094_v17 = vcombine.high %v1092_v24, %v1092_v24  ;;  %v1110_v2 = vcombine.high %v1102_v49, %v1102_v49 }
 0x10e   : > { %v2171_v7 = vsel %vm1611_vm7, %v2170_v35, %v2169_v22  ;;  %v1119_v9 = vcombine.high %v395_v50, %v395_v50  ;;  %v1111_v15 = vcombine.high %v1109_v38, %v1109_v38  ;;  %v1126_v8 = vrot.slane %v395_v50, %v3724_v10 }
 0x10f   : > { %v2173_v62 = vsel %vm1614_vm8, %v2172_v26, %v2171_v7  ;;  %v1136_v36 = vcombine.high %v396_v5, %v396_v5  ;;  %v1143_v21 = vrot.slane %v396_v5, %v3724_v10  ;;  %v1418_v32 = vpack.c.bf16 %v1085_v45, %v1085_v45 }
 0x110   : > { %v2177_v59 = vpack.c.b16 %v2173_v62, %v2159_v46  ;;  %v1133_v16 = vrot.slane %v1119_v9, %v3724_v10  ;;  %v1134_v37 = vcombine.high %v1126_v8, %v1126_v8  ;;  %v1419_v11 = vpack.c.bf16 %v1093_v31, %v1093_v31 }
 0x111   : > { %v1150_v53 = vrot.slane %v1136_v36, %v3724_v10  ;;  %v1420_v35 = vpack.c.bf16 %v1092_v24, %v1092_v24  ;;  %v1151_v40 = vcombine.high %v1143_v21, %v1143_v21  ;;  %v1421_v26 = vpack.c.bf16 %v1094_v17, %v1094_v17 }
 0x112   : > { %2184 = vrot.lane.b32.xlu1 %v2177_v59, %s3540_s14  ;;  %v1135_v22 = vcombine.high %v1133_v16, %v1133_v16  ;;  %v1422_v7 = vpack.c.bf16 %v1102_v49, %v1102_v49  ;;  %v1423_v50 = vpack.c.bf16 %v1110_v2, %v1110_v2  ;;  %v1424_v34 = vpack.c.bf16 %v1109_v38, %v1109_v38 }
 0x113   : > { %v1152_v57 = vcombine.high %v1150_v53, %v1150_v53  ;;  %v1425_v46 = vpack.c.bf16 %v1111_v15, %v1111_v15  ;;  %v1426_v62 = vpack.c.bf16 %v1126_v8, %v1126_v8  ;;  %v1427_v9 = vpack.c.bf16 %v1134_v37, %v1134_v37 }
 0x114   : > { %v1428_v44 = vpack.c.bf16 %v1133_v16, %v1133_v16  ;;  %v1429_v5 = vpack.c.bf16 %v1135_v22, %v1135_v22  ;;  %v1430_v45 = vpack.c.bf16 %v1143_v21, %v1143_v21  ;;  %v1431_v6 = vpack.c.bf16 %v1151_v40, %v1151_v40 }
 0x115   : > { %v1432_v52 = vpack.c.bf16 %v1150_v53, %v1150_v53  ;;  %v1433_v36 = vpack.c.bf16 %v1152_v57, %v1152_v57  ;;  %v4931_v31 = vunpack.c.l.b16 %v1418_v32  ;;  %v4933_v24 = vunpack.c.l.b16 %v1419_v11 }
 0x116   : > { %v4935_v59 = vunpack.c.l.b16 %v1420_v35  ;;  %v4937_v17 = vunpack.c.l.b16 %v1421_v26  ;;  %v4939_v49 = vunpack.c.l.b16 %v1422_v7  ;;  %v4941_v38 = vunpack.c.l.b16 %v1423_v50 }
 0x117   : > { %v4943_v2 = vunpack.c.l.b16 %v1424_v34  ;;  %v4945_v15 = vunpack.c.l.b16 %v1425_v46  ;;  %v4947_v8 = vunpack.c.l.b16 %v1426_v62  ;;  %v4949_v40 = vunpack.c.l.b16 %v1427_v9 }
 0x118   : > { %v4951_v57 = vunpack.c.l.b16 %v1428_v44  ;;  %v4953_v16 = vunpack.c.l.b16 %v1429_v5  ;;  %v4955_v21 = vunpack.c.l.b16 %v1430_v45  ;;  %v4957_v32 = vunpack.c.l.b16 %v1431_v6 }
 0x119   : > { %v4959_v37 = vunpack.c.l.b16 %v1432_v52  ;;  %v4961_v53 = vunpack.c.l.b16 %v1433_v36  ;;  %v2118_v34 = vrot.slane %v4933_v24, 7  ;;  %v2120_v11 = vrot.slane %v4935_v59, 6 }
 0x11a   : > { %v2122_v35 = vrot.slane %v4937_v17, 5  ;;  %v2124_v22 = vrot.slane %v4939_v49, 4  ;;  %v2126_v44 = vrot.slane %v4941_v38, 3  ;;  %v2128_v26 = vrot.slane %v4943_v2, 2 }
 0x11b   : > { %v2130_v7 = vrot.slane %v4945_v15, 1  ;;  %v2132_v6 = vrot.slane %v4949_v40, 7  ;;  %v2119_v52 = vsel %vm1596_vm2, %v2118_v34, %v4931_v31  ;;  %v2134_v50 = vrot.slane %v4951_v57, 6 }
 0x11c   : > { %v2136_v46 = vrot.slane %v4953_v16, 5  ;;  %v2138_v62 = vrot.slane %v4955_v21, 4  ;;  %v2121_v9 = vsel %vm1599_vm3, %v2120_v11, %v2119_v52  ;;  %v2140_v45 = vrot.slane %v4957_v32, 3 }
 0x11d   : > { %v2133_v5 = vsel %vm1596_vm2, %v2132_v6, %v4947_v8  ;;  %v2142_v36 = vrot.slane %v4959_v37, 2  ;;  %v2123_v29 = vsel %vm1602_vm4, %v2122_v35, %v2121_v9  ;;  %v2144_v34 = vrot.slane %v4961_v53, 1 }
 0x11e   : > { %v2135_v14 = vsel %vm1599_vm3, %v2134_v50, %v2133_v5  ;;  %v2270_v63 = vrot.slane %v4860_v12, 1  ;;  %v2125_v51 = vsel %vm1605_vm5, %v2124_v22, %v2123_v29  ;;  %v2272_v11 = vrot.slane %v4864_v1, 7 }
 0x11f   : > { %v2137_v3 = vsel %vm1602_vm4, %v2136_v46, %v2135_v14  ;;  %v2274_v6 = vrot.slane %v4866_v27, 6  ;;  %v2127_v52 = vsel %vm1608_vm6, %v2126_v44, %v2125_v51  ;;  %v2276_v50 = vrot.slane %v4868_v18, 5 }
 0x120   : > { %v2139_v33 = vsel %vm1605_vm5, %v2138_v62, %v2137_v3  ;;  %v2271_v35 = vsel %vm1596_vm2, %v4862_v60, %v2270_v63  ;;  %v2129_v9 = vsel %vm1611_vm7, %v2128_v26, %v2127_v52  ;;  %v2278_v29 = vrot.slane %v4870_v30, 4 }
 0x121   : > { %v2141_v12 = vsel %vm1608_vm6, %v2140_v45, %v2139_v33  ;;  %v2273_v14 = vsel %vm1599_vm3, %v2272_v11, %v2271_v35  ;;  %v2131_v22 = vsel %vm1614_vm8, %v2130_v7, %v2129_v9  ;;  %v2280_v63 = vrot.slane %v4872_v43, 3 }
 0x122   : > { %v2143_v51 = vsel %vm1611_vm7, %v2142_v36, %v2141_v12  ;;  %v2275_v3 = vsel %vm1602_vm4, %v2274_v6, %v2273_v14  ;;  %v2282_v26 = vrot.slane %v4874_v41, 2  ;;  %v2284_v46 = vrot.slane %v4876_v28, 1 }
 0x123   : > { %v2145_v44 = vsel %vm1614_vm8, %v2144_v34, %v2143_v51  ;;  %v2277_v33 = vsel %vm1605_vm5, %v2276_v50, %v2275_v3  ;;  %v2286_v5 = vrot.slane %v4880_v61, 7  ;;  %v2288_v45 = vrot.slane %v4882_v42, 6 }
 0x124   : > { %v2176_v62 = vpack.c.b16 %v2145_v44, %v2131_v22  ;;  %v2279_v7 = vsel %vm1608_vm6, %v2278_v29, %v2277_v33  ;;  %v2285_v34 = vsel %vm1596_vm2, %v4878_v56, %v2284_v46  ;;  %v2290_v52 = vrot.slane %v4884_v0, 5 }
 0x125   : > { %v2281_v36 = vsel %vm1611_vm7, %v2280_v63, %v2279_v7  ;;  %v2292_v28 = vrot.slane %v4886_v19, 4  ;;  %v2287_v61 = vsel %vm1599_vm3, %v2286_v5, %v2285_v34  ;;  %v2294_v42 = vrot.slane %v4888_v13, 3  ;;  %v3301_v34 = vld.sshfl [vmem:[#allocation2 + $0x148] sm:$0x3 pattern:$0x76325410] }
 0x126   : > { %2182 = vrot.lane.b32.xlu0 %v2176_v62, %s3540_s14  ;;  %v2283_v35 = vsel %vm1614_vm8, %v2282_v26, %v2281_v36  ;;  %v2296_v9 = vrot.slane %v4890_v39, 2  ;;  %v2289_v12 = vsel %vm1602_vm4, %v2288_v45, %v2287_v61  ;;  %v2242_v14 = vrot.slane %v4931_v31, 1  ;;  %v5124_v39 = vpop.permute.xlu0 %1834  ;;  %s3550_s14 = smov 56  }
 0x127   : > { %v2244_v0 = vrot.slane %v4935_v59, 7  ;;  %v2246_v19 = vrot.slane %v4937_v17, 6  ;;  %v2291_v22 = vsel %vm1605_vm5, %v2290_v52, %v2289_v12  ;;  %v2248_v51 = vrot.slane %v4939_v49, 5 }
 0x128   : > { %v2250_v3 = vrot.slane %v4941_v38, 4  ;;  %v5780_v44 = vrot.slane %v4943_v2, 3  ;;  %v2293_v13 = vsel %vm1608_vm6, %v2292_v28, %v2291_v22  ;;  %v2243_v33 = vsel %vm1596_vm2, %v4933_v24, %v2242_v14  ;;  %v3302_v22 = vld.sshfl [vmem:[#allocation2 + $0x178] sm:$0x3 pattern:$0x76325410] }
 0x129   : > { %v2254_v46 = vrot.slane %v4945_v15, 2  ;;  %v2256_v31 = vrot.slane %v4947_v8, 1  ;;  %v2295_v59 = vsel %vm1611_vm7, %v2294_v42, %v2293_v13  ;;  %v2245_v62 = vsel %vm1599_vm3, %v2244_v0, %v2243_v33 }
 0x12a   : > { %v2258_v7 = vrot.slane %v4951_v57, 7  ;;  %v2260_v36 = vrot.slane %v4953_v16, 6  ;;  %v2297_v61 = vsel %vm1614_vm8, %v2296_v9, %v2295_v59  ;;  %v2247_v12 = vsel %vm1602_vm4, %v2246_v19, %v2245_v62 }
 0x12b   : > { %v2257_v8 = vsel %vm1596_vm2, %v4949_v40, %v2256_v31  ;;  %v2262_v14 = vrot.slane %v4955_v21, 5  ;;  %v2301_v13 = vpack.c.b16 %v2297_v61, %v2283_v35  ;;  %v2249_v57 = vsel %vm1605_vm5, %v2248_v51, %v2247_v12 }
 0x12c   : > { %v2259_v16 = vsel %vm1599_vm3, %v2258_v7, %v2257_v8  ;;  %v2264_v33 = vrot.slane %v4957_v32, 4  ;;  %v2251_v59 = vsel %vm1608_vm6, %v2250_v3, %v2249_v57  ;;  %v2266_v31 = vrot.slane %v4959_v37, 3  ;;  %v3299_v8 = vld.sshfl [vmem:[#allocation2 + $0xe8] sm:$0x3 pattern:$0x76325410] }
 0x12d   : > { %v2261_v62 = vsel %vm1602_vm4, %v2260_v36, %v2259_v16  ;;  %v2268_v21 = vrot.slane %v4961_v53, 2  ;;  %2308 = vrot.lane.b32.xlu1 %v2301_v13, %s3542_s16  ;;  %v2253_v35 = vsel %vm1611_vm7, %v5780_v44, %v2251_v59  ;;  %v1456_v12 = vpack.c.bf16 %v3301_v34, %v3301_v34  ;;  %v3300_v44 = vld.sshfl [vmem:[#allocation2 + $0x118] sm:$0x3 pattern:$0x76325410] }
 0x12e   : > { %v2263_v61 = vsel %vm1605_vm5, %v2262_v14, %v2261_v62  ;;  %v1457_v32 = vpack.c.bf16 %v3302_v22, %v3302_v22  ;;  %v2255_v57 = vsel %vm1614_vm8, %v2254_v46, %v2253_v35  ;;  %v2374_v37 = vsel %vm1596_vm2, %v2272_v11, %v4862_v60 }
 0x12f   : > { %v2265_v16 = vsel %vm1608_vm6, %v2264_v33, %v2263_v61  ;;  %v2382_v13 = vsel %vm1596_vm2, %v2286_v5, %v4878_v56  ;;  %v2324_v62 = vunpack.c.l.b16 %v1456_v12  ;;  %v2375_v22 = vsel %vm1599_vm3, %v2274_v6, %v2374_v37 }
 0x130   : > { %v2267_v59 = vsel %vm1611_vm7, %v2266_v31, %v2265_v16  ;;  %v2325_v34 = vunpack.c.l.b16 %v1457_v32  ;;  %v2376_v60 = vsel %vm1602_vm4, %v2276_v50, %v2375_v22  ;;  %v2383_v1 = vsel %vm1599_vm3, %v2288_v45, %v2382_v13 }
 0x131   : > { %v2269_v35 = vsel %vm1614_vm8, %v2268_v21, %v2267_v59  ;;  %v1454_v56 = vpack.c.bf16 %v3299_v8, %v3299_v8  ;;  %v2377_v5 = vsel %vm1605_vm5, %v2278_v29, %v2376_v60  ;;  %v2380_v27 = vrot.slane %v2324_v62, 1  ;;  %v411_v8 = vld [vmem:[#allocation2 + $0x188] sm:$0xff] }
 0x132   : > { %v2300_v11 = vpack.c.b16 %v2269_v35, %v2255_v57  ;;  %v2384_v6 = vsel %vm1602_vm4, %v2290_v52, %v2383_v1  ;;  %v2378_v61 = vsel %vm1608_vm6, %v2280_v63, %v2377_v5  ;;  %v2388_v18 = vrot.slane %v2325_v34, 1  ;;  %v5109_v52 = vpop.permute.xlu1 %2180 }
 0x133   : > { %v2385_v12 = vsel %vm1605_vm5, %v2292_v28, %v2384_v6  ;;  %v1455_v32 = vpack.c.bf16 %v3300_v44, %v3300_v44  ;;  %v2379_v50 = vsel %vm1611_vm7, %v2282_v26, %v2378_v61  ;;  %v2322_v29 = vunpack.c.l.b16 %v1454_v56  ;;  %v410_v26 = vld [vmem:[#allocation2 + $0x180] sm:$0xff]  ;;  %v5151_v56 = vpop.permute.xlu0 %1836 }
 0x134   : > { %2306 = vrot.lane.b32.xlu0 %v2300_v11, %s3542_s16  ;;  %v2386_v30 = vsel %vm1608_vm6, %v2294_v42, %v2385_v12  ;;  %v2358_v45 = vsel %vm1596_vm2, %v2244_v0, %v4933_v24  ;;  %v2381_v43 = vsel %vm1614_vm8, %v2380_v27, %v2379_v50  ;;  %v2366_v44 = vsel %vm1596_vm2, %v2258_v7, %v4949_v40 }
 0x135   : > { %v2387_v63 = vsel %vm1611_vm7, %v2296_v9, %v2386_v30  ;;  %v2323_v28 = vunpack.c.l.b16 %v1455_v32  ;;  %v2359_v41 = vsel %vm1599_vm3, %v2246_v19, %v2358_v45  ;;  %v2364_v0 = vrot.slane %v2322_v29, 1 }
 0x136   : > { %v2389_v42 = vsel %vm1614_vm8, %v2388_v18, %v2387_v63  ;;  %v2360_v24 = vsel %vm1602_vm4, %v2248_v51, %v2359_v41  ;;  %v2367_v19 = vsel %vm1599_vm3, %v2260_v36, %v2366_v44  ;;  %v5982_v16 = vrot.slane %v4943_v2, 3  ;;  %v5144_v62 = vpop.permute.xlu1 %2304 }
 0x137   : > { %v2393_v9 = vpack.c.b16 %v2389_v42, %v2381_v43  ;;  %v2361_v17 = vsel %vm1605_vm5, %v2250_v3, %v2360_v24  ;;  %v2372_v57 = vrot.slane %v2323_v28, 1  ;;  %v2368_v51 = vsel %vm1602_vm4, %v2262_v14, %v2367_v19 }
 0x138   : > { %v2362_v49 = vsel %vm1608_vm6, %v5982_v16, %v2361_v17  ;;  %v768_v37 = vcombine.high %v410_v26, %v410_v26  ;;  %v775_v40 = vrot.slane %v410_v26, %v3724_v10  ;;  %v2369_v3 = vsel %vm1605_vm5, %v2264_v33, %v2368_v51 }
 0x139   : > { %2400 = vrot.lane.b32.xlu1 %v2393_v9, %s3545_s19  ;;  %v2363_v38 = vsel %vm1611_vm7, %v2254_v46, %v2362_v49  ;;  %v785_v7 = vcombine.high %v411_v8, %v411_v8  ;;  %v792_v36 = vrot.slane %v411_v8, %v3724_v10  ;;  %v2370_v13 = vsel %vm1608_vm6, %v2266_v31, %v2369_v3 }
 0x13a   : > { %v2365_v2 = vsel %vm1614_vm8, %v2364_v0, %v2363_v38  ;;  %v782_v14 = vrot.slane %v768_v37, %v3724_v10  ;;  %v783_v59 = vcombine.high %v775_v40, %v775_v40  ;;  %v2371_v15 = vsel %vm1611_vm7, %v2268_v21, %v2370_v13  ;;  %v5983_v37 = vld [vmem:[#allocation49_spill] sm:$0xff] }
 0x13b   : > { %v799_v46 = vrot.slane %v785_v7, %v3724_v10  ;;  %v800_v34 = vcombine.high %v792_v36, %v792_v36  ;;  %v1458_v33 = vpack.c.bf16 %v775_v40, %v775_v40  ;;  %v2373_v22 = vsel %vm1614_vm8, %v2372_v57, %v2371_v15  ;;  %v5984_v7 = vld [vmem:[#allocation52_spill] sm:$0xff] }
 0x13c   : > { %v784_v35 = vcombine.high %v782_v14, %v782_v14  ;;  %v1459_v60 = vpack.c.bf16 %v783_v59, %v783_v59  ;;  %v1460_v1 = vpack.c.bf16 %v782_v14, %v782_v14  ;;  %v2392_v31 = vpack.c.b16 %v2373_v22, %v2365_v2  ;;  %v5985_v2 = vld [vmem:[#allocation50_spill] sm:$0xff]  ;;  %v5986_v14 = vld [vmem:[#allocation51_spill] sm:$0xff] }
 0x13d   : > { %v801_v11 = vcombine.high %v799_v46, %v799_v46  ;;  %v1462_v5 = vpack.c.bf16 %v792_v36, %v792_v36  ;;  %v1463_v27 = vpack.c.bf16 %v800_v34, %v800_v34  ;;  %v1464_v61 = vpack.c.bf16 %v799_v46, %v799_v46  ;;  %v5987_v46 = vld [vmem:[#allocation47_spill] sm:$0xff] }
 0x13e   : > { %v1461_v6 = vpack.c.bf16 %v784_v35, %v784_v35  ;;  %v1700_v53 = vrot.slane %v4517_v4, 7  ;;  %v1702_v21 = vrot.slane %v4519_v58, 6  ;;  %2398 = vrot.lane.b32.xlu0 %v2392_v31, %s3545_s19  ;;  %v1704_v12 = vrot.slane %v4521_v25, 5  ;;  %v5165_v4 = vpop.permute.xlu1 %2438  ;;  %s5578_s19 = scalar_lea.hbm %s5635_s6, %s3328_s12 }
 0x13f   : > { %v1465_v10 = vpack.c.bf16 %v801_v11, %v801_v11  ;;  %v1706_v18 = vrot.slane %v4523_v23, 4  ;;  %v1708_v32 = vrot.slane %v4525_v20, 3  ;;  %v1710_v30 = vrot.slane %v4527_v48, 2  ;;  %v5990_v11 = vld [vmem:[#allocation57_spill] sm:$0xff] }
 0x140   : > { %v1701_v50 = vsel %vm1596_vm2, %v1700_v53, %v4515_v47  ;;  %v1712_v29 = vrot.slane %v4529_v54, 1  ;;  %v5163_v45 = vunpack.c.l.b16 %v1458_v33  ;;  %v5168_v43 = vunpack.c.l.b16 %v1459_v60  ;;  %v5181_v54 = vpop.permute.xlu0 %2178  ;;  %v5988_v33 = vld [vmem:[#allocation53_spill] sm:$0xff] }
 0x141   : > { %v1703_v58 = vsel %vm1599_vm3, %v1702_v21, %v1701_v50  ;;  %v5170_v25 = vunpack.c.l.b16 %v1460_v1  ;;  %v5172_v23 = vunpack.c.l.b16 %v1461_v6  ;;  %v5175_v63 = vunpack.c.l.b16 %v1462_v5  ;;  %v5992_v21 = vld [vmem:[#allocation59_spill] sm:$0xff] }
 0x142   : > { %v1705_v20 = vsel %vm1602_vm4, %v1704_v12, %v1703_v58  ;;  %v5177_v47 = vunpack.c.l.b16 %v1463_v27  ;;  %v5179_v48 = vunpack.c.l.b16 %v1464_v61  ;;  %v5184_v41 = vunpack.c.l.b16 %v1465_v10  ;;  %v5203_v38 = vpop.permute.xlu1 %2464  ;;  %v5991_v27 = vld [vmem:[#allocation58_spill] sm:$0xff]  ;;  %v5993_v12 = vld [vmem:[#allocation60_spill] sm:$0xff]  ;;  %v5995_v58 = vld [vmem:[#allocation61_spill] sm:$0xff] }
 0x143   : > { %v1707_v28 = vsel %vm1605_vm5, %v1706_v18, %v1705_v20  ;;  %v2418_v26 = vrot.slane %v5168_v43, 7  ;;  %v2420_v42 = vrot.slane %v5170_v25, 6  ;;  %v2422_v0 = vrot.slane %v5172_v23, 5 }
 0x144   : > { %v1709_v24 = vsel %vm1608_vm6, %v1708_v32, %v1707_v28  ;;  %v2424_v44 = vrot.slane %v5175_v63, 4  ;;  %v2426_v8 = vrot.slane %v5177_v47, 3  ;;  %v2428_v19 = vrot.slane %v5179_v48, 2  ;;  %v5214_v60 = vpop.permute.xlu0 %2302 }
 0x145   : > { %v1711_v9 = vsel %vm1611_vm7, %v1710_v30, %v1709_v24  ;;  %v2419_v17 = vsel %vm1596_vm2, %v2418_v26, %v5163_v45  ;;  %v2430_v57 = vrot.slane %v5184_v41, 1  ;;  %v1672_v51 = vrot.slane %v5963_v55, 7  ;;  %v5989_v55 = vld [vmem:[#allocation54_spill] sm:$0xff]  ;;  %v5994_v30 = vld [vmem:[#allocation21_spill] sm:$0xff] }
 0x146   : > { %v5198_v16 = vsel %vm1614_vm8, %v1712_v29, %v1711_v9  ;;  %v2421_v49 = vsel %vm1599_vm3, %v2420_v42, %v2419_v17  ;;  %v1674_v40 = vrot.slane %v5983_v37, 6  ;;  %v1676_v36 = vrot.slane %v5984_v7, 5  ;;  %v5996_v24 = vld [vmem:[#allocation62_spill] sm:$0xff] }
 0x147   : > { %v2423_v3 = vsel %vm1602_vm4, %v2422_v0, %v2421_v49  ;;  %v1678_v13 = vrot.slane %v5985_v2, 4  ;;  %v1680_v59 = vrot.slane %v5986_v14, 3  ;;  %v1673_v34 = vsel %vm1596_vm2, %v1672_v51, %v5987_v46  ;;  %v5997_v17 = vld [vmem:[#allocation30_spill] sm:$0xff] }
 0x148   : > { %v2425_v15 = vsel %vm1605_vm5, %v2424_v44, %v2423_v3  ;;  %v1682_v22 = vrot.slane %v5988_v33, 2  ;;  %v1684_v35 = vrot.slane %v5989_v55, 1  ;;  %v1675_v31 = vsel %vm1599_vm3, %v1674_v40, %v1673_v34  ;;  %v1839_v44 = vpop.permute.xlu1 %1838  ;;  %v5241_v40 = vpop.permute.xlu0 %2436 }
 0x149   : > { %v2427_v1 = vsel %vm1608_vm6, %v2426_v8, %v2425_v15  ;;  %v1686_v5 = vrot.slane %v5990_v11, 7  ;;  %v1688_v6 = vrot.slane %v5991_v27, 6  ;;  %v1677_v53 = vsel %vm1602_vm4, %v1676_v36, %v1675_v31  ;;  %v5998_v15 = vld [vmem:[#allocation46_spill] sm:$0xff]  ;;  %v5999_v11 = vld [vmem:[#allocation55_spill] sm:$0xff] }
 0x14a   : > { %v2429_v61 = vsel %vm1611_vm7, %v2428_v19, %v2427_v1  ;;  %v1690_v10 = vrot.slane %v5992_v21, 5  ;;  %v1692_v18 = vrot.slane %v5993_v12, 4  ;;  %v1679_v50 = vsel %vm1605_vm5, %v1678_v13, %v1677_v53  ;;  %v6001_v12 = vld [vmem:[#allocation63_spill] sm:$0xff] }
 0x14b   : > { %v2431_v32 = vsel %vm1614_vm8, %v2430_v57, %v2429_v61  ;;  %v1687_v29 = vsel %vm1596_vm2, %v1686_v5, %v5994_v30  ;;  %v1694_v20 = vrot.slane %v5995_v58, 3  ;;  %v1681_v26 = vsel %vm1608_vm6, %v1680_v59, %v1679_v50  ;;  %v6000_v5 = vld [vmem:[#allocation29_spill] sm:$0xff]  ;;  %v3469_v58 = vld [vmem:[%s5630_s1 + $0x8] sm:$0xff]  }
 0x14c   : > { %v2435_v28 = vpack.c.b16 %v2431_v32, %v5198_v16  ;;  %v1689_v42 = vsel %vm1599_vm3, %v1688_v6, %v1687_v29  ;;  %v1696_v0 = vrot.slane %v5996_v24, 2  ;;  %v1683_v8 = vsel %vm1611_vm7, %v1682_v22, %v1681_v26  ;;  %v1841_v1 = vpop.permute.xlu1 %1840  ;;  %v2463_v6 = vpop.permute.xlu0 %2462  ;;  %v6004_v26 = vld [vmem:[#allocation24_spill] sm:$0xff] }
 0x14d   : > { %v1691_v9 = vsel %vm1602_vm4, %v1690_v10, %v1689_v42  ;;  %v1698_v19 = vrot.slane %v5997_v17, 1  ;;  %v2444_v57 = vrot.slane %v5163_v45, 1  ;;  %v2446_v51 = vrot.slane %v5170_v25, 7  ;;  %v3468_v10 = vld [vmem:[%s5630_s1 + $0x10] ss:$0 sps:$4 sm:$0x33]  }
 0x14e   : > { %2442 = vrot.lane.b32.xlu1 %v2435_v28, %s3543_s17  ;;  %v1693_v49 = vsel %vm1605_vm5, %v1692_v18, %v1691_v9  ;;  %v2448_v37 = vrot.slane %v5172_v23, 6  ;;  %v1685_v3 = vsel %vm1614_vm8, %v1684_v35, %v1683_v8  ;;  %v2450_v2 = vrot.slane %v5175_v63, 5  ;;  %v3294_v45 = vld.sshfl [vmem:[#allocation2 + $0x190] sm:$0x3 pattern:$0x76325410]  ;;  %3377 = vmatprep.subr.msk.bf16.mxu0 %vm2596_vm11, %v3468_v10 }
 0x14f   : > { %v1695_v7 = vsel %vm1608_vm6, %v1694_v20, %v1693_v49  ;;  %v2445_v36 = vsel %vm1596_vm2, %v5168_v43, %v2444_v57  ;;  %v2452_v25 = vrot.slane %v5177_v47, 4  ;;  %v2454_v23 = vrot.slane %v5179_v48, 3  ;;  %v6003_v28 = vld [vmem:[#allocation31_spill] sm:$0xff]  ;;  %v6006_v9 = vld [vmem:[#allocation22_spill] sm:$0xff]  ;;  %v6007_v17 = vld [vmem:[#allocation56_spill] sm:$0xff] }
 0x150   : > { %v1697_v13 = vsel %vm1611_vm7, %v1696_v0, %v1695_v7  ;;  %v2447_v14 = vsel %vm1599_vm3, %v2446_v51, %v2445_v36  ;;  %v1716_v46 = vpack.c.b16 %v1685_v3, %v5998_v15  ;;  %v2456_v33 = vrot.slane %v5184_v41, 2  ;;  %v1927_v49 = vpop.permute.xlu1 %1926 }
 0x151   : > { %v1699_v59 = vsel %vm1614_vm8, %v1698_v19, %v1697_v13  ;;  %v2449_v34 = vsel %vm1602_vm4, %v2448_v37, %v2447_v14  ;;  %v1466_v35 = vpack.c.bf16 %v3294_v45, %v3294_v45  ;;  %v2472_v47 = vsel %vm1596_vm2, %v2446_v51, %v5168_v43  ;;  %v2395_v51 = vpop.permute.xlu0 %2394  ;;  %v6010_v45 = vld [vmem:[#allocation23_spill] sm:$0xff] }
 0x152   : > { %v1717_v22 = vpack.c.b16 %v5198_v16, %v1699_v59  ;;  %v2434_v63 = vpack.c.b16 %v1699_v59, %v1685_v3  ;;  %v2451_v55 = vsel %vm1605_vm5, %v2450_v2, %v2449_v34  ;;  %v2460_v27 = vpack.c.b16 %v6000_v5, %v5999_v11  ;;  %v3470_v3 = vld [vmem:[%s5630_s1] sm:$0xff]  }
 0x153   : > { %v2453_v31 = vsel %vm1608_vm6, %v2452_v25, %v2451_v55  ;;  %v2471_v41 = vunpack.c.l.b16 %v1466_v35  ;;  %v2473_v16 = vsel %vm1599_vm3, %v2448_v37, %v2472_v47  ;;  %v5269_v21 = vsel %vm283_vm0, %v1716_v46, %v1839_v44  ;;  %v6005_v44 = vld [vmem:[#allocation25_spill] sm:$0xff] }
 0x154   : > { %2440 = vrot.lane.b32.xlu0 %v2434_v63, %s3543_s17  ;;  %v2455_v48 = vsel %vm1611_vm7, %v2454_v23, %v2453_v31  ;;  %v2474_v53 = vsel %vm1602_vm4, %v2450_v2, %v2473_v16  ;;  %v2503_v43 = vsel %vm283_vm0, %v1717_v22, %v1841_v1  ;;  %v6002_v29 = vmov 0.0   ;;  %v6009_v2 = vld [vmem:[#allocation45_spill] sm:$0xff] }
 0x155   : > { %v2457_v61 = vsel %vm1614_vm8, %v2456_v33, %v2455_v48  ;;  %v2475_v32 = vsel %vm1605_vm5, %v2452_v25, %v2474_v53  ;;  %v2478_v50 = vrot.slane %v2471_v41, 1  ;;  %2705 = vst.msk [vmem:[#allocation3] sm:$0xff] %vm2504_vm10, %v6002_v29  ;;  %2709 = vst.msk [vmem:[#allocation3 + $0x90] sm:$0xff] %vm2504_vm10, %v6002_v29  ;;  %v2482_v42 = vpack.c.b16 %v6004_v26, %v6003_v28  ;;  %v5392_v28 = vld [vmem:[%s5631_s2] ss:$0 sm:$0xff] }
 0x156   : > { %v2461_v18 = vpack.c.b16 %v2457_v61, %v6001_v12  ;;  %v2476_v30 = vsel %vm1608_vm6, %v2454_v23, %v2475_v32  ;;  %v2598_v0 = vsel %vm2596_vm11, %v3468_v10, 0  ;;  %v6008_v19 = vpack.c.b16 %v6006_v9, %v6007_v17 }
 0x157   : > { %v2477_v20 = vsel %vm1611_vm7, %v2456_v33, %v2476_v30  ;;  %3346 = vmatpush3.bf16.msra.mxu0 %v2598_v0  ;;  %vm2558_vm2 = vcmask 261120   ;;  %v6011_v13 = vpack.c.b16 %v6009_v2, %v6010_v45  ;;  %v1929_v23 = vpop.permute.xlu1 %1928  ;;  %vm2587_vm3 = vcmask 293888  }
 0x158   : > { %2468 = vrot.lane.b32.xlu1 %v2461_v18, %s3544_s18  ;;  %2466 = vrot.lane.b32.xlu0 %v2460_v27, %s3544_s18  ;;  %v2479_v24 = vsel %vm1614_vm8, %v2478_v50, %v2477_v20  ;;  %v2494_v57 = vsel %vm283_vm0, %v6008_v19, %v5124_v39  ;;  %vm2711_vm4 = vcmask 57344   ;;  %vm3063_vm5 = vcmask 1043456   ;;  %s3551_s18 = smov 64  }
 0x159   : > { %v2483_v8 = vpack.c.b16 %v2479_v24, %v6005_v44  ;;  %v2506_v37 = vsel %vm2504_vm10, %v2494_v57, %v1927_v49  ;;  %3347 = vmatprep.subr.bf16.mxu0 %v3469_v58  ;;  %v2497_v14 = vsel %vm283_vm0, %v6011_v13, %v5151_v56  ;;  %vm2706_vm0 = vcmask 58368   ;;  %2715 = vst.msk [vmem:[#allocation3 + $0x30] sm:$0x1] %vm2711_vm4, %v6002_v29  ;;  %2716 = vst.msk [vmem:[#allocation3 + $0x40] sm:$0x1] %vm2711_vm4, %v6002_v29 }
 0x15a   : > { %v2515_v7 = vsel %vm2513_vm12, %v2506_v37, %v5181_v54  ;;  %v2508_v54 = vsel %vm2504_vm10, %v2497_v14, %v1929_v23  ;;  %2707 = vst.msk [vmem:[#allocation3 + $0x8] sm:$0x3] %vm2706_vm0, %v6002_v29  ;;  %2710 = vst.msk [vmem:[#allocation3 + $0x98] sm:$0x3] %vm2706_vm0, %v6002_v29  ;;  %vm2982_vm6 = vcmask 326656   ;;  %vm2991_vm7 = vcmask 392192  }
 0x15b   : > { %v2524_v39 = vsel %vm2522_vm13, %v2515_v7, %v5214_v60  ;;  %3348 = vmatpush3.bf16.msra.mxu0 %v3469_v58  ;;  %v2485_v60 = vpop.permute.xlu0 %2484  ;;  %v2517_v15 = vsel %vm2513_vm12, %v2508_v54, %v5109_v52  ;;  %2712 = vst.msk [vmem:[#allocation3] sm:$0x1] %vm2711_vm4, %v6002_v29  ;;  %2713 = vst.msk [vmem:[#allocation3 + $0x10] sm:$0x1] %vm2711_vm4, %v6002_v29  ;;  %vm3000_vm8 = vcmask 457728   ;;  %vm3009_vm9 = vcmask 523264  }
 0x15c   : > { %2490 = vrot.lane.b32.xlu1 %v2483_v8, %s3547_s26  ;;  %2488 = vrot.lane.b32.xlu0 %v2482_v42, %s3547_s26  ;;  %v2533_v36 = vsel %vm2531_vm14, %v2524_v39, %v2395_v51  ;;  %v2526_v56 = vsel %vm2522_vm13, %v2517_v15, %v5144_v62  ;;  %2714 = vst.msk [vmem:[#allocation3 + $0x20] sm:$0x1] %vm2711_vm4, %v6002_v29  ;;  %2717 = vst.msk [vmem:[#allocation3 + $0x50] sm:$0x1] %vm2711_vm4, %v6002_v29  ;;  %vm3054_vm11 = vcmask 588800  }
 0x15d   : > { %v2542_v25 = vsel %vm2540_vm15, %v2533_v36, %v5241_v40  ;;  %3349 = vmatprep.subr.bf16.mxu0 %v3470_v3  ;;  %2718 = vst.msk [vmem:[#allocation3 + $0x60] sm:$0x1] %vm2711_vm4, %v6002_v29  ;;  %2719 = vst.msk [vmem:[#allocation3 + $0x70] sm:$0x1] %vm2711_vm4, %v6002_v29 }
 0x15e   : > { %v2551_v59 = vsel %vm2549_vm1, %v2542_v25, %v2463_v6  ;;  %2720 = vst.msk [vmem:[#allocation3 + $0x80] sm:$0x1] %vm2711_vm4, %v6002_v29  ;;  %2721 = vst.msk [vmem:[#allocation3 + $0x90] sm:$0x1] %vm2711_vm4, %v6002_v29 }
 0x15f   : > { %v2560_v46 = vsel %vm2558_vm2, %v2551_v59, %v2485_v60  ;;  %3350 = vmatpush3.bf16.msra.mxu0 %v3470_v3  ;;  %2722 = vst.msk [vmem:[#allocation3 + $0x9] sm:$0x1] %vm2711_vm4, %v6002_v29  ;;  %2723 = vst.msk [vmem:[#allocation3 + $0x19] sm:$0x1] %vm2711_vm4, %v6002_v29 }
 0x160   : > { %3351 = vmatprep.mubr.msk.bf16.mxu0 %vm2587_vm3, %v2560_v46  ;;  %2724 = vst.msk [vmem:[#allocation3 + $0x29] sm:$0x1] %vm2711_vm4, %v6002_v29  ;;  %2725 = vst.msk [vmem:[#allocation3 + $0x39] sm:$0x1] %vm2711_vm4, %v6002_v29 }
 0x161   : > { %v2397_v40 = vpop.permute.xlu1 %2396  ;;  %2726 = vst.msk [vmem:[#allocation3 + $0x49] sm:$0x1] %vm2711_vm4, %v6002_v29  ;;  %2727 = vst.msk [vmem:[#allocation3 + $0x59] sm:$0x1] %vm2711_vm4, %v6002_v29  ;;  %v2753_v37 = vld [vmem:[#allocation3 + $0x1] sm:$0xff] }
 0x162   : > { %v2535_v34 = vsel %vm2531_vm14, %v2526_v56, %v2397_v40  ;;  %2728 = vst.msk [vmem:[#allocation3 + $0x69] sm:$0x1] %vm2711_vm4, %v6002_v29  ;;  %2729 = vst.msk [vmem:[#allocation3 + $0x79] sm:$0x1] %vm2711_vm4, %v6002_v29 }
 0x163   : > { %v2544_v33 = vsel %vm2540_vm15, %v2535_v34, %v5165_v4  ;;  %2730 = vst.msk [vmem:[#allocation3 + $0x89] sm:$0x1] %vm2711_vm4, %v6002_v29  ;;  %2731 = vst.msk [vmem:[#allocation3 + $0x99] sm:$0x1] %vm2711_vm4, %v6002_v29 }
 0x164   : > { %v2553_v22 = vsel %vm2549_vm1, %v2544_v33, %v5203_v38  ;;  %v2487_v63 = vpop.permute.xlu0 %2486 }
 0x165   : > { %v2562_v52 = vsel %vm2558_vm2, %v2553_v22, %v2487_v63 }
 0x166   : > { %3352 = vmatmul.mubr.msk.bf16.vlgmr.msra.gmra.mxu0 %vm2587_vm3, %v2562_v52  ;;  %v2765_v39 = vld [vmem:[#allocation3 + $0x2] sm:$0xff] }
 0x16c   : > { %v1933_v55 = vpop.permute.xlu1 %1932 }
 0x16d   : > { %v2512_v35 = vsel %vm2504_vm10, %v2503_v43, %v1933_v55  ;;  %v3471_v55 = vld [vmem:[%s5632_s3 + $0x20] ss:$0 sps:$4 sm:$0xff]  }
 0x16e   : > { %3378 = vmatprep.subr.msk.bf16.mxu1 %vm3063_vm5, %v3471_v55 }
 0x170   : > { %v1931_v31 = vpop.permute.xlu0 %1930 }
 0x171   : > { %v2510_v47 = vsel %vm2504_vm10, %v5269_v21, %v1931_v31 }
 0x184   : > { %v2185_v1 = vpop.permute.xlu1 %2184 }
 0x185   : > { %v2521_v62 = vsel %vm2513_vm12, %v2512_v35, %v2185_v1  ;;  %v3472_v35 = vld [vmem:[%s5632_s3 + $0x18] sm:$0xff]  }
 0x198   : > { %v2183_v48 = vpop.permute.xlu0 %2182 }
 0x199   : > { %v2519_v4 = vsel %vm2513_vm12, %v2510_v47, %v2183_v48  ;;  %v3473_v47 = vld [vmem:[%s5632_s3 + $0x10] sm:$0xff]   ;;  %v3474_v48 = vld [vmem:[%s5632_s3 + $0x8] sm:$0xff]  }
 0x19f   : > { %v2309_v38 = vpop.permute.xlu1 %2308 }
 0x1a0   : > { %v2530_v53 = vsel %vm2522_vm13, %v2521_v62, %v2309_v38  ;;  %v3065_v62 = vsel %vm3063_vm5, %v3471_v55, 0  ;;  %v2845_v55 = vld [vmem:[#allocation3 + $0x92] sm:$0xff] }
 0x1a1   : > { %3360 = vmatpush3.bf16.msra.mxu1 %v3065_v62 }
 0x1a2   : > { %3361 = vmatprep.subr.bf16.mxu1 %v3472_v35 }
 0x1a5   : > { %3362 = vmatpush3.bf16.msra.mxu1 %v3472_v35 }
 0x1a6   : > { %v2307_v11 = vpop.permute.xlu0 %2306  ;;  %3363 = vmatprep.subr.bf16.mxu1 %v3473_v47 }
 0x1a7   : > { %v2528_v21 = vsel %vm2522_vm13, %v2519_v4, %v2307_v11 }
 0x1a9   : > { %3364 = vmatpush3.bf16.msra.mxu1 %v3473_v47 }
 0x1aa   : > { %3365 = vmatprep.subr.bf16.mxu1 %v3474_v48 }
 0x1ab   : > { %v2401_v5 = vpop.permute.xlu1 %2400 }
 0x1ac   : > { %v2539_v43 = vsel %vm2531_vm14, %v2530_v53, %v2401_v5 }
 0x1ad   : > { %3366 = vmatpush3.bf16.msra.mxu1 %v3474_v48 }
 0x1b0   : > { %v2399_v27 = vpop.permute.xlu0 %2398 }
 0x1b1   : > { %v2537_v10 = vsel %vm2531_vm14, %v2528_v21, %v2399_v27 }
 0x1c0   : > { %v2443_v41 = vpop.permute.xlu1 %2442 }
 0x1c1   : > { %v2548_v12 = vsel %vm2540_vm15, %v2539_v43, %v2443_v41 }
 0x1c6   : > { %v2441_v16 = vpop.permute.xlu0 %2440 }
 0x1c7   : > { %v2546_v18 = vsel %vm2540_vm15, %v2537_v10, %v2441_v16  ;;  %v3475_v16 = vld [vmem:[%s5632_s3] sm:$0xff]  }
 0x1c8   : > { %3367 = vmatprep.subr.bf16.mxu1 %v3475_v16 }
 0x1c9   : > { %3368 = vmatpush3.bf16.msra.mxu1 %v3475_v16 }
 0x1ca   : > { %v2469_v6 = vpop.permute.xlu1 %2468  ;;  %v2467_v61 = vpop.permute.xlu0 %2466 }
 0x1cb   : > { %v2557_v32 = vsel %vm2549_vm1, %v2548_v12, %v2469_v6  ;;  %v2555_v50 = vsel %vm2549_vm1, %v2546_v18, %v2467_v61 }
 0x1ce   : > { %v2491_v30 = vpop.permute.xlu1 %2490  ;;  %v2489_v29 = vpop.permute.xlu0 %2488 }
 0x1cf   : > { %v2566_v58 = vsel %vm2558_vm2, %v2557_v32, %v2491_v30  ;;  %v2564_v20 = vsel %vm2558_vm2, %v2555_v50, %v2489_v29 }
 0x1d0   : > { %3355 = vmatprep.mubr.msk.bf16.mxu0 %vm2587_vm3, %v2564_v20 }
 0x1d1   : > { %3356 = vmatmul.mubr.msk.bf16.gmra.mxu0 %vm2587_vm3, %v2566_v58 }
 0x226   : > { %v5394_v26 = vpop.f32.mrf.mxu0 }
 0x227   : > { %v2674_v42 = vadd.f32 %v5394_v26, %v5392_v28 }
 0x228   : > { %v5398_v24 = vpop.f32.mrf.mxu0 }
 0x229   : > { %v2682_v0 = vmax.f32 %v2674_v42, 0.0  ;;  %v2672_v44 = vadd.f32 %v5392_v28, %v5398_v24 }
 0x22a   : > { %v5402_v8 = vpop.f32.mrf.mxu0 }
 0x22b   : > { %2735 = vst.msk [vmem:[#allocation3 + $0x31] sm:$0xff] %vm2504_vm10, %v2682_v0  ;;  %v2680_v9 = vmax.f32 %v2672_v44, 0.0  ;;  %v2675_v17 = vadd.f32 %v5402_v8, %v5392_v28 }
 0x22c   : > { %v5407_v19 = vpop.f32.mrf.mxu0 }
 0x22d   : > { %2733 = vst.msk [vmem:[#allocation3 + $0x11] sm:$0xff] %vm2504_vm10, %v2680_v9  ;;  %v2683_v57 = vmax.f32 %v2675_v17, 0.0  ;;  %v2673_v49 = vadd.f32 %v5392_v28, %v5407_v19 }
 0x22f   : > { %2736 = vst.msk [vmem:[#allocation3 + $0x41] sm:$0xff] %vm2504_vm10, %v2683_v57  ;;  %v2681_v51 = vmax.f32 %v2673_v49, 0.0 }
 0x231   : > { %2734 = vst.msk [vmem:[#allocation3 + $0x21] sm:$0xff] %vm2504_vm10, %v2681_v51 }
 0x232   : > { %v2779_v36 = vld [vmem:[#allocation3 + $0x30] sm:$0xff] }
 0x233   : > { %v2791_v23 = vld [vmem:[#allocation3 + $0x31] sm:$0xff] }
 0x234   : > { %v2754_v3 = vld [vmem:[#allocation3 + $0x11] sm:$0xff] }
 0x235   : > { %v2761_v7 = vpack.c.bf16 %v2754_v3, %v2753_v37  ;;  %v2766_v45 = vld [vmem:[#allocation3 + $0x12] sm:$0xff] }
 0x236   : > { %v5414_v2 = vld [vmem:[#allocation3 + $0x40] sm:$0xff]  ;;  %v2773_v25 = vpack.c.bf16 %v2766_v45, %v2765_v39  ;;  %v5423_v59 = vld [vmem:[#allocation3 + $0x10] sm:$0xff] }
 0x237   : > { %2854 = vrot.lane.b32.xlu0 %v2761_v7, %s3546_s20  ;;  %v2786_v13 = vpack.c.bf16 %v5414_v2, %v2779_v36  ;;  %v5418_v14 = vld [vmem:[#allocation3 + $0x41] sm:$0xff]  ;;  %v2803_v56 = vld [vmem:[#allocation3 + $0x32] sm:$0xff] }
 0x238   : > { %v2778_v54 = vld [vmem:[#allocation3 + $0x20] sm:$0xff]  ;;  %v2798_v60 = vpack.c.bf16 %v5418_v14, %v2791_v23 }
 0x239   : > { %2880 = vrot.lane.b32.xlu1 %v2786_v13, %s3543_s17  ;;  %v2804_v15 = vld [vmem:[#allocation3 + $0x42] sm:$0xff]  ;;  %v2785_v46 = vpack.c.bf16 %v2778_v54, %v5423_v59  ;;  %v5439_v31 = vpack.c.bf16 %v2779_v36, %v2778_v54  ;;  %v2821_v13 = vld [vmem:[#allocation3 + $0x90] sm:$0xff] }
 0x23a   : > { %v2790_v40 = vld [vmem:[#allocation3 + $0x21] sm:$0xff]  ;;  %v2810_v34 = vpack.c.bf16 %v2804_v15, %v2803_v56 }
 0x23b   : > { %2866 = vrot.lane.b32.xlu0 %v2773_v25, %s3542_s16  ;;  %v2797_v33 = vpack.c.bf16 %v2790_v40, %v2754_v3  ;;  %v2802_v22 = vld [vmem:[#allocation3 + $0x22] sm:$0xff]  ;;  %v2762_v63 = vpack.c.bf16 %v2791_v23, %v2790_v40  ;;  %v2833_v40 = vld [vmem:[#allocation3 + $0x91] sm:$0xff] }
 0x23c   : > { %v2809_v52 = vpack.c.bf16 %v2802_v22, %v2766_v45  ;;  %v2774_v1 = vpack.c.bf16 %v2803_v56, %v2802_v22  ;;  %v3311_v56 = vld [vmem:[%s5634_s5] ss:$0 sm:$0xff] }
 0x23d   : > { %2892 = vrot.lane.b32.xlu1 %v2798_v60, %s3547_s26 }
 0x23f   : > { %2878 = vrot.lane.b32.xlu0 %v2785_v46, %s3543_s17  ;;  %v2741_v46 = vld [vmem:[#allocation3] sm:$0xff] }
 0x241   : > { %2904 = vrot.lane.b32.xlu1 %v2810_v34, %s3548_s15  ;;  %v2749_v34 = vpack.c.bf16 %v5423_v59, %v2741_v46 }
 0x243   : > { %2890 = vrot.lane.b32.xlu0 %v2797_v33, %s3547_s26 }
 0x245   : > { %2856 = vrot.lane.b32.xlu1 %v2762_v63, %s3546_s20 }
 0x247   : > { %2902 = vrot.lane.b32.xlu0 %v2809_v52, %s3548_s15 }
 0x249   : > { %2868 = vrot.lane.b32.xlu1 %v2774_v1, %s3542_s16 }
 0x24b   : > { %2914 = vrot.lane.b32.xlu0 %v5439_v31, %s3549_s11 }
 0x24f   : > { %2926 = vrot.lane.b32.xlu0 %v2762_v63, %s3550_s14 }
 0x253   : > { %2938 = vrot.lane.b32.xlu0 %v2774_v1, %s3551_s18 }
 0x291   : > { %v5451_v4 = vpop.f32.mrf.mxu0 }
 0x292   : > { %v2678_v38 = vadd.f32 %v5451_v4, %v5392_v28 }
 0x293   : > { %v5455_v11 = vpop.f32.mrf.mxu0 }
 0x294   : > { %v2686_v5 = vmax.f32 %v2678_v38, 0.0  ;;  %v2676_v27 = vadd.f32 %v5392_v28, %v5455_v11 }
 0x295   : > { %v5459_v41 = vpop.f32.mrf.mxu0 }
 0x296   : > { %2739 = vst.msk [vmem:[#allocation3 + $0x71] sm:$0xff] %vm2504_vm10, %v2686_v5  ;;  %v2684_v6 = vmax.f32 %v2676_v27, 0.0  ;;  %v2679_v61 = vadd.f32 %v5459_v41, %v5392_v28 }
 0x297   : > { %v5467_v53 = vpop.f32.mrf.mxu0 }
 0x298   : > { %2737 = vst.msk [vmem:[#allocation3 + $0x51] sm:$0xff] %vm2504_vm10, %v2684_v6  ;;  %v2687_v21 = vmax.f32 %v2679_v61, 0.0  ;;  %v2677_v43 = vadd.f32 %v5392_v28, %v5467_v53 }
 0x29a   : > { %2740 = vst.msk [vmem:[#allocation3 + $0x81] sm:$0xff] %vm2504_vm10, %v2687_v21  ;;  %v2685_v10 = vmax.f32 %v2677_v43, 0.0 }
 0x29c   : > { %2738 = vst.msk [vmem:[#allocation3 + $0x61] sm:$0xff] %vm2504_vm10, %v2685_v10 }
 0x29d   : > { %v2783_v0 = vld [vmem:[#allocation3 + $0x70] sm:$0xff] }
 0x29e   : > { %v2795_v51 = vld [vmem:[#allocation3 + $0x71] sm:$0xff] }
 0x29f   : > { %v2817_v12 = vld [vmem:[#allocation3 + $0x50] sm:$0xff] }
 0x2a0   : > { %v2841_v18 = vld [vmem:[#allocation3 + $0x52] sm:$0xff]  ;;  %v5475_v32 = vpack.c.bf16 %v2817_v12, %v5414_v2 }
 0x2a1   : > { %v2847_v50 = vpack.c.bf16 %v2841_v18, %v2804_v15  ;;  %v2829_v30 = vld [vmem:[#allocation3 + $0x51] sm:$0xff]  ;;  %v2784_v28 = vld [vmem:[#allocation3 + $0x80] sm:$0xff] }
 0x2a2   : > { %2916 = vrot.lane.b32.xlu1 %v5475_v32, %s3549_s11  ;;  %v2835_v29 = vpack.c.bf16 %v2829_v30, %v5418_v14  ;;  %v2788_v44 = vpack.c.bf16 %v2784_v28, %v2783_v0  ;;  %v2796_v17 = vld [vmem:[#allocation3 + $0x81] sm:$0xff]  ;;  %v2807_v36 = vld [vmem:[#allocation3 + $0x72] sm:$0xff]  ;;  %v2825_v25 = vpack.c.bf16 %v2821_v13, %v2784_v28 }
 0x2a3   : > { %2940 = vrot.lane.b32.xlu0 %v2847_v50, %s3551_s18  ;;  %v2782_v58 = vld [vmem:[#allocation3 + $0x60] sm:$0xff]  ;;  %v2800_v37 = vpack.c.bf16 %v2796_v17, %v2795_v51  ;;  %v2837_v63 = vpack.c.bf16 %v2833_v40, %v2796_v17 }
 0x2a4   : > { %v2787_v20 = vpack.c.bf16 %v2782_v58, %v2817_v12  ;;  %v2794_v42 = vld [vmem:[#allocation3 + $0x61] sm:$0xff]  ;;  %v5489_v45 = vpack.c.bf16 %v2783_v0, %v2782_v58 }
 0x2a5   : > { %v2799_v9 = vpack.c.bf16 %v2794_v42, %v2829_v30  ;;  %v2806_v57 = vld [vmem:[#allocation3 + $0x62] sm:$0xff]  ;;  %v2764_v23 = vpack.c.bf16 %v2795_v51, %v2794_v42 }
 0x2a6   : > { %2928 = vrot.lane.b32.xlu1 %v2835_v29, %s3550_s14  ;;  %v2811_v3 = vpack.c.bf16 %v2806_v57, %v2841_v18  ;;  %v2808_v7 = vld [vmem:[#allocation3 + $0x82] sm:$0xff]  ;;  %v2776_v60 = vpack.c.bf16 %v2807_v36, %v2806_v57 }
 0x2a7   : > { %2870 = vrot.lane.b32.xlu0 %v2847_v50, %s3542_s16  ;;  %v2812_v2 = vpack.c.bf16 %v2808_v7, %v2807_v36  ;;  %v2849_v47 = vpack.c.bf16 %v2845_v55, %v2808_v7 }
 0x2a9   : > { %v2855_v49 = vpop.permute.xlu0 %2854 }
 0x2aa   : > { %2858 = vrot.lane.b32.xlu1 %v2835_v29, %s3546_s20  ;;  %v2948_v22 = vsel %vm2504_vm10, %v2749_v34, %v2855_v49 }
 0x2ab   : > { %2882 = vrot.lane.b32.xlu0 %v2787_v20, %s3543_s17  ;;  %v2881_v16 = vpop.permute.xlu1 %2880 }
 0x2ad   : > { %v2867_v39 = vpop.permute.xlu0 %2866 }
 0x2ae   : > { %2884 = vrot.lane.b32.xlu1 %v2788_v44, %s3543_s17  ;;  %v2959_v52 = vsel %vm2522_vm13, %v2948_v22, %v2867_v39  ;;  %s3553_s17 = smov [#allocation4]  }
 0x2af   : > { %2894 = vrot.lane.b32.xlu0 %v2799_v9, %s3547_s26  ;;  %v2893_v6 = vpop.permute.xlu1 %2892 }
 0x2b1   : > { %v2879_v14 = vpop.permute.xlu0 %2878 }
 0x2b2   : > { %2896 = vrot.lane.b32.xlu1 %v2800_v37, %s3547_s26  ;;  %v2967_v35 = vsel %vm2540_vm15, %v2959_v52, %v2879_v14  ;;  %s3480_s26 = sshll.u32 %s3553_s17, 4  ;;  %s3481_s26 = int_to_ptr.vmem [resolvable:$false] %s3480_s26 }
 0x2b3   : > { %2906 = vrot.lane.b32.xlu0 %v2811_v3, %s3548_s15  ;;  %v2905_v61 = vpop.permute.xlu1 %2904 }
 0x2b5   : > { %v2891_v54 = vpop.permute.xlu0 %2890 }
 0x2b6   : > { %2908 = vrot.lane.b32.xlu1 %v2812_v2, %s3548_s15  ;;  %v2975_v59 = vsel %vm2558_vm2, %v2967_v35, %v2891_v54  ;;  %s242_s15 = sand.u32 1, %s3528_s22  }
 0x2b7   : > { %2918 = vrot.lane.b32.xlu0 %v5489_v45, %s3549_s11  ;;  %v2857_v21 = vpop.permute.xlu1 %2856  ;;  %s3283_s10 = sshll.u32 %s242_s15, 6  ;;  %s5588_s25 = scalar_lea.sflag [#allocation5], %s242_s15 }
 0x2b8   : > { %v2951_v10 = vsel %vm2504_vm10, %v5439_v31, %v2857_v21 }
 0x2b9   : > { %v2903_v15 = vpop.permute.xlu0 %2902 }
 0x2ba   : > { %2920 = vrot.lane.b32.xlu1 %v2825_v25, %s3549_s11  ;;  %v2984_v62 = vsel %vm2982_vm6, %v2975_v59, %v2903_v15  ;;  %s5559_s11 = scalar_lea.vmem [#allocation4], %s3283_s10 }
 0x2bb   : > { %2930 = vrot.lane.b32.xlu0 %v2764_v23, %s3550_s14  ;;  %v2869_v43 = vpop.permute.xlu1 %2868  ;;  %s3217_s13 = sshll.u32 %s5559_s11, 4  ;;  %s5582_s13 = int_to_ptr.vmem [resolvable:$true] %s3217_s13 }
 0x2bc   : > { %v2961_v12 = vsel %vm2522_vm13, %v2951_v10, %v2869_v43  ;;  %s3476_s28 = scalar_lea.vmem %s5582_s13, 1024  ;;  %p3483_p0 = scmp.lt.s32.totalorder %s5582_s13, %s3481_s26 }
 0x2bd   : > { %v2915_v33 = vpop.permute.xlu0 %2914  ;;  %v2969_v18 = vsel %vm2540_vm15, %v2961_v12, %v2881_v16  ;;  %p3477_p11 = scmp.ne.s32.totalorder %s5582_s13, %s3476_s28 }
 0x2be   : > { %2860 = vrot.lane.b32.xlu1 %v2764_v23, %s3546_s20  ;;  %v2993_v48 = vsel %vm2991_vm7, %v2984_v62, %v2915_v33  ;;  %v2977_v50 = vsel %vm2558_vm2, %v2969_v18, %v2893_v6 }
 0x2bf   : > { %2942 = vrot.lane.b32.xlu0 %v2776_v60, %s3551_s18  ;;  %v2986_v58 = vsel %vm2982_vm6, %v2977_v50, %v2905_v61  ;;  %p3478_p12 = pnand %p3477_p11, %p3628_p5 }
 0x2c1   : > { %v2927_v1 = vpop.permute.xlu0 %2926  ;;  %p3479_p13 = pneg %p3478_p12 }
 0x2c2   : > { %2872 = vrot.lane.b32.xlu1 %v2776_v60, %s3542_s16  ;;  %v3002_v38 = vsel %vm3000_vm8, %v2993_v48, %v2927_v1  ;;  %s3552_s16 = smov 120  }
 0x2c3   : > { %2694 = vrot.lane.b32.xlu0 %v3311_v56, %s3546_s20 }
 0x2c5   : > { %v2939_v5 = vpop.permute.xlu0 %2938 }
 0x2c6   : > { %2932 = vrot.lane.b32.xlu1 %v2837_v63, %s3550_s14  ;;  %v3011_v27 = vsel %vm3009_vm9, %v3002_v38, %v2939_v5  ;;  %v3321_v5 = vld [vmem:[%s5633_s4] ss:$0 sm:$0xff] }
 0x2c7   : > { %3369 = vmatprep.mubr.msk.bf16.mxu1 %vm3054_vm11, %v3011_v27 }
 0x2ca   : > { %2944 = vrot.lane.b32.xlu1 %v2849_v47, %s3551_s18 }
 0x314   : > { %v2917_v30 = vpop.permute.xlu1 %2916 }
 0x315   : > { %v2941_v29 = vpop.permute.xlu0 %2940  ;;  %v2995_v20 = vsel %vm2991_vm7, %v2986_v58, %v2917_v30 }
 0x318   : > { %v2929_v28 = vpop.permute.xlu1 %2928 }
 0x319   : > { %v2871_v42 = vpop.permute.xlu0 %2870  ;;  %v3004_v0 = vsel %vm3000_vm8, %v2995_v20, %v2929_v28 }
 0x31a   : > { %v3013_v44 = vsel %vm3009_vm9, %v3004_v0, %v2941_v29 }
 0x31b   : > { %3370 = vmatmul.mubr.msk.bf16.vlgmr.msra.gmra.mxu1 %vm3054_vm11, %v3013_v44 }
 0x31c   : > { %v2859_v31 = vpop.permute.xlu1 %2858 }
 0x31d   : > { %v2883_v9 = vpop.permute.xlu0 %2882  ;;  %v2954_v37 = vsel %vm2504_vm10, %v5475_v32, %v2859_v31 }
 0x31e   : > { %v2963_v39 = vsel %vm2522_vm13, %v2954_v37, %v2871_v42 }
 0x31f   : > { %v2971_v36 = vsel %vm2540_vm15, %v2963_v39, %v2883_v9 }
 0x320   : > { %v2885_v17 = vpop.permute.xlu1 %2884 }
 0x321   : > { %v2895_v57 = vpop.permute.xlu0 %2894 }
 0x322   : > { %v2979_v14 = vsel %vm2558_vm2, %v2971_v36, %v2895_v57 }
 0x324   : > { %v2897_v49 = vpop.permute.xlu1 %2896 }
 0x325   : > { %v2907_v51 = vpop.permute.xlu0 %2906 }
 0x326   : > { %v2988_v25 = vsel %vm2982_vm6, %v2979_v14, %v2907_v51 }
 0x328   : > { %v2909_v3 = vpop.permute.xlu1 %2908 }
 0x329   : > { %v2919_v7 = vpop.permute.xlu0 %2918 }
 0x32a   : > { %v2997_v23 = vsel %vm2991_vm7, %v2988_v25, %v2919_v7 }
 0x32c   : > { %v2921_v2 = vpop.permute.xlu1 %2920 }
 0x32d   : > { %v2931_v13 = vpop.permute.xlu0 %2930 }
 0x32e   : > { %v3006_v60 = vsel %vm3000_vm8, %v2997_v23, %v2931_v13 }
 0x330   : > { %v2861_v54 = vpop.permute.xlu1 %2860 }
 0x331   : > { %v2943_v15 = vpop.permute.xlu0 %2942  ;;  %v2957_v46 = vsel %vm2504_vm10, %v5489_v45, %v2861_v54 }
 0x332   : > { %v3015_v32 = vsel %vm3009_vm9, %v3006_v60, %v2943_v15 }
 0x333   : > { %3373 = vmatprep.mubr.msk.bf16.mxu1 %vm3054_vm11, %v3015_v32 }
 0x334   : > { %v2873_v56 = vpop.permute.xlu1 %2872 }
 0x335   : > { %v2695_v40 = vpop.permute.xlu0 %2694  ;;  %v2965_v34 = vsel %vm2522_vm13, %v2957_v46, %v2873_v56 }
 0x336   : > { %v2698_v33 = vadd.f32 %v2695_v40, %v5407_v19  ;;  %v2697_v22 = vadd.f32 %v2695_v40, %v5398_v24  ;;  %v2973_v63 = vsel %vm2540_vm15, %v2965_v34, %v2885_v17  ;;  %v2700_v1 = vadd.f32 %v5402_v8, %v2695_v40 }
 0x337   : > { %v2981_v52 = vsel %vm2558_vm2, %v2973_v63, %v2897_v49  ;;  %v2699_v59 = vadd.f32 %v5394_v26, %v2695_v40  ;;  %v2702_v47 = vadd.f32 %v2695_v40, %v5467_v53  ;;  %v2701_v48 = vadd.f32 %v2695_v40, %v5455_v11 }
 0x338   : > { %3157 = vrot.lane.b32.xlu0 %v2698_v33, %s3552_s16  ;;  %3155 = vrot.lane.b32.xlu1 %v2697_v22, %s3552_s16  ;;  %v2933_v55 = vpop.permute.xlu1 %2932  ;;  %v2990_v35 = vsel %vm2982_vm6, %v2981_v52, %v2909_v3  ;;  %v2704_v8 = vadd.f32 %v5459_v41, %v2695_v40  ;;  %v2703_v26 = vadd.f32 %v5451_v4, %v2695_v40 }
 0x339   : > { %v2999_v45 = vsel %vm2991_vm7, %v2990_v35, %v2921_v2 }
 0x33a   : > { %v3008_v24 = vsel %vm3000_vm8, %v2999_v45, %v2933_v55 }
 0x33c   : > { %3161 = vrot.lane.b32.xlu0 %v2700_v1, %s3552_s16  ;;  %3159 = vrot.lane.b32.xlu1 %v2699_v59, %s3552_s16  ;;  %v2945_v19 = vpop.permute.xlu1 %2944 }
 0x33d   : > { %v3017_v62 = vsel %vm3009_vm9, %v3008_v24, %v2945_v19 }
 0x33e   : > { %3374 = vmatmul.mubr.msk.bf16.gmra.mxu1 %vm3054_vm11, %v3017_v62 }
 0x340   : > { %3165 = vrot.lane.b32.xlu0 %v2702_v47, %s3552_s16  ;;  %3163 = vrot.lane.b32.xlu1 %v2701_v48, %s3552_s16 }
 0x344   : > { %3169 = vrot.lane.b32.xlu0 %v2704_v8, %s3552_s16  ;;  %3167 = vrot.lane.b32.xlu1 %v2703_v26, %s3552_s16  ;;  %s3482_s16 = scalar_lea.vmem %s3481_s26, 2048 }
 0x345   : > { %p3484_p1 = scmp.lt.s32.totalorder %s3482_s16, %s3476_s28 }
 0x347   : > { %p3485_p2 = por %p3484_p1, %p3483_p0 }
 0x349   : > { %p3486_p3 = pnand %p3485_p2, %p3479_p13 }
 0x3aa   : > { %v3156_v38 = vpop.permute.xlu1 %3155  ;;  %v3158_v27 = vpop.permute.xlu0 %3157 }
 0x3ae   : > { %v3160_v16 = vpop.permute.xlu1 %3159  ;;  %v3162_v12 = vpop.permute.xlu0 %3161 }
 0x3b2   : > { %v3164_v42 = vpop.permute.xlu1 %3163  ;;  %v3166_v0 = vpop.permute.xlu0 %3165 }
 0x3b6   : > { %v3168_v9 = vpop.permute.xlu1 %3167  ;;  %v3170_v39 = vpop.permute.xlu0 %3169 }
 0x3db   : > { %v3371_v53 = vpop.f32.mrf.mxu1 }
 0x3dc   : > { %v3141_v11 = vadd.f32 %v3371_v53, %v3321_v5 }
 0x3dd   : > { %v3101_v6 = vpop.f32.mrf.mxu1 }
 0x3de   : > { %v3181_v61 = vadd.f32 %v3160_v16, %v3141_v11  ;;  %v3139_v21 = vadd.f32 %v3321_v5, %v3101_v6 }
 0x3df   : > { %v3372_v41 = vpop.f32.mrf.mxu1 }
 0x3e0   : > { %v3189_v43 = vmax.f32 %v3181_v61, 0.0  ;;  %v3179_v4 = vadd.f32 %v3156_v38, %v3139_v21  ;;  %v3142_v10 = vadd.f32 %v3372_v41, %v3321_v5 }
 0x3e1   : > { %v3104_v18 = vpop.f32.mrf.mxu1 }
 0x3e2   : > { %3197 = vst.msk [vmem:[%s5559_s11 + $0x10] sm:$0xff] %vm2504_vm10, %v3189_v43  ;;  %v3187_v50 = vmax.f32 %v3179_v4, 0.0  ;;  %v3182_v30 = vadd.f32 %v3162_v12, %v3142_v10  ;;  %v3140_v29 = vadd.f32 %v3321_v5, %v3104_v18 }
 0x3e4   : > { %3195 = vst.msk [vmem:[%s5559_s11] sm:$0xff] %vm2504_vm10, %v3187_v50  ;;  %v3190_v58 = vmax.f32 %v3182_v30, 0.0  ;;  %v3180_v20 = vadd.f32 %v3158_v27, %v3140_v29 }
 0x3e6   : > { %3198 = vst.msk [vmem:[%s5559_s11 + $0x18] sm:$0xff] %vm2504_vm10, %v3190_v58  ;;  %v3188_v28 = vmax.f32 %v3180_v20, 0.0 }
 0x3e8   : > { %3196 = vst.msk [vmem:[%s5559_s11 + $0x8] sm:$0xff] %vm2504_vm10, %v3188_v28 }
 0x3fe   : > { %v3375_v44 = vpop.f32.mrf.mxu1 }
 0x3ff   : > { %v3145_v31 = vadd.f32 %v3375_v44, %v3321_v5 }
 0x400   : > { %v3117_v17 = vpop.f32.mrf.mxu1 }
 0x401   : > { %v3185_v57 = vadd.f32 %v3168_v9, %v3145_v31  ;;  %v3143_v49 = vadd.f32 %v3321_v5, %v3117_v17 }
 0x402   : > { %v3376_v51 = vpop.f32.mrf.mxu1 }
 0x403   : > { %v3193_v37 = vmax.f32 %v3185_v57, 0.0  ;;  %v3183_v3 = vadd.f32 %v3164_v42, %v3143_v49  ;;  %v3146_v7 = vadd.f32 %v3376_v51, %v3321_v5 }
 0x404   : > { %v3120_v36 = vpop.f32.mrf.mxu1 }
 0x405   : > { %3201 = vst.msk [vmem:[%s5559_s11 + $0x30] sm:$0xff] %vm2504_vm10, %v3193_v37  ;;  %v3191_v2 = vmax.f32 %v3183_v3, 0.0  ;;  %v3186_v13 = vadd.f32 %v3170_v39, %v3146_v7  ;;  %v3144_v14 = vadd.f32 %v3321_v5, %v3120_v36 }
 0x407   : > { %3199 = vst.msk [vmem:[%s5559_s11 + $0x20] sm:$0xff] %vm2504_vm10, %v3191_v2  ;;  %v3194_v25 = vmax.f32 %v3186_v13, 0.0  ;;  %v3184_v23 = vadd.f32 %v3166_v0, %v3144_v14 }
 0x409   : > { %3202 = vst.msk [vmem:[%s5559_s11 + $0x38] sm:$0xff] %vm2504_vm10, %v3194_v25  ;;  %v3192_v54 = vmax.f32 %v3184_v23, 0.0 }
 0x40b   : > { %3200 = vst.msk [vmem:[%s5559_s11 + $0x28] sm:$0xff] %vm2504_vm10, %v3192_v54 }
 0x40c   : > { %3489 = shalt.err (!%p3486_p3)
}
 0x40d   : > { %s3490_s15 = scalar_lea.hbm %s5578_s19, 1024  ;;  %s3494_s10 = scalar_lea.hbm %s5635_s6, 2048 }
 0x40e   : > { %p3491_p4 = scmp.ne.s32.totalorder %s5578_s19, %s3490_s15  ;;  %p3495_p9 = scmp.lt.s32.totalorder %s5578_s19, %s5635_s6 }
 0x40f   : > { %p3496_p10 = scmp.lt.s32.totalorder %s3494_s10, %s3490_s15 }
 0x410   : > { %p3492_p7 = pnand %p3491_p4, %p3628_p5 }
 0x411   : > { %p3497_p11 = por %p3496_p10, %p3495_p9 }
 0x412   : > { %p3493_p8 = pneg %p3492_p7 }
 0x414   : > { %p3498_p12 = pnand %p3497_p11, %p3493_p8 }
 0x416   : > { %3501 = shalt.err (!%p3498_p12)
}
 0x417   : > { %s3554_s14 = smov 128  }
 0x418   : > { %3379 = dma.vmem_to_hbm [thread:$0]  (%p3628_p5), %s5582_s13, 1024, %s5578_s19, %s5588_s25, %s3554_s14, %s3554_s14, %s3546_s20  }
 0x419 PF: > { %p3385_p13 = scmp.ge.s32.totalorder %s3536_s24, 2  ;;  %s3232_s18 = sand.u32 1, %s3524_s21  }
 0x41a   : > { %s3233_s28 = scalar_lea.sflag [#allocation5], %s3232_s18 }
 0x41b   : > { %p3382_p0 = pnand %p3385_p13, %p3632_p6 }
 0x41d   : > { %p3383_p1 = pneg %p3382_p0 }
 0x41f   : > { %3519 = dma.done.wait (%p3383_p1), %s3233_s28, 1024  }
 0x420   : > { %3521 = vsyncadd (%p3383_p1), %s3233_s28, 4294966272  ;;  %p16_p2 = scmp.ge.s32.totalorder %s3615_s27, 4   ;;  %s6012_s21 = smov %s3528_s22 }
 0x421   : > { %s6013_s22 = smov %s3532_s23  ;;  %s6014_s23 = smov %s3626_s30 }
 0x422   : > { %s6015_s24 = smov %s3615_s27  ;;  %18 = sbr.rel (!%p16_p2) target bundleno = 3 (0x3), region = 84 }
 0x427   :  { %3238 = vsyncpa [#allocation5], 1 }
 0x428   :  { %3240 = vsyncpa [#allocation5 + $0x1], 1 }

</bundles_post_ra>
